<compile_context>
chip_gen: v5e
topology: v5e:2x2
jax: 0.10.0
libtpu: 0.0.40
codegen_flags: <defaults>
</compile_context>

<pallas_src>
import functools

import jax
import jax.numpy as jnp
from jax.experimental import pallas as pl
from jax.experimental.pallas import tpu as pltpu

BN_EPS = 1e-5        # nn.BatchNorm2d default
LANES = 128


def _round_up(x, m):
    return (x + m - 1) // m * m


def _is_pow2(m):
    return m > 0 and (m & (m - 1)) == 0


def _mod(x, m):
    # Cheap vector modulo; only the power-of-two branch is exercised here.
    if _is_pow2(m):
        return jnp.bitwise_and(x, m - 1)
    return jax.lax.rem(x, jnp.int32(m))   # TODO(synk): non-pow2 row pitches


def _fdiv(x, m):
    if _is_pow2(m):
        return jnp.right_shift(x, m.bit_length() - 1)
    return jax.lax.div(x, jnp.int32(m))


# ---------------------------------------------------------------------------
# in-kernel building blocks
# ---------------------------------------------------------------------------
def _conv3x3(src_ref, w_ref, row_pitch, out_rows):
    """3x3 VALID conv as 9 shifted-window MXU matmuls (in-kernel im2col)."""
    acc = None
    for ki in range(3):
        for kj in range(3):
            xs = src_ref[pl.ds(ki * row_pitch + kj, out_rows), :]
            part = jnp.dot(xs, w_ref[ki * 3 + kj],
                           preferred_element_type=jnp.float32)
            acc = part if acc is None else acc + part
    return acc


def _bn_valid_mask(rows, n_imgs, img_pitch, row_pitch, h_pitch, out_h, out_w):
    """0/1 mask of conv rows that are real (n<N, oh<OH, ow<OW), iota-generated
    in-kernel (replaces the old (rows,1) f32 mask input)."""
    p = jax.lax.broadcasted_iota(jnp.int32, (rows, 1), 0)
    ow = _mod(p, row_pitch)
    oh = _mod(_fdiv(p, row_pitch), h_pitch)
    valid = (p < n_imgs * img_pitch) & (ow < out_w) & (oh < out_h)
    return valid.astype(jnp.float32)


def _bn_relu(acc, mask, gamma, beta, inv_count):
    """Training-mode BatchNorm (two-pass masked batch stats) + ReLU.
    The conv bias is omitted upstream: it is cancelled exactly by the
    batch-mean subtraction."""
    mu = jnp.sum(acc * mask, axis=0, keepdims=True) * inv_count
    d = (acc - mu) * mask
    var = jnp.sum(d * d, axis=0, keepdims=True) * inv_count   # biased variance
    scale = gamma * jax.lax.rsqrt(var + BN_EPS)
    shift = beta - mu * scale
    return jnp.maximum(acc * scale + shift, 0.0)


def _pool2x2_compact(src_ref, dst_ref, *, n_imgs, src_img_pitch, src_row_pitch,
                     dst_img_pitch, dst_row_pitch, out_h, out_w):
    """MaxPool2d(2,2) that writes only the compacted pooled rows.
    Stride-2 sublane reads pull the 4 window phases per (image, pooled-row)
    group; the max lands directly at the destination layout."""
    for n in range(n_imgs):
        for ph in range(out_h):
            s = n * src_img_pitch + 2 * ph * src_row_pitch
            d = n * dst_img_pitch + ph * dst_row_pitch
            p00 = src_ref[pl.ds(s, out_w, stride=2), :]
            p01 = src_ref[pl.ds(s + 1, out_w, stride=2), :]
            p10 = src_ref[pl.ds(s + src_row_pitch, out_w, stride=2), :]
            p11 = src_ref[pl.ds(s + src_row_pitch + 1, out_w, stride=2), :]
            dst_ref[pl.ds(d, out_w), :] = jnp.maximum(
                jnp.maximum(p00, p01), jnp.maximum(p10, p11))


# ---------------------------------------------------------------------------
# Fused two-layer kernel
# ---------------------------------------------------------------------------
def _fused_kernel(x_ref, w1_ref, g1_ref, b1_ref, w2_ref, g2_ref, b2_ref,
                  o_ref, y1_ref, x2_ref, y2_ref, *,
                  N, H1, W1, IMG1, OH1, OW1, PH1, PW1, P1_y, C1_p,
                  H2p, W2p, IMG2, OH2, OW2, PH2, PW2, P2_y, inv1, inv2):
    # ---- layer 1: conv3x3 -> BN(train) -> ReLU ------------------------------
    acc1 = _conv3x3(x_ref, w1_ref, W1, P1_y)[:, :C1_p]        # (P1_y, C1_p)
    mask1 = _bn_valid_mask(P1_y, N, IMG1, W1, H1, OH1, OW1)
    y1_ref[...] = _bn_relu(acc1, mask1, g1_ref[...], b1_ref[...], inv1)

    # ---- MaxPool(2,2), compacted straight into layer-2's input layout -------
    x2_ref[...] = jnp.zeros_like(x2_ref)      # zero the padded pitch/rows once
    _pool2x2_compact(y1_ref, x2_ref, n_imgs=N,
                     src_img_pitch=IMG1, src_row_pitch=W1,
                     dst_img_pitch=IMG2, dst_row_pitch=W2p,
                     out_h=PH1, out_w=PW1)

    # ---- layer 2: conv3x3 -> BN(train) -> ReLU ------------------------------
    acc2 = _conv3x3(x2_ref, w2_ref, W2p, P2_y)                # (P2_y, 128)
    mask2 = _bn_valid_mask(P2_y, N, IMG2, W2p, H2p, OH2, OW2)
    y2_ref[...] = _bn_relu(acc2, mask2, g2_ref[...], b2_ref[...], inv2)

    # ---- MaxPool(2,2), compacted straight into the (N*PH2*PW2, 128) output --
    _pool2x2_compact(y2_ref, o_ref, n_imgs=N,
                     src_img_pitch=IMG2, src_row_pitch=W2p,
                     dst_img_pitch=PH2 * PW2, dst_row_pitch=PW2,
                     out_h=PH2, out_w=PW2)


# ---------------------------------------------------------------------------
# Wrapper (NHWC in / pooled NHWC out) — one pallas_call for both layers
# ---------------------------------------------------------------------------
def fused_two_layer_forward(x_nhwc, w1, g1, be1, w2, g2, be2):
    N, H1, W1, Cin = x_nhwc.shape
    C1 = w1.shape[0]
    C2 = w2.shape[0]
    OH1, OW1 = H1 - 2, W1 - 2
    PH1, PW1 = OH1 // 2, OW1 // 2
    H2, W2 = PH1, PW1
    OH2, OW2 = H2 - 2, W2 - 2
    PH2, PW2 = OH2 // 2, OW2 // 2
    assert OH2 >= 2 and OW2 >= 2, "board too small for two pooled conv layers"

    Cin_p = _round_up(Cin, 8)
    C1_p = _round_up(C1, 8)
    IMG1 = H1 * W1
    # Layer-2 input pitch: multiple of 8 (aligned conv-tap starts) and a power
    # of two (shift/and BN mask).
    W2p = max(8, pl.next_power_of_2(W2))
    H2p = pl.next_power_of_2(H2)
    IMG2 = H2p * W2p

    # conv-row / input-row extents (flattened, padded to sublane multiples)
    P1_y = _round_up((N - 1) * IMG1 + (OH1 - 1) * W1 + OW1, 8)
    X_rows = _round_up(P1_y + 2 * W1 + 2, 8)
    P2_y = _round_up((N - 1) * IMG2 + (OH2 - 1) * W2p + OW2, 8)
    X2_rows = _round_up(P2_y + 2 * W2p + 2, 8)
    O_rows = _round_up(N * PH2 * PW2, 8)

    # ---- operand packing (lane-dense / sublane-aligned) ---------------------
    x2d = x_nhwc.reshape(N * H1 * W1, Cin)
    x2d = jnp.pad(x2d, ((0, X_rows - N * H1 * W1), (0, Cin_p - Cin)))

    w1_k = jnp.transpose(w1, (2, 3, 1, 0)).reshape(9, Cin, C1)
    w1_k = jnp.pad(w1_k, ((0, 0), (0, Cin_p - Cin), (0, LANES - C1)))
    g1_p = jnp.pad(g1.reshape(1, C1), ((0, 0), (0, C1_p - C1)))
    b1_p = jnp.pad(be1.reshape(1, C1), ((0, 0), (0, C1_p - C1)))

    w2_k = jnp.transpose(w2, (2, 3, 1, 0)).reshape(9, C1, C2)
    w2_k = jnp.pad(w2_k, ((0, 0), (0, C1_p - C1), (0, LANES - C2)))
    g2_p = jnp.pad(g2.reshape(1, C2), ((0, 0), (0, LANES - C2)))
    b2_p = jnp.pad(be2.reshape(1, C2), ((0, 0), (0, LANES - C2)))

    kernel = functools.partial(
        _fused_kernel,
        N=N, H1=H1, W1=W1, IMG1=IMG1, OH1=OH1, OW1=OW1, PH1=PH1, PW1=PW1,
        P1_y=P1_y, C1_p=C1_p,
        H2p=H2p, W2p=W2p, IMG2=IMG2, OH2=OH2, OW2=OW2, PH2=PH2, PW2=PW2,
        P2_y=P2_y,
        inv1=1.0 / (N * OH1 * OW1), inv2=1.0 / (N * OH2 * OW2))

    out = pl.pallas_call(
        kernel,
        out_shape=jax.ShapeDtypeStruct((O_rows, LANES), jnp.float32),
        grid=(1,),                                  # whole network fits in VMEM
        in_specs=[
            pl.BlockSpec((X_rows, Cin_p), lambda i: (0, 0)),
            pl.BlockSpec((9, Cin_p, LANES), lambda i: (0, 0, 0)),
            pl.BlockSpec((1, C1_p), lambda i: (0, 0)),
            pl.BlockSpec((1, C1_p), lambda i: (0, 0)),
            pl.BlockSpec((9, C1_p, LANES), lambda i: (0, 0, 0)),
            pl.BlockSpec((1, LANES), lambda i: (0, 0)),
            pl.BlockSpec((1, LANES), lambda i: (0, 0)),
        ],
        out_specs=pl.BlockSpec((O_rows, LANES), lambda i: (0, 0)),
        scratch_shapes=[
            pltpu.VMEM((P1_y, C1_p), jnp.float32),     # layer-1 ReLU activations
            pltpu.VMEM((X2_rows, C1_p), jnp.float32),  # layer-2 input (pooled l1)
            pltpu.VMEM((P2_y, LANES), jnp.float32),    # layer-2 ReLU activations
        ],
        compiler_params=pltpu.CompilerParams(
            dimension_semantics=("arbitrary",)),
    )(x2d, w1_k, g1_p, b1_p, w2_k, g2_p, b2_p)

    out = out[:N * PH2 * PW2].reshape(N, PH2, PW2, LANES)[..., :C2]
    return out                                       # pooled NHWC


# ---------------------------------------------------------------------------
# Network forward (NCHW <-> NHWC only at the boundaries)
# ---------------------------------------------------------------------------
def cnn_minesweeper_forward(x_nchw, params):
    x = jnp.transpose(x_nchw, (0, 2, 3, 1))            # NCHW -> NHWC once
    w1, _b1, g1, be1 = params["l1"]                    # conv bias is dead under
    w2, _b2, g2, be2 = params["l2"]                    # training-mode BN
    y = fused_two_layer_forward(x, w1, g1, be1, w2, g2, be2)
    # TODO(synk): layer3 = Conv2d(9, 64) cannot be applied: layer2 outputs 64
    # channels, so the original PyTorch forward raises a channel-mismatch
    # RuntimeError there (and its forward has no return statement); we return
    # the layer-2 activations instead.
    return jnp.transpose(y, (0, 3, 1, 2))              # NHWC -> NCHW once


# ---------------------------------------------------------------------------
# Parameters
# ---------------------------------------------------------------------------
def init_params(key):
    ks = jax.random.split(key, 6)

    def conv_p(k, cout, cin):
        k1, k2 = jax.random.split(k)
        w = 0.1 * jax.random.normal(k1, (cout, cin, 3, 3), jnp.float32)
        b = 0.1 * jax.random.normal(k2, (cout,), jnp.float32)
        return w, b

    def bn_p(k, c):
        k1, k2 = jax.random.split(k)
        g = 1.0 + 0.1 * jax.random.normal(k1, (c,), jnp.float32)
        be = 0.1 * jax.random.normal(k2, (c,), jnp.float32)
        return g, be

    return {
        "l1": conv_p(ks[0], 9, 1) + bn_p(ks[1], 9),
        "l2": conv_p(ks[2], 64, 9) + bn_p(ks[3], 64),
        "l3": conv_p(ks[4], 64, 9) + bn_p(ks[5], 64),   # defined; unusable (TODO above)
    }


# ---------------------------------------------------------------------------
# Pure-JAX reference (correctness check only; keeps the conv bias)
# ---------------------------------------------------------------------------
def reference_layer(x_nchw, w, b, gamma, beta):
    y = jax.lax.conv_general_dilated(
        x_nchw, w, (1, 1), "VALID",
        dimension_numbers=("NCHW", "OIHW", "NCHW"))
    y = y + b.reshape(1, -1, 1, 1)
    mu = jnp.mean(y, axis=(0, 2, 3), keepdims=True)
    var = jnp.mean((y - mu) ** 2, axis=(0, 2, 3), keepdims=True)
    y = (y - mu) * jax.lax.rsqrt(var + BN_EPS)
    y = y * gamma.reshape(1, -1, 1, 1) + beta.reshape(1, -1, 1, 1)
    y = jnp.maximum(y, 0.0)
    return jax.lax.reduce_window(y, -jnp.inf, jax.lax.max,
                                 (1, 1, 2, 2), (1, 1, 2, 2), "VALID")


if __name__ == "__main__":
    key = jax.random.PRNGKey(0)
    kp, kx = jax.random.split(key)
    params = init_params(kp)

    # rows = cols = 16 -> layer1: (2,9,7,7), layer2: (2,64,2,2)
    x = jax.random.normal(kx, (2, 1, 16, 16), jnp.float32)

    fwd = jax.jit(cnn_minesweeper_forward)
    out = jax.block_until_ready(fwd(x, params))

    ref = reference_layer(reference_layer(x, *params["l1"]), *params["l2"])
    assert out.shape == (2, 64, 2, 2), out.shape
    err = float(jnp.max(jnp.abs(out - ref)))
    assert err < 3e-4, err

    print("KERNEL_OK")
</pallas_src>

<mosaic_0001>
module attributes {stable_mosaic.version = 11 : i64} {
  func.func @_fused_kernel(%arg0: i32, %arg1: memref<520x8xf32, #tpu.memory_space<vmem>>, %arg2: memref<9x8x128xf32, #tpu.memory_space<vmem>>, %arg3: memref<1x16xf32, #tpu.memory_space<vmem>>, %arg4: memref<1x16xf32, #tpu.memory_space<vmem>>, %arg5: memref<9x16x128xf32, #tpu.memory_space<vmem>>, %arg6: memref<1x128xf32, #tpu.memory_space<vmem>>, %arg7: memref<1x128xf32, #tpu.memory_space<vmem>>, %arg8: memref<8x128xf32, #tpu.memory_space<vmem>>, %arg9: memref<480x16xf32, #tpu.memory_space<vmem>>, %arg10: memref<128x16xf32, #tpu.memory_space<vmem>>, %arg11: memref<104x128xf32, #tpu.memory_space<vmem>>) attributes {dimension_semantics = [#tpu.dimension_semantics<arbitrary>], iteration_bounds = array<i64: 1>, scalar_prefetch = 0 : i64, scratch_operands = 3 : i64, tpu.core_type = #tpu.core_type<tc>, window_params = [{pipeline_mode = #tpu.pipeline_mode<synchronous>, transform_indices = @transform_0, window_bounds = array<i64: 520, 8>}, {pipeline_mode = #tpu.pipeline_mode<synchronous>, transform_indices = @transform_1, window_bounds = array<i64: 9, 8, 128>}, {pipeline_mode = #tpu.pipeline_mode<synchronous>, transform_indices = @transform_2, window_bounds = array<i64: 1, 16>}, {pipeline_mode = #tpu.pipeline_mode<synchronous>, transform_indices = @transform_3, window_bounds = array<i64: 1, 16>}, {pipeline_mode = #tpu.pipeline_mode<synchronous>, transform_indices = @transform_4, window_bounds = array<i64: 9, 16, 128>}, {pipeline_mode = #tpu.pipeline_mode<synchronous>, transform_indices = @transform_5, window_bounds = array<i64: 1, 128>}, {pipeline_mode = #tpu.pipeline_mode<synchronous>, transform_indices = @transform_6, window_bounds = array<i64: 1, 128>}, {pipeline_mode = #tpu.pipeline_mode<synchronous>, transform_indices = @transform_7, window_bounds = array<i64: 8, 128>}]} {
    %c0 = arith.constant 0 : index
    %c0_0 = arith.constant 0 : index
    %0 = vector.load %arg1[%c0, %c0_0] : memref<520x8xf32, #tpu.memory_space<vmem>>, vector<480x8xf32>
    %c0_1 = arith.constant 0 : index
    %c0_2 = arith.constant 0 : index
    %c0_3 = arith.constant 0 : index
    %1 = vector.load %arg2[%c0_1, %c0_2, %c0_3] : memref<9x8x128xf32, #tpu.memory_space<vmem>>, vector<1x8x128xf32>
    %2 = vector.shape_cast %1 : vector<1x8x128xf32> to vector<8x128xf32>
    %cst = arith.constant dense<0.000000e+00> : vector<480x128xf32>
    %3 = tpu.matmul %0, %2, %cst {dimension_numbers = #tpu.dot_dimension_numbers<[1], [0], [0], [1], [0, 0, 1, 1], [], []>} : vector<480x8xf32>, vector<8x128xf32>, vector<480x128xf32> -> vector<480x128xf32>
    %c1 = arith.constant 1 : index
    %c0_4 = arith.constant 0 : index
    %4 = vector.load %arg1[%c1, %c0_4] : memref<520x8xf32, #tpu.memory_space<vmem>>, vector<480x8xf32>
    %c1_5 = arith.constant 1 : index
    %c0_6 = arith.constant 0 : index
    %c0_7 = arith.constant 0 : index
    %5 = vector.load %arg2[%c1_5, %c0_6, %c0_7] : memref<9x8x128xf32, #tpu.memory_space<vmem>>, vector<1x8x128xf32>
    %6 = vector.shape_cast %5 : vector<1x8x128xf32> to vector<8x128xf32>
    %cst_8 = arith.constant dense<0.000000e+00> : vector<480x128xf32>
    %7 = tpu.matmul %4, %6, %cst_8 {dimension_numbers = #tpu.dot_dimension_numbers<[1], [0], [0], [1], [0, 0, 1, 1], [], []>} : vector<480x8xf32>, vector<8x128xf32>, vector<480x128xf32> -> vector<480x128xf32>
    %8 = arith.addf %3, %7 : vector<480x128xf32>
    %c2 = arith.constant 2 : index
    %c0_9 = arith.constant 0 : index
    %9 = vector.load %arg1[%c2, %c0_9] : memref<520x8xf32, #tpu.memory_space<vmem>>, vector<480x8xf32>
    %c2_10 = arith.constant 2 : index
    %c0_11 = arith.constant 0 : index
    %c0_12 = arith.constant 0 : index
    %10 = vector.load %arg2[%c2_10, %c0_11, %c0_12] : memref<9x8x128xf32, #tpu.memory_space<vmem>>, vector<1x8x128xf32>
    %11 = vector.shape_cast %10 : vector<1x8x128xf32> to vector<8x128xf32>
    %cst_13 = arith.constant dense<0.000000e+00> : vector<480x128xf32>
    %12 = tpu.matmul %9, %11, %cst_13 {dimension_numbers = #tpu.dot_dimension_numbers<[1], [0], [0], [1], [0, 0, 1, 1], [], []>} : vector<480x8xf32>, vector<8x128xf32>, vector<480x128xf32> -> vector<480x128xf32>
    %13 = arith.addf %8, %12 : vector<480x128xf32>
    %c16 = arith.constant 16 : index
    %c0_14 = arith.constant 0 : index
    %14 = vector.load %arg1[%c16, %c0_14] : memref<520x8xf32, #tpu.memory_space<vmem>>, vector<480x8xf32>
    %c3 = arith.constant 3 : index
    %c0_15 = arith.constant 0 : index
    %c0_16 = arith.constant 0 : index
    %15 = vector.load %arg2[%c3, %c0_15, %c0_16] : memref<9x8x128xf32, #tpu.memory_space<vmem>>, vector<1x8x128xf32>
    %16 = vector.shape_cast %15 : vector<1x8x128xf32> to vector<8x128xf32>
    %cst_17 = arith.constant dense<0.000000e+00> : vector<480x128xf32>
    %17 = tpu.matmul %14, %16, %cst_17 {dimension_numbers = #tpu.dot_dimension_numbers<[1], [0], [0], [1], [0, 0, 1, 1], [], []>} : vector<480x8xf32>, vector<8x128xf32>, vector<480x128xf32> -> vector<480x128xf32>
    %18 = arith.addf %13, %17 : vector<480x128xf32>
    %c17 = arith.constant 17 : index
    %c0_18 = arith.constant 0 : index
    %19 = vector.load %arg1[%c17, %c0_18] : memref<520x8xf32, #tpu.memory_space<vmem>>, vector<480x8xf32>
    %c4 = arith.constant 4 : index
    %c0_19 = arith.constant 0 : index
    %c0_20 = arith.constant 0 : index
    %20 = vector.load %arg2[%c4, %c0_19, %c0_20] : memref<9x8x128xf32, #tpu.memory_space<vmem>>, vector<1x8x128xf32>
    %21 = vector.shape_cast %20 : vector<1x8x128xf32> to vector<8x128xf32>
    %cst_21 = arith.constant dense<0.000000e+00> : vector<480x128xf32>
    %22 = tpu.matmul %19, %21, %cst_21 {dimension_numbers = #tpu.dot_dimension_numbers<[1], [0], [0], [1], [0, 0, 1, 1], [], []>} : vector<480x8xf32>, vector<8x128xf32>, vector<480x128xf32> -> vector<480x128xf32>
    %23 = arith.addf %18, %22 : vector<480x128xf32>
    %c18 = arith.constant 18 : index
    %c0_22 = arith.constant 0 : index
    %24 = vector.load %arg1[%c18, %c0_22] : memref<520x8xf32, #tpu.memory_space<vmem>>, vector<480x8xf32>
    %c5 = arith.constant 5 : index
    %c0_23 = arith.constant 0 : index
    %c0_24 = arith.constant 0 : index
    %25 = vector.load %arg2[%c5, %c0_23, %c0_24] : memref<9x8x128xf32, #tpu.memory_space<vmem>>, vector<1x8x128xf32>
    %26 = vector.shape_cast %25 : vector<1x8x128xf32> to vector<8x128xf32>
    %cst_25 = arith.constant dense<0.000000e+00> : vector<480x128xf32>
    %27 = tpu.matmul %24, %26, %cst_25 {dimension_numbers = #tpu.dot_dimension_numbers<[1], [0], [0], [1], [0, 0, 1, 1], [], []>} : vector<480x8xf32>, vector<8x128xf32>, vector<480x128xf32> -> vector<480x128xf32>
    %28 = arith.addf %23, %27 : vector<480x128xf32>
    %c32 = arith.constant 32 : index
    %c0_26 = arith.constant 0 : index
    %29 = vector.load %arg1[%c32, %c0_26] : memref<520x8xf32, #tpu.memory_space<vmem>>, vector<480x8xf32>
    %c6 = arith.constant 6 : index
    %c0_27 = arith.constant 0 : index
    %c0_28 = arith.constant 0 : index
    %30 = vector.load %arg2[%c6, %c0_27, %c0_28] : memref<9x8x128xf32, #tpu.memory_space<vmem>>, vector<1x8x128xf32>
    %31 = vector.shape_cast %30 : vector<1x8x128xf32> to vector<8x128xf32>
    %cst_29 = arith.constant dense<0.000000e+00> : vector<480x128xf32>
    %32 = tpu.matmul %29, %31, %cst_29 {dimension_numbers = #tpu.dot_dimension_numbers<[1], [0], [0], [1], [0, 0, 1, 1], [], []>} : vector<480x8xf32>, vector<8x128xf32>, vector<480x128xf32> -> vector<480x128xf32>
    %33 = arith.addf %28, %32 : vector<480x128xf32>
    %c33 = arith.constant 33 : index
    %c0_30 = arith.constant 0 : index
    %34 = vector.load %arg1[%c33, %c0_30] : memref<520x8xf32, #tpu.memory_space<vmem>>, vector<480x8xf32>
    %c7 = arith.constant 7 : index
    %c0_31 = arith.constant 0 : index
    %c0_32 = arith.constant 0 : index
    %35 = vector.load %arg2[%c7, %c0_31, %c0_32] : memref<9x8x128xf32, #tpu.memory_space<vmem>>, vector<1x8x128xf32>
    %36 = vector.shape_cast %35 : vector<1x8x128xf32> to vector<8x128xf32>
    %cst_33 = arith.constant dense<0.000000e+00> : vector<480x128xf32>
    %37 = tpu.matmul %34, %36, %cst_33 {dimension_numbers = #tpu.dot_dimension_numbers<[1], [0], [0], [1], [0, 0, 1, 1], [], []>} : vector<480x8xf32>, vector<8x128xf32>, vector<480x128xf32> -> vector<480x128xf32>
    %38 = arith.addf %33, %37 : vector<480x128xf32>
    %c34 = arith.constant 34 : index
    %c0_34 = arith.constant 0 : index
    %39 = vector.load %arg1[%c34, %c0_34] : memref<520x8xf32, #tpu.memory_space<vmem>>, vector<480x8xf32>
    %c8 = arith.constant 8 : index
    %c0_35 = arith.constant 0 : index
    %c0_36 = arith.constant 0 : index
    %40 = vector.load %arg2[%c8, %c0_35, %c0_36] : memref<9x8x128xf32, #tpu.memory_space<vmem>>, vector<1x8x128xf32>
    %41 = vector.shape_cast %40 : vector<1x8x128xf32> to vector<8x128xf32>
    %cst_37 = arith.constant dense<0.000000e+00> : vector<480x128xf32>
    %42 = tpu.matmul %39, %41, %cst_37 {dimension_numbers = #tpu.dot_dimension_numbers<[1], [0], [0], [1], [0, 0, 1, 1], [], []>} : vector<480x8xf32>, vector<8x128xf32>, vector<480x128xf32> -> vector<480x128xf32>
    %43 = arith.addf %38, %42 : vector<480x128xf32>
    %44 = vector.extract_strided_slice %43 {offsets = [0, 0], sizes = [480, 16], strides = [1, 1]} : vector<480x128xf32> to vector<480x16xf32>
    %45 = tpu.iota {dimensions = array<i32: 0>} : vector<480x1xi32>
    %c15_i32 = arith.constant 15 : i32
    %46 = vector.broadcast %c15_i32 : i32 to vector<480x1xi32>
    %47 = arith.andi %45, %46 : vector<480x1xi32>
    %c4_i32 = arith.constant 4 : i32
    %48 = vector.broadcast %c4_i32 : i32 to vector<480x1xi32>
    %49 = arith.shrsi %45, %48 : vector<480x1xi32>
    %c15_i32_38 = arith.constant 15 : i32
    %50 = vector.broadcast %c15_i32_38 : i32 to vector<480x1xi32>
    %51 = arith.andi %49, %50 : vector<480x1xi32>
    %c512_i32 = arith.constant 512 : i32
    %52 = vector.broadcast %c512_i32 : i32 to vector<480x1xi32>
    %53 = arith.cmpi slt, %45, %52 : vector<480x1xi32>
    %c14_i32 = arith.constant 14 : i32
    %54 = vector.broadcast %c14_i32 : i32 to vector<480x1xi32>
    %55 = arith.cmpi slt, %47, %54 : vector<480x1xi32>
    %56 = arith.andi %53, %55 : vector<480x1xi1>
    %c14_i32_39 = arith.constant 14 : i32
    %57 = vector.broadcast %c14_i32_39 : i32 to vector<480x1xi32>
    %58 = arith.cmpi slt, %51, %57 : vector<480x1xi32>
    %59 = arith.andi %56, %58 : vector<480x1xi1>
    %60 = arith.extui %59 : vector<480x1xi1> to vector<480x1xi32>
    %61 = arith.sitofp %60 : vector<480x1xi32> to vector<480x1xf32>
    %c0_40 = arith.constant 0 : index
    %c0_41 = arith.constant 0 : index
    %62 = vector.load %arg3[%c0_40, %c0_41] : memref<1x16xf32, #tpu.memory_space<vmem>>, vector<1x16xf32>
    %c0_42 = arith.constant 0 : index
    %c0_43 = arith.constant 0 : index
    %63 = vector.load %arg4[%c0_42, %c0_43] : memref<1x16xf32, #tpu.memory_space<vmem>>, vector<1x16xf32>
    %64 = vector.broadcast %61 : vector<480x1xf32> to vector<480x16xf32>
    %65 = arith.mulf %44, %64 : vector<480x16xf32>
    %cst_44 = arith.constant dense<0.000000e+00> : vector<16xf32>
    %66 = vector.multi_reduction <add>, %65, %cst_44 [0] : vector<480x16xf32> to vector<16xf32>
    %67 = vector.shape_cast %66 : vector<16xf32> to vector<1x16xf32>
    %cst_45 = arith.constant 0.00255102036 : f32
    %68 = vector.broadcast %cst_45 : f32 to vector<1x16xf32>
    %69 = arith.mulf %67, %68 : vector<1x16xf32>
    %70 = vector.broadcast %69 : vector<1x16xf32> to vector<480x16xf32>
    %71 = arith.subf %44, %70 : vector<480x16xf32>
    %72 = vector.broadcast %61 : vector<480x1xf32> to vector<480x16xf32>
    %73 = arith.mulf %71, %72 : vector<480x16xf32>
    %74 = arith.mulf %73, %73 : vector<480x16xf32>
    %cst_46 = arith.constant dense<0.000000e+00> : vector<16xf32>
    %75 = vector.multi_reduction <add>, %74, %cst_46 [0] : vector<480x16xf32> to vector<16xf32>
    %76 = vector.shape_cast %75 : vector<16xf32> to vector<1x16xf32>
    %cst_47 = arith.constant 0.00255102036 : f32
    %77 = vector.broadcast %cst_47 : f32 to vector<1x16xf32>
    %78 = arith.mulf %76, %77 : vector<1x16xf32>
    %cst_48 = arith.constant 9.99999974E-6 : f32
    %79 = vector.broadcast %cst_48 : f32 to vector<1x16xf32>
    %80 = arith.addf %78, %79 : vector<1x16xf32>
    %81 = math.rsqrt %80 : vector<1x16xf32>
    %82 = arith.mulf %62, %81 : vector<1x16xf32>
    %83 = arith.mulf %69, %82 : vector<1x16xf32>
    %84 = arith.subf %63, %83 : vector<1x16xf32>
    %85 = vector.broadcast %82 : vector<1x16xf32> to vector<480x16xf32>
    %86 = arith.mulf %44, %85 : vector<480x16xf32>
    %87 = vector.broadcast %84 : vector<1x16xf32> to vector<480x16xf32>
    %88 = arith.addf %86, %87 : vector<480x16xf32>
    %cst_49 = arith.constant 0.000000e+00 : f32
    %89 = vector.broadcast %cst_49 : f32 to vector<480x16xf32>
    %90 = arith.maximumf %88, %89 : vector<480x16xf32>
    %c0_50 = arith.constant 0 : index
    %c0_51 = arith.constant 0 : index
    %91 = vector.load %arg9[%c0_50, %c0_51] : memref<480x16xf32, #tpu.memory_space<vmem>>, vector<480x16xf32>
    tpu.vector_store %arg9[%c0_50, %c0_51], %90 {strides = array<i32>} : memref<480x16xf32, #tpu.memory_space<vmem>>, vector<480x16xf32>,
    %cst_52 = arith.constant 0.000000e+00 : f32
    %92 = vector.broadcast %cst_52 : f32 to vector<128x16xf32>
    %c0_53 = arith.constant 0 : index
    %c0_54 = arith.constant 0 : index
    %93 = vector.load %arg10[%c0_53, %c0_54] : memref<128x16xf32, #tpu.memory_space<vmem>>, vector<128x16xf32>
    tpu.vector_store %arg10[%c0_53, %c0_54], %92 {strides = array<i32>} : memref<128x16xf32, #tpu.memory_space<vmem>>, vector<128x16xf32>,
    %c0_55 = arith.constant 0 : index
    %c0_56 = arith.constant 0 : index
    %94 = tpu.strided_load %arg9[%c0_55, %c0_56] {strides = array<i32: 2, 1>} : memref<480x16xf32, #tpu.memory_space<vmem>>, vector<7x16xf32>
    %c1_57 = arith.constant 1 : index
    %c0_58 = arith.constant 0 : index
    %95 = tpu.strided_load %arg9[%c1_57, %c0_58] {strides = array<i32: 2, 1>} : memref<480x16xf32, #tpu.memory_space<vmem>>, vector<7x16xf32>
    %c16_59 = arith.constant 16 : index
    %c0_60 = arith.constant 0 : index
    %96 = tpu.strided_load %arg9[%c16_59, %c0_60] {strides = array<i32: 2, 1>} : memref<480x16xf32, #tpu.memory_space<vmem>>, vector<7x16xf32>
    %c17_61 = arith.constant 17 : index
    %c0_62 = arith.constant 0 : index
    %97 = tpu.strided_load %arg9[%c17_61, %c0_62] {strides = array<i32: 2, 1>} : memref<480x16xf32, #tpu.memory_space<vmem>>, vector<7x16xf32>
    %98 = arith.maximumf %94, %95 : vector<7x16xf32>
    %99 = arith.maximumf %96, %97 : vector<7x16xf32>
    %100 = arith.maximumf %98, %99 : vector<7x16xf32>
    %c0_63 = arith.constant 0 : index
    %c0_64 = arith.constant 0 : index
    %101 = vector.load %arg10[%c0_63, %c0_64] : memref<128x16xf32, #tpu.memory_space<vmem>>, vector<7x16xf32>
    tpu.vector_store %arg10[%c0_63, %c0_64], %100 {strides = array<i32>} : memref<128x16xf32, #tpu.memory_space<vmem>>, vector<7x16xf32>,
    %c32_65 = arith.constant 32 : index
    %c0_66 = arith.constant 0 : index
    %102 = tpu.strided_load %arg9[%c32_65, %c0_66] {strides = array<i32: 2, 1>} : memref<480x16xf32, #tpu.memory_space<vmem>>, vector<7x16xf32>
    %c33_67 = arith.constant 33 : index
    %c0_68 = arith.constant 0 : index
    %103 = tpu.strided_load %arg9[%c33_67, %c0_68] {strides = array<i32: 2, 1>} : memref<480x16xf32, #tpu.memory_space<vmem>>, vector<7x16xf32>
    %c48 = arith.constant 48 : index
    %c0_69 = arith.constant 0 : index
    %104 = tpu.strided_load %arg9[%c48, %c0_69] {strides = array<i32: 2, 1>} : memref<480x16xf32, #tpu.memory_space<vmem>>, vector<7x16xf32>
    %c49 = arith.constant 49 : index
    %c0_70 = arith.constant 0 : index
    %105 = tpu.strided_load %arg9[%c49, %c0_70] {strides = array<i32: 2, 1>} : memref<480x16xf32, #tpu.memory_space<vmem>>, vector<7x16xf32>
    %106 = arith.maximumf %102, %103 : vector<7x16xf32>
    %107 = arith.maximumf %104, %105 : vector<7x16xf32>
    %108 = arith.maximumf %106, %107 : vector<7x16xf32>
    %c8_71 = arith.constant 8 : index
    %c0_72 = arith.constant 0 : index
    %109 = vector.load %arg10[%c8_71, %c0_72] : memref<128x16xf32, #tpu.memory_space<vmem>>, vector<7x16xf32>
    tpu.vector_store %arg10[%c8_71, %c0_72], %108 {strides = array<i32>} : memref<128x16xf32, #tpu.memory_space<vmem>>, vector<7x16xf32>,
    %c64 = arith.constant 64 : index
    %c0_73 = arith.constant 0 : index
    %110 = tpu.strided_load %arg9[%c64, %c0_73] {strides = array<i32: 2, 1>} : memref<480x16xf32, #tpu.memory_space<vmem>>, vector<7x16xf32>
    %c65 = arith.constant 65 : index
    %c0_74 = arith.constant 0 : index
    %111 = tpu.strided_load %arg9[%c65, %c0_74] {strides = array<i32: 2, 1>} : memref<480x16xf32, #tpu.memory_space<vmem>>, vector<7x16xf32>
    %c80 = arith.constant 80 : index
    %c0_75 = arith.constant 0 : index
    %112 = tpu.strided_load %arg9[%c80, %c0_75] {strides = array<i32: 2, 1>} : memref<480x16xf32, #tpu.memory_space<vmem>>, vector<7x16xf32>
    %c81 = arith.constant 81 : index
    %c0_76 = arith.constant 0 : index
    %113 = tpu.strided_load %arg9[%c81, %c0_76] {strides = array<i32: 2, 1>} : memref<480x16xf32, #tpu.memory_space<vmem>>, vector<7x16xf32>
    %114 = arith.maximumf %110, %111 : vector<7x16xf32>
    %115 = arith.maximumf %112, %113 : vector<7x16xf32>
    %116 = arith.maximumf %114, %115 : vector<7x16xf32>
    %c16_77 = arith.constant 16 : index
    %c0_78 = arith.constant 0 : index
    %117 = vector.load %arg10[%c16_77, %c0_78] : memref<128x16xf32, #tpu.memory_space<vmem>>, vector<7x16xf32>
    tpu.vector_store %arg10[%c16_77, %c0_78], %116 {strides = array<i32>} : memref<128x16xf32, #tpu.memory_space<vmem>>, vector<7x16xf32>,
    %c96 = arith.constant 96 : index
    %c0_79 = arith.constant 0 : index
    %118 = tpu.strided_load %arg9[%c96, %c0_79] {strides = array<i32: 2, 1>} : memref<480x16xf32, #tpu.memory_space<vmem>>, vector<7x16xf32>
    %c97 = arith.constant 97 : index
    %c0_80 = arith.constant 0 : index
    %119 = tpu.strided_load %arg9[%c97, %c0_80] {strides = array<i32: 2, 1>} : memref<480x16xf32, #tpu.memory_space<vmem>>, vector<7x16xf32>
    %c112 = arith.constant 112 : index
    %c0_81 = arith.constant 0 : index
    %120 = tpu.strided_load %arg9[%c112, %c0_81] {strides = array<i32: 2, 1>} : memref<480x16xf32, #tpu.memory_space<vmem>>, vector<7x16xf32>
    %c113 = arith.constant 113 : index
    %c0_82 = arith.constant 0 : index
    %121 = tpu.strided_load %arg9[%c113, %c0_82] {strides = array<i32: 2, 1>} : memref<480x16xf32, #tpu.memory_space<vmem>>, vector<7x16xf32>
    %122 = arith.maximumf %118, %119 : vector<7x16xf32>
    %123 = arith.maximumf %120, %121 : vector<7x16xf32>
    %124 = arith.maximumf %122, %123 : vector<7x16xf32>
    %c24 = arith.constant 24 : index
    %c0_83 = arith.constant 0 : index
    %125 = vector.load %arg10[%c24, %c0_83] : memref<128x16xf32, #tpu.memory_space<vmem>>, vector<7x16xf32>
    tpu.vector_store %arg10[%c24, %c0_83], %124 {strides = array<i32>} : memref<128x16xf32, #tpu.memory_space<vmem>>, vector<7x16xf32>,
    %c128 = arith.constant 128 : index
    %c0_84 = arith.constant 0 : index
    %126 = tpu.strided_load %arg9[%c128, %c0_84] {strides = array<i32: 2, 1>} : memref<480x16xf32, #tpu.memory_space<vmem>>, vector<7x16xf32>
    %c129 = arith.constant 129 : index
    %c0_85 = arith.constant 0 : index
    %127 = tpu.strided_load %arg9[%c129, %c0_85] {strides = array<i32: 2, 1>} : memref<480x16xf32, #tpu.memory_space<vmem>>, vector<7x16xf32>
    %c144 = arith.constant 144 : index
    %c0_86 = arith.constant 0 : index
    %128 = tpu.strided_load %arg9[%c144, %c0_86] {strides = array<i32: 2, 1>} : memref<480x16xf32, #tpu.memory_space<vmem>>, vector<7x16xf32>
    %c145 = arith.constant 145 : index
    %c0_87 = arith.constant 0 : index
    %129 = tpu.strided_load %arg9[%c145, %c0_87] {strides = array<i32: 2, 1>} : memref<480x16xf32, #tpu.memory_space<vmem>>, vector<7x16xf32>
    %130 = arith.maximumf %126, %127 : vector<7x16xf32>
    %131 = arith.maximumf %128, %129 : vector<7x16xf32>
    %132 = arith.maximumf %130, %131 : vector<7x16xf32>
    %c32_88 = arith.constant 32 : index
    %c0_89 = arith.constant 0 : index
    %133 = vector.load %arg10[%c32_88, %c0_89] : memref<128x16xf32, #tpu.memory_space<vmem>>, vector<7x16xf32>
    tpu.vector_store %arg10[%c32_88, %c0_89], %132 {strides = array<i32>} : memref<128x16xf32, #tpu.memory_space<vmem>>, vector<7x16xf32>,
    %c160 = arith.constant 160 : index
    %c0_90 = arith.constant 0 : index
    %134 = tpu.strided_load %arg9[%c160, %c0_90] {strides = array<i32: 2, 1>} : memref<480x16xf32, #tpu.memory_space<vmem>>, vector<7x16xf32>
    %c161 = arith.constant 161 : index
    %c0_91 = arith.constant 0 : index
    %135 = tpu.strided_load %arg9[%c161, %c0_91] {strides = array<i32: 2, 1>} : memref<480x16xf32, #tpu.memory_space<vmem>>, vector<7x16xf32>
    %c176 = arith.constant 176 : index
    %c0_92 = arith.constant 0 : index
    %136 = tpu.strided_load %arg9[%c176, %c0_92] {strides = array<i32: 2, 1>} : memref<480x16xf32, #tpu.memory_space<vmem>>, vector<7x16xf32>
    %c177 = arith.constant 177 : index
    %c0_93 = arith.constant 0 : index
    %137 = tpu.strided_load %arg9[%c177, %c0_93] {strides = array<i32: 2, 1>} : memref<480x16xf32, #tpu.memory_space<vmem>>, vector<7x16xf32>
    %138 = arith.maximumf %134, %135 : vector<7x16xf32>
    %139 = arith.maximumf %136, %137 : vector<7x16xf32>
    %140 = arith.maximumf %138, %139 : vector<7x16xf32>
    %c40 = arith.constant 40 : index
    %c0_94 = arith.constant 0 : index
    %141 = vector.load %arg10[%c40, %c0_94] : memref<128x16xf32, #tpu.memory_space<vmem>>, vector<7x16xf32>
    tpu.vector_store %arg10[%c40, %c0_94], %140 {strides = array<i32>} : memref<128x16xf32, #tpu.memory_space<vmem>>, vector<7x16xf32>,
    %c192 = arith.constant 192 : index
    %c0_95 = arith.constant 0 : index
    %142 = tpu.strided_load %arg9[%c192, %c0_95] {strides = array<i32: 2, 1>} : memref<480x16xf32, #tpu.memory_space<vmem>>, vector<7x16xf32>
    %c193 = arith.constant 193 : index
    %c0_96 = arith.constant 0 : index
    %143 = tpu.strided_load %arg9[%c193, %c0_96] {strides = array<i32: 2, 1>} : memref<480x16xf32, #tpu.memory_space<vmem>>, vector<7x16xf32>
    %c208 = arith.constant 208 : index
    %c0_97 = arith.constant 0 : index
    %144 = tpu.strided_load %arg9[%c208, %c0_97] {strides = array<i32: 2, 1>} : memref<480x16xf32, #tpu.memory_space<vmem>>, vector<7x16xf32>
    %c209 = arith.constant 209 : index
    %c0_98 = arith.constant 0 : index
    %145 = tpu.strided_load %arg9[%c209, %c0_98] {strides = array<i32: 2, 1>} : memref<480x16xf32, #tpu.memory_space<vmem>>, vector<7x16xf32>
    %146 = arith.maximumf %142, %143 : vector<7x16xf32>
    %147 = arith.maximumf %144, %145 : vector<7x16xf32>
    %148 = arith.maximumf %146, %147 : vector<7x16xf32>
    %c48_99 = arith.constant 48 : index
    %c0_100 = arith.constant 0 : index
    %149 = vector.load %arg10[%c48_99, %c0_100] : memref<128x16xf32, #tpu.memory_space<vmem>>, vector<7x16xf32>
    tpu.vector_store %arg10[%c48_99, %c0_100], %148 {strides = array<i32>} : memref<128x16xf32, #tpu.memory_space<vmem>>, vector<7x16xf32>,
    %c256 = arith.constant 256 : index
    %c0_101 = arith.constant 0 : index
    %150 = tpu.strided_load %arg9[%c256, %c0_101] {strides = array<i32: 2, 1>} : memref<480x16xf32, #tpu.memory_space<vmem>>, vector<7x16xf32>
    %c257 = arith.constant 257 : index
    %c0_102 = arith.constant 0 : index
    %151 = tpu.strided_load %arg9[%c257, %c0_102] {strides = array<i32: 2, 1>} : memref<480x16xf32, #tpu.memory_space<vmem>>, vector<7x16xf32>
    %c272 = arith.constant 272 : index
    %c0_103 = arith.constant 0 : index
    %152 = tpu.strided_load %arg9[%c272, %c0_103] {strides = array<i32: 2, 1>} : memref<480x16xf32, #tpu.memory_space<vmem>>, vector<7x16xf32>
    %c273 = arith.constant 273 : index
    %c0_104 = arith.constant 0 : index
    %153 = tpu.strided_load %arg9[%c273, %c0_104] {strides = array<i32: 2, 1>} : memref<480x16xf32, #tpu.memory_space<vmem>>, vector<7x16xf32>
    %154 = arith.maximumf %150, %151 : vector<7x16xf32>
    %155 = arith.maximumf %152, %153 : vector<7x16xf32>
    %156 = arith.maximumf %154, %155 : vector<7x16xf32>
    %c64_105 = arith.constant 64 : index
    %c0_106 = arith.constant 0 : index
    %157 = vector.load %arg10[%c64_105, %c0_106] : memref<128x16xf32, #tpu.memory_space<vmem>>, vector<7x16xf32>
    tpu.vector_store %arg10[%c64_105, %c0_106], %156 {strides = array<i32>} : memref<128x16xf32, #tpu.memory_space<vmem>>, vector<7x16xf32>,
    %c288 = arith.constant 288 : index
    %c0_107 = arith.constant 0 : index
    %158 = tpu.strided_load %arg9[%c288, %c0_107] {strides = array<i32: 2, 1>} : memref<480x16xf32, #tpu.memory_space<vmem>>, vector<7x16xf32>
    %c289 = arith.constant 289 : index
    %c0_108 = arith.constant 0 : index
    %159 = tpu.strided_load %arg9[%c289, %c0_108] {strides = array<i32: 2, 1>} : memref<480x16xf32, #tpu.memory_space<vmem>>, vector<7x16xf32>
    %c304 = arith.constant 304 : index
    %c0_109 = arith.constant 0 : index
    %160 = tpu.strided_load %arg9[%c304, %c0_109] {strides = array<i32: 2, 1>} : memref<480x16xf32, #tpu.memory_space<vmem>>, vector<7x16xf32>
    %c305 = arith.constant 305 : index
    %c0_110 = arith.constant 0 : index
    %161 = tpu.strided_load %arg9[%c305, %c0_110] {strides = array<i32: 2, 1>} : memref<480x16xf32, #tpu.memory_space<vmem>>, vector<7x16xf32>
    %162 = arith.maximumf %158, %159 : vector<7x16xf32>
    %163 = arith.maximumf %160, %161 : vector<7x16xf32>
    %164 = arith.maximumf %162, %163 : vector<7x16xf32>
    %c72 = arith.constant 72 : index
    %c0_111 = arith.constant 0 : index
    %165 = vector.load %arg10[%c72, %c0_111] : memref<128x16xf32, #tpu.memory_space<vmem>>, vector<7x16xf32>
    tpu.vector_store %arg10[%c72, %c0_111], %164 {strides = array<i32>} : memref<128x16xf32, #tpu.memory_space<vmem>>, vector<7x16xf32>,
    %c320 = arith.constant 320 : index
    %c0_112 = arith.constant 0 : index
    %166 = tpu.strided_load %arg9[%c320, %c0_112] {strides = array<i32: 2, 1>} : memref<480x16xf32, #tpu.memory_space<vmem>>, vector<7x16xf32>
    %c321 = arith.constant 321 : index
    %c0_113 = arith.constant 0 : index
    %167 = tpu.strided_load %arg9[%c321, %c0_113] {strides = array<i32: 2, 1>} : memref<480x16xf32, #tpu.memory_space<vmem>>, vector<7x16xf32>
    %c336 = arith.constant 336 : index
    %c0_114 = arith.constant 0 : index
    %168 = tpu.strided_load %arg9[%c336, %c0_114] {strides = array<i32: 2, 1>} : memref<480x16xf32, #tpu.memory_space<vmem>>, vector<7x16xf32>
    %c337 = arith.constant 337 : index
    %c0_115 = arith.constant 0 : index
    %169 = tpu.strided_load %arg9[%c337, %c0_115] {strides = array<i32: 2, 1>} : memref<480x16xf32, #tpu.memory_space<vmem>>, vector<7x16xf32>
    %170 = arith.maximumf %166, %167 : vector<7x16xf32>
    %171 = arith.maximumf %168, %169 : vector<7x16xf32>
    %172 = arith.maximumf %170, %171 : vector<7x16xf32>
    %c80_116 = arith.constant 80 : index
    %c0_117 = arith.constant 0 : index
    %173 = vector.load %arg10[%c80_116, %c0_117] : memref<128x16xf32, #tpu.memory_space<vmem>>, vector<7x16xf32>
    tpu.vector_store %arg10[%c80_116, %c0_117], %172 {strides = array<i32>} : memref<128x16xf32, #tpu.memory_space<vmem>>, vector<7x16xf32>,
    %c352 = arith.constant 352 : index
    %c0_118 = arith.constant 0 : index
    %174 = tpu.strided_load %arg9[%c352, %c0_118] {strides = array<i32: 2, 1>} : memref<480x16xf32, #tpu.memory_space<vmem>>, vector<7x16xf32>
    %c353 = arith.constant 353 : index
    %c0_119 = arith.constant 0 : index
    %175 = tpu.strided_load %arg9[%c353, %c0_119] {strides = array<i32: 2, 1>} : memref<480x16xf32, #tpu.memory_space<vmem>>, vector<7x16xf32>
    %c368 = arith.constant 368 : index
    %c0_120 = arith.constant 0 : index
    %176 = tpu.strided_load %arg9[%c368, %c0_120] {strides = array<i32: 2, 1>} : memref<480x16xf32, #tpu.memory_space<vmem>>, vector<7x16xf32>
    %c369 = arith.constant 369 : index
    %c0_121 = arith.constant 0 : index
    %177 = tpu.strided_load %arg9[%c369, %c0_121] {strides = array<i32: 2, 1>} : memref<480x16xf32, #tpu.memory_space<vmem>>, vector<7x16xf32>
    %178 = arith.maximumf %174, %175 : vector<7x16xf32>
    %179 = arith.maximumf %176, %177 : vector<7x16xf32>
    %180 = arith.maximumf %178, %179 : vector<7x16xf32>
    %c88 = arith.constant 88 : index
    %c0_122 = arith.constant 0 : index
    %181 = vector.load %arg10[%c88, %c0_122] : memref<128x16xf32, #tpu.memory_space<vmem>>, vector<7x16xf32>
    tpu.vector_store %arg10[%c88, %c0_122], %180 {strides = array<i32>} : memref<128x16xf32, #tpu.memory_space<vmem>>, vector<7x16xf32>,
    %c384 = arith.constant 384 : index
    %c0_123 = arith.constant 0 : index
    %182 = tpu.strided_load %arg9[%c384, %c0_123] {strides = array<i32: 2, 1>} : memref<480x16xf32, #tpu.memory_space<vmem>>, vector<7x16xf32>
    %c385 = arith.constant 385 : index
    %c0_124 = arith.constant 0 : index
    %183 = tpu.strided_load %arg9[%c385, %c0_124] {strides = array<i32: 2, 1>} : memref<480x16xf32, #tpu.memory_space<vmem>>, vector<7x16xf32>
    %c400 = arith.constant 400 : index
    %c0_125 = arith.constant 0 : index
    %184 = tpu.strided_load %arg9[%c400, %c0_125] {strides = array<i32: 2, 1>} : memref<480x16xf32, #tpu.memory_space<vmem>>, vector<7x16xf32>
    %c401 = arith.constant 401 : index
    %c0_126 = arith.constant 0 : index
    %185 = tpu.strided_load %arg9[%c401, %c0_126] {strides = array<i32: 2, 1>} : memref<480x16xf32, #tpu.memory_space<vmem>>, vector<7x16xf32>
    %186 = arith.maximumf %182, %183 : vector<7x16xf32>
    %187 = arith.maximumf %184, %185 : vector<7x16xf32>
    %188 = arith.maximumf %186, %187 : vector<7x16xf32>
    %c96_127 = arith.constant 96 : index
    %c0_128 = arith.constant 0 : index
    %189 = vector.load %arg10[%c96_127, %c0_128] : memref<128x16xf32, #tpu.memory_space<vmem>>, vector<7x16xf32>
    tpu.vector_store %arg10[%c96_127, %c0_128], %188 {strides = array<i32>} : memref<128x16xf32, #tpu.memory_space<vmem>>, vector<7x16xf32>,
    %c416 = arith.constant 416 : index
    %c0_129 = arith.constant 0 : index
    %190 = tpu.strided_load %arg9[%c416, %c0_129] {strides = array<i32: 2, 1>} : memref<480x16xf32, #tpu.memory_space<vmem>>, vector<7x16xf32>
    %c417 = arith.constant 417 : index
    %c0_130 = arith.constant 0 : index
    %191 = tpu.strided_load %arg9[%c417, %c0_130] {strides = array<i32: 2, 1>} : memref<480x16xf32, #tpu.memory_space<vmem>>, vector<7x16xf32>
    %c432 = arith.constant 432 : index
    %c0_131 = arith.constant 0 : index
    %192 = tpu.strided_load %arg9[%c432, %c0_131] {strides = array<i32: 2, 1>} : memref<480x16xf32, #tpu.memory_space<vmem>>, vector<7x16xf32>
    %c433 = arith.constant 433 : index
    %c0_132 = arith.constant 0 : index
    %193 = tpu.strided_load %arg9[%c433, %c0_132] {strides = array<i32: 2, 1>} : memref<480x16xf32, #tpu.memory_space<vmem>>, vector<7x16xf32>
    %194 = arith.maximumf %190, %191 : vector<7x16xf32>
    %195 = arith.maximumf %192, %193 : vector<7x16xf32>
    %196 = arith.maximumf %194, %195 : vector<7x16xf32>
    %c104 = arith.constant 104 : index
    %c0_133 = arith.constant 0 : index
    %197 = vector.load %arg10[%c104, %c0_133] : memref<128x16xf32, #tpu.memory_space<vmem>>, vector<7x16xf32>
    tpu.vector_store %arg10[%c104, %c0_133], %196 {strides = array<i32>} : memref<128x16xf32, #tpu.memory_space<vmem>>, vector<7x16xf32>,
    %c448 = arith.constant 448 : index
    %c0_134 = arith.constant 0 : index
    %198 = tpu.strided_load %arg9[%c448, %c0_134] {strides = array<i32: 2, 1>} : memref<480x16xf32, #tpu.memory_space<vmem>>, vector<7x16xf32>
    %c449 = arith.constant 449 : index
    %c0_135 = arith.constant 0 : index
    %199 = tpu.strided_load %arg9[%c449, %c0_135] {strides = array<i32: 2, 1>} : memref<480x16xf32, #tpu.memory_space<vmem>>, vector<7x16xf32>
    %c464 = arith.constant 464 : index
    %c0_136 = arith.constant 0 : index
    %200 = tpu.strided_load %arg9[%c464, %c0_136] {strides = array<i32: 2, 1>} : memref<480x16xf32, #tpu.memory_space<vmem>>, vector<7x16xf32>
    %c465 = arith.constant 465 : index
    %c0_137 = arith.constant 0 : index
    %201 = tpu.strided_load %arg9[%c465, %c0_137] {strides = array<i32: 2, 1>} : memref<480x16xf32, #tpu.memory_space<vmem>>, vector<7x16xf32>
    %202 = arith.maximumf %198, %199 : vector<7x16xf32>
    %203 = arith.maximumf %200, %201 : vector<7x16xf32>
    %204 = arith.maximumf %202, %203 : vector<7x16xf32>
    %c112_138 = arith.constant 112 : index
    %c0_139 = arith.constant 0 : index
    %205 = vector.load %arg10[%c112_138, %c0_139] : memref<128x16xf32, #tpu.memory_space<vmem>>, vector<7x16xf32>
    tpu.vector_store %arg10[%c112_138, %c0_139], %204 {strides = array<i32>} : memref<128x16xf32, #tpu.memory_space<vmem>>, vector<7x16xf32>,
    %c0_140 = arith.constant 0 : index
    %c0_141 = arith.constant 0 : index
    %206 = vector.load %arg10[%c0_140, %c0_141] : memref<128x16xf32, #tpu.memory_space<vmem>>, vector<104x16xf32>
    %c0_142 = arith.constant 0 : index
    %c0_143 = arith.constant 0 : index
    %c0_144 = arith.constant 0 : index
    %207 = vector.load %arg5[%c0_142, %c0_143, %c0_144] : memref<9x16x128xf32, #tpu.memory_space<vmem>>, vector<1x16x128xf32>
    %208 = vector.shape_cast %207 : vector<1x16x128xf32> to vector<16x128xf32>
    %cst_145 = arith.constant dense<0.000000e+00> : vector<104x128xf32>
    %209 = tpu.matmul %206, %208, %cst_145 {dimension_numbers = #tpu.dot_dimension_numbers<[1], [0], [0], [1], [0, 0, 1, 1], [], []>} : vector<104x16xf32>, vector<16x128xf32>, vector<104x128xf32> -> vector<104x128xf32>
    %c1_146 = arith.constant 1 : index
    %c0_147 = arith.constant 0 : index
    %210 = vector.load %arg10[%c1_146, %c0_147] : memref<128x16xf32, #tpu.memory_space<vmem>>, vector<104x16xf32>
    %c1_148 = arith.constant 1 : index
    %c0_149 = arith.constant 0 : index
    %c0_150 = arith.constant 0 : index
    %211 = vector.load %arg5[%c1_148, %c0_149, %c0_150] : memref<9x16x128xf32, #tpu.memory_space<vmem>>, vector<1x16x128xf32>
    %212 = vector.shape_cast %211 : vector<1x16x128xf32> to vector<16x128xf32>
    %cst_151 = arith.constant dense<0.000000e+00> : vector<104x128xf32>
    %213 = tpu.matmul %210, %212, %cst_151 {dimension_numbers = #tpu.dot_dimension_numbers<[1], [0], [0], [1], [0, 0, 1, 1], [], []>} : vector<104x16xf32>, vector<16x128xf32>, vector<104x128xf32> -> vector<104x128xf32>
    %214 = arith.addf %209, %213 : vector<104x128xf32>
    %c2_152 = arith.constant 2 : index
    %c0_153 = arith.constant 0 : index
    %215 = vector.load %arg10[%c2_152, %c0_153] : memref<128x16xf32, #tpu.memory_space<vmem>>, vector<104x16xf32>
    %c2_154 = arith.constant 2 : index
    %c0_155 = arith.constant 0 : index
    %c0_156 = arith.constant 0 : index
    %216 = vector.load %arg5[%c2_154, %c0_155, %c0_156] : memref<9x16x128xf32, #tpu.memory_space<vmem>>, vector<1x16x128xf32>
    %217 = vector.shape_cast %216 : vector<1x16x128xf32> to vector<16x128xf32>
    %cst_157 = arith.constant dense<0.000000e+00> : vector<104x128xf32>
    %218 = tpu.matmul %215, %217, %cst_157 {dimension_numbers = #tpu.dot_dimension_numbers<[1], [0], [0], [1], [0, 0, 1, 1], [], []>} : vector<104x16xf32>, vector<16x128xf32>, vector<104x128xf32> -> vector<104x128xf32>
    %219 = arith.addf %214, %218 : vector<104x128xf32>
    %c8_158 = arith.constant 8 : index
    %c0_159 = arith.constant 0 : index
    %220 = vector.load %arg10[%c8_158, %c0_159] : memref<128x16xf32, #tpu.memory_space<vmem>>, vector<104x16xf32>
    %c3_160 = arith.constant 3 : index
    %c0_161 = arith.constant 0 : index
    %c0_162 = arith.constant 0 : index
    %221 = vector.load %arg5[%c3_160, %c0_161, %c0_162] : memref<9x16x128xf32, #tpu.memory_space<vmem>>, vector<1x16x128xf32>
    %222 = vector.shape_cast %221 : vector<1x16x128xf32> to vector<16x128xf32>
    %cst_163 = arith.constant dense<0.000000e+00> : vector<104x128xf32>
    %223 = tpu.matmul %220, %222, %cst_163 {dimension_numbers = #tpu.dot_dimension_numbers<[1], [0], [0], [1], [0, 0, 1, 1], [], []>} : vector<104x16xf32>, vector<16x128xf32>, vector<104x128xf32> -> vector<104x128xf32>
    %224 = arith.addf %219, %223 : vector<104x128xf32>
    %c9 = arith.constant 9 : index
    %c0_164 = arith.constant 0 : index
    %225 = vector.load %arg10[%c9, %c0_164] : memref<128x16xf32, #tpu.memory_space<vmem>>, vector<104x16xf32>
    %c4_165 = arith.constant 4 : index
    %c0_166 = arith.constant 0 : index
    %c0_167 = arith.constant 0 : index
    %226 = vector.load %arg5[%c4_165, %c0_166, %c0_167] : memref<9x16x128xf32, #tpu.memory_space<vmem>>, vector<1x16x128xf32>
    %227 = vector.shape_cast %226 : vector<1x16x128xf32> to vector<16x128xf32>
    %cst_168 = arith.constant dense<0.000000e+00> : vector<104x128xf32>
    %228 = tpu.matmul %225, %227, %cst_168 {dimension_numbers = #tpu.dot_dimension_numbers<[1], [0], [0], [1], [0, 0, 1, 1], [], []>} : vector<104x16xf32>, vector<16x128xf32>, vector<104x128xf32> -> vector<104x128xf32>
    %229 = arith.addf %224, %228 : vector<104x128xf32>
    %c10 = arith.constant 10 : index
    %c0_169 = arith.constant 0 : index
    %230 = vector.load %arg10[%c10, %c0_169] : memref<128x16xf32, #tpu.memory_space<vmem>>, vector<104x16xf32>
    %c5_170 = arith.constant 5 : index
    %c0_171 = arith.constant 0 : index
    %c0_172 = arith.constant 0 : index
    %231 = vector.load %arg5[%c5_170, %c0_171, %c0_172] : memref<9x16x128xf32, #tpu.memory_space<vmem>>, vector<1x16x128xf32>
    %232 = vector.shape_cast %231 : vector<1x16x128xf32> to vector<16x128xf32>
    %cst_173 = arith.constant dense<0.000000e+00> : vector<104x128xf32>
    %233 = tpu.matmul %230, %232, %cst_173 {dimension_numbers = #tpu.dot_dimension_numbers<[1], [0], [0], [1], [0, 0, 1, 1], [], []>} : vector<104x16xf32>, vector<16x128xf32>, vector<104x128xf32> -> vector<104x128xf32>
    %234 = arith.addf %229, %233 : vector<104x128xf32>
    %c16_174 = arith.constant 16 : index
    %c0_175 = arith.constant 0 : index
    %235 = vector.load %arg10[%c16_174, %c0_175] : memref<128x16xf32, #tpu.memory_space<vmem>>, vector<104x16xf32>
    %c6_176 = arith.constant 6 : index
    %c0_177 = arith.constant 0 : index
    %c0_178 = arith.constant 0 : index
    %236 = vector.load %arg5[%c6_176, %c0_177, %c0_178] : memref<9x16x128xf32, #tpu.memory_space<vmem>>, vector<1x16x128xf32>
    %237 = vector.shape_cast %236 : vector<1x16x128xf32> to vector<16x128xf32>
    %cst_179 = arith.constant dense<0.000000e+00> : vector<104x128xf32>
    %238 = tpu.matmul %235, %237, %cst_179 {dimension_numbers = #tpu.dot_dimension_numbers<[1], [0], [0], [1], [0, 0, 1, 1], [], []>} : vector<104x16xf32>, vector<16x128xf32>, vector<104x128xf32> -> vector<104x128xf32>
    %239 = arith.addf %234, %238 : vector<104x128xf32>
    %c17_180 = arith.constant 17 : index
    %c0_181 = arith.constant 0 : index
    %240 = vector.load %arg10[%c17_180, %c0_181] : memref<128x16xf32, #tpu.memory_space<vmem>>, vector<104x16xf32>
    %c7_182 = arith.constant 7 : index
    %c0_183 = arith.constant 0 : index
    %c0_184 = arith.constant 0 : index
    %241 = vector.load %arg5[%c7_182, %c0_183, %c0_184] : memref<9x16x128xf32, #tpu.memory_space<vmem>>, vector<1x16x128xf32>
    %242 = vector.shape_cast %241 : vector<1x16x128xf32> to vector<16x128xf32>
    %cst_185 = arith.constant dense<0.000000e+00> : vector<104x128xf32>
    %243 = tpu.matmul %240, %242, %cst_185 {dimension_numbers = #tpu.dot_dimension_numbers<[1], [0], [0], [1], [0, 0, 1, 1], [], []>} : vector<104x16xf32>, vector<16x128xf32>, vector<104x128xf32> -> vector<104x128xf32>
    %244 = arith.addf %239, %243 : vector<104x128xf32>
    %c18_186 = arith.constant 18 : index
    %c0_187 = arith.constant 0 : index
    %245 = vector.load %arg10[%c18_186, %c0_187] : memref<128x16xf32, #tpu.memory_space<vmem>>, vector<104x16xf32>
    %c8_188 = arith.constant 8 : index
    %c0_189 = arith.constant 0 : index
    %c0_190 = arith.constant 0 : index
    %246 = vector.load %arg5[%c8_188, %c0_189, %c0_190] : memref<9x16x128xf32, #tpu.memory_space<vmem>>, vector<1x16x128xf32>
    %247 = vector.shape_cast %246 : vector<1x16x128xf32> to vector<16x128xf32>
    %cst_191 = arith.constant dense<0.000000e+00> : vector<104x128xf32>
    %248 = tpu.matmul %245, %247, %cst_191 {dimension_numbers = #tpu.dot_dimension_numbers<[1], [0], [0], [1], [0, 0, 1, 1], [], []>} : vector<104x16xf32>, vector<16x128xf32>, vector<104x128xf32> -> vector<104x128xf32>
    %249 = arith.addf %244, %248 : vector<104x128xf32>
    %250 = tpu.iota {dimensions = array<i32: 0>} : vector<104x1xi32>
    %c7_i32 = arith.constant 7 : i32
    %251 = vector.broadcast %c7_i32 : i32 to vector<104x1xi32>
    %252 = arith.andi %250, %251 : vector<104x1xi32>
    %c3_i32 = arith.constant 3 : i32
    %253 = vector.broadcast %c3_i32 : i32 to vector<104x1xi32>
    %254 = arith.shrsi %250, %253 : vector<104x1xi32>
    %c7_i32_192 = arith.constant 7 : i32
    %255 = vector.broadcast %c7_i32_192 : i32 to vector<104x1xi32>
    %256 = arith.andi %254, %255 : vector<104x1xi32>
    %c128_i32 = arith.constant 128 : i32
    %257 = vector.broadcast %c128_i32 : i32 to vector<104x1xi32>
    %258 = arith.cmpi slt, %250, %257 : vector<104x1xi32>
    %c5_i32 = arith.constant 5 : i32
    %259 = vector.broadcast %c5_i32 : i32 to vector<104x1xi32>
    %260 = arith.cmpi slt, %252, %259 : vector<104x1xi32>
    %261 = arith.andi %258, %260 : vector<104x1xi1>
    %c5_i32_193 = arith.constant 5 : i32
    %262 = vector.broadcast %c5_i32_193 : i32 to vector<104x1xi32>
    %263 = arith.cmpi slt, %256, %262 : vector<104x1xi32>
    %264 = arith.andi %261, %263 : vector<104x1xi1>
    %265 = arith.extui %264 : vector<104x1xi1> to vector<104x1xi32>
    %266 = arith.sitofp %265 : vector<104x1xi32> to vector<104x1xf32>
    %c0_194 = arith.constant 0 : index
    %c0_195 = arith.constant 0 : index
    %267 = vector.load %arg6[%c0_194, %c0_195] : memref<1x128xf32, #tpu.memory_space<vmem>>, vector<1x128xf32>
    %c0_196 = arith.constant 0 : index
    %c0_197 = arith.constant 0 : index
    %268 = vector.load %arg7[%c0_196, %c0_197] : memref<1x128xf32, #tpu.memory_space<vmem>>, vector<1x128xf32>
    %269 = vector.broadcast %266 : vector<104x1xf32> to vector<104x128xf32>
    %270 = arith.mulf %249, %269 : vector<104x128xf32>
    %cst_198 = arith.constant dense<0.000000e+00> : vector<128xf32>
    %271 = vector.multi_reduction <add>, %270, %cst_198 [0] : vector<104x128xf32> to vector<128xf32>
    %272 = vector.shape_cast %271 : vector<128xf32> to vector<1x128xf32>
    %cst_199 = arith.constant 2.000000e-02 : f32
    %273 = vector.broadcast %cst_199 : f32 to vector<1x128xf32>
    %274 = arith.mulf %272, %273 : vector<1x128xf32>
    %275 = vector.broadcast %274 : vector<1x128xf32> to vector<104x128xf32>
    %276 = arith.subf %249, %275 : vector<104x128xf32>
    %277 = vector.broadcast %266 : vector<104x1xf32> to vector<104x128xf32>
    %278 = arith.mulf %276, %277 : vector<104x128xf32>
    %279 = arith.mulf %278, %278 : vector<104x128xf32>
    %cst_200 = arith.constant dense<0.000000e+00> : vector<128xf32>
    %280 = vector.multi_reduction <add>, %279, %cst_200 [0] : vector<104x128xf32> to vector<128xf32>
    %281 = vector.shape_cast %280 : vector<128xf32> to vector<1x128xf32>
    %cst_201 = arith.constant 2.000000e-02 : f32
    %282 = vector.broadcast %cst_201 : f32 to vector<1x128xf32>
    %283 = arith.mulf %281, %282 : vector<1x128xf32>
    %cst_202 = arith.constant 9.99999974E-6 : f32
    %284 = vector.broadcast %cst_202 : f32 to vector<1x128xf32>
    %285 = arith.addf %283, %284 : vector<1x128xf32>
    %286 = math.rsqrt %285 : vector<1x128xf32>
    %287 = arith.mulf %267, %286 : vector<1x128xf32>
    %288 = arith.mulf %274, %287 : vector<1x128xf32>
    %289 = arith.subf %268, %288 : vector<1x128xf32>
    %290 = vector.broadcast %287 : vector<1x128xf32> to vector<104x128xf32>
    %291 = arith.mulf %249, %290 : vector<104x128xf32>
    %292 = vector.broadcast %289 : vector<1x128xf32> to vector<104x128xf32>
    %293 = arith.addf %291, %292 : vector<104x128xf32>
    %cst_203 = arith.constant 0.000000e+00 : f32
    %294 = vector.broadcast %cst_203 : f32 to vector<104x128xf32>
    %295 = arith.maximumf %293, %294 : vector<104x128xf32>
    %c0_204 = arith.constant 0 : index
    %c0_205 = arith.constant 0 : index
    %296 = vector.load %arg11[%c0_204, %c0_205] : memref<104x128xf32, #tpu.memory_space<vmem>>, vector<104x128xf32>
    tpu.vector_store %arg11[%c0_204, %c0_205], %295 {strides = array<i32>} : memref<104x128xf32, #tpu.memory_space<vmem>>, vector<104x128xf32>,
    %c0_206 = arith.constant 0 : index
    %c0_207 = arith.constant 0 : index
    %297 = tpu.strided_load %arg11[%c0_206, %c0_207] {strides = array<i32: 2, 1>} : memref<104x128xf32, #tpu.memory_space<vmem>>, vector<2x128xf32>
    %c1_208 = arith.constant 1 : index
    %c0_209 = arith.constant 0 : index
    %298 = tpu.strided_load %arg11[%c1_208, %c0_209] {strides = array<i32: 2, 1>} : memref<104x128xf32, #tpu.memory_space<vmem>>, vector<2x128xf32>
    %c8_210 = arith.constant 8 : index
    %c0_211 = arith.constant 0 : index
    %299 = tpu.strided_load %arg11[%c8_210, %c0_211] {strides = array<i32: 2, 1>} : memref<104x128xf32, #tpu.memory_space<vmem>>, vector<2x128xf32>
    %c9_212 = arith.constant 9 : index
    %c0_213 = arith.constant 0 : index
    %300 = tpu.strided_load %arg11[%c9_212, %c0_213] {strides = array<i32: 2, 1>} : memref<104x128xf32, #tpu.memory_space<vmem>>, vector<2x128xf32>
    %301 = arith.maximumf %297, %298 : vector<2x128xf32>
    %302 = arith.maximumf %299, %300 : vector<2x128xf32>
    %303 = arith.maximumf %301, %302 : vector<2x128xf32>
    %c0_214 = arith.constant 0 : index
    %c0_215 = arith.constant 0 : index
    %304 = vector.load %arg8[%c0_214, %c0_215] : memref<8x128xf32, #tpu.memory_space<vmem>>, vector<2x128xf32>
    tpu.vector_store %arg8[%c0_214, %c0_215], %303 {strides = array<i32>} : memref<8x128xf32, #tpu.memory_space<vmem>>, vector<2x128xf32>,
    %c16_216 = arith.constant 16 : index
    %c0_217 = arith.constant 0 : index
    %305 = tpu.strided_load %arg11[%c16_216, %c0_217] {strides = array<i32: 2, 1>} : memref<104x128xf32, #tpu.memory_space<vmem>>, vector<2x128xf32>
    %c17_218 = arith.constant 17 : index
    %c0_219 = arith.constant 0 : index
    %306 = tpu.strided_load %arg11[%c17_218, %c0_219] {strides = array<i32: 2, 1>} : memref<104x128xf32, #tpu.memory_space<vmem>>, vector<2x128xf32>
    %c24_220 = arith.constant 24 : index
    %c0_221 = arith.constant 0 : index
    %307 = tpu.strided_load %arg11[%c24_220, %c0_221] {strides = array<i32: 2, 1>} : memref<104x128xf32, #tpu.memory_space<vmem>>, vector<2x128xf32>
    %c25 = arith.constant 25 : index
    %c0_222 = arith.constant 0 : index
    %308 = tpu.strided_load %arg11[%c25, %c0_222] {strides = array<i32: 2, 1>} : memref<104x128xf32, #tpu.memory_space<vmem>>, vector<2x128xf32>
    %309 = arith.maximumf %305, %306 : vector<2x128xf32>
    %310 = arith.maximumf %307, %308 : vector<2x128xf32>
    %311 = arith.maximumf %309, %310 : vector<2x128xf32>
    %c2_223 = arith.constant 2 : index
    %c0_224 = arith.constant 0 : index
    %312 = vector.load %arg8[%c2_223, %c0_224] : memref<8x128xf32, #tpu.memory_space<vmem>>, vector<2x128xf32>
    tpu.vector_store %arg8[%c2_223, %c0_224], %311 {strides = array<i32>} : memref<8x128xf32, #tpu.memory_space<vmem>>, vector<2x128xf32>,
    %c64_225 = arith.constant 64 : index
    %c0_226 = arith.constant 0 : index
    %313 = tpu.strided_load %arg11[%c64_225, %c0_226] {strides = array<i32: 2, 1>} : memref<104x128xf32, #tpu.memory_space<vmem>>, vector<2x128xf32>
    %c65_227 = arith.constant 65 : index
    %c0_228 = arith.constant 0 : index
    %314 = tpu.strided_load %arg11[%c65_227, %c0_228] {strides = array<i32: 2, 1>} : memref<104x128xf32, #tpu.memory_space<vmem>>, vector<2x128xf32>
    %c72_229 = arith.constant 72 : index
    %c0_230 = arith.constant 0 : index
    %315 = tpu.strided_load %arg11[%c72_229, %c0_230] {strides = array<i32: 2, 1>} : memref<104x128xf32, #tpu.memory_space<vmem>>, vector<2x128xf32>
    %c73 = arith.constant 73 : index
    %c0_231 = arith.constant 0 : index
    %316 = tpu.strided_load %arg11[%c73, %c0_231] {strides = array<i32: 2, 1>} : memref<104x128xf32, #tpu.memory_space<vmem>>, vector<2x128xf32>
    %317 = arith.maximumf %313, %314 : vector<2x128xf32>
    %318 = arith.maximumf %315, %316 : vector<2x128xf32>
    %319 = arith.maximumf %317, %318 : vector<2x128xf32>
    %c4_232 = arith.constant 4 : index
    %c0_233 = arith.constant 0 : index
    %320 = vector.load %arg8[%c4_232, %c0_233] : memref<8x128xf32, #tpu.memory_space<vmem>>, vector<2x128xf32>
    tpu.vector_store %arg8[%c4_232, %c0_233], %319 {strides = array<i32>} : memref<8x128xf32, #tpu.memory_space<vmem>>, vector<2x128xf32>,
    %c80_234 = arith.constant 80 : index
    %c0_235 = arith.constant 0 : index
    %321 = tpu.strided_load %arg11[%c80_234, %c0_235] {strides = array<i32: 2, 1>} : memref<104x128xf32, #tpu.memory_space<vmem>>, vector<2x128xf32>
    %c81_236 = arith.constant 81 : index
    %c0_237 = arith.constant 0 : index
    %322 = tpu.strided_load %arg11[%c81_236, %c0_237] {strides = array<i32: 2, 1>} : memref<104x128xf32, #tpu.memory_space<vmem>>, vector<2x128xf32>
    %c88_238 = arith.constant 88 : index
    %c0_239 = arith.constant 0 : index
    %323 = tpu.strided_load %arg11[%c88_238, %c0_239] {strides = array<i32: 2, 1>} : memref<104x128xf32, #tpu.memory_space<vmem>>, vector<2x128xf32>
    %c89 = arith.constant 89 : index
    %c0_240 = arith.constant 0 : index
    %324 = tpu.strided_load %arg11[%c89, %c0_240] {strides = array<i32: 2, 1>} : memref<104x128xf32, #tpu.memory_space<vmem>>, vector<2x128xf32>
    %325 = arith.maximumf %321, %322 : vector<2x128xf32>
    %326 = arith.maximumf %323, %324 : vector<2x128xf32>
    %327 = arith.maximumf %325, %326 : vector<2x128xf32>
    %c6_241 = arith.constant 6 : index
    %c0_242 = arith.constant 0 : index
    %328 = vector.load %arg8[%c6_241, %c0_242] : memref<8x128xf32, #tpu.memory_space<vmem>>, vector<2x128xf32>
    tpu.vector_store %arg8[%c6_241, %c0_242], %327 {strides = array<i32>} : memref<8x128xf32, #tpu.memory_space<vmem>>, vector<2x128xf32>,
    return
  }
  func.func @transform_0(%arg0: i32) -> (i32, i32) {
    %c0_i32 = arith.constant 0 : i32
    %c0_i32_0 = arith.constant 0 : i32
    %c0_i32_1 = arith.constant 0 : i32
    return %c0_i32, %c0_i32_0 : i32, i32
  }
  func.func @transform_1(%arg0: i32) -> (i32, i32, i32) {
    %c0_i32 = arith.constant 0 : i32
    %c0_i32_0 = arith.constant 0 : i32
    %c0_i32_1 = arith.constant 0 : i32
    %c0_i32_2 = arith.constant 0 : i32
    return %c0_i32, %c0_i32_0, %c0_i32_1 : i32, i32, i32
  }
  func.func @transform_2(%arg0: i32) -> (i32, i32) {
    %c0_i32 = arith.constant 0 : i32
    %c0_i32_0 = arith.constant 0 : i32
    %c0_i32_1 = arith.constant 0 : i32
    return %c0_i32, %c0_i32_0 : i32, i32
  }
  func.func @transform_3(%arg0: i32) -> (i32, i32) {
    %c0_i32 = arith.constant 0 : i32
    %c0_i32_0 = arith.constant 0 : i32
    %c0_i32_1 = arith.constant 0 : i32
    return %c0_i32, %c0_i32_0 : i32, i32
  }
  func.func @transform_4(%arg0: i32) -> (i32, i32, i32) {
    %c0_i32 = arith.constant 0 : i32
    %c0_i32_0 = arith.constant 0 : i32
    %c0_i32_1 = arith.constant 0 : i32
    %c0_i32_2 = arith.constant 0 : i32
    return %c0_i32, %c0_i32_0, %c0_i32_1 : i32, i32, i32
  }
  func.func @transform_5(%arg0: i32) -> (i32, i32) {
    %c0_i32 = arith.constant 0 : i32
    %c0_i32_0 = arith.constant 0 : i32
    %c0_i32_1 = arith.constant 0 : i32
    return %c0_i32, %c0_i32_0 : i32, i32
  }
  func.func @transform_6(%arg0: i32) -> (i32, i32) {
    %c0_i32 = arith.constant 0 : i32
    %c0_i32_0 = arith.constant 0 : i32
    %c0_i32_1 = arith.constant 0 : i32
    return %c0_i32, %c0_i32_0 : i32, i32
  }
  func.func @transform_7(%arg0: i32) -> (i32, i32) {
    %c0_i32 = arith.constant 0 : i32
    %c0_i32_0 = arith.constant 0 : i32
    %c0_i32_1 = arith.constant 0 : i32
    return %c0_i32, %c0_i32_0 : i32, i32
  }
}

</mosaic_0001>

<bundles_post_ra>
// kernel: cnn_minesweeper_forward.1
= control target key start
LH: loop header
LB: loop body
LE: loop exit
PB: predicated region body
PF: predicated region fallthrough
CT: control target
= control target key end

     0   :  { %vm149_vm0 = vcmask 64512   ;;  %vm5120_vm1 = vcmask 130048   ;;  %s13510_s1 = inlined_call_operand.vmem [shape: f32[9,8,128], index: 1, kind: input, shape index: {}]   ;;  %s13511_s0 = inlined_call_operand.vmem [shape: f32[520,8], index: 0, kind: input, shape index: {}]   ;;  %s13512_s4 = inlined_call_operand.vmem [shape: f32[9,16,128], index: 4, kind: input, shape index: {}]   ;;  %s13513_s2 = inlined_call_operand.vmem [shape: f32[1,16], index: 2, kind: input, shape index: {}]   ;;  %s13514_s3 = inlined_call_operand.vmem [shape: f32[1,16], index: 3, kind: input, shape index: {}]   ;;  %s13515_s5 = inlined_call_operand.vmem [shape: f32[1,128], index: 5, kind: input, shape index: {}]   ;;  %s13516_s6 = inlined_call_operand.vmem [shape: f32[1,128], index: 6, kind: input, shape index: {}]   ;;  %s13517_s7 = inlined_call_operand.vmem [shape: f32[8,128], index: 7, kind: output, shape index: {}]  }
   0x1   :  { %v7431_v0 = vld [vmem:[%s13510_s1 + $0x8] sm:$0xff]  ;;  %v138_v3 = vld [vmem:[%s13511_s0 + $0x199] sm:$0xff]  ;;  %v133_v7 = vld [vmem:[%s13511_s0 + $0x171] sm:$0xff] }
   0x2   :  { %v87_v1 = vld [vmem:[%s13511_s0 + $0x1] sm:$0xff]  ;;  %v132_v2 = vld [vmem:[%s13511_s0 + $0x169] sm:$0xff]  ;;  %345 = vmatpush.msra.mxu0 %v7431_v0  ;;  %8185 = vmatpush.msra.mxu1 %v7431_v0  ;;  %v145_v9 = vld [vmem:[%s13511_s0 + $0x1d1] sm:$0xff] }
   0x3   :  { %v7674_v4 = vld [vmem:[%s13510_s1 + $0x20] sm:$0xff]  ;;  %8186 = vmatpush.msra.mxu2 %v7431_v0  ;;  %7432 = vmatmul.msk.f32.vlgmr.msra.gmra.mxu0 %vm149_vm0, %v87_v1  ;;  %v144_v5 = vld [vmem:[%s13511_s0 + $0x1c9] sm:$0xff]  ;;  %v89_v12 = vld [vmem:[%s13511_s0 + $0x11] sm:$0xff] }
   0x4   :  { %7477 = vmatmul.msk.f32.vlgmr.msra.gmra.mxu1 %vm149_vm0, %v132_v2  ;;  %7483 = vmatmul.msk.f32.vlgmr.msra.gmra.mxu2 %vm149_vm0, %v138_v3  ;;  %v88_v6 = vld [vmem:[%s13511_s0 + $0x9] sm:$0xff]  ;;  %v139_v8 = vld [vmem:[%s13511_s0 + $0x1a1] sm:$0xff]  ;;  %v134_v13 = vld [vmem:[%s13511_s0 + $0x179] sm:$0xff] }
   0x5   :  { %2159 = vmatpush.msrb.mxu0 %v7674_v4  ;;  %8187 = vmatpush.msra.mxu3 %v7431_v0  ;;  %v86_v10 = vld [vmem:[%s13510_s1] sm:$0xff]  ;;  %v7552_v11 = vld [vmem:[%s13510_s1 + $0x10] sm:$0xff]  ;;  %v7613_v16 = vld [vmem:[%s13510_s1 + $0x18] sm:$0xff] }
   0x6   :  { %7489 = vmatmul.msk.f32.vlgmr.msra.gmra.mxu3 %vm149_vm0, %v144_v5  ;;  %722 = vmatpush.msrb.mxu1 %v86_v10  ;;  %v140_v14 = vld [vmem:[%s13511_s0 + $0x1a9] sm:$0xff]  ;;  %v146_v15 = vld [vmem:[%s13511_s0 + $0x1d9] sm:$0xff]  ;;  %v135_v18 = vld [vmem:[%s13511_s0 + $0x181] sm:$0xff] }
   0x7   :  { %1161 = vmatpush.msrb.mxu2 %v7552_v11  ;;  %1660 = vmatpush.msrb.mxu3 %v7613_v16  ;;  %v90_v17 = vld [vmem:[%s13511_s0 + $0x19] sm:$0xff]  ;;  %v141_v19 = vld [vmem:[%s13511_s0 + $0x1b1] sm:$0xff]  ;;  %v91_v21 = vld [vmem:[%s13511_s0 + $0x21] sm:$0xff] }
   0x8   :  { %v1403_v20 = vld [vmem:[%s13511_s0 + $0x10] sm:$0xff]  ;;  %v142_v23 = vld [vmem:[%s13511_s0 + $0x1b9] sm:$0xff]  ;;  %v143_v27 = vld [vmem:[%s13511_s0 + $0x1c1] sm:$0xff] }
   0x9   :  { %v136_v22 = vld [vmem:[%s13511_s0 + $0x189] sm:$0xff]  ;;  %v1404_v24 = vld [vmem:[%s13511_s0 + $0x18] sm:$0xff]  ;;  %v1405_v28 = vld [vmem:[%s13511_s0 + $0x20] sm:$0xff] }
   0xa   :  { %v92_v25 = vld [vmem:[%s13511_s0 + $0x29] sm:$0xff]  ;;  %v137_v26 = vld [vmem:[%s13511_s0 + $0x191] sm:$0xff]  ;;  %v26_v30 = vld [vmem:[%s13511_s0] sm:$0xff] }
   0xb   :  { %7433 = vmatmul.msk.f32.gmra.mxu0 %vm149_vm0, %v88_v6  ;;  %v93_v29 = vld [vmem:[%s13511_s0 + $0x31] sm:$0xff]  ;;  %v904_v31 = vld [vmem:[%s13511_s0 + $0x2] sm:$0xff]  ;;  %v94_v33 = vld [vmem:[%s13511_s0 + $0x39] sm:$0xff] }
   0xc   :  { %7478 = vmatmul.msk.f32.gmra.mxu1 %vm149_vm0, %v133_v7  ;;  %7484 = vmatmul.msk.f32.gmra.mxu2 %vm149_vm0, %v139_v8  ;;  %v1406_v32 = vld [vmem:[%s13511_s0 + $0x28] sm:$0xff]  ;;  %v1407_v36 = vld [vmem:[%s13511_s0 + $0x30] sm:$0xff]  ;;  %v1408_v39 = vld [vmem:[%s13511_s0 + $0x38] sm:$0xff] }
   0xd   :  { %v27_v34 = vld [vmem:[%s13511_s0 + $0x8] sm:$0xff]  ;;  %v906_v38 = vld [vmem:[%s13511_s0 + $0x12] sm:$0xff]  ;;  %v907_v41 = vld [vmem:[%s13511_s0 + $0x1a] sm:$0xff] }
   0xe   :  { %7490 = vmatmul.msk.f32.gmra.mxu3 %vm149_vm0, %v145_v9  ;;  %v905_v35 = vld [vmem:[%s13511_s0 + $0xa] sm:$0xff]  ;;  %v95_v37 = vld [vmem:[%s13511_s0 + $0x41] sm:$0xff]  ;;  %v98_v46 = vld [vmem:[%s13511_s0 + $0x59] sm:$0xff] }
   0xf   :  { %v96_v40 = vld [vmem:[%s13511_s0 + $0x49] sm:$0xff]  ;;  %v1409_v42 = vld [vmem:[%s13511_s0 + $0x40] sm:$0xff]  ;;  %v97_v43 = vld [vmem:[%s13511_s0 + $0x51] sm:$0xff] }
  0x10   :  { %v908_v44 = vld [vmem:[%s13511_s0 + $0x22] sm:$0xff]  ;;  %v909_v47 = vld [vmem:[%s13511_s0 + $0x2a] sm:$0xff]  ;;  %v910_v50 = vld [vmem:[%s13511_s0 + $0x32] sm:$0xff] }
  0x11   :  { %v1410_v45 = vld [vmem:[%s13511_s0 + $0x48] sm:$0xff]  ;;  %v1411_v48 = vld [vmem:[%s13511_s0 + $0x50] sm:$0xff]  ;;  %v1412_v51 = vld [vmem:[%s13511_s0 + $0x58] sm:$0xff] }
  0x12   :  { %v99_v49 = vld [vmem:[%s13511_s0 + $0x61] sm:$0xff]  ;;  %v100_v52 = vld [vmem:[%s13511_s0 + $0x69] sm:$0xff]  ;;  %v101_v55 = vld [vmem:[%s13511_s0 + $0x71] sm:$0xff] }
  0x13   :  { %7434 = vmatmul.msk.f32.gmra.mxu0 %vm149_vm0, %v89_v12  ;;  %v911_v53 = vld [vmem:[%s13511_s0 + $0x3a] sm:$0xff]  ;;  %v912_v56 = vld [vmem:[%s13511_s0 + $0x42] sm:$0xff]  ;;  %v913_v59 = vld [vmem:[%s13511_s0 + $0x4a] sm:$0xff] }
  0x14   :  { %7479 = vmatmul.msk.f32.gmra.mxu1 %vm149_vm0, %v134_v13  ;;  %7485 = vmatmul.msk.f32.gmra.mxu2 %vm149_vm0, %v140_v14  ;;  %v1413_v54 = vld [vmem:[%s13511_s0 + $0x60] sm:$0xff]  ;;  %v1414_v57 = vld [vmem:[%s13511_s0 + $0x68] sm:$0xff]  ;;  %v1415_v60 = vld [vmem:[%s13511_s0 + $0x70] sm:$0xff] }
  0x15   :  { %v102_v58 = vld [vmem:[%s13511_s0 + $0x79] sm:$0xff]  ;;  %v103_v62 = vld [vmem:[%s13511_s0 + $0x81] sm:$0xff]  ;;  %v104_v4 = vld [vmem:[%s13511_s0 + $0x89] sm:$0xff] }
  0x16   :  { %7491 = vmatmul.msk.f32.gmra.mxu3 %vm149_vm0, %v146_v15  ;;  %v914_v0 = vld [vmem:[%s13511_s0 + $0x52] sm:$0xff]  ;;  %v915_v6 = vld [vmem:[%s13511_s0 + $0x5a] sm:$0xff]  ;;  %v916_v13 = vld [vmem:[%s13511_s0 + $0x62] sm:$0xff] }
  0x17   :  { %v1416_v1 = vld [vmem:[%s13511_s0 + $0x78] sm:$0xff]  ;;  %v1417_v8 = vld [vmem:[%s13511_s0 + $0x80] sm:$0xff]  ;;  %v1418_v15 = vld [vmem:[%s13511_s0 + $0x88] sm:$0xff] }
  0x18   :  { %v105_v11 = vld [vmem:[%s13511_s0 + $0x91] sm:$0xff] }
  0x1b   :  { %7435 = vmatmul.msk.f32.gmra.mxu0 %vm149_vm0, %v90_v17 }
  0x1c   :  { %7480 = vmatmul.msk.f32.gmra.mxu1 %vm149_vm0, %v135_v18  ;;  %7486 = vmatmul.msk.f32.gmra.mxu2 %vm149_vm0, %v141_v19  ;;  %v106_v18 = vld [vmem:[%s13511_s0 + $0x99] sm:$0xff] }
  0x1e   :  { %7614 = vmatmul.msk.f32.vlgmr.msrb.gmra.mxu3 %vm149_vm0, %v1403_v20 }
  0x23   :  { %7436 = vmatmul.msk.f32.gmra.mxu0 %vm149_vm0, %v91_v21 }
  0x24   :  { %7481 = vmatmul.msk.f32.gmra.mxu1 %vm149_vm0, %v136_v22  ;;  %7487 = vmatmul.msk.f32.gmra.mxu2 %vm149_vm0, %v142_v23  ;;  %v1419_v22 = vld [vmem:[%s13511_s0 + $0x90] sm:$0xff] }
  0x26   :  { %7615 = vmatmul.msk.f32.gmra.mxu3 %vm149_vm0, %v1404_v24 }
  0x2b   :  { %7437 = vmatmul.msk.f32.gmra.mxu0 %vm149_vm0, %v92_v25  ;;  %v107_v25 = vld [vmem:[%s13511_s0 + $0xa1] sm:$0xff] }
  0x2c   :  { %7482 = vmatmul.msk.f32.gmra.mxu1 %vm149_vm0, %v137_v26  ;;  %7488 = vmatmul.msk.f32.gmra.mxu2 %vm149_vm0, %v143_v27  ;;  %v918_v27 = vld [vmem:[%s13511_s0 + $0x72] sm:$0xff] }
  0x2e   :  { %7616 = vmatmul.msk.f32.gmra.mxu3 %vm149_vm0, %v1405_v28 }
  0x33   :  { %7438 = vmatmul.msk.f32.gmra.mxu0 %vm149_vm0, %v93_v29  ;;  %v8577_v29 = vld [vmem:[%s13511_s0 + $0x98] sm:$0xff] }
  0x34   :  { %7492 = vmatmul.msk.f32.vlgmr.msrb.gmra.mxu1 %vm149_vm0, %v26_v30  ;;  %7553 = vmatmul.msk.f32.vlgmr.msrb.gmra.mxu2 %vm149_vm0, %v904_v31 }
  0x36   :  { %7617 = vmatmul.msk.f32.gmra.mxu3 %vm149_vm0, %v1406_v32 }
  0x3b   :  { %7439 = vmatmul.msk.f32.gmra.mxu0 %vm149_vm0, %v94_v33 }
  0x3c   :  { %7493 = vmatmul.msk.f32.gmra.mxu1 %vm149_vm0, %v27_v34  ;;  %7554 = vmatmul.msk.f32.gmra.mxu2 %vm149_vm0, %v905_v35  ;;  %v919_v34 = vld [vmem:[%s13511_s0 + $0x7a] sm:$0xff] }
  0x3e   :  { %7618 = vmatmul.msk.f32.gmra.mxu3 %vm149_vm0, %v1407_v36 }
  0x43   :  { %7440 = vmatmul.msk.f32.gmra.mxu0 %vm149_vm0, %v95_v37 }
  0x44   :  { %7494 = vmatmul.msk.f32.gmra.mxu1 %vm149_vm0, %v1403_v20  ;;  %7555 = vmatmul.msk.f32.gmra.mxu2 %vm149_vm0, %v906_v38  ;;  %v917_v20 = vld [vmem:[%s13511_s0 + $0x6a] sm:$0xff] }
  0x46   :  { %7619 = vmatmul.msk.f32.gmra.mxu3 %vm149_vm0, %v1408_v39 }
  0x4b   :  { %7441 = vmatmul.msk.f32.gmra.mxu0 %vm149_vm0, %v96_v40 }
  0x4c   :  { %7495 = vmatmul.msk.f32.gmra.mxu1 %vm149_vm0, %v1404_v24  ;;  %7556 = vmatmul.msk.f32.gmra.mxu2 %vm149_vm0, %v907_v41  ;;  %v920_v41 = vld [vmem:[%s13511_s0 + $0x82] sm:$0xff] }
  0x4e   :  { %7620 = vmatmul.msk.f32.gmra.mxu3 %vm149_vm0, %v1409_v42 }
  0x53   :  { %7442 = vmatmul.msk.f32.gmra.mxu0 %vm149_vm0, %v97_v43  ;;  %v8619_v43 = vld [vmem:[%s13511_s0 + $0xa8] sm:$0xff] }
  0x54   :  { %7496 = vmatmul.msk.f32.gmra.mxu1 %vm149_vm0, %v1405_v28  ;;  %7557 = vmatmul.msk.f32.gmra.mxu2 %vm149_vm0, %v908_v44 }
  0x56   :  { %7621 = vmatmul.msk.f32.gmra.mxu3 %vm149_vm0, %v1410_v45 }
  0x5b   :  { %7443 = vmatmul.msk.f32.gmra.mxu0 %vm149_vm0, %v98_v46 }
  0x5c   :  { %7497 = vmatmul.msk.f32.gmra.mxu1 %vm149_vm0, %v1406_v32  ;;  %7558 = vmatmul.msk.f32.gmra.mxu2 %vm149_vm0, %v909_v47  ;;  %v108_v32 = vld [vmem:[%s13511_s0 + $0xa9] sm:$0xff] }
  0x5e   :  { %7622 = vmatmul.msk.f32.gmra.mxu3 %vm149_vm0, %v1411_v48 }
  0x63   :  { %7444 = vmatmul.msk.f32.gmra.mxu0 %vm149_vm0, %v99_v49 }
  0x64   :  { %7498 = vmatmul.msk.f32.gmra.mxu1 %vm149_vm0, %v1407_v36  ;;  %7559 = vmatmul.msk.f32.gmra.mxu2 %vm149_vm0, %v910_v50  ;;  %v8599_v36 = vld [vmem:[%s13511_s0 + $0xa0] sm:$0xff]  ;;  %v921_v50 = vld [vmem:[%s13511_s0 + $0x8a] sm:$0xff] }
  0x66   :  { %7623 = vmatmul.msk.f32.gmra.mxu3 %vm149_vm0, %v1412_v51 }
  0x6b   :  { %7445 = vmatmul.msk.f32.gmra.mxu0 %vm149_vm0, %v100_v52 }
  0x6c   :  { %7499 = vmatmul.msk.f32.gmra.mxu1 %vm149_vm0, %v1408_v39  ;;  %7560 = vmatmul.msk.f32.gmra.mxu2 %vm149_vm0, %v911_v53  ;;  %v109_v39 = vld [vmem:[%s13511_s0 + $0xb1] sm:$0xff] }
  0x6d   :  { %v8640_v53 = vld [vmem:[%s13511_s0 + $0xb0] sm:$0xff] }
  0x6e   :  { %7624 = vmatmul.msk.f32.gmra.mxu3 %vm149_vm0, %v1413_v54 }
  0x73   :  { %7446 = vmatmul.msk.f32.gmra.mxu0 %vm149_vm0, %v101_v55 }
  0x74   :  { %7500 = vmatmul.msk.f32.gmra.mxu1 %vm149_vm0, %v1409_v42  ;;  %7561 = vmatmul.msk.f32.gmra.mxu2 %vm149_vm0, %v912_v56 }
  0x76   :  { %7625 = vmatmul.msk.f32.gmra.mxu3 %vm149_vm0, %v1414_v57 }
  0x7b   :  { %7447 = vmatmul.msk.f32.gmra.mxu0 %vm149_vm0, %v102_v58  ;;  %v111_v58 = vld [vmem:[%s13511_s0 + $0xc1] sm:$0xff] }
  0x7c   :  { %7501 = vmatmul.msk.f32.gmra.mxu1 %vm149_vm0, %v1410_v45  ;;  %7562 = vmatmul.msk.f32.gmra.mxu2 %vm149_vm0, %v913_v59 }
  0x7e   :  { %7626 = vmatmul.msk.f32.gmra.mxu3 %vm149_vm0, %v1415_v60 }
  0x80   :  { %v8481_v61 = vpop.f32.mrf.mxu0 }
  0x81   :  { %v8486_v63 = vpop.f32.mrf.mxu1 }
  0x83   :  { %7448 = vmatmul.msk.f32.gmra.mxu0 %vm149_vm0, %v103_v62 }
  0x84   :  { %7502 = vmatmul.msk.f32.gmra.mxu1 %vm149_vm0, %v1411_v48  ;;  %7563 = vmatmul.msk.f32.gmra.mxu2 %vm149_vm0, %v914_v0  ;;  %v110_v48 = vld [vmem:[%s13511_s0 + $0xb9] sm:$0xff] }
  0x85   :  { %v8661_v0 = vld [vmem:[%s13511_s0 + $0xb8] sm:$0xff] }
  0x86   :  { %7627 = vmatmul.msk.f32.gmra.mxu3 %vm149_vm0, %v1416_v1 }
  0x87   :  { %v8498_v2 = vpop.f32.mrf.mxu2 }
  0x88   :  { %v8500_v3 = vpop.f32.mrf.mxu0 }
  0x89   :  { %v8505_v5 = vpop.f32.mrf.mxu1  ;;  %v8510_v7 = vpop.f32.mrf.mxu3 }
  0x8b   :  { %7449 = vmatmul.msk.f32.gmra.mxu0 %vm149_vm0, %v104_v4 }
  0x8c   :  { %7503 = vmatmul.msk.f32.gmra.mxu1 %vm149_vm0, %v1412_v51  ;;  %7564 = vmatmul.msk.f32.gmra.mxu2 %vm149_vm0, %v915_v6 }
  0x8e   :  { %7628 = vmatmul.msk.f32.gmra.mxu3 %vm149_vm0, %v1417_v8 }
  0x8f   :  { %v8519_v9 = vpop.f32.mrf.mxu2 }
  0x90   :  { %v8521_v10 = vpop.f32.mrf.mxu0 }
  0x91   :  { %v8526_v12 = vpop.f32.mrf.mxu1  ;;  %v8531_v14 = vpop.f32.mrf.mxu3 }
  0x93   :  { %7450 = vmatmul.msk.f32.gmra.mxu0 %vm149_vm0, %v105_v11 }
  0x94   :  { %7504 = vmatmul.msk.f32.gmra.mxu1 %vm149_vm0, %v1413_v54  ;;  %7565 = vmatmul.msk.f32.gmra.mxu2 %vm149_vm0, %v916_v13  ;;  %v923_v13 = vld [vmem:[%s13511_s0 + $0x9a] sm:$0xff] }
  0x96   :  { %7629 = vmatmul.msk.f32.gmra.mxu3 %vm149_vm0, %v1418_v15 }
  0x97   :  { %v8540_v16 = vpop.f32.mrf.mxu2 }
  0x98   :  { %v8542_v17 = vpop.f32.mrf.mxu0 }
  0x99   :  { %v8547_v19 = vpop.f32.mrf.mxu1  ;;  %v8552_v21 = vpop.f32.mrf.mxu3 }
  0x9b   :  { %7451 = vmatmul.msk.f32.gmra.mxu0 %vm149_vm0, %v106_v18 }
  0x9c   :  { %7505 = vmatmul.msk.f32.gmra.mxu1 %vm149_vm0, %v1414_v57  ;;  %7566 = vmatmul.msk.f32.gmra.mxu2 %vm149_vm0, %v917_v20 }
  0x9e   :  { %7630 = vmatmul.msk.f32.gmra.mxu3 %vm149_vm0, %v1419_v22 }
  0x9f   :  { %v8561_v23 = vpop.f32.mrf.mxu2 }
  0xa0   :  { %v8563_v24 = vpop.f32.mrf.mxu0 }
  0xa1   :  { %v8568_v26 = vpop.f32.mrf.mxu1  ;;  %v1662_v28 = vpop.f32.mrf.mxu3 }
  0xa3   :  { %7452 = vmatmul.msk.f32.gmra.mxu0 %vm149_vm0, %v107_v25 }
  0xa4   :  { %7506 = vmatmul.msk.f32.gmra.mxu1 %vm149_vm0, %v1415_v60  ;;  %7567 = vmatmul.msk.f32.gmra.mxu2 %vm149_vm0, %v918_v27  ;;  %v922_v60 = vld [vmem:[%s13511_s0 + $0x92] sm:$0xff] }
  0xa6   :  { %7631 = vmatmul.msk.f32.gmra.mxu3 %vm149_vm0, %v8577_v29 }
  0xa7   :  { %v8583_v30 = vpop.f32.mrf.mxu2 }
  0xa8   :  { %v8585_v31 = vpop.f32.mrf.mxu0 }
  0xa9   :  { %v8590_v33 = vpop.f32.mrf.mxu1  ;;  %v1665_v35 = vpop.f32.mrf.mxu3 }
  0xab   :  { %7453 = vmatmul.msk.f32.gmra.mxu0 %vm149_vm0, %v108_v32 }
  0xac   :  { %7507 = vmatmul.msk.f32.gmra.mxu1 %vm149_vm0, %v1416_v1  ;;  %7568 = vmatmul.msk.f32.gmra.mxu2 %vm149_vm0, %v919_v34 }
  0xae   :  { %7632 = vmatmul.msk.f32.gmra.mxu3 %vm149_vm0, %v8599_v36 }
  0xaf   :  { %v8605_v37 = vpop.f32.mrf.mxu2 }
  0xb0   :  { %v8607_v38 = vpop.f32.mrf.mxu0 }
  0xb1   :  { %v724_v40 = vpop.f32.mrf.mxu1  ;;  %v1668_v42 = vpop.f32.mrf.mxu3 }
  0xb2   :  { %v725_v44 = vadd.f32 %v724_v40, %v8481_v61 }
  0xb3   :  { %7454 = vmatmul.msk.f32.gmra.mxu0 %vm149_vm0, %v109_v39 }
  0xb4   :  { %7508 = vmatmul.msk.f32.gmra.mxu1 %vm149_vm0, %v1417_v8  ;;  %7569 = vmatmul.msk.f32.gmra.mxu2 %vm149_vm0, %v920_v41  ;;  %v112_v8 = vld [vmem:[%s13511_s0 + $0xc9] sm:$0xff] }
  0xb6   :  { %7633 = vmatmul.msk.f32.gmra.mxu3 %vm149_vm0, %v8619_v43 }
  0xb7   :  { %v1163_v45 = vpop.f32.mrf.mxu2 }
  0xb8   :  { %v1343_v46 = vadd.f32 %v1163_v45, %v725_v44  ;;  %v8626_v47 = vpop.f32.mrf.mxu0  ;;  %v114_v44 = vld [vmem:[%s13511_s0 + $0xd9] sm:$0xff] }
  0xb9   :  { %v727_v49 = vpop.f32.mrf.mxu1  ;;  %v1671_v51 = vpop.f32.mrf.mxu3 }
  0xba   :  { %v8634_v52 = vadd.f32 %v1662_v28, %v1343_v46  ;;  %v728_v54 = vadd.f32 %v727_v49, %v8500_v3  ;;  %v113_v28 = vld [vmem:[%s13511_s0 + $0xd1] sm:$0xff] }
  0xbb   :  { %7455 = vmatmul.msk.f32.gmra.mxu0 %vm149_vm0, %v110_v48 }
  0xbc   :  { %7509 = vmatmul.msk.f32.gmra.mxu1 %vm149_vm0, %v1418_v15  ;;  %7570 = vmatmul.msk.f32.gmra.mxu2 %vm149_vm0, %v921_v50 }
  0xbe   :  { %7634 = vmatmul.msk.f32.gmra.mxu3 %vm149_vm0, %v8640_v53 }
  0xbf   :  { %v1166_v55 = vpop.f32.mrf.mxu2 }
  0xc0   :  { %v1344_v56 = vadd.f32 %v1166_v55, %v728_v54  ;;  %v8647_v57 = vpop.f32.mrf.mxu0  ;;  %v115_v55 = vld [vmem:[%s13511_s0 + $0xe1] sm:$0xff] }
  0xc1   :  { %v730_v59 = vpop.f32.mrf.mxu1  ;;  %v1674_v61 = vpop.f32.mrf.mxu3 }
  0xc2   :  { %v8655_v62 = vadd.f32 %v1665_v35, %v1344_v56  ;;  %v731_v1 = vadd.f32 %v730_v59, %v8521_v10  ;;  %v8682_v10 = vld [vmem:[%s13511_s0 + $0xc0] sm:$0xff] }
  0xc3   :  { %7456 = vmatmul.msk.f32.gmra.mxu0 %vm149_vm0, %v111_v58 }
  0xc4   :  { %7510 = vmatmul.msk.f32.gmra.mxu1 %vm149_vm0, %v1419_v22  ;;  %7571 = vmatmul.msk.f32.gmra.mxu2 %vm149_vm0, %v922_v60 }
  0xc6   :  { %7635 = vmatmul.msk.f32.gmra.mxu3 %vm149_vm0, %v8661_v0 }
  0xc7   :  { %v1169_v3 = vpop.f32.mrf.mxu2 }
  0xc8   :  { %v1345_v4 = vadd.f32 %v1169_v3, %v731_v1  ;;  %v8668_v6 = vpop.f32.mrf.mxu0 }
  0xc9   :  { %v733_v11 = vpop.f32.mrf.mxu1  ;;  %v1677_v15 = vpop.f32.mrf.mxu3 }
  0xca   :  { %v8676_v18 = vadd.f32 %v1668_v42, %v1345_v4  ;;  %v734_v20 = vadd.f32 %v733_v11, %v8542_v17  ;;  %v8704_v17 = vld [vmem:[%s13511_s0 + $0xc8] sm:$0xff] }
  0xcb   :  { %7457 = vmatmul.msk.f32.gmra.mxu0 %vm149_vm0, %v112_v8  ;;  %v116_v4 = vld [vmem:[%s13511_s0 + $0xe9] sm:$0xff] }
  0xcc   :  { %7511 = vmatmul.msk.f32.gmra.mxu1 %vm149_vm0, %v8577_v29  ;;  %7572 = vmatmul.msk.f32.gmra.mxu2 %vm149_vm0, %v923_v13  ;;  %v924_v29 = vld [vmem:[%s13511_s0 + $0xa2] sm:$0xff] }
  0xce   :  { %7636 = vmatmul.msk.f32.gmra.mxu3 %vm149_vm0, %v8682_v10 }
  0xcf   :  { %v1172_v22 = vpop.f32.mrf.mxu2 }
  0xd0   :  { %v1346_v25 = vadd.f32 %v1172_v22, %v734_v20  ;;  %v8690_v27 = vpop.f32.mrf.mxu0 }
  0xd1   :  { %v736_v32 = vpop.f32.mrf.mxu1  ;;  %v1680_v34 = vpop.f32.mrf.mxu3 }
  0xd2   :  { %v8698_v35 = vadd.f32 %v1671_v51, %v1346_v25  ;;  %v737_v39 = vadd.f32 %v736_v32, %v8563_v24  ;;  %v8726_v24 = vld [vmem:[%s13511_s0 + $0xd0] sm:$0xff] }
  0xd3   :  { %7458 = vmatmul.msk.f32.gmra.mxu0 %vm149_vm0, %v113_v28  ;;  %v117_v28 = vld [vmem:[%s13511_s0 + $0xf1] sm:$0xff] }
  0xd4   :  { %7512 = vmatmul.msk.f32.gmra.mxu1 %vm149_vm0, %v8599_v36  ;;  %7573 = vmatmul.msk.f32.gmra.mxu2 %vm149_vm0, %v924_v29  ;;  %v925_v36 = vld [vmem:[%s13511_s0 + $0xaa] sm:$0xff] }
  0xd6   :  { %7637 = vmatmul.msk.f32.gmra.mxu3 %vm149_vm0, %v8704_v17 }
  0xd7   :  { %v1175_v40 = vpop.f32.mrf.mxu2 }
  0xd8   :  { %v1347_v41 = vadd.f32 %v1175_v40, %v737_v39  ;;  %v8712_v42 = vpop.f32.mrf.mxu0 }
  0xd9   :  { %v739_v45 = vpop.f32.mrf.mxu1  ;;  %v1683_v46 = vpop.f32.mrf.mxu3 }
  0xda   :  { %v8720_v48 = vadd.f32 %v1674_v61, %v1347_v41  ;;  %v740_v49 = vadd.f32 %v739_v45, %v8585_v31  ;;  %v8748_v31 = vld [vmem:[%s13511_s0 + $0xd8] sm:$0xff] }
  0xdb   :  { %7459 = vmatmul.msk.f32.gmra.mxu0 %vm149_vm0, %v114_v44  ;;  %v118_v45 = vld [vmem:[%s13511_s0 + $0xf9] sm:$0xff] }
  0xdc   :  { %7513 = vmatmul.msk.f32.gmra.mxu1 %vm149_vm0, %v8619_v43  ;;  %7574 = vmatmul.msk.f32.gmra.mxu2 %vm149_vm0, %v925_v36  ;;  %v926_v43 = vld [vmem:[%s13511_s0 + $0xb2] sm:$0xff] }
  0xde   :  { %7638 = vmatmul.msk.f32.gmra.mxu3 %vm149_vm0, %v8726_v24 }
  0xdf   :  { %v1178_v50 = vpop.f32.mrf.mxu2 }
  0xe0   :  { %v1348_v51 = vadd.f32 %v1178_v50, %v740_v49  ;;  %v8734_v54 = vpop.f32.mrf.mxu0 }
  0xe1   :  { %v742_v56 = vpop.f32.mrf.mxu1  ;;  %v1686_v58 = vpop.f32.mrf.mxu3 }
  0xe2   :  { %v8742_v59 = vadd.f32 %v1677_v15, %v1348_v51  ;;  %v743_v60 = vadd.f32 %v742_v56, %v8607_v38  ;;  %v8770_v38 = vld [vmem:[%s13511_s0 + $0xe0] sm:$0xff] }
  0xe3   :  { %7460 = vmatmul.msk.f32.gmra.mxu0 %vm149_vm0, %v115_v55 }
  0xe4   :  { %7514 = vmatmul.msk.f32.gmra.mxu1 %vm149_vm0, %v8640_v53  ;;  %7575 = vmatmul.msk.f32.gmra.mxu2 %vm149_vm0, %v926_v43  ;;  %v927_v53 = vld [vmem:[%s13511_s0 + $0xba] sm:$0xff] }
  0xe5   :  { %v119_v43 = vld [vmem:[%s13511_s0 + $0x101] sm:$0xff] }
  0xe6   :  { %7639 = vmatmul.msk.f32.gmra.mxu3 %vm149_vm0, %v8748_v31 }
  0xe7   :  { %v1181_v61 = vpop.f32.mrf.mxu2 }
  0xe8   :  { %v1349_v1 = vadd.f32 %v1181_v61, %v743_v60  ;;  %v8756_v3 = vpop.f32.mrf.mxu0 }
  0xe9   :  { %v745_v8 = vpop.f32.mrf.mxu1  ;;  %v1689_v11 = vpop.f32.mrf.mxu3 }
  0xea   :  { %v8764_v13 = vadd.f32 %v1680_v34, %v1349_v1  ;;  %v746_v15 = vadd.f32 %v745_v8, %v8626_v47  ;;  %v8792_v47 = vld [vmem:[%s13511_s0 + $0xe8] sm:$0xff] }
  0xeb   :  { %7461 = vmatmul.msk.f32.gmra.mxu0 %vm149_vm0, %v116_v4 }
  0xec   :  { %7515 = vmatmul.msk.f32.gmra.mxu1 %vm149_vm0, %v8661_v0  ;;  %7576 = vmatmul.msk.f32.gmra.mxu2 %vm149_vm0, %v927_v53  ;;  %v928_v0 = vld [vmem:[%s13511_s0 + $0xc2] sm:$0xff] }
  0xee   :  { %7640 = vmatmul.msk.f32.gmra.mxu3 %vm149_vm0, %v8770_v38 }
  0xef   :  { %v1184_v20 = vpop.f32.mrf.mxu2 }
  0xf0   :  { %v1350_v22 = vadd.f32 %v1184_v20, %v746_v15  ;;  %v8778_v25 = vpop.f32.mrf.mxu0 }
  0xf1   :  { %v748_v32 = vpop.f32.mrf.mxu1  ;;  %v1692_v29 = vpop.f32.mrf.mxu3 }
  0xf2   :  { %v8786_v34 = vadd.f32 %v1683_v46, %v1350_v22  ;;  %v749_v39 = vadd.f32 %v748_v32, %v8647_v57  ;;  %v8814_v57 = vld [vmem:[%s13511_s0 + $0xf0] sm:$0xff] }
  0xf3   :  { %7462 = vmatmul.msk.f32.gmra.mxu0 %vm149_vm0, %v117_v28 }
  0xf4   :  { %7516 = vmatmul.msk.f32.gmra.mxu1 %vm149_vm0, %v8682_v10  ;;  %7577 = vmatmul.msk.f32.gmra.mxu2 %vm149_vm0, %v928_v0  ;;  %v929_v10 = vld [vmem:[%s13511_s0 + $0xca] sm:$0xff] }
  0xf6   :  { %7641 = vmatmul.msk.f32.gmra.mxu3 %vm149_vm0, %v8792_v47 }
  0xf7   :  { %v1187_v40 = vpop.f32.mrf.mxu2 }
  0xf8   :  { %v1351_v41 = vadd.f32 %v1187_v40, %v749_v39  ;;  %v8800_v44 = vpop.f32.mrf.mxu0  ;;  %v121_v39 = vld [vmem:[%s13511_s0 + $0x111] sm:$0xff] }
  0xf9   :  { %v751_v36 = vpop.f32.mrf.mxu1  ;;  %v1695_v46 = vpop.f32.mrf.mxu3 }
  0xfa   :  { %v8808_v49 = vadd.f32 %v1686_v58, %v1351_v41  ;;  %v752_v50 = vadd.f32 %v751_v36, %v8668_v6  ;;  %v8836_v6 = vld [vmem:[%s13511_s0 + $0xf8] sm:$0xff] }
  0xfb   :  { %7463 = vmatmul.msk.f32.gmra.mxu0 %vm149_vm0, %v118_v45 }
  0xfc   :  { %7517 = vmatmul.msk.f32.gmra.mxu1 %vm149_vm0, %v8704_v17  ;;  %7578 = vmatmul.msk.f32.gmra.mxu2 %vm149_vm0, %v929_v10  ;;  %v930_v17 = vld [vmem:[%s13511_s0 + $0xd2] sm:$0xff] }
  0xfe   :  { %7642 = vmatmul.msk.f32.gmra.mxu3 %vm149_vm0, %v8814_v57 }
  0xff   :  { %v1190_v51 = vpop.f32.mrf.mxu2 }
 0x100   :  { %v1352_v55 = vadd.f32 %v1190_v51, %v752_v50  ;;  %v8822_v56 = vpop.f32.mrf.mxu0  ;;  %v122_v51 = vld [vmem:[%s13511_s0 + $0x119] sm:$0xff] }
 0x101   :  { %v754_v58 = vpop.f32.mrf.mxu1  ;;  %v1698_v60 = vpop.f32.mrf.mxu3 }
 0x102   :  { %v8830_v61 = vadd.f32 %v1689_v11, %v1352_v55  ;;  %v755_v1 = vadd.f32 %v754_v58, %v8690_v27  ;;  %v120_v11 = vld [vmem:[%s13511_s0 + $0x109] sm:$0xff]  ;;  %v8858_v27 = vld [vmem:[%s13511_s0 + $0x100] sm:$0xff] }
 0x103   :  { %7464 = vmatmul.msk.f32.gmra.mxu0 %vm149_vm0, %v119_v43 }
 0x104   :  { %13662 = vst [vmem:[#allocation5_spill] sm:$0xff] %v8830_v61  ;;  %7518 = vmatmul.msk.f32.gmra.mxu1 %vm149_vm0, %v8726_v24  ;;  %7579 = vmatmul.msk.f32.gmra.mxu2 %vm149_vm0, %v930_v17  ;;  %v931_v24 = vld [vmem:[%s13511_s0 + $0xda] sm:$0xff] }
 0x106   :  { %7643 = vmatmul.msk.f32.gmra.mxu3 %vm149_vm0, %v8836_v6 }
 0x107   :  { %v1193_v4 = vpop.f32.mrf.mxu2 }
 0x108   :  { %v1353_v8 = vadd.f32 %v1193_v4, %v755_v1  ;;  %v8844_v53 = vpop.f32.mrf.mxu0 }
 0x109   :  { %v757_v15 = vpop.f32.mrf.mxu1  ;;  %v1701_v20 = vpop.f32.mrf.mxu3 }
 0x10a   :  { %v8852_v22 = vadd.f32 %v1692_v29, %v1353_v8  ;;  %v758_v28 = vadd.f32 %v757_v15, %v8712_v42  ;;  %v8880_v42 = vld [vmem:[%s13511_s0 + $0x108] sm:$0xff] }
 0x10b   :  { %7465 = vmatmul.msk.f32.gmra.mxu0 %vm149_vm0, %v120_v11  ;;  %v123_v8 = vld [vmem:[%s13511_s0 + $0x121] sm:$0xff] }
 0x10c   :  { %13663 = vst [vmem:[#allocation6_spill] sm:$0xff] %v8852_v22  ;;  %7519 = vmatmul.msk.f32.gmra.mxu1 %vm149_vm0, %v8748_v31  ;;  %7580 = vmatmul.msk.f32.gmra.mxu2 %vm149_vm0, %v931_v24  ;;  %v932_v31 = vld [vmem:[%s13511_s0 + $0xe2] sm:$0xff] }
 0x10e   :  { %7644 = vmatmul.msk.f32.gmra.mxu3 %vm149_vm0, %v8858_v27 }
 0x10f   :  { %v1196_v32 = vpop.f32.mrf.mxu2 }
 0x110   :  { %v1354_v0 = vadd.f32 %v1196_v32, %v758_v28  ;;  %v8866_v29 = vpop.f32.mrf.mxu0 }
 0x111   :  { %v760_v40 = vpop.f32.mrf.mxu1  ;;  %v1704_v41 = vpop.f32.mrf.mxu3 }
 0x112   :  { %v8874_v45 = vadd.f32 %v1695_v46, %v1354_v0  ;;  %v761_v36 = vadd.f32 %v760_v40, %v8734_v54  ;;  %v8902_v54 = vld [vmem:[%s13511_s0 + $0x110] sm:$0xff] }
 0x113   :  { %7466 = vmatmul.msk.f32.gmra.mxu0 %vm149_vm0, %v121_v39  ;;  %v124_v39 = vld [vmem:[%s13511_s0 + $0x129] sm:$0xff] }
 0x114   :  { %13664 = vst [vmem:[#allocation7_spill] sm:$0xff] %v8874_v45  ;;  %7520 = vmatmul.msk.f32.gmra.mxu1 %vm149_vm0, %v8770_v38  ;;  %7581 = vmatmul.msk.f32.gmra.mxu2 %vm149_vm0, %v932_v31  ;;  %v933_v38 = vld [vmem:[%s13511_s0 + $0xea] sm:$0xff] }
 0x116   :  { %7645 = vmatmul.msk.f32.gmra.mxu3 %vm149_vm0, %v8880_v42 }
 0x117   :  { %v1199_v10 = vpop.f32.mrf.mxu2 }
 0x118   :  { %v1355_v46 = vadd.f32 %v1199_v10, %v761_v36  ;;  %v8888_v50 = vpop.f32.mrf.mxu0 }
 0x119   :  { %v763_v55 = vpop.f32.mrf.mxu1  ;;  %v1707_v43 = vpop.f32.mrf.mxu3 }
 0x11a   :  { %v8896_v58 = vadd.f32 %v1698_v60, %v1355_v46  ;;  %v764_v17 = vadd.f32 %v763_v55, %v8756_v3  ;;  %v8924_v3 = vld [vmem:[%s13511_s0 + $0x118] sm:$0xff] }
 0x11b   :  { %7467 = vmatmul.msk.f32.gmra.mxu0 %vm149_vm0, %v122_v51  ;;  %v125_v55 = vld [vmem:[%s13511_s0 + $0x131] sm:$0xff] }
 0x11c   :  { %13665 = vst [vmem:[#allocation8_spill] sm:$0xff] %v8896_v58  ;;  %7521 = vmatmul.msk.f32.gmra.mxu1 %vm149_vm0, %v8792_v47  ;;  %7582 = vmatmul.msk.f32.gmra.mxu2 %vm149_vm0, %v933_v38  ;;  %v934_v47 = vld [vmem:[%s13511_s0 + $0xf2] sm:$0xff] }
 0x11e   :  { %7646 = vmatmul.msk.f32.gmra.mxu3 %vm149_vm0, %v8902_v54 }
 0x11f   :  { %v1202_v1 = vpop.f32.mrf.mxu2 }
 0x120   :  { %v1356_v60 = vadd.f32 %v1202_v1, %v764_v17  ;;  %v8910_v4 = vpop.f32.mrf.mxu0 }
 0x121   :  { %v766_v11 = vpop.f32.mrf.mxu1  ;;  %v1710_v15 = vpop.f32.mrf.mxu3 }
 0x122   :  { %v8918_v24 = vadd.f32 %v1701_v20, %v1356_v60  ;;  %v767_v28 = vadd.f32 %v766_v11, %v8778_v25  ;;  %v8946_v25 = vld [vmem:[%s13511_s0 + $0x120] sm:$0xff] }
 0x123   :  { %7468 = vmatmul.msk.f32.gmra.mxu0 %vm149_vm0, %v123_v8 }
 0x124   :  { %13666 = vst [vmem:[#allocation9_spill] sm:$0xff] %v8918_v24  ;;  %7522 = vmatmul.msk.f32.gmra.mxu1 %vm149_vm0, %v8814_v57  ;;  %7583 = vmatmul.msk.f32.gmra.mxu2 %vm149_vm0, %v934_v47  ;;  %v935_v57 = vld [vmem:[%s13511_s0 + $0xfa] sm:$0xff] }
 0x125   :  { %v126_v47 = vld [vmem:[%s13511_s0 + $0x139] sm:$0xff] }
 0x126   :  { %7647 = vmatmul.msk.f32.gmra.mxu3 %vm149_vm0, %v8924_v3 }
 0x127   :  { %v1205_v32 = vpop.f32.mrf.mxu2 }
 0x128   :  { %v1357_v20 = vadd.f32 %v1205_v32, %v767_v28  ;;  %v8932_v0 = vpop.f32.mrf.mxu0 }
 0x129   :  { %v769_v40 = vpop.f32.mrf.mxu1  ;;  %v1713_v31 = vpop.f32.mrf.mxu3 }
 0x12a   :  { %v8940_v36 = vadd.f32 %v1704_v41, %v1357_v20  ;;  %v770_v10 = vadd.f32 %v769_v40, %v8800_v44  ;;  %v8968_v44 = vld [vmem:[%s13511_s0 + $0x128] sm:$0xff] }
 0x12b   :  { %7469 = vmatmul.msk.f32.gmra.mxu0 %vm149_vm0, %v124_v39 }
 0x12c   :  { %13667 = vst [vmem:[#allocation10_spill] sm:$0xff] %v8940_v36  ;;  %7523 = vmatmul.msk.f32.gmra.mxu1 %vm149_vm0, %v8836_v6  ;;  %7584 = vmatmul.msk.f32.gmra.mxu2 %vm149_vm0, %v935_v57  ;;  %v936_v6 = vld [vmem:[%s13511_s0 + $0x102] sm:$0xff] }
 0x12e   :  { %7648 = vmatmul.msk.f32.gmra.mxu3 %vm149_vm0, %v8946_v25 }
 0x12f   :  { %v1208_v46 = vpop.f32.mrf.mxu2 }
 0x130   :  { %v1358_v41 = vadd.f32 %v1208_v46, %v770_v10  ;;  %v8954_v51 = vpop.f32.mrf.mxu0  ;;  %v127_v10 = vld [vmem:[%s13511_s0 + $0x141] sm:$0xff] }
 0x131   :  { %v772_v38 = vpop.f32.mrf.mxu1  ;;  %v1716_v17 = vpop.f32.mrf.mxu3 }
 0x132   :  { %v8962_v1 = vadd.f32 %v1707_v43, %v1358_v41  ;;  %v773_v60 = vadd.f32 %v772_v38, %v8822_v56  ;;  %v8990_v56 = vld [vmem:[%s13511_s0 + $0x130] sm:$0xff]  ;;  %v9015_v38 = vld [vmem:[%s13511_s0 + $0x138] sm:$0xff] }
 0x133   :  { %7470 = vmatmul.msk.f32.gmra.mxu0 %vm149_vm0, %v125_v55 }
 0x134   :  { %13668 = vst [vmem:[#allocation11_spill] sm:$0xff] %v8962_v1  ;;  %7524 = vmatmul.msk.f32.gmra.mxu1 %vm149_vm0, %v8858_v27  ;;  %7585 = vmatmul.msk.f32.gmra.mxu2 %vm149_vm0, %v936_v6  ;;  %v937_v27 = vld [vmem:[%s13511_s0 + $0x10a] sm:$0xff] }
 0x135   :  { %v7735_v6 = vld [vmem:[%s13510_s1 + $0x28] sm:$0xff] }
 0x136   :  { %7649 = vmatmul.msk.f32.gmra.mxu3 %vm149_vm0, %v8968_v44  ;;  %2658 = vmatpush.msra.mxu1 %v7735_v6 }
 0x137   :  { %v1211_v8 = vpop.f32.mrf.mxu2 }
 0x138   :  { %v1359_v43 = vadd.f32 %v1211_v8, %v773_v60  ;;  %v8976_v11 = vpop.f32.mrf.mxu0 }
 0x139   :  { %v775_v28 = vpop.f32.mrf.mxu1  ;;  %v1719_v32 = vpop.f32.mrf.mxu3 }
 0x13a   :  { %v8984_v20 = vadd.f32 %v1710_v15, %v1359_v43  ;;  %v776_v39 = vadd.f32 %v775_v28, %v8844_v53  ;;  %v7796_v53 = vld [vmem:[%s13510_s1 + $0x30] sm:$0xff] }
 0x13b   :  { %7471 = vmatmul.msk.f32.gmra.mxu0 %vm149_vm0, %v126_v47  ;;  %3157 = vmatpush.msra.mxu2 %v7796_v53  ;;  %v128_v47 = vld [vmem:[%s13511_s0 + $0x149] sm:$0xff] }
 0x13c   :  { %13669 = vst [vmem:[#allocation12_spill] sm:$0xff] %v8984_v20  ;;  %7525 = vmatmul.msk.f32.gmra.mxu1 %vm149_vm0, %v8880_v42  ;;  %7586 = vmatmul.msk.f32.gmra.mxu2 %vm149_vm0, %v937_v27  ;;  %v938_v42 = vld [vmem:[%s13511_s0 + $0x112] sm:$0xff]  ;;  %v939_v27 = vld [vmem:[%s13511_s0 + $0x11a] sm:$0xff] }
 0x13e   :  { %7650 = vmatmul.msk.f32.gmra.mxu3 %vm149_vm0, %v8990_v56 }
 0x13f   :  { %v1214_v40 = vpop.f32.mrf.mxu2 }
 0x140   :  { %v1360_v15 = vadd.f32 %v1214_v40, %v776_v39  ;;  %v8998_v57 = vpop.f32.mrf.mxu0 }
 0x141   :  { %v778_v46 = vpop.f32.mrf.mxu1  ;;  %v1722_v41 = vpop.f32.mrf.mxu3 }
 0x142   :  { %v9006_v55 = vadd.f32 %v1713_v31, %v1360_v15  ;;  %v7857_v31 = vld [vmem:[%s13510_s1 + $0x38] sm:$0xff]  ;;  %v779_v60 = vadd.f32 %v778_v46, %v8866_v29  ;;  %v9043_v29 = vld [vmem:[%s13511_s0 + $0x140] sm:$0xff] }
 0x143   :  { %7472 = vmatmul.msk.f32.gmra.mxu0 %vm149_vm0, %v127_v10  ;;  %3656 = vmatpush.msra.mxu3 %v7857_v31  ;;  %v7918_v15 = vld [vmem:[%s13510_s1 + $0x40] sm:$0xff] }
 0x144   :  { %13670 = vst [vmem:[#allocation13_spill] sm:$0xff] %v9006_v55  ;;  %7526 = vmatmul.msk.f32.gmra.mxu1 %vm149_vm0, %v8902_v54  ;;  %7587 = vmatmul.msk.f32.gmra.mxu2 %vm149_vm0, %v938_v42  ;;  %v940_v31 = vld [vmem:[%s13511_s0 + $0x122] sm:$0xff] }
 0x145   :  { %4155 = vmatpush.msra.mxu0 %v7918_v15 }
 0x146   :  { %7651 = vmatmul.msk.f32.gmra.mxu3 %vm149_vm0, %v9015_v38 }
 0x147   :  { %v1217_v8 = vpop.f32.mrf.mxu2 }
 0x148   :  { %v1361_v43 = vadd.f32 %v1217_v8, %v779_v60  ;;  %v9029_v54 = vpop.f32.mrf.mxu0 }
 0x149   :  { %v781_v28 = vpop.f32.mrf.mxu1  ;;  %v1725_v39 = vpop.f32.mrf.mxu3 }
 0x14a   :  { %v9037_v40 = vadd.f32 %v1716_v17, %v1361_v43  ;;  %v782_v17 = vadd.f32 %v781_v28, %v8888_v50  ;;  %v9068_v50 = vld [vmem:[%s13511_s0 + $0x148] sm:$0xff]  ;;  %v130_v28 = vld [vmem:[%s13511_s0 + $0x159] sm:$0xff] }
 0x14b   :  { %7473 = vmatmul.msk.f32.gmra.mxu0 %vm149_vm0, %v128_v47 }
 0x14c   :  { %13671 = vst [vmem:[#allocation14_spill] sm:$0xff] %v9037_v40  ;;  %7527 = vmatmul.msk.f32.gmra.mxu1 %vm149_vm0, %v8924_v3  ;;  %7588 = vmatmul.msk.f32.gmra.mxu2 %vm149_vm0, %v939_v27  ;;  %v129_v3 = vld [vmem:[%s13511_s0 + $0x151] sm:$0xff] }
 0x14e   :  { %7652 = vmatmul.msk.f32.gmra.mxu3 %vm149_vm0, %v9043_v29 }
 0x14f   :  { %v1220_v10 = vpop.f32.mrf.mxu2 }
 0x150   :  { %v1362_v46 = vadd.f32 %v1220_v10, %v782_v17  ;;  %v9054_v42 = vpop.f32.mrf.mxu0 }
 0x151   :  { %v784_v53 = vpop.f32.mrf.mxu1  ;;  %v1728_v6 = vpop.f32.mrf.mxu3 }
 0x152   :  { %v9062_v60 = vadd.f32 %v1719_v32, %v1362_v46  ;;  %v785_v8 = vadd.f32 %v784_v53, %v8910_v4  ;;  %v9090_v4 = vld [vmem:[%s13511_s0 + $0x150] sm:$0xff]  ;;  %v131_v53 = vld [vmem:[%s13511_s0 + $0x161] sm:$0xff] }
 0x153   :  { %7474 = vmatmul.msk.f32.gmra.mxu0 %vm149_vm0, %v129_v3 }
 0x154   :  { %13672 = vst [vmem:[#allocation15_spill] sm:$0xff] %v9062_v60  ;;  %7528 = vmatmul.msk.f32.gmra.mxu1 %vm149_vm0, %v8946_v25  ;;  %7589 = vmatmul.msk.f32.gmra.mxu2 %vm149_vm0, %v940_v31  ;;  %v941_v25 = vld [vmem:[%s13511_s0 + $0x12a] sm:$0xff] }
 0x156   :  { %7653 = vmatmul.msk.f32.gmra.mxu3 %vm149_vm0, %v9068_v50 }
 0x157   :  { %v1223_v43 = vpop.f32.mrf.mxu2 }
 0x158   :  { %v1363_v32 = vadd.f32 %v1223_v43, %v785_v8  ;;  %v9076_v47 = vpop.f32.mrf.mxu0 }
 0x159   :  { %v787_v27 = vpop.f32.mrf.mxu1  ;;  %v1731_v15 = vpop.f32.mrf.mxu3 }
 0x15a   :  { %v9084_v17 = vadd.f32 %v1722_v41, %v1363_v32  ;;  %v788_v10 = vadd.f32 %v787_v27, %v8932_v0  ;;  %v9112_v0 = vld [vmem:[%s13511_s0 + $0x158] sm:$0xff] }
 0x15b   :  { %7475 = vmatmul.msk.f32.gmra.mxu0 %vm149_vm0, %v130_v28 }
 0x15c   :  { %13673 = vst [vmem:[#allocation16_spill] sm:$0xff] %v9084_v17  ;;  %7529 = vmatmul.msk.f32.gmra.mxu1 %vm149_vm0, %v8968_v44  ;;  %7590 = vmatmul.msk.f32.gmra.mxu2 %vm149_vm0, %v941_v25  ;;  %v942_v44 = vld [vmem:[%s13511_s0 + $0x132] sm:$0xff] }
 0x15d   :  { %v1902_v25 = vld [vmem:[%s13511_s0 + $0x11] sm:$0xff] }
 0x15e   :  { %7654 = vmatmul.msk.f32.gmra.mxu3 %vm149_vm0, %v9090_v4 }
 0x15f   :  { %v1226_v46 = vpop.f32.mrf.mxu2 }
 0x160   :  { %v1364_v41 = vadd.f32 %v1226_v46, %v788_v10  ;;  %v9098_v3 = vpop.f32.mrf.mxu0 }
 0x161   :  { %v790_v31 = vpop.f32.mrf.mxu1  ;;  %v1734_v8 = vpop.f32.mrf.mxu3 }
 0x162   :  { %v9106_v43 = vadd.f32 %v1725_v39, %v1364_v41  ;;  %v791_v32 = vadd.f32 %v790_v31, %v8954_v51  ;;  %v9134_v51 = vld [vmem:[%s13511_s0 + $0x160] sm:$0xff] }
 0x163   :  { %7476 = vmatmul.msk.f32.gmra.mxu0 %vm149_vm0, %v131_v53 }
 0x164   :  { %13674 = vst [vmem:[#allocation17_spill] sm:$0xff] %v9106_v43  ;;  %7530 = vmatmul.msk.f32.gmra.mxu1 %vm149_vm0, %v8990_v56  ;;  %7591 = vmatmul.msk.f32.gmra.mxu2 %vm149_vm0, %v942_v44  ;;  %v943_v56 = vld [vmem:[%s13511_s0 + $0x13a] sm:$0xff] }
 0x166   :  { %7655 = vmatmul.msk.f32.gmra.mxu3 %vm149_vm0, %v9112_v0 }
 0x167   :  { %v1229_v28 = vpop.f32.mrf.mxu2 }
 0x168   :  { %v1365_v39 = vadd.f32 %v1229_v28, %v791_v32  ;;  %v9120_v27 = vpop.f32.mrf.mxu0  ;;  %v1903_v32 = vld [vmem:[%s13511_s0 + $0x19] sm:$0xff] }
 0x169   :  { %v793_v10 = vpop.f32.mrf.mxu1  ;;  %v1737_v46 = vpop.f32.mrf.mxu3 }
 0x16a   :  { %v9128_v41 = vadd.f32 %v1728_v6, %v1365_v39  ;;  %v794_v53 = vadd.f32 %v793_v10, %v8976_v11  ;;  %v9156_v11 = vld [vmem:[%s13511_s0 + $0x168] sm:$0xff] }
 0x16b   :  { %7675 = vmatmul.msk.f32.vlgmr.msrb.gmra.mxu0 %vm149_vm0, %v1902_v25 }
 0x16c   :  { %13675 = vst [vmem:[#allocation18_spill] sm:$0xff] %v9128_v41  ;;  %7531 = vmatmul.msk.f32.gmra.mxu1 %vm149_vm0, %v9015_v38  ;;  %7592 = vmatmul.msk.f32.gmra.mxu2 %vm149_vm0, %v943_v56  ;;  %v944_v38 = vld [vmem:[%s13511_s0 + $0x142] sm:$0xff] }
 0x16e   :  { %7656 = vmatmul.msk.f32.gmra.mxu3 %vm149_vm0, %v9134_v51 }
 0x16f   :  { %v1232_v31 = vpop.f32.mrf.mxu2 }
 0x170   :  { %v1366_v6 = vadd.f32 %v1232_v31, %v794_v53  ;;  %v9142_v44 = vpop.f32.mrf.mxu0  ;;  %v9169_v31 = vld [vmem:[%s13511_s0 + $0x21] sm:$0xff] }
 0x171   :  { %v796_v28 = vpop.f32.mrf.mxu1  ;;  %v1740_v39 = vpop.f32.mrf.mxu3 }
 0x172   :  { %v9150_v25 = vadd.f32 %v1731_v15, %v1366_v6  ;;  %v797_v10 = vadd.f32 %v796_v28, %v8998_v57  ;;  %v9181_v57 = vld [vmem:[%s13511_s0 + $0x170] sm:$0xff] }
 0x173   :  { %7676 = vmatmul.msk.f32.gmra.mxu0 %vm149_vm0, %v1903_v32 }
 0x174   :  { %13676 = vst [vmem:[#allocation19_spill] sm:$0xff] %v9150_v25  ;;  %7532 = vmatmul.msk.f32.gmra.mxu1 %vm149_vm0, %v9043_v29  ;;  %7593 = vmatmul.msk.f32.gmra.mxu2 %vm149_vm0, %v944_v38  ;;  %v945_v29 = vld [vmem:[%s13511_s0 + $0x14a] sm:$0xff] }
 0x176   :  { %7657 = vmatmul.msk.f32.gmra.mxu3 %vm149_vm0, %v9156_v11 }
 0x177   :  { %v1235_v56 = vpop.f32.mrf.mxu2 }
 0x178   :  { %v1367_v15 = vadd.f32 %v1235_v56, %v797_v10  ;;  %v9164_v53 = vpop.f32.mrf.mxu0 }
 0x179   :  { %v799_v6 = vpop.f32.mrf.mxu1  ;;  %v1743_v32 = vpop.f32.mrf.mxu3 }
 0x17a   :  { %v9174_v38 = vadd.f32 %v1734_v8, %v1367_v15  ;;  %v800_v28 = vadd.f32 %v799_v6, %v9029_v54  ;;  %v9194_v15 = vld [vmem:[%s13511_s0 + $0x29] sm:$0xff]  ;;  %v9206_v54 = vld [vmem:[%s13511_s0 + $0x178] sm:$0xff] }
 0x17b   :  { %7677 = vmatmul.msk.f32.gmra.mxu0 %vm149_vm0, %v9169_v31 }
 0x17c   :  { %13677 = vst [vmem:[#allocation20_spill] sm:$0xff] %v9174_v38  ;;  %7533 = vmatmul.msk.f32.gmra.mxu1 %vm149_vm0, %v9068_v50  ;;  %7594 = vmatmul.msk.f32.gmra.mxu2 %vm149_vm0, %v945_v29  ;;  %v946_v50 = vld [vmem:[%s13511_s0 + $0x152] sm:$0xff] }
 0x17e   :  { %7658 = vmatmul.msk.f32.gmra.mxu3 %vm149_vm0, %v9181_v57 }
 0x17f   :  { %v1238_v8 = vpop.f32.mrf.mxu2 }
 0x180   :  { %v1368_v10 = vadd.f32 %v1238_v8, %v800_v28  ;;  %v9189_v56 = vpop.f32.mrf.mxu0 }
 0x181   :  { %v802_v38 = vpop.f32.mrf.mxu1  ;;  %v1746_v29 = vpop.f32.mrf.mxu3 }
 0x182   :  { %v9199_v25 = vadd.f32 %v1737_v46, %v1368_v10  ;;  %v803_v6 = vadd.f32 %v802_v38, %v9054_v42  ;;  %v9219_v10 = vld [vmem:[%s13511_s0 + $0x31] sm:$0xff]  ;;  %v9231_v42 = vld [vmem:[%s13511_s0 + $0x180] sm:$0xff] }
 0x183   :  { %7678 = vmatmul.msk.f32.gmra.mxu0 %vm149_vm0, %v9194_v15 }
 0x184   :  { %13678 = vst [vmem:[#allocation21_spill] sm:$0xff] %v9199_v25  ;;  %7534 = vmatmul.msk.f32.gmra.mxu1 %vm149_vm0, %v9090_v4  ;;  %7595 = vmatmul.msk.f32.gmra.mxu2 %vm149_vm0, %v946_v50  ;;  %v947_v4 = vld [vmem:[%s13511_s0 + $0x15a] sm:$0xff] }
 0x186   :  { %7659 = vmatmul.msk.f32.gmra.mxu3 %vm149_vm0, %v9206_v54 }
 0x187   :  { %v1241_v46 = vpop.f32.mrf.mxu2 }
 0x188   :  { %v1369_v28 = vadd.f32 %v1241_v46, %v803_v6  ;;  %v9214_v8 = vpop.f32.mrf.mxu0 }
 0x189   :  { %v805_v25 = vpop.f32.mrf.mxu1  ;;  %v1749_v50 = vpop.f32.mrf.mxu3 }
 0x18a   :  { %v9224_v41 = vadd.f32 %v1740_v39, %v1369_v28  ;;  %v806_v38 = vadd.f32 %v805_v25, %v9076_v47  ;;  %v9244_v28 = vld [vmem:[%s13511_s0 + $0x39] sm:$0xff]  ;;  %v9256_v47 = vld [vmem:[%s13511_s0 + $0x188] sm:$0xff] }
 0x18b   :  { %7679 = vmatmul.msk.f32.gmra.mxu0 %vm149_vm0, %v9219_v10 }
 0x18c   :  { %13679 = vst [vmem:[#allocation22_spill] sm:$0xff] %v9224_v41  ;;  %7535 = vmatmul.msk.f32.gmra.mxu1 %vm149_vm0, %v9112_v0  ;;  %7596 = vmatmul.msk.f32.gmra.mxu2 %vm149_vm0, %v947_v4  ;;  %v948_v0 = vld [vmem:[%s13511_s0 + $0x162] sm:$0xff] }
 0x18e   :  { %7660 = vmatmul.msk.f32.gmra.mxu3 %vm149_vm0, %v9231_v42 }
 0x18f   :  { %v1244_v39 = vpop.f32.mrf.mxu2 }
 0x190   :  { %v1370_v6 = vadd.f32 %v1244_v39, %v806_v38  ;;  %v9239_v46 = vpop.f32.mrf.mxu0 }
 0x191   :  { %v808_v41 = vpop.f32.mrf.mxu1  ;;  %v1752_v4 = vpop.f32.mrf.mxu3 }
 0x192   :  { %v9249_v43 = vadd.f32 %v1743_v32, %v1370_v6  ;;  %v809_v25 = vadd.f32 %v808_v41, %v9098_v3  ;;  %v9269_v6 = vld [vmem:[%s13511_s0 + $0x41] sm:$0xff]  ;;  %v9281_v3 = vld [vmem:[%s13511_s0 + $0x190] sm:$0xff] }
 0x193   :  { %7680 = vmatmul.msk.f32.gmra.mxu0 %vm149_vm0, %v9244_v28 }
 0x194   :  { %13680 = vst [vmem:[#allocation23_spill] sm:$0xff] %v9249_v43  ;;  %7536 = vmatmul.msk.f32.gmra.mxu1 %vm149_vm0, %v9134_v51  ;;  %7597 = vmatmul.msk.f32.gmra.mxu2 %vm149_vm0, %v948_v0  ;;  %v949_v51 = vld [vmem:[%s13511_s0 + $0x16a] sm:$0xff] }
 0x196   :  { %7661 = vmatmul.msk.f32.gmra.mxu3 %vm149_vm0, %v9256_v47 }
 0x197   :  { %v1247_v32 = vpop.f32.mrf.mxu2 }
 0x198   :  { %v1371_v38 = vadd.f32 %v1247_v32, %v809_v25  ;;  %v9264_v39 = vpop.f32.mrf.mxu0 }
 0x199   :  { %v811_v43 = vpop.f32.mrf.mxu1  ;;  %v1755_v0 = vpop.f32.mrf.mxu3 }
 0x19a   :  { %v9274_v17 = vadd.f32 %v1746_v29, %v1371_v38  ;;  %v812_v41 = vadd.f32 %v811_v43, %v9120_v27  ;;  %v9294_v38 = vld [vmem:[%s13511_s0 + $0x49] sm:$0xff]  ;;  %v9306_v43 = vld [vmem:[%s13511_s0 + $0x198] sm:$0xff] }
 0x19b   :  { %7681 = vmatmul.msk.f32.gmra.mxu0 %vm149_vm0, %v9269_v6 }
 0x19c   :  { %13681 = vst [vmem:[#allocation24_spill] sm:$0xff] %v9274_v17  ;;  %7537 = vmatmul.msk.f32.gmra.mxu1 %vm149_vm0, %v9156_v11  ;;  %7598 = vmatmul.msk.f32.gmra.mxu2 %vm149_vm0, %v949_v51  ;;  %v950_v11 = vld [vmem:[%s13511_s0 + $0x172] sm:$0xff] }
 0x19e   :  { %7662 = vmatmul.msk.f32.gmra.mxu3 %vm149_vm0, %v9281_v3 }
 0x19f   :  { %v1250_v29 = vpop.f32.mrf.mxu2 }
 0x1a0   :  { %v1372_v25 = vadd.f32 %v1250_v29, %v812_v41  ;;  %v9289_v32 = vpop.f32.mrf.mxu0 }
 0x1a1   :  { %v814_v17 = vpop.f32.mrf.mxu1  ;;  %v1758_v51 = vpop.f32.mrf.mxu3 }
 0x1a2   :  { %v9299_v60 = vadd.f32 %v1749_v50, %v1372_v25  ;;  %v815_v27 = vadd.f32 %v814_v17, %v9142_v44  ;;  %v9319_v25 = vld [vmem:[%s13511_s0 + $0x51] sm:$0xff]  ;;  %v9331_v17 = vld [vmem:[%s13511_s0 + $0x1a0] sm:$0xff] }
 0x1a3   :  { %7682 = vmatmul.msk.f32.gmra.mxu0 %vm149_vm0, %v9294_v38 }
 0x1a4   :  { %13682 = vst [vmem:[#allocation25_spill] sm:$0xff] %v9299_v60  ;;  %7538 = vmatmul.msk.f32.gmra.mxu1 %vm149_vm0, %v9181_v57  ;;  %7599 = vmatmul.msk.f32.gmra.mxu2 %vm149_vm0, %v950_v11  ;;  %v951_v57 = vld [vmem:[%s13511_s0 + $0x17a] sm:$0xff] }
 0x1a6   :  { %7663 = vmatmul.msk.f32.gmra.mxu3 %vm149_vm0, %v9306_v43 }
 0x1a7   :  { %v1253_v50 = vpop.f32.mrf.mxu2 }
 0x1a8   :  { %v1373_v41 = vadd.f32 %v1253_v50, %v815_v27  ;;  %v9314_v29 = vpop.f32.mrf.mxu0 }
 0x1a9   :  { %v817_v60 = vpop.f32.mrf.mxu1  ;;  %v1761_v11 = vpop.f32.mrf.mxu3 }
 0x1aa   :  { %v9324_v40 = vadd.f32 %v1752_v4, %v1373_v41  ;;  %v818_v44 = vadd.f32 %v817_v60, %v9164_v53  ;;  %v9344_v41 = vld [vmem:[%s13511_s0 + $0x59] sm:$0xff]  ;;  %v9356_v60 = vld [vmem:[%s13511_s0 + $0x1a8] sm:$0xff] }
 0x1ab   :  { %7683 = vmatmul.msk.f32.gmra.mxu0 %vm149_vm0, %v9319_v25 }
 0x1ac   :  { %13683 = vst [vmem:[#allocation26_spill] sm:$0xff] %v9324_v40  ;;  %7539 = vmatmul.msk.f32.gmra.mxu1 %vm149_vm0, %v9206_v54  ;;  %7600 = vmatmul.msk.f32.gmra.mxu2 %vm149_vm0, %v951_v57  ;;  %v952_v54 = vld [vmem:[%s13511_s0 + $0x182] sm:$0xff] }
 0x1ae   :  { %7664 = vmatmul.msk.f32.gmra.mxu3 %vm149_vm0, %v9331_v17 }
 0x1af   :  { %v1256_v4 = vpop.f32.mrf.mxu2 }
 0x1b0   :  { %v1374_v27 = vadd.f32 %v1256_v4, %v818_v44  ;;  %v9339_v50 = vpop.f32.mrf.mxu0 }
 0x1b1   :  { %v820_v40 = vpop.f32.mrf.mxu1  ;;  %v1764_v57 = vpop.f32.mrf.mxu3 }
 0x1b2   :  { %v9349_v55 = vadd.f32 %v1755_v0, %v1374_v27  ;;  %v821_v53 = vadd.f32 %v820_v40, %v9189_v56  ;;  %v9369_v27 = vld [vmem:[%s13511_s0 + $0x61] sm:$0xff]  ;;  %v9381_v40 = vld [vmem:[%s13511_s0 + $0x1b0] sm:$0xff] }
 0x1b3   :  { %7684 = vmatmul.msk.f32.gmra.mxu0 %vm149_vm0, %v9344_v41 }
 0x1b4   :  { %13684 = vst [vmem:[#allocation27_spill] sm:$0xff] %v9349_v55  ;;  %7540 = vmatmul.msk.f32.gmra.mxu1 %vm149_vm0, %v9231_v42  ;;  %7601 = vmatmul.msk.f32.gmra.mxu2 %vm149_vm0, %v952_v54  ;;  %v953_v42 = vld [vmem:[%s13511_s0 + $0x18a] sm:$0xff] }
 0x1b6   :  { %7665 = vmatmul.msk.f32.gmra.mxu3 %vm149_vm0, %v9356_v60 }
 0x1b7   :  { %v1259_v0 = vpop.f32.mrf.mxu2 }
 0x1b8   :  { %v1375_v44 = vadd.f32 %v1259_v0, %v821_v53  ;;  %v9364_v4 = vpop.f32.mrf.mxu0 }
 0x1b9   :  { %v823_v55 = vpop.f32.mrf.mxu1  ;;  %v1767_v54 = vpop.f32.mrf.mxu3 }
 0x1ba   :  { %v9374_v20 = vadd.f32 %v1758_v51, %v1375_v44  ;;  %v824_v56 = vadd.f32 %v823_v55, %v9214_v8  ;;  %v9394_v44 = vld [vmem:[%s13511_s0 + $0x69] sm:$0xff]  ;;  %v9406_v55 = vld [vmem:[%s13511_s0 + $0x1b8] sm:$0xff] }
 0x1bb   :  { %7685 = vmatmul.msk.f32.gmra.mxu0 %vm149_vm0, %v9369_v27 }
 0x1bc   :  { %13685 = vst [vmem:[#allocation28_spill] sm:$0xff] %v9374_v20  ;;  %7541 = vmatmul.msk.f32.gmra.mxu1 %vm149_vm0, %v9256_v47  ;;  %7602 = vmatmul.msk.f32.gmra.mxu2 %vm149_vm0, %v953_v42  ;;  %v954_v47 = vld [vmem:[%s13511_s0 + $0x192] sm:$0xff] }
 0x1be   :  { %7666 = vmatmul.msk.f32.gmra.mxu3 %vm149_vm0, %v9381_v40 }
 0x1bf   :  { %v1262_v51 = vpop.f32.mrf.mxu2 }
 0x1c0   :  { %v1376_v53 = vadd.f32 %v1262_v51, %v824_v56  ;;  %v9389_v0 = vpop.f32.mrf.mxu0 }
 0x1c1   :  { %v826_v20 = vpop.f32.mrf.mxu1  ;;  %v1770_v42 = vpop.f32.mrf.mxu3 }
 0x1c2   :  { %v9399_v1 = vadd.f32 %v1761_v11, %v1376_v53  ;;  %v827_v8 = vadd.f32 %v826_v20, %v9239_v46  ;;  %v9419_v53 = vld [vmem:[%s13511_s0 + $0x71] sm:$0xff]  ;;  %v9431_v20 = vld [vmem:[%s13511_s0 + $0x1c0] sm:$0xff] }
 0x1c3   :  { %7686 = vmatmul.msk.f32.gmra.mxu0 %vm149_vm0, %v9394_v44 }
 0x1c4   :  { %13686 = vst [vmem:[#allocation29_spill] sm:$0xff] %v9399_v1  ;;  %7542 = vmatmul.msk.f32.gmra.mxu1 %vm149_vm0, %v9281_v3  ;;  %7603 = vmatmul.msk.f32.gmra.mxu2 %vm149_vm0, %v954_v47  ;;  %v955_v3 = vld [vmem:[%s13511_s0 + $0x19a] sm:$0xff] }
 0x1c6   :  { %7667 = vmatmul.msk.f32.gmra.mxu3 %vm149_vm0, %v9406_v55 }
 0x1c7   :  { %v1265_v11 = vpop.f32.mrf.mxu2 }
 0x1c8   :  { %v1377_v56 = vadd.f32 %v1265_v11, %v827_v8  ;;  %v9414_v51 = vpop.f32.mrf.mxu0 }
 0x1c9   :  { %v829_v1 = vpop.f32.mrf.mxu1  ;;  %v1773_v47 = vpop.f32.mrf.mxu3 }
 0x1ca   :  { %v9424_v36 = vadd.f32 %v1764_v57, %v1377_v56  ;;  %v830_v46 = vadd.f32 %v829_v1, %v9264_v39  ;;  %v9444_v56 = vld [vmem:[%s13511_s0 + $0x79] sm:$0xff]  ;;  %v9456_v1 = vld [vmem:[%s13511_s0 + $0x1c8] sm:$0xff] }
 0x1cb   :  { %7687 = vmatmul.msk.f32.gmra.mxu0 %vm149_vm0, %v9419_v53 }
 0x1cc   :  { %13687 = vst [vmem:[#allocation30_spill] sm:$0xff] %v9424_v36  ;;  %7543 = vmatmul.msk.f32.gmra.mxu1 %vm149_vm0, %v9306_v43  ;;  %7604 = vmatmul.msk.f32.gmra.mxu2 %vm149_vm0, %v955_v3  ;;  %v956_v43 = vld [vmem:[%s13511_s0 + $0x1a2] sm:$0xff] }
 0x1ce   :  { %7668 = vmatmul.msk.f32.gmra.mxu3 %vm149_vm0, %v9431_v20 }
 0x1cf   :  { %v1268_v57 = vpop.f32.mrf.mxu2 }
 0x1d0   :  { %v1378_v8 = vadd.f32 %v1268_v57, %v830_v46  ;;  %v9439_v11 = vpop.f32.mrf.mxu0 }
 0x1d1   :  { %v832_v36 = vpop.f32.mrf.mxu1  ;;  %v1776_v3 = vpop.f32.mrf.mxu3 }
 0x1d2   :  { %v9449_v24 = vadd.f32 %v1767_v54, %v1378_v8  ;;  %v833_v39 = vadd.f32 %v832_v36, %v9289_v32  ;;  %v9469_v8 = vld [vmem:[%s13511_s0 + $0x81] sm:$0xff]  ;;  %v9481_v36 = vld [vmem:[%s13511_s0 + $0x1d0] sm:$0xff] }
 0x1d3   :  { %7688 = vmatmul.msk.f32.gmra.mxu0 %vm149_vm0, %v9444_v56 }
 0x1d4   :  { %13688 = vst [vmem:[#allocation31_spill] sm:$0xff] %v9449_v24  ;;  %7544 = vmatmul.msk.f32.gmra.mxu1 %vm149_vm0, %v9331_v17  ;;  %7605 = vmatmul.msk.f32.gmra.mxu2 %vm149_vm0, %v956_v43  ;;  %v957_v17 = vld [vmem:[%s13511_s0 + $0x1aa] sm:$0xff] }
 0x1d6   :  { %7669 = vmatmul.msk.f32.gmra.mxu3 %vm149_vm0, %v9456_v1 }
 0x1d7   :  { %v1271_v54 = vpop.f32.mrf.mxu2 }
 0x1d8   :  { %v1379_v46 = vadd.f32 %v1271_v54, %v833_v39  ;;  %v9464_v57 = vpop.f32.mrf.mxu0 }
 0x1d9   :  { %v835_v24 = vpop.f32.mrf.mxu1  ;;  %v1779_v43 = vpop.f32.mrf.mxu3 }
 0x1da   :  { %v9474_v58 = vadd.f32 %v1770_v42, %v1379_v46  ;;  %v836_v32 = vadd.f32 %v835_v24, %v9314_v29  ;;  %v9494_v46 = vld [vmem:[%s13511_s0 + $0x89] sm:$0xff]  ;;  %v9506_v24 = vld [vmem:[%s13511_s0 + $0x1d8] sm:$0xff] }
 0x1db   :  { %7689 = vmatmul.msk.f32.gmra.mxu0 %vm149_vm0, %v9469_v8 }
 0x1dc   :  { %13689 = vst [vmem:[#allocation32_spill] sm:$0xff] %v9474_v58  ;;  %7545 = vmatmul.msk.f32.gmra.mxu1 %vm149_vm0, %v9356_v60  ;;  %7606 = vmatmul.msk.f32.gmra.mxu2 %vm149_vm0, %v957_v17  ;;  %v958_v60 = vld [vmem:[%s13511_s0 + $0x1b2] sm:$0xff] }
 0x1de   :  { %7670 = vmatmul.msk.f32.gmra.mxu3 %vm149_vm0, %v9481_v36 }
 0x1df   :  { %v1274_v42 = vpop.f32.mrf.mxu2 }
 0x1e0   :  { %v1380_v39 = vadd.f32 %v1274_v42, %v836_v32  ;;  %v9489_v54 = vpop.f32.mrf.mxu0 }
 0x1e1   :  { %v838_v58 = vpop.f32.mrf.mxu1  ;;  %v1782_v17 = vpop.f32.mrf.mxu3 }
 0x1e2   :  { %v9499_v45 = vadd.f32 %v1773_v47, %v1380_v39  ;;  %v839_v29 = vadd.f32 %v838_v58, %v9339_v50  ;;  %v9519_v39 = vld [vmem:[%s13511_s0 + $0x91] sm:$0xff]  ;;  %v1461_v58 = vld [vmem:[%s13511_s0 + $0x1e0] sm:$0xff] }
 0x1e3   :  { %7690 = vmatmul.msk.f32.gmra.mxu0 %vm149_vm0, %v9494_v46 }
 0x1e4   :  { %13690 = vst [vmem:[#allocation33_spill] sm:$0xff] %v9499_v45  ;;  %7546 = vmatmul.msk.f32.gmra.mxu1 %vm149_vm0, %v9381_v40  ;;  %7607 = vmatmul.msk.f32.gmra.mxu2 %vm149_vm0, %v958_v60  ;;  %v959_v40 = vld [vmem:[%s13511_s0 + $0x1ba] sm:$0xff] }
 0x1e6   :  { %7671 = vmatmul.msk.f32.gmra.mxu3 %vm149_vm0, %v9506_v24 }
 0x1e7   :  { %v1277_v47 = vpop.f32.mrf.mxu2 }
 0x1e8   :  { %v1381_v32 = vadd.f32 %v1277_v47, %v839_v29  ;;  %v9514_v42 = vpop.f32.mrf.mxu0 }
 0x1e9   :  { %v841_v45 = vpop.f32.mrf.mxu1  ;;  %v1785_v60 = vpop.f32.mrf.mxu3 }
 0x1ea   :  { %v9524_v22 = vadd.f32 %v1776_v3, %v1381_v32  ;;  %v842_v50 = vadd.f32 %v841_v45, %v9364_v4  ;;  %v9541_v32 = vld [vmem:[%s13511_s0 + $0x99] sm:$0xff]  ;;  %v1462_v45 = vld [vmem:[%s13511_s0 + $0x1e8] sm:$0xff] }
 0x1eb   :  { %7691 = vmatmul.msk.f32.gmra.mxu0 %vm149_vm0, %v9519_v39 }
 0x1ec   :  { %13691 = vst [vmem:[#allocation34_spill] sm:$0xff] %v9524_v22  ;;  %7547 = vmatmul.msk.f32.gmra.mxu1 %vm149_vm0, %v9406_v55  ;;  %7608 = vmatmul.msk.f32.gmra.mxu2 %vm149_vm0, %v959_v40  ;;  %v960_v55 = vld [vmem:[%s13511_s0 + $0x1c2] sm:$0xff] }
 0x1ee   :  { %7672 = vmatmul.msk.f32.gmra.mxu3 %vm149_vm0, %v1461_v58 }
 0x1ef   :  { %v1280_v29 = vpop.f32.mrf.mxu2 }
 0x1f0   :  { %v1382_v47 = vadd.f32 %v1280_v29, %v842_v50  ;;  %v9536_v3 = vpop.f32.mrf.mxu0  ;;  %v9563_v29 = vld [vmem:[%s13511_s0 + $0xa1] sm:$0xff] }
 0x1f1   :  { %v844_v22 = vpop.f32.mrf.mxu1  ;;  %v1788_v61 = vpop.f32.mrf.mxu3 }
 0x1f2   :  { %v9546_v40 = vadd.f32 %v1779_v43, %v1382_v47  ;;  %v845_v4 = vadd.f32 %v844_v22, %v9389_v0 }
 0x1f3   :  { %7692 = vmatmul.msk.f32.gmra.mxu0 %vm149_vm0, %v9541_v32 }
 0x1f4   :  { %13692 = vst [vmem:[#allocation35_spill] sm:$0xff] %v9546_v40  ;;  %7548 = vmatmul.msk.f32.gmra.mxu1 %vm149_vm0, %v9431_v20  ;;  %7609 = vmatmul.msk.f32.gmra.mxu2 %vm149_vm0, %v960_v55  ;;  %v961_v20 = vld [vmem:[%s13511_s0 + $0x1ca] sm:$0xff] }
 0x1f6   :  { %7673 = vmatmul.msk.f32.gmra.mxu3 %vm149_vm0, %v1462_v45 }
 0x1f7   :  { %v1283_v58 = vpop.f32.mrf.mxu2 }
 0x1f8   :  { %v1383_v50 = vadd.f32 %v1283_v58, %v845_v4  ;;  %v9558_v43 = vpop.f32.mrf.mxu0 }
 0x1f9   :  { %v847_v47 = vpop.f32.mrf.mxu1  ;;  %v1791_v40 = vpop.f32.mrf.mxu3 }
 0x1fa   :  { %v9568_v55 = vadd.f32 %v1782_v17, %v1383_v50  ;;  %v848_v22 = vadd.f32 %v847_v47, %v9414_v51  ;;  %v9583_v17 = vld [vmem:[%s13511_s0 + $0xa9] sm:$0xff] }
 0x1fb   :  { %7693 = vmatmul.msk.f32.gmra.mxu0 %vm149_vm0, %v9563_v29 }
 0x1fc   :  { %7549 = vmatmul.msk.f32.gmra.mxu1 %vm149_vm0, %v9456_v1  ;;  %7610 = vmatmul.msk.f32.gmra.mxu2 %vm149_vm0, %v961_v20  ;;  %v962_v1 = vld [vmem:[%s13511_s0 + $0x1d2] sm:$0xff] }
 0x1fe   :  { %7858 = vmatmul.msk.f32.vlgmr.msra.gmra.mxu3 %vm149_vm0, %v9169_v31 }
 0x1ff   :  { %v1286_v0 = vpop.f32.mrf.mxu2 }
 0x200   :  { %v1384_v45 = vadd.f32 %v1286_v0, %v848_v22  ;;  %v9578_v4 = vpop.f32.mrf.mxu0 }
 0x201   :  { %v850_v58 = vpop.f32.mrf.mxu1  ;;  %v1794_v50 = vpop.f32.mrf.mxu3 }
 0x202   :  { %v9588_v20 = vadd.f32 %v1785_v60, %v1384_v45  ;;  %v851_v31 = vadd.f32 %v850_v58, %v9439_v11  ;;  %v9603_v60 = vld [vmem:[%s13511_s0 + $0xb1] sm:$0xff] }
 0x203   :  { %7694 = vmatmul.msk.f32.gmra.mxu0 %vm149_vm0, %v9583_v17 }
 0x204   :  { %7550 = vmatmul.msk.f32.gmra.mxu1 %vm149_vm0, %v9481_v36  ;;  %7611 = vmatmul.msk.f32.gmra.mxu2 %vm149_vm0, %v962_v1  ;;  %v963_v36 = vld [vmem:[%s13511_s0 + $0x1da] sm:$0xff] }
 0x206   :  { %7859 = vmatmul.msk.f32.gmra.mxu3 %vm149_vm0, %v9194_v15 }
 0x207   :  { %v1289_v51 = vpop.f32.mrf.mxu2 }
 0x208   :  { %v1385_v47 = vadd.f32 %v1289_v51, %v851_v31  ;;  %v9598_v22 = vpop.f32.mrf.mxu0 }
 0x209   :  { %v853_v0 = vpop.f32.mrf.mxu1  ;;  %v1797_v45 = vpop.f32.mrf.mxu3 }
 0x20a   :  { %v9608_v1 = vadd.f32 %v1788_v61, %v1385_v47  ;;  %v854_v15 = vadd.f32 %v853_v0, %v9464_v57  ;;  %v9623_v61 = vld [vmem:[%s13511_s0 + $0xb9] sm:$0xff] }
 0x20b   :  { %7695 = vmatmul.msk.f32.gmra.mxu0 %vm149_vm0, %v9603_v60  ;;  %v2900_v57 = vld [vmem:[%s13511_s0 + $0x20] sm:$0xff] }
 0x20c   :  { %13693 = vst [vmem:[#allocation36_spill] sm:$0xff] %v9608_v1  ;;  %7551 = vmatmul.msk.f32.gmra.mxu1 %vm149_vm0, %v9506_v24  ;;  %7612 = vmatmul.msk.f32.gmra.mxu2 %vm149_vm0, %v963_v36  ;;  %v2401_v24 = vld [vmem:[%s13511_s0 + $0x12] sm:$0xff] }
 0x20e   :  { %7860 = vmatmul.msk.f32.gmra.mxu3 %vm149_vm0, %v9219_v10 }
 0x20f   :  { %v1292_v11 = vpop.f32.mrf.mxu2 }
 0x210   :  { %v1386_v58 = vadd.f32 %v1292_v11, %v854_v15  ;;  %v9618_v31 = vpop.f32.mrf.mxu0 }
 0x211   :  { %v856_v51 = vpop.f32.mrf.mxu1  ;;  %v1800_v47 = vpop.f32.mrf.mxu3 }
 0x212   :  { %v9631_v10 = vadd.f32 %v1791_v40, %v1386_v58  ;;  %v857_v0 = vadd.f32 %v856_v51, %v9489_v54  ;;  %v9645_v40 = vld [vmem:[%s13511_s0 + $0xc1] sm:$0xff] }
 0x213   :  { %7696 = vmatmul.msk.f32.gmra.mxu0 %vm149_vm0, %v9623_v61  ;;  %v2901_v54 = vld [vmem:[%s13511_s0 + $0x28] sm:$0xff] }
 0x214   :  { %13694 = vst [vmem:[#allocation37_spill] sm:$0xff] %v9631_v10  ;;  %7736 = vmatmul.msk.f32.vlgmr.msra.gmra.mxu1 %vm149_vm0, %v2401_v24  ;;  %7797 = vmatmul.msk.f32.vlgmr.msra.gmra.mxu2 %vm149_vm0, %v2900_v57  ;;  %v2402_v24 = vld [vmem:[%s13511_s0 + $0x1a] sm:$0xff] }
 0x216   :  { %7861 = vmatmul.msk.f32.gmra.mxu3 %vm149_vm0, %v9244_v28 }
 0x217   :  { %v1295_v36 = vpop.f32.mrf.mxu2 }
 0x218   :  { %v1387_v15 = vadd.f32 %v1295_v36, %v857_v0  ;;  %v9640_v11 = vpop.f32.mrf.mxu0 }
 0x219   :  { %v859_v58 = vpop.f32.mrf.mxu1  ;;  %v1803_v51 = vpop.f32.mrf.mxu3 }
 0x21a   :  { %v9653_v28 = vadd.f32 %v1794_v50, %v1387_v15  ;;  %v860_v57 = vadd.f32 %v859_v58, %v8486_v63  ;;  %v9667_v50 = vld [vmem:[%s13511_s0 + $0xc9] sm:$0xff] }
 0x21b   :  { %7697 = vmatmul.msk.f32.gmra.mxu0 %vm149_vm0, %v9645_v40  ;;  %v2902_v63 = vld [vmem:[%s13511_s0 + $0x30] sm:$0xff] }
 0x21c   :  { %13695 = vst [vmem:[#allocation38_spill] sm:$0xff] %v9653_v28  ;;  %7737 = vmatmul.msk.f32.gmra.mxu1 %vm149_vm0, %v2402_v24  ;;  %7798 = vmatmul.msk.f32.gmra.mxu2 %vm149_vm0, %v2901_v54  ;;  %v2403_v24 = vld [vmem:[%s13511_s0 + $0x22] sm:$0xff] }
 0x21e   :  { %7862 = vmatmul.msk.f32.gmra.mxu3 %vm149_vm0, %v9269_v6 }
 0x21f   :  { %v1298_v0 = vpop.f32.mrf.mxu2 }
 0x220   :  { %v1388_v36 = vadd.f32 %v1298_v0, %v860_v57  ;;  %v9662_v10 = vpop.f32.mrf.mxu0 }
 0x221   :  { %v862_v15 = vpop.f32.mrf.mxu1  ;;  %v1806_v58 = vpop.f32.mrf.mxu3 }
 0x222   :  { %v9675_v6 = vadd.f32 %v1797_v45, %v1388_v36  ;;  %v863_v54 = vadd.f32 %v862_v15, %v8505_v5  ;;  %v9689_v45 = vld [vmem:[%s13511_s0 + $0xd1] sm:$0xff] }
 0x223   :  { %7698 = vmatmul.msk.f32.gmra.mxu0 %vm149_vm0, %v9667_v50  ;;  %v2903_v5 = vld [vmem:[%s13511_s0 + $0x38] sm:$0xff] }
 0x224   :  { %13696 = vst [vmem:[#allocation39_spill] sm:$0xff] %v9675_v6  ;;  %7738 = vmatmul.msk.f32.gmra.mxu1 %vm149_vm0, %v2403_v24  ;;  %7799 = vmatmul.msk.f32.gmra.mxu2 %vm149_vm0, %v2902_v63  ;;  %v2404_v24 = vld [vmem:[%s13511_s0 + $0x2a] sm:$0xff] }
 0x226   :  { %7863 = vmatmul.msk.f32.gmra.mxu3 %vm149_vm0, %v9294_v38 }
 0x227   :  { %v1301_v57 = vpop.f32.mrf.mxu2 }
 0x228   :  { %v1389_v0 = vadd.f32 %v1301_v57, %v863_v54  ;;  %v9684_v28 = vpop.f32.mrf.mxu0 }
 0x229   :  { %v865_v36 = vpop.f32.mrf.mxu1  ;;  %v1809_v15 = vpop.f32.mrf.mxu3 }
 0x22a   :  { %v9697_v38 = vadd.f32 %v1800_v47, %v1389_v0  ;;  %v866_v63 = vadd.f32 %v865_v36, %v8526_v12  ;;  %v9711_v47 = vld [vmem:[%s13511_s0 + $0xd9] sm:$0xff] }
 0x22b   :  { %7699 = vmatmul.msk.f32.gmra.mxu0 %vm149_vm0, %v9689_v45  ;;  %v2904_v12 = vld [vmem:[%s13511_s0 + $0x40] sm:$0xff] }
 0x22c   :  { %13697 = vst [vmem:[#allocation40_spill] sm:$0xff] %v9697_v38  ;;  %7739 = vmatmul.msk.f32.gmra.mxu1 %vm149_vm0, %v2404_v24  ;;  %7800 = vmatmul.msk.f32.gmra.mxu2 %vm149_vm0, %v2903_v5  ;;  %v2405_v24 = vld [vmem:[%s13511_s0 + $0x32] sm:$0xff] }
 0x22e   :  { %7864 = vmatmul.msk.f32.gmra.mxu3 %vm149_vm0, %v9319_v25 }
 0x22f   :  { %v1304_v54 = vpop.f32.mrf.mxu2 }
 0x230   :  { %v1390_v57 = vadd.f32 %v1304_v54, %v866_v63  ;;  %v9706_v6 = vpop.f32.mrf.mxu0 }
 0x231   :  { %v868_v0 = vpop.f32.mrf.mxu1  ;;  %v1812_v36 = vpop.f32.mrf.mxu3 }
 0x232   :  { %v9719_v25 = vadd.f32 %v1803_v51, %v1390_v57  ;;  %v869_v5 = vadd.f32 %v868_v0, %v8547_v19  ;;  %v9733_v51 = vld [vmem:[%s13511_s0 + $0xe1] sm:$0xff] }
 0x233   :  { %7700 = vmatmul.msk.f32.gmra.mxu0 %vm149_vm0, %v9711_v47  ;;  %v2905_v19 = vld [vmem:[%s13511_s0 + $0x48] sm:$0xff] }
 0x234   :  { %13698 = vst [vmem:[#allocation41_spill] sm:$0xff] %v9719_v25  ;;  %7740 = vmatmul.msk.f32.gmra.mxu1 %vm149_vm0, %v2405_v24  ;;  %7801 = vmatmul.msk.f32.gmra.mxu2 %vm149_vm0, %v2904_v12  ;;  %v2406_v24 = vld [vmem:[%s13511_s0 + $0x3a] sm:$0xff] }
 0x236   :  { %7865 = vmatmul.msk.f32.gmra.mxu3 %vm149_vm0, %v9344_v41 }
 0x237   :  { %v1307_v63 = vpop.f32.mrf.mxu2 }
 0x238   :  { %v1391_v54 = vadd.f32 %v1307_v63, %v869_v5  ;;  %v9728_v38 = vpop.f32.mrf.mxu0 }
 0x239   :  { %v871_v57 = vpop.f32.mrf.mxu1  ;;  %v1815_v0 = vpop.f32.mrf.mxu3 }
 0x23a   :  { %v9741_v41 = vadd.f32 %v1806_v58, %v1391_v54  ;;  %v872_v12 = vadd.f32 %v871_v57, %v8568_v26  ;;  %v9755_v58 = vld [vmem:[%s13511_s0 + $0xe9] sm:$0xff] }
 0x23b   :  { %7701 = vmatmul.msk.f32.gmra.mxu0 %vm149_vm0, %v9733_v51  ;;  %v2906_v26 = vld [vmem:[%s13511_s0 + $0x50] sm:$0xff] }
 0x23c   :  { %13699 = vst [vmem:[#allocation42_spill] sm:$0xff] %v9741_v41  ;;  %7741 = vmatmul.msk.f32.gmra.mxu1 %vm149_vm0, %v2406_v24  ;;  %7802 = vmatmul.msk.f32.gmra.mxu2 %vm149_vm0, %v2905_v19  ;;  %v2407_v24 = vld [vmem:[%s13511_s0 + $0x42] sm:$0xff] }
 0x23e   :  { %7866 = vmatmul.msk.f32.gmra.mxu3 %vm149_vm0, %v9369_v27 }
 0x23f   :  { %v1310_v5 = vpop.f32.mrf.mxu2 }
 0x240   :  { %v1392_v63 = vadd.f32 %v1310_v5, %v872_v12  ;;  %v9750_v25 = vpop.f32.mrf.mxu0 }
 0x241   :  { %v874_v54 = vpop.f32.mrf.mxu1  ;;  %v1818_v57 = vpop.f32.mrf.mxu3 }
 0x242   :  { %v9763_v27 = vadd.f32 %v1809_v15, %v1392_v63  ;;  %v875_v19 = vadd.f32 %v874_v54, %v8590_v33  ;;  %v9777_v15 = vld [vmem:[%s13511_s0 + $0xf1] sm:$0xff] }
 0x243   :  { %7702 = vmatmul.msk.f32.gmra.mxu0 %vm149_vm0, %v9755_v58  ;;  %v2907_v33 = vld [vmem:[%s13511_s0 + $0x58] sm:$0xff] }
 0x244   :  { %13700 = vst [vmem:[#allocation43_spill] sm:$0xff] %v9763_v27  ;;  %7742 = vmatmul.msk.f32.gmra.mxu1 %vm149_vm0, %v2407_v24  ;;  %7803 = vmatmul.msk.f32.gmra.mxu2 %vm149_vm0, %v2906_v26  ;;  %v2408_v24 = vld [vmem:[%s13511_s0 + $0x4a] sm:$0xff] }
 0x246   :  { %7867 = vmatmul.msk.f32.gmra.mxu3 %vm149_vm0, %v9394_v44 }
 0x247   :  { %v1313_v12 = vpop.f32.mrf.mxu2 }
 0x248   :  { %v1393_v5 = vadd.f32 %v1313_v12, %v875_v19  ;;  %v9772_v41 = vpop.f32.mrf.mxu0 }
 0x249   :  { %v877_v63 = vpop.f32.mrf.mxu1  ;;  %v1821_v54 = vpop.f32.mrf.mxu3 }
 0x24a   :  { %v9785_v44 = vadd.f32 %v1812_v36, %v1393_v5  ;;  %v878_v26 = vadd.f32 %v877_v63, %v8498_v2  ;;  %v9799_v36 = vld [vmem:[%s13511_s0 + $0xf9] sm:$0xff] }
 0x24b   :  { %7703 = vmatmul.msk.f32.gmra.mxu0 %vm149_vm0, %v9777_v15  ;;  %v2908_v2 = vld [vmem:[%s13511_s0 + $0x60] sm:$0xff] }
 0x24c   :  { %13701 = vst [vmem:[#allocation44_spill] sm:$0xff] %v9785_v44  ;;  %7743 = vmatmul.msk.f32.gmra.mxu1 %vm149_vm0, %v2408_v24  ;;  %7804 = vmatmul.msk.f32.gmra.mxu2 %vm149_vm0, %v2907_v33  ;;  %v2409_v24 = vld [vmem:[%s13511_s0 + $0x52] sm:$0xff] }
 0x24e   :  { %7868 = vmatmul.msk.f32.gmra.mxu3 %vm149_vm0, %v9419_v53 }
 0x24f   :  { %v1316_v19 = vpop.f32.mrf.mxu2 }
 0x250   :  { %v1394_v12 = vadd.f32 %v1316_v19, %v878_v26  ;;  %v9794_v27 = vpop.f32.mrf.mxu0 }
 0x251   :  { %v880_v5 = vpop.f32.mrf.mxu1  ;;  %v1824_v63 = vpop.f32.mrf.mxu3 }
 0x252   :  { %v9807_v53 = vadd.f32 %v1815_v0, %v1394_v12  ;;  %v881_v33 = vadd.f32 %v880_v5, %v8519_v9  ;;  %v9821_v0 = vld [vmem:[%s13511_s0 + $0x101] sm:$0xff] }
 0x253   :  { %7704 = vmatmul.msk.f32.gmra.mxu0 %vm149_vm0, %v9799_v36  ;;  %v2909_v9 = vld [vmem:[%s13511_s0 + $0x68] sm:$0xff] }
 0x254   :  { %13702 = vst [vmem:[#allocation45_spill] sm:$0xff] %v9807_v53  ;;  %7744 = vmatmul.msk.f32.gmra.mxu1 %vm149_vm0, %v2409_v24  ;;  %7805 = vmatmul.msk.f32.gmra.mxu2 %vm149_vm0, %v2908_v2  ;;  %v2410_v24 = vld [vmem:[%s13511_s0 + $0x5a] sm:$0xff] }
 0x256   :  { %7869 = vmatmul.msk.f32.gmra.mxu3 %vm149_vm0, %v9444_v56 }
 0x257   :  { %v1319_v26 = vpop.f32.mrf.mxu2 }
 0x258   :  { %v1395_v19 = vadd.f32 %v1319_v26, %v881_v33  ;;  %v9816_v44 = vpop.f32.mrf.mxu0 }
 0x259   :  { %v883_v12 = vpop.f32.mrf.mxu1  ;;  %v1827_v5 = vpop.f32.mrf.mxu3 }
 0x25a   :  { %v9829_v56 = vadd.f32 %v1818_v57, %v1395_v19  ;;  %v884_v2 = vadd.f32 %v883_v12, %v8540_v16  ;;  %v9843_v57 = vld [vmem:[%s13511_s0 + $0x109] sm:$0xff] }
 0x25b   :  { %7705 = vmatmul.msk.f32.gmra.mxu0 %vm149_vm0, %v9821_v0  ;;  %v2910_v16 = vld [vmem:[%s13511_s0 + $0x70] sm:$0xff] }
 0x25c   :  { %13703 = vst [vmem:[#allocation46_spill] sm:$0xff] %v9829_v56  ;;  %7745 = vmatmul.msk.f32.gmra.mxu1 %vm149_vm0, %v2410_v24  ;;  %7806 = vmatmul.msk.f32.gmra.mxu2 %vm149_vm0, %v2909_v9  ;;  %v2411_v24 = vld [vmem:[%s13511_s0 + $0x62] sm:$0xff] }
 0x25e   :  { %7870 = vmatmul.msk.f32.gmra.mxu3 %vm149_vm0, %v9469_v8 }
 0x25f   :  { %v1322_v33 = vpop.f32.mrf.mxu2 }
 0x260   :  { %v1396_v26 = vadd.f32 %v1322_v33, %v884_v2  ;;  %v9838_v53 = vpop.f32.mrf.mxu0 }
 0x261   :  { %v886_v19 = vpop.f32.mrf.mxu1  ;;  %v1830_v12 = vpop.f32.mrf.mxu3 }
 0x262   :  { %v9851_v8 = vadd.f32 %v1821_v54, %v1396_v26  ;;  %v887_v9 = vadd.f32 %v886_v19, %v8561_v23  ;;  %v9865_v54 = vld [vmem:[%s13511_s0 + $0x111] sm:$0xff] }
 0x263   :  { %7706 = vmatmul.msk.f32.gmra.mxu0 %vm149_vm0, %v9843_v57  ;;  %v2911_v23 = vld [vmem:[%s13511_s0 + $0x78] sm:$0xff] }
 0x264   :  { %13704 = vst [vmem:[#allocation47_spill] sm:$0xff] %v9851_v8  ;;  %7746 = vmatmul.msk.f32.gmra.mxu1 %vm149_vm0, %v2411_v24  ;;  %7807 = vmatmul.msk.f32.gmra.mxu2 %vm149_vm0, %v2910_v16  ;;  %v2412_v24 = vld [vmem:[%s13511_s0 + $0x6a] sm:$0xff] }
 0x266   :  { %7871 = vmatmul.msk.f32.gmra.mxu3 %vm149_vm0, %v9494_v46 }
 0x267   :  { %v1325_v2 = vpop.f32.mrf.mxu2 }
 0x268   :  { %v1397_v33 = vadd.f32 %v1325_v2, %v887_v9  ;;  %v9860_v56 = vpop.f32.mrf.mxu0 }
 0x269   :  { %v889_v26 = vpop.f32.mrf.mxu1  ;;  %v1833_v19 = vpop.f32.mrf.mxu3 }
 0x26a   :  { %v9873_v46 = vadd.f32 %v1824_v63, %v1397_v33  ;;  %v890_v16 = vadd.f32 %v889_v26, %v8583_v30  ;;  %v9887_v63 = vld [vmem:[%s13511_s0 + $0x119] sm:$0xff] }
 0x26b   :  { %7707 = vmatmul.msk.f32.gmra.mxu0 %vm149_vm0, %v9865_v54  ;;  %v2912_v30 = vld [vmem:[%s13511_s0 + $0x80] sm:$0xff] }
 0x26c   :  { %13705 = vst [vmem:[#allocation48_spill] sm:$0xff] %v9873_v46  ;;  %7747 = vmatmul.msk.f32.gmra.mxu1 %vm149_vm0, %v2412_v24  ;;  %7808 = vmatmul.msk.f32.gmra.mxu2 %vm149_vm0, %v2911_v23  ;;  %v2413_v24 = vld [vmem:[%s13511_s0 + $0x72] sm:$0xff] }
 0x26e   :  { %7872 = vmatmul.msk.f32.gmra.mxu3 %vm149_vm0, %v9519_v39 }
 0x26f   :  { %v1328_v9 = vpop.f32.mrf.mxu2 }
 0x270   :  { %v1398_v2 = vadd.f32 %v1328_v9, %v890_v16  ;;  %v9882_v8 = vpop.f32.mrf.mxu0 }
 0x271   :  { %v892_v33 = vpop.f32.mrf.mxu1  ;;  %v1836_v26 = vpop.f32.mrf.mxu3 }
 0x272   :  { %v9895_v39 = vadd.f32 %v1827_v5, %v1398_v2  ;;  %v893_v23 = vadd.f32 %v892_v33, %v8605_v37  ;;  %v9909_v5 = vld [vmem:[%s13511_s0 + $0x121] sm:$0xff] }
 0x273   :  { %7708 = vmatmul.msk.f32.gmra.mxu0 %vm149_vm0, %v9887_v63  ;;  %v2913_v37 = vld [vmem:[%s13511_s0 + $0x88] sm:$0xff] }
 0x274   :  { %13706 = vst [vmem:[#allocation49_spill] sm:$0xff] %v9895_v39  ;;  %7748 = vmatmul.msk.f32.gmra.mxu1 %vm149_vm0, %v2413_v24  ;;  %7809 = vmatmul.msk.f32.gmra.mxu2 %vm149_vm0, %v2912_v30  ;;  %v2414_v24 = vld [vmem:[%s13511_s0 + $0x7a] sm:$0xff] }
 0x276   :  { %7873 = vmatmul.msk.f32.gmra.mxu3 %vm149_vm0, %v9541_v32 }
 0x277   :  { %v1331_v16 = vpop.f32.mrf.mxu2 }
 0x278   :  { %v1399_v9 = vadd.f32 %v1331_v16, %v893_v23  ;;  %v9904_v46 = vpop.f32.mrf.mxu0 }
 0x279   :  { %v895_v2 = vpop.f32.mrf.mxu1  ;;  %v1839_v33 = vpop.f32.mrf.mxu3 }
 0x27a   :  { %v9917_v32 = vadd.f32 %v1830_v12, %v1399_v9  ;;  %v896_v30 = vadd.f32 %v895_v2, %v8510_v7  ;;  %v9931_v12 = vld [vmem:[%s13511_s0 + $0x129] sm:$0xff] }
 0x27b   :  { %7709 = vmatmul.msk.f32.gmra.mxu0 %vm149_vm0, %v9909_v5  ;;  %v2914_v7 = vld [vmem:[%s13511_s0 + $0x90] sm:$0xff] }
 0x27c   :  { %13707 = vst [vmem:[#allocation50_spill] sm:$0xff] %v9917_v32  ;;  %7749 = vmatmul.msk.f32.gmra.mxu1 %vm149_vm0, %v2414_v24  ;;  %7810 = vmatmul.msk.f32.gmra.mxu2 %vm149_vm0, %v2913_v37  ;;  %v2415_v24 = vld [vmem:[%s13511_s0 + $0x82] sm:$0xff] }
 0x27e   :  { %7874 = vmatmul.msk.f32.gmra.mxu3 %vm149_vm0, %v9563_v29 }
 0x27f   :  { %v1334_v23 = vpop.f32.mrf.mxu2 }
 0x280   :  { %v1400_v16 = vadd.f32 %v1334_v23, %v896_v30  ;;  %v9926_v39 = vpop.f32.mrf.mxu0 }
 0x281   :  { %v898_v9 = vpop.f32.mrf.mxu1  ;;  %v3658_v2 = vpop.f32.mrf.mxu3 }
 0x282   :  { %v9939_v29 = vadd.f32 %v1833_v19, %v1400_v16  ;;  %v899_v37 = vadd.f32 %v898_v9, %v8531_v14  ;;  %v9953_v19 = vld [vmem:[%s13511_s0 + $0x131] sm:$0xff] }
 0x283   :  { %7710 = vmatmul.msk.f32.gmra.mxu0 %vm149_vm0, %v9931_v12  ;;  %v2915_v14 = vld [vmem:[%s13511_s0 + $0x98] sm:$0xff] }
 0x284   :  { %13708 = vst [vmem:[#allocation51_spill] sm:$0xff] %v9939_v29  ;;  %7750 = vmatmul.msk.f32.gmra.mxu1 %vm149_vm0, %v2415_v24  ;;  %7811 = vmatmul.msk.f32.gmra.mxu2 %vm149_vm0, %v2914_v7  ;;  %v2416_v24 = vld [vmem:[%s13511_s0 + $0x8a] sm:$0xff] }
 0x286   :  { %7875 = vmatmul.msk.f32.gmra.mxu3 %vm149_vm0, %v9583_v17 }
 0x287   :  { %v1337_v30 = vpop.f32.mrf.mxu2 }
 0x288   :  { %v1401_v23 = vadd.f32 %v1337_v30, %v899_v37  ;;  %v9948_v32 = vpop.f32.mrf.mxu0 }
 0x289   :  { %v901_v16 = vpop.f32.mrf.mxu1  ;;  %v3661_v9 = vpop.f32.mrf.mxu3 }
 0x28a   :  { %v9961_v17 = vadd.f32 %v1836_v26, %v1401_v23  ;;  %v902_v7 = vadd.f32 %v901_v16, %v8552_v21  ;;  %v9975_v26 = vld [vmem:[%s13511_s0 + $0x139] sm:$0xff] }
 0x28b   :  { %7711 = vmatmul.msk.f32.gmra.mxu0 %vm149_vm0, %v9953_v19  ;;  %v2916_v21 = vld [vmem:[%s13511_s0 + $0xa0] sm:$0xff] }
 0x28c   :  { %13709 = vst [vmem:[#allocation52_spill] sm:$0xff] %v9961_v17  ;;  %7751 = vmatmul.msk.f32.gmra.mxu1 %vm149_vm0, %v2416_v24  ;;  %7812 = vmatmul.msk.f32.gmra.mxu2 %vm149_vm0, %v2915_v14  ;;  %v2417_v24 = vld [vmem:[%s13511_s0 + $0x92] sm:$0xff]  ;;  %v2341_v14 = vadd.f32 %v9514_v42, %v8634_v52  ;;  %v2418_v52 = vld [vmem:[%s13511_s0 + $0x9a] sm:$0xff]  ;;  %v2917_v42 = vld [vmem:[%s13511_s0 + $0xa8] sm:$0xff] }
 0x28e   :  { %7876 = vmatmul.msk.f32.gmra.mxu3 %vm149_vm0, %v9603_v60 }
 0x28f   :  { %v1340_v37 = vpop.f32.mrf.mxu2 }
 0x290   :  { %v1402_v30 = vadd.f32 %v1340_v37, %v902_v7  ;;  %v9970_v29 = vpop.f32.mrf.mxu0 }
 0x291   :  { %v2660_v23 = vpop.f32.mrf.mxu1  ;;  %v3664_v16 = vpop.f32.mrf.mxu3 }
 0x292   :  { %v9983_v60 = vadd.f32 %v1839_v33, %v1402_v30  ;;  %v2840_v7 = vadd.f32 %v2660_v23, %v2341_v14  ;;  %v9998_v33 = vld [vmem:[%s13511_s0 + $0x141] sm:$0xff] }
 0x293   :  { %7712 = vmatmul.msk.f32.gmra.mxu0 %vm149_vm0, %v9975_v26 }
 0x294   :  { %13710 = vst [vmem:[#allocation53_spill] sm:$0xff] %v9983_v60  ;;  %7752 = vmatmul.msk.f32.gmra.mxu1 %vm149_vm0, %v2417_v24  ;;  %7813 = vmatmul.msk.f32.gmra.mxu2 %vm149_vm0, %v2916_v21  ;;  %v2342_v24 = vadd.f32 %v9536_v3, %v8655_v62  ;;  %v2419_v62 = vld [vmem:[%s13511_s0 + $0xa2] sm:$0xff]  ;;  %v2918_v3 = vld [vmem:[%s13511_s0 + $0xb0] sm:$0xff] }
 0x296   :  { %7877 = vmatmul.msk.f32.gmra.mxu3 %vm149_vm0, %v9623_v61 }
 0x297   :  { %v3159_v37 = vpop.f32.mrf.mxu2 }
 0x298   :  { %v3339_v17 = vadd.f32 %v3159_v37, %v2840_v7  ;;  %v9993_v1 = vpop.f32.mrf.mxu0 }
 0x299   :  { %v2663_v30 = vpop.f32.mrf.mxu1  ;;  %v3667_v23 = vpop.f32.mrf.mxu3 }
 0x29a   :  { %v10006_v61 = vadd.f32 %v3658_v2, %v3339_v17  ;;  %v2841_v21 = vadd.f32 %v2663_v30, %v2342_v24  ;;  %v10021_v2 = vld [vmem:[%s13511_s0 + $0x149] sm:$0xff] }
 0x29b   :  { %7713 = vmatmul.msk.f32.gmra.mxu0 %vm149_vm0, %v9998_v33 }
 0x29c   :  { %7753 = vmatmul.msk.f32.gmra.mxu1 %vm149_vm0, %v2418_v52  ;;  %7814 = vmatmul.msk.f32.gmra.mxu2 %vm149_vm0, %v2917_v42  ;;  %v2343_v52 = vadd.f32 %v9558_v43, %v8676_v18  ;;  %v2420_v18 = vld [vmem:[%s13511_s0 + $0xaa] sm:$0xff]  ;;  %v2919_v43 = vld [vmem:[%s13511_s0 + $0xb8] sm:$0xff] }
 0x29e   :  { %7878 = vmatmul.msk.f32.gmra.mxu3 %vm149_vm0, %v9645_v40 }
 0x29f   :  { %v3162_v14 = vpop.f32.mrf.mxu2 }
 0x2a0   :  { %v3340_v7 = vadd.f32 %v3162_v14, %v2841_v21  ;;  %v10016_v37 = vpop.f32.mrf.mxu0 }
 0x2a1   :  { %v2666_v17 = vpop.f32.mrf.mxu1  ;;  %v3670_v30 = vpop.f32.mrf.mxu3 }
 0x2a2   :  { %v10029_v40 = vadd.f32 %v3661_v9, %v3340_v7  ;;  %v2842_v42 = vadd.f32 %v2666_v17, %v2343_v52  ;;  %v10044_v9 = vld [vmem:[%s13511_s0 + $0x151] sm:$0xff] }
 0x2a3   :  { %7714 = vmatmul.msk.f32.gmra.mxu0 %vm149_vm0, %v10021_v2 }
 0x2a4   :  { %7754 = vmatmul.msk.f32.gmra.mxu1 %vm149_vm0, %v2419_v62  ;;  %7815 = vmatmul.msk.f32.gmra.mxu2 %vm149_vm0, %v2918_v3  ;;  %v2344_v62 = vadd.f32 %v9578_v4, %v8698_v35  ;;  %v2421_v35 = vld [vmem:[%s13511_s0 + $0xb2] sm:$0xff]  ;;  %v2920_v4 = vld [vmem:[%s13511_s0 + $0xc0] sm:$0xff] }
 0x2a6   :  { %7879 = vmatmul.msk.f32.gmra.mxu3 %vm149_vm0, %v9667_v50 }
 0x2a7   :  { %v3165_v24 = vpop.f32.mrf.mxu2 }
 0x2a8   :  { %v3341_v21 = vadd.f32 %v3165_v24, %v2842_v42  ;;  %v10039_v14 = vpop.f32.mrf.mxu0 }
 0x2a9   :  { %v2669_v7 = vpop.f32.mrf.mxu1  ;;  %v3673_v17 = vpop.f32.mrf.mxu3 }
 0x2aa   :  { %v10052_v50 = vadd.f32 %v3664_v16, %v3341_v21  ;;  %v2843_v3 = vadd.f32 %v2669_v7, %v2344_v62  ;;  %v10067_v16 = vld [vmem:[%s13511_s0 + $0x159] sm:$0xff] }
 0x2ab   :  { %7715 = vmatmul.msk.f32.gmra.mxu0 %vm149_vm0, %v10044_v9 }
 0x2ac   :  { %7755 = vmatmul.msk.f32.gmra.mxu1 %vm149_vm0, %v2420_v18  ;;  %7816 = vmatmul.msk.f32.gmra.mxu2 %vm149_vm0, %v2919_v43  ;;  %v2345_v18 = vadd.f32 %v9598_v22, %v8720_v48  ;;  %v2422_v48 = vld [vmem:[%s13511_s0 + $0xba] sm:$0xff]  ;;  %v2921_v22 = vld [vmem:[%s13511_s0 + $0xc8] sm:$0xff] }
 0x2ae   :  { %7880 = vmatmul.msk.f32.gmra.mxu3 %vm149_vm0, %v9689_v45 }
 0x2af   :  { %v3168_v52 = vpop.f32.mrf.mxu2 }
 0x2b0   :  { %v3342_v42 = vadd.f32 %v3168_v52, %v2843_v3  ;;  %v10062_v24 = vpop.f32.mrf.mxu0 }
 0x2b1   :  { %v2672_v21 = vpop.f32.mrf.mxu1  ;;  %v3676_v7 = vpop.f32.mrf.mxu3 }
 0x2b2   :  { %v10075_v45 = vadd.f32 %v3667_v23, %v3342_v42  ;;  %v2844_v43 = vadd.f32 %v2672_v21, %v2345_v18  ;;  %v10090_v23 = vld [vmem:[%s13511_s0 + $0x161] sm:$0xff] }
 0x2b3   :  { %7716 = vmatmul.msk.f32.gmra.mxu0 %vm149_vm0, %v10067_v16 }
 0x2b4   :  { %7756 = vmatmul.msk.f32.gmra.mxu1 %vm149_vm0, %v2421_v35  ;;  %7817 = vmatmul.msk.f32.gmra.mxu2 %vm149_vm0, %v2920_v4  ;;  %v2346_v35 = vadd.f32 %v9618_v31, %v8742_v59  ;;  %v2423_v59 = vld [vmem:[%s13511_s0 + $0xc2] sm:$0xff]  ;;  %v2922_v31 = vld [vmem:[%s13511_s0 + $0xd0] sm:$0xff] }
 0x2b6   :  { %7881 = vmatmul.msk.f32.gmra.mxu3 %vm149_vm0, %v9711_v47 }
 0x2b7   :  { %v3171_v62 = vpop.f32.mrf.mxu2 }
 0x2b8   :  { %v3343_v3 = vadd.f32 %v3171_v62, %v2844_v43  ;;  %v10085_v52 = vpop.f32.mrf.mxu0 }
 0x2b9   :  { %v2675_v42 = vpop.f32.mrf.mxu1  ;;  %v3679_v21 = vpop.f32.mrf.mxu3 }
 0x2ba   :  { %v10098_v47 = vadd.f32 %v3670_v30, %v3343_v3  ;;  %v2845_v4 = vadd.f32 %v2675_v42, %v2346_v35  ;;  %v10113_v30 = vld [vmem:[%s13511_s0 + $0x169] sm:$0xff] }
 0x2bb   :  { %7717 = vmatmul.msk.f32.gmra.mxu0 %vm149_vm0, %v10090_v23 }
 0x2bc   :  { %7757 = vmatmul.msk.f32.gmra.mxu1 %vm149_vm0, %v2422_v48  ;;  %7818 = vmatmul.msk.f32.gmra.mxu2 %vm149_vm0, %v2921_v22  ;;  %v2347_v48 = vadd.f32 %v9640_v11, %v8764_v13  ;;  %v2424_v13 = vld [vmem:[%s13511_s0 + $0xca] sm:$0xff]  ;;  %v2923_v11 = vld [vmem:[%s13511_s0 + $0xd8] sm:$0xff] }
 0x2be   :  { %7882 = vmatmul.msk.f32.gmra.mxu3 %vm149_vm0, %v9733_v51 }
 0x2bf   :  { %v3174_v18 = vpop.f32.mrf.mxu2 }
 0x2c0   :  { %v3344_v43 = vadd.f32 %v3174_v18, %v2845_v4  ;;  %v10108_v62 = vpop.f32.mrf.mxu0 }
 0x2c1   :  { %v2678_v3 = vpop.f32.mrf.mxu1  ;;  %v3682_v42 = vpop.f32.mrf.mxu3 }
 0x2c2   :  { %v10121_v51 = vadd.f32 %v3673_v17, %v3344_v43  ;;  %v2846_v22 = vadd.f32 %v2678_v3, %v2347_v48  ;;  %v10136_v17 = vld [vmem:[%s13511_s0 + $0x171] sm:$0xff] }
 0x2c3   :  { %7718 = vmatmul.msk.f32.gmra.mxu0 %vm149_vm0, %v10113_v30 }
 0x2c4   :  { %7758 = vmatmul.msk.f32.gmra.mxu1 %vm149_vm0, %v2423_v59  ;;  %7819 = vmatmul.msk.f32.gmra.mxu2 %vm149_vm0, %v2922_v31  ;;  %v2348_v59 = vadd.f32 %v9662_v10, %v8786_v34  ;;  %v2425_v34 = vld [vmem:[%s13511_s0 + $0xd2] sm:$0xff]  ;;  %v2924_v10 = vld [vmem:[%s13511_s0 + $0xe0] sm:$0xff] }
 0x2c6   :  { %7883 = vmatmul.msk.f32.gmra.mxu3 %vm149_vm0, %v9755_v58 }
 0x2c7   :  { %v3177_v35 = vpop.f32.mrf.mxu2 }
 0x2c8   :  { %v3345_v4 = vadd.f32 %v3177_v35, %v2846_v22  ;;  %v10131_v18 = vpop.f32.mrf.mxu0 }
 0x2c9   :  { %v2681_v43 = vpop.f32.mrf.mxu1  ;;  %v3685_v3 = vpop.f32.mrf.mxu3 }
 0x2ca   :  { %v10144_v58 = vadd.f32 %v3676_v7, %v3345_v4  ;;  %v2847_v31 = vadd.f32 %v2681_v43, %v2348_v59  ;;  %v10159_v7 = vld [vmem:[%s13511_s0 + $0x179] sm:$0xff] }
 0x2cb   :  { %7719 = vmatmul.msk.f32.gmra.mxu0 %vm149_vm0, %v10136_v17 }
 0x2cc   :  { %7759 = vmatmul.msk.f32.gmra.mxu1 %vm149_vm0, %v2424_v13  ;;  %7820 = vmatmul.msk.f32.gmra.mxu2 %vm149_vm0, %v2923_v11  ;;  %v2349_v13 = vadd.f32 %v9684_v28, %v8808_v49  ;;  %v2426_v49 = vld [vmem:[%s13511_s0 + $0xda] sm:$0xff]  ;;  %v2925_v28 = vld [vmem:[%s13511_s0 + $0xe8] sm:$0xff] }
 0x2ce   :  { %7884 = vmatmul.msk.f32.gmra.mxu3 %vm149_vm0, %v9777_v15 }
 0x2cf   :  { %v3180_v48 = vpop.f32.mrf.mxu2 }
 0x2d0   :  { %v3346_v22 = vadd.f32 %v3180_v48, %v2847_v31  ;;  %v10154_v35 = vpop.f32.mrf.mxu0 }
 0x2d1   :  { %v2684_v4 = vpop.f32.mrf.mxu1  ;;  %v3688_v43 = vpop.f32.mrf.mxu3 }
 0x2d2   :  { %v10167_v15 = vadd.f32 %v3679_v21, %v3346_v22  ;;  %v2848_v11 = vadd.f32 %v2684_v4, %v2349_v13  ;;  %v10182_v21 = vld [vmem:[%s13511_s0 + $0x181] sm:$0xff] }
 0x2d3   :  { %7720 = vmatmul.msk.f32.gmra.mxu0 %vm149_vm0, %v10159_v7 }
 0x2d4   :  { %7760 = vmatmul.msk.f32.gmra.mxu1 %vm149_vm0, %v2425_v34  ;;  %7821 = vmatmul.msk.f32.gmra.mxu2 %vm149_vm0, %v2924_v10  ;;  %v13712_v34 = vld [vmem:[#allocation5_spill] sm:$0xff] }
 0x2d5   :  { %v2350_v10 = vadd.f32 %v9706_v6, %v13712_v34  ;;  %v2427_v6 = vld [vmem:[%s13511_s0 + $0xe2] sm:$0xff] }
 0x2d6   :  { %7885 = vmatmul.msk.f32.gmra.mxu3 %vm149_vm0, %v9799_v36 }
 0x2d7   :  { %v3183_v59 = vpop.f32.mrf.mxu2 }
 0x2d8   :  { %v3347_v31 = vadd.f32 %v3183_v59, %v2848_v11  ;;  %v10177_v48 = vpop.f32.mrf.mxu0 }
 0x2d9   :  { %v2687_v22 = vpop.f32.mrf.mxu1  ;;  %v3691_v4 = vpop.f32.mrf.mxu3 }
 0x2da   :  { %v10190_v36 = vadd.f32 %v3682_v42, %v3347_v31  ;;  %v2849_v13 = vadd.f32 %v2687_v22, %v2350_v10  ;;  %v10205_v42 = vld [vmem:[%s13511_s0 + $0x189] sm:$0xff] }
 0x2db   :  { %7721 = vmatmul.msk.f32.gmra.mxu0 %vm149_vm0, %v10182_v21  ;;  %v2926_v22 = vld [vmem:[%s13511_s0 + $0xf0] sm:$0xff] }
 0x2dc   :  { %13711 = vst [vmem:[#allocation54_spill] sm:$0xff] %v10190_v36  ;;  %7761 = vmatmul.msk.f32.gmra.mxu1 %vm149_vm0, %v2426_v49  ;;  %7822 = vmatmul.msk.f32.gmra.mxu2 %vm149_vm0, %v2925_v28  ;;  %v13714_v28 = vld [vmem:[#allocation6_spill] sm:$0xff] }
 0x2dd   :  { %v2351_v34 = vadd.f32 %v9728_v38, %v13714_v28  ;;  %v2428_v38 = vld [vmem:[%s13511_s0 + $0xea] sm:$0xff] }
 0x2de   :  { %7886 = vmatmul.msk.f32.gmra.mxu3 %vm149_vm0, %v9821_v0 }
 0x2df   :  { %v3186_v11 = vpop.f32.mrf.mxu2 }
 0x2e0   :  { %v3348_v59 = vadd.f32 %v3186_v11, %v2849_v13  ;;  %v10200_v60 = vpop.f32.mrf.mxu0 }
 0x2e1   :  { %v2690_v31 = vpop.f32.mrf.mxu1  ;;  %v3694_v49 = vpop.f32.mrf.mxu3 }
 0x2e2   :  { %v10213_v0 = vadd.f32 %v3685_v3, %v3348_v59  ;;  %v2850_v10 = vadd.f32 %v2690_v31, %v2351_v34  ;;  %v10228_v3 = vld [vmem:[%s13511_s0 + $0x191] sm:$0xff] }
 0x2e3   :  { %7722 = vmatmul.msk.f32.gmra.mxu0 %vm149_vm0, %v10205_v42  ;;  %v2927_v31 = vld [vmem:[%s13511_s0 + $0xf8] sm:$0xff] }
 0x2e4   :  { %13713 = vst [vmem:[#allocation5_spill] sm:$0xff] %v10213_v0  ;;  %7762 = vmatmul.msk.f32.gmra.mxu1 %vm149_vm0, %v2427_v6  ;;  %7823 = vmatmul.msk.f32.gmra.mxu2 %vm149_vm0, %v2926_v22  ;;  %v13716_v22 = vld [vmem:[#allocation7_spill] sm:$0xff] }
 0x2e5   :  { %v2352_v28 = vadd.f32 %v9750_v25, %v13716_v22  ;;  %v2429_v25 = vld [vmem:[%s13511_s0 + $0xf2] sm:$0xff] }
 0x2e6   :  { %7887 = vmatmul.msk.f32.gmra.mxu3 %vm149_vm0, %v9843_v57 }
 0x2e7   :  { %v3189_v13 = vpop.f32.mrf.mxu2 }
 0x2e8   :  { %v3349_v11 = vadd.f32 %v3189_v13, %v2850_v10  ;;  %v10223_v36 = vpop.f32.mrf.mxu0 }
 0x2e9   :  { %v2693_v59 = vpop.f32.mrf.mxu1  ;;  %v3697_v6 = vpop.f32.mrf.mxu3 }
 0x2ea   :  { %v10236_v57 = vadd.f32 %v3688_v43, %v3349_v11  ;;  %v2851_v34 = vadd.f32 %v2693_v59, %v2352_v28  ;;  %v10251_v43 = vld [vmem:[%s13511_s0 + $0x199] sm:$0xff] }
 0x2eb   :  { %7723 = vmatmul.msk.f32.gmra.mxu0 %vm149_vm0, %v10228_v3  ;;  %v2928_v59 = vld [vmem:[%s13511_s0 + $0x100] sm:$0xff] }
 0x2ec   :  { %13715 = vst [vmem:[#allocation6_spill] sm:$0xff] %v10236_v57  ;;  %7763 = vmatmul.msk.f32.gmra.mxu1 %vm149_vm0, %v2428_v38  ;;  %7824 = vmatmul.msk.f32.gmra.mxu2 %vm149_vm0, %v2927_v31  ;;  %v13718_v31 = vld [vmem:[#allocation8_spill] sm:$0xff] }
 0x2ed   :  { %v2353_v22 = vadd.f32 %v9772_v41, %v13718_v31  ;;  %v2430_v41 = vld [vmem:[%s13511_s0 + $0xfa] sm:$0xff] }
 0x2ee   :  { %7888 = vmatmul.msk.f32.gmra.mxu3 %vm149_vm0, %v9865_v54 }
 0x2ef   :  { %v3192_v10 = vpop.f32.mrf.mxu2 }
 0x2f0   :  { %v3350_v13 = vadd.f32 %v3192_v10, %v2851_v34  ;;  %v10246_v0 = vpop.f32.mrf.mxu0 }
 0x2f1   :  { %v2696_v11 = vpop.f32.mrf.mxu1  ;;  %v3700_v38 = vpop.f32.mrf.mxu3 }
 0x2f2   :  { %v10259_v54 = vadd.f32 %v3691_v4, %v3350_v13  ;;  %v2852_v28 = vadd.f32 %v2696_v11, %v2353_v22  ;;  %v10274_v4 = vld [vmem:[%s13511_s0 + $0x1a1] sm:$0xff] }
 0x2f3   :  { %7724 = vmatmul.msk.f32.gmra.mxu0 %vm149_vm0, %v10251_v43  ;;  %v2929_v11 = vld [vmem:[%s13511_s0 + $0x108] sm:$0xff] }
 0x2f4   :  { %13717 = vst [vmem:[#allocation7_spill] sm:$0xff] %v10259_v54  ;;  %7764 = vmatmul.msk.f32.gmra.mxu1 %vm149_vm0, %v2429_v25  ;;  %7825 = vmatmul.msk.f32.gmra.mxu2 %vm149_vm0, %v2928_v59  ;;  %v13720_v59 = vld [vmem:[#allocation9_spill] sm:$0xff] }
 0x2f5   :  { %v2354_v31 = vadd.f32 %v9794_v27, %v13720_v59  ;;  %v2431_v27 = vld [vmem:[%s13511_s0 + $0x102] sm:$0xff] }
 0x2f6   :  { %7889 = vmatmul.msk.f32.gmra.mxu3 %vm149_vm0, %v9887_v63 }
 0x2f7   :  { %v3195_v34 = vpop.f32.mrf.mxu2 }
 0x2f8   :  { %v3351_v10 = vadd.f32 %v3195_v34, %v2852_v28  ;;  %v10269_v57 = vpop.f32.mrf.mxu0 }
 0x2f9   :  { %v2699_v13 = vpop.f32.mrf.mxu1  ;;  %v3703_v25 = vpop.f32.mrf.mxu3 }
 0x2fa   :  { %v10282_v63 = vadd.f32 %v3694_v49, %v3351_v10  ;;  %v2853_v22 = vadd.f32 %v2699_v13, %v2354_v31  ;;  %v10297_v49 = vld [vmem:[%s13511_s0 + $0x1a9] sm:$0xff] }
 0x2fb   :  { %7725 = vmatmul.msk.f32.gmra.mxu0 %vm149_vm0, %v10274_v4  ;;  %v2930_v13 = vld [vmem:[%s13511_s0 + $0x110] sm:$0xff] }
 0x2fc   :  { %13719 = vst [vmem:[#allocation8_spill] sm:$0xff] %v10282_v63  ;;  %7765 = vmatmul.msk.f32.gmra.mxu1 %vm149_vm0, %v2430_v41  ;;  %7826 = vmatmul.msk.f32.gmra.mxu2 %vm149_vm0, %v2929_v11  ;;  %v13722_v11 = vld [vmem:[#allocation10_spill] sm:$0xff] }
 0x2fd   :  { %v2355_v59 = vadd.f32 %v9816_v44, %v13722_v11  ;;  %v2432_v44 = vld [vmem:[%s13511_s0 + $0x10a] sm:$0xff] }
 0x2fe   :  { %7890 = vmatmul.msk.f32.gmra.mxu3 %vm149_vm0, %v9909_v5 }
 0x2ff   :  { %v3198_v28 = vpop.f32.mrf.mxu2 }
 0x300   :  { %v3352_v34 = vadd.f32 %v3198_v28, %v2853_v22  ;;  %v10292_v54 = vpop.f32.mrf.mxu0 }
 0x301   :  { %v2702_v10 = vpop.f32.mrf.mxu1  ;;  %v3706_v41 = vpop.f32.mrf.mxu3 }
 0x302   :  { %v10305_v5 = vadd.f32 %v3697_v6, %v3352_v34  ;;  %v2854_v31 = vadd.f32 %v2702_v10, %v2355_v59  ;;  %v10320_v6 = vld [vmem:[%s13511_s0 + $0x1b1] sm:$0xff] }
 0x303   :  { %7726 = vmatmul.msk.f32.gmra.mxu0 %vm149_vm0, %v10297_v49  ;;  %v2931_v10 = vld [vmem:[%s13511_s0 + $0x118] sm:$0xff] }
 0x304   :  { %13721 = vst [vmem:[#allocation9_spill] sm:$0xff] %v10305_v5  ;;  %7766 = vmatmul.msk.f32.gmra.mxu1 %vm149_vm0, %v2431_v27  ;;  %7827 = vmatmul.msk.f32.gmra.mxu2 %vm149_vm0, %v2930_v13  ;;  %v13724_v13 = vld [vmem:[#allocation11_spill] sm:$0xff] }
 0x305   :  { %v2356_v11 = vadd.f32 %v9838_v53, %v13724_v13  ;;  %v2433_v53 = vld [vmem:[%s13511_s0 + $0x112] sm:$0xff] }
 0x306   :  { %7891 = vmatmul.msk.f32.gmra.mxu3 %vm149_vm0, %v9931_v12 }
 0x307   :  { %v3201_v22 = vpop.f32.mrf.mxu2 }
 0x308   :  { %v3353_v28 = vadd.f32 %v3201_v22, %v2854_v31  ;;  %v10315_v63 = vpop.f32.mrf.mxu0 }
 0x309   :  { %v2705_v34 = vpop.f32.mrf.mxu1  ;;  %v3709_v27 = vpop.f32.mrf.mxu3 }
 0x30a   :  { %v10328_v12 = vadd.f32 %v3700_v38, %v3353_v28  ;;  %v2855_v59 = vadd.f32 %v2705_v34, %v2356_v11  ;;  %v10343_v38 = vld [vmem:[%s13511_s0 + $0x1b9] sm:$0xff] }
 0x30b   :  { %7727 = vmatmul.msk.f32.gmra.mxu0 %vm149_vm0, %v10320_v6  ;;  %v2932_v34 = vld [vmem:[%s13511_s0 + $0x120] sm:$0xff] }
 0x30c   :  { %13723 = vst [vmem:[#allocation10_spill] sm:$0xff] %v10328_v12  ;;  %7767 = vmatmul.msk.f32.gmra.mxu1 %vm149_vm0, %v2432_v44  ;;  %7828 = vmatmul.msk.f32.gmra.mxu2 %vm149_vm0, %v2931_v10  ;;  %v13726_v10 = vld [vmem:[#allocation12_spill] sm:$0xff] }
 0x30d   :  { %v2357_v13 = vadd.f32 %v9860_v56, %v13726_v10  ;;  %v2434_v56 = vld [vmem:[%s13511_s0 + $0x11a] sm:$0xff] }
 0x30e   :  { %7892 = vmatmul.msk.f32.gmra.mxu3 %vm149_vm0, %v9953_v19 }
 0x30f   :  { %v3204_v31 = vpop.f32.mrf.mxu2 }
 0x310   :  { %v3354_v22 = vadd.f32 %v3204_v31, %v2855_v59  ;;  %v10338_v5 = vpop.f32.mrf.mxu0 }
 0x311   :  { %v2708_v28 = vpop.f32.mrf.mxu1  ;;  %v3712_v44 = vpop.f32.mrf.mxu3 }
 0x312   :  { %v10351_v19 = vadd.f32 %v3703_v25, %v3354_v22  ;;  %v2856_v11 = vadd.f32 %v2708_v28, %v2357_v13  ;;  %v10366_v25 = vld [vmem:[%s13511_s0 + $0x1c1] sm:$0xff] }
 0x313   :  { %7728 = vmatmul.msk.f32.gmra.mxu0 %vm149_vm0, %v10343_v38  ;;  %v2933_v28 = vld [vmem:[%s13511_s0 + $0x128] sm:$0xff] }
 0x314   :  { %13725 = vst [vmem:[#allocation11_spill] sm:$0xff] %v10351_v19  ;;  %7768 = vmatmul.msk.f32.gmra.mxu1 %vm149_vm0, %v2433_v53  ;;  %7829 = vmatmul.msk.f32.gmra.mxu2 %vm149_vm0, %v2932_v34  ;;  %v13728_v34 = vld [vmem:[#allocation13_spill] sm:$0xff] }
 0x315   :  { %v2358_v10 = vadd.f32 %v9882_v8, %v13728_v34  ;;  %v2435_v8 = vld [vmem:[%s13511_s0 + $0x122] sm:$0xff] }
 0x316   :  { %7893 = vmatmul.msk.f32.gmra.mxu3 %vm149_vm0, %v9975_v26 }
 0x317   :  { %v3207_v59 = vpop.f32.mrf.mxu2 }
 0x318   :  { %v3355_v31 = vadd.f32 %v3207_v59, %v2856_v11  ;;  %v10361_v12 = vpop.f32.mrf.mxu0 }
 0x319   :  { %v2711_v22 = vpop.f32.mrf.mxu1  ;;  %v3715_v53 = vpop.f32.mrf.mxu3 }
 0x31a   :  { %v10374_v26 = vadd.f32 %v3706_v41, %v3355_v31  ;;  %v2857_v13 = vadd.f32 %v2711_v22, %v2358_v10  ;;  %v10389_v41 = vld [vmem:[%s13511_s0 + $0x1c9] sm:$0xff] }
 0x31b   :  { %7729 = vmatmul.msk.f32.gmra.mxu0 %vm149_vm0, %v10366_v25  ;;  %v2934_v22 = vld [vmem:[%s13511_s0 + $0x130] sm:$0xff] }
 0x31c   :  { %13727 = vst [vmem:[#allocation12_spill] sm:$0xff] %v10374_v26  ;;  %7769 = vmatmul.msk.f32.gmra.mxu1 %vm149_vm0, %v2434_v56  ;;  %7830 = vmatmul.msk.f32.gmra.mxu2 %vm149_vm0, %v2933_v28  ;;  %v13730_v28 = vld [vmem:[#allocation14_spill] sm:$0xff] }
 0x31d   :  { %v2359_v34 = vadd.f32 %v9904_v46, %v13730_v28  ;;  %v2436_v46 = vld [vmem:[%s13511_s0 + $0x12a] sm:$0xff] }
 0x31e   :  { %7894 = vmatmul.msk.f32.gmra.mxu3 %vm149_vm0, %v9998_v33 }
 0x31f   :  { %v3210_v11 = vpop.f32.mrf.mxu2 }
 0x320   :  { %v3356_v59 = vadd.f32 %v3210_v11, %v2857_v13  ;;  %v10384_v19 = vpop.f32.mrf.mxu0 }
 0x321   :  { %v2714_v31 = vpop.f32.mrf.mxu1  ;;  %v3718_v56 = vpop.f32.mrf.mxu3 }
 0x322   :  { %v10397_v33 = vadd.f32 %v3709_v27, %v3356_v59  ;;  %v2858_v10 = vadd.f32 %v2714_v31, %v2359_v34  ;;  %v10412_v27 = vld [vmem:[%s13511_s0 + $0x1d1] sm:$0xff] }
 0x323   :  { %7730 = vmatmul.msk.f32.gmra.mxu0 %vm149_vm0, %v10389_v41  ;;  %v2935_v31 = vld [vmem:[%s13511_s0 + $0x138] sm:$0xff] }
 0x324   :  { %13729 = vst [vmem:[#allocation13_spill] sm:$0xff] %v10397_v33  ;;  %7770 = vmatmul.msk.f32.gmra.mxu1 %vm149_vm0, %v2435_v8  ;;  %7831 = vmatmul.msk.f32.gmra.mxu2 %vm149_vm0, %v2934_v22  ;;  %v13732_v22 = vld [vmem:[#allocation15_spill] sm:$0xff] }
 0x325   :  { %v2360_v28 = vadd.f32 %v9926_v39, %v13732_v22  ;;  %v2437_v39 = vld [vmem:[%s13511_s0 + $0x132] sm:$0xff] }
 0x326   :  { %7895 = vmatmul.msk.f32.gmra.mxu3 %vm149_vm0, %v10021_v2 }
 0x327   :  { %v3213_v13 = vpop.f32.mrf.mxu2 }
 0x328   :  { %v3357_v11 = vadd.f32 %v3213_v13, %v2858_v10  ;;  %v10407_v26 = vpop.f32.mrf.mxu0 }
 0x329   :  { %v2717_v59 = vpop.f32.mrf.mxu1  ;;  %v3721_v8 = vpop.f32.mrf.mxu3 }
 0x32a   :  { %v10420_v2 = vadd.f32 %v3712_v44, %v3357_v11  ;;  %v2859_v34 = vadd.f32 %v2717_v59, %v2360_v28  ;;  %v10435_v44 = vld [vmem:[%s13511_s0 + $0x1d9] sm:$0xff] }
 0x32b   :  { %7731 = vmatmul.msk.f32.gmra.mxu0 %vm149_vm0, %v10412_v27  ;;  %v2936_v59 = vld [vmem:[%s13511_s0 + $0x140] sm:$0xff] }
 0x32c   :  { %13731 = vst [vmem:[#allocation14_spill] sm:$0xff] %v10420_v2  ;;  %7771 = vmatmul.msk.f32.gmra.mxu1 %vm149_vm0, %v2436_v46  ;;  %7832 = vmatmul.msk.f32.gmra.mxu2 %vm149_vm0, %v2935_v31  ;;  %v13734_v31 = vld [vmem:[#allocation16_spill] sm:$0xff] }
 0x32d   :  { %v2361_v22 = vadd.f32 %v9948_v32, %v13734_v31  ;;  %v2438_v32 = vld [vmem:[%s13511_s0 + $0x13a] sm:$0xff] }
 0x32e   :  { %7896 = vmatmul.msk.f32.gmra.mxu3 %vm149_vm0, %v10044_v9 }
 0x32f   :  { %v3216_v10 = vpop.f32.mrf.mxu2 }
 0x330   :  { %v3358_v13 = vadd.f32 %v3216_v10, %v2859_v34  ;;  %v10430_v33 = vpop.f32.mrf.mxu0 }
 0x331   :  { %v2720_v11 = vpop.f32.mrf.mxu1  ;;  %v3724_v46 = vpop.f32.mrf.mxu3 }
 0x332   :  { %v10443_v9 = vadd.f32 %v3715_v53, %v3358_v13  ;;  %v2860_v28 = vadd.f32 %v2720_v11, %v2361_v22  ;;  %v10458_v53 = vld [vmem:[%s13511_s0 + $0x1e1] sm:$0xff] }
 0x333   :  { %7732 = vmatmul.msk.f32.gmra.mxu0 %vm149_vm0, %v10435_v44  ;;  %v2937_v11 = vld [vmem:[%s13511_s0 + $0x148] sm:$0xff] }
 0x334   :  { %13733 = vst [vmem:[#allocation15_spill] sm:$0xff] %v10443_v9  ;;  %7772 = vmatmul.msk.f32.gmra.mxu1 %vm149_vm0, %v2437_v39  ;;  %7833 = vmatmul.msk.f32.gmra.mxu2 %vm149_vm0, %v2936_v59  ;;  %v13736_v59 = vld [vmem:[#allocation17_spill] sm:$0xff] }
 0x335   :  { %v2362_v31 = vadd.f32 %v9970_v29, %v13736_v59  ;;  %v2439_v29 = vld [vmem:[%s13511_s0 + $0x142] sm:$0xff] }
 0x336   :  { %7897 = vmatmul.msk.f32.gmra.mxu3 %vm149_vm0, %v10067_v16 }
 0x337   :  { %v3219_v34 = vpop.f32.mrf.mxu2 }
 0x338   :  { %v3359_v10 = vadd.f32 %v3219_v34, %v2860_v28  ;;  %v10453_v2 = vpop.f32.mrf.mxu0 }
 0x339   :  { %v2723_v13 = vpop.f32.mrf.mxu1  ;;  %v3727_v39 = vpop.f32.mrf.mxu3 }
 0x33a   :  { %v10466_v16 = vadd.f32 %v3718_v56, %v3359_v10  ;;  %v2861_v22 = vadd.f32 %v2723_v13, %v2362_v31  ;;  %v10481_v56 = vld [vmem:[%s13511_s0 + $0x1e9] sm:$0xff] }
 0x33b   :  { %7733 = vmatmul.msk.f32.gmra.mxu0 %vm149_vm0, %v10458_v53  ;;  %v2938_v13 = vld [vmem:[%s13511_s0 + $0x150] sm:$0xff] }
 0x33c   :  { %13735 = vst [vmem:[#allocation16_spill] sm:$0xff] %v10466_v16  ;;  %7773 = vmatmul.msk.f32.gmra.mxu1 %vm149_vm0, %v2438_v32  ;;  %7834 = vmatmul.msk.f32.gmra.mxu2 %vm149_vm0, %v2937_v11  ;;  %v13738_v11 = vld [vmem:[#allocation18_spill] sm:$0xff] }
 0x33d   :  { %v2363_v59 = vadd.f32 %v9993_v1, %v13738_v11  ;;  %v2440_v1 = vld [vmem:[%s13511_s0 + $0x14a] sm:$0xff] }
 0x33e   :  { %7898 = vmatmul.msk.f32.gmra.mxu3 %vm149_vm0, %v10090_v23 }
 0x33f   :  { %v3222_v28 = vpop.f32.mrf.mxu2 }
 0x340   :  { %v3360_v34 = vadd.f32 %v3222_v28, %v2861_v22  ;;  %v10476_v9 = vpop.f32.mrf.mxu0 }
 0x341   :  { %v2726_v10 = vpop.f32.mrf.mxu1  ;;  %v3730_v32 = vpop.f32.mrf.mxu3 }
 0x342   :  { %v10489_v23 = vadd.f32 %v3721_v8, %v3360_v34  ;;  %v2862_v31 = vadd.f32 %v2726_v10, %v2363_v59  ;;  %v3898_v8 = vld [vmem:[%s13511_s0 + $0x22] sm:$0xff]  ;;  %v2939_v10 = vld [vmem:[%s13511_s0 + $0x158] sm:$0xff] }
 0x343   :  { %7734 = vmatmul.msk.f32.gmra.mxu0 %vm149_vm0, %v10481_v56 }
 0x344   :  { %13737 = vst [vmem:[#allocation17_spill] sm:$0xff] %v10489_v23  ;;  %7774 = vmatmul.msk.f32.gmra.mxu1 %vm149_vm0, %v2439_v29  ;;  %7835 = vmatmul.msk.f32.gmra.mxu2 %vm149_vm0, %v2938_v13  ;;  %v13740_v13 = vld [vmem:[#allocation19_spill] sm:$0xff] }
 0x345   :  { %v2364_v11 = vadd.f32 %v10016_v37, %v13740_v13  ;;  %v2441_v37 = vld [vmem:[%s13511_s0 + $0x152] sm:$0xff] }
 0x346   :  { %7899 = vmatmul.msk.f32.gmra.mxu3 %vm149_vm0, %v10113_v30 }
 0x347   :  { %v3225_v22 = vpop.f32.mrf.mxu2 }
 0x348   :  { %v3361_v28 = vadd.f32 %v3225_v22, %v2862_v31  ;;  %v10499_v16 = vpop.f32.mrf.mxu0 }
 0x349   :  { %v2729_v34 = vpop.f32.mrf.mxu1  ;;  %v3733_v30 = vpop.f32.mrf.mxu3 }
 0x34a   :  { %v10510_v29 = vadd.f32 %v3724_v46, %v3361_v28  ;;  %v2863_v59 = vadd.f32 %v2729_v34, %v2364_v11  ;;  %v3899_v46 = vld [vmem:[%s13511_s0 + $0x2a] sm:$0xff] }
 0x34b   :  { %7919 = vmatmul.msk.f32.vlgmr.msra.gmra.mxu0 %vm149_vm0, %v3898_v8  ;;  %v2940_v8 = vld [vmem:[%s13511_s0 + $0x160] sm:$0xff] }
 0x34c   :  { %13739 = vst [vmem:[#allocation18_spill] sm:$0xff] %v10510_v29  ;;  %7775 = vmatmul.msk.f32.gmra.mxu1 %vm149_vm0, %v2440_v1  ;;  %7836 = vmatmul.msk.f32.gmra.mxu2 %vm149_vm0, %v2939_v10 }
 0x34e   :  { %7900 = vmatmul.msk.f32.gmra.mxu3 %vm149_vm0, %v10136_v17  ;;  %v13742_v17 = vld [vmem:[#allocation20_spill] sm:$0xff] }
 0x34f   :  { %v3228_v31 = vpop.f32.mrf.mxu2  ;;  %v2365_v1 = vadd.f32 %v10039_v14, %v13742_v17  ;;  %v2442_v14 = vld [vmem:[%s13511_s0 + $0x15a] sm:$0xff] }
 0x350   :  { %v3362_v22 = vadd.f32 %v3228_v31, %v2863_v59  ;;  %v10519_v23 = vpop.f32.mrf.mxu0 }
 0x351   :  { %v2732_v28 = vpop.f32.mrf.mxu1  ;;  %v3736_v10 = vpop.f32.mrf.mxu3 }
 0x352   :  { %v10530_v34 = vadd.f32 %v3727_v39, %v3362_v22  ;;  %v2864_v13 = vadd.f32 %v2732_v28, %v2365_v1  ;;  %v3900_v39 = vld [vmem:[%s13511_s0 + $0x32] sm:$0xff] }
 0x353   :  { %7920 = vmatmul.msk.f32.gmra.mxu0 %vm149_vm0, %v3899_v46  ;;  %v2941_v46 = vld [vmem:[%s13511_s0 + $0x168] sm:$0xff] }
 0x354   :  { %13741 = vst [vmem:[#allocation19_spill] sm:$0xff] %v10530_v34  ;;  %7776 = vmatmul.msk.f32.gmra.mxu1 %vm149_vm0, %v2441_v37  ;;  %7837 = vmatmul.msk.f32.gmra.mxu2 %vm149_vm0, %v2940_v8  ;;  %v3948_v34 = vld [vmem:[%s13511_s0 + $0x1b2] sm:$0xff] }
 0x356   :  { %7901 = vmatmul.msk.f32.gmra.mxu3 %vm149_vm0, %v10159_v7  ;;  %v13744_v7 = vld [vmem:[#allocation21_spill] sm:$0xff] }
 0x357   :  { %v3231_v11 = vpop.f32.mrf.mxu2  ;;  %v2366_v37 = vadd.f32 %v10062_v24, %v13744_v7  ;;  %v2443_v24 = vld [vmem:[%s13511_s0 + $0x162] sm:$0xff] }
 0x358   :  { %v3363_v59 = vadd.f32 %v3231_v11, %v2864_v13  ;;  %v10539_v31 = vpop.f32.mrf.mxu0 }
 0x359   :  { %v2735_v22 = vpop.f32.mrf.mxu1  ;;  %v3739_v1 = vpop.f32.mrf.mxu3 }
 0x35a   :  { %v10550_v28 = vadd.f32 %v3730_v32, %v3363_v59  ;;  %v2865_v8 = vadd.f32 %v2735_v22, %v2366_v37  ;;  %v3901_v32 = vld [vmem:[%s13511_s0 + $0x3a] sm:$0xff] }
 0x35b   :  { %7921 = vmatmul.msk.f32.gmra.mxu0 %vm149_vm0, %v3900_v39  ;;  %v2942_v39 = vld [vmem:[%s13511_s0 + $0x170] sm:$0xff] }
 0x35c   :  { %13743 = vst [vmem:[#allocation20_spill] sm:$0xff] %v10550_v28  ;;  %7777 = vmatmul.msk.f32.gmra.mxu1 %vm149_vm0, %v2442_v14  ;;  %7838 = vmatmul.msk.f32.gmra.mxu2 %vm149_vm0, %v2941_v46 }
 0x35e   :  { %7902 = vmatmul.msk.f32.gmra.mxu3 %vm149_vm0, %v10182_v21  ;;  %v13746_v21 = vld [vmem:[#allocation22_spill] sm:$0xff] }
 0x35f   :  { %v3234_v17 = vpop.f32.mrf.mxu2  ;;  %v2367_v14 = vadd.f32 %v10085_v52, %v13746_v21  ;;  %v2444_v52 = vld [vmem:[%s13511_s0 + $0x16a] sm:$0xff] }
 0x360   :  { %v3364_v13 = vadd.f32 %v3234_v17, %v2865_v8  ;;  %v10559_v11 = vpop.f32.mrf.mxu0 }
 0x361   :  { %v2738_v59 = vpop.f32.mrf.mxu1 }
 0x362   :  { %v10570_v22 = vadd.f32 %v3733_v30, %v3364_v13  ;;  %v2866_v46 = vadd.f32 %v2738_v59, %v2367_v14  ;;  %v3902_v30 = vld [vmem:[%s13511_s0 + $0x42] sm:$0xff]  ;;  %v2943_v13 = vld [vmem:[%s13511_s0 + $0x178] sm:$0xff] }
 0x363   :  { %7922 = vmatmul.msk.f32.gmra.mxu0 %vm149_vm0, %v3901_v32  ;;  %v3742_v32 = vpop.f32.mrf.mxu3 }
 0x364   :  { %13745 = vst [vmem:[#allocation21_spill] sm:$0xff] %v10570_v22  ;;  %7778 = vmatmul.msk.f32.gmra.mxu1 %vm149_vm0, %v2443_v24  ;;  %7839 = vmatmul.msk.f32.gmra.mxu2 %vm149_vm0, %v2942_v39 }
 0x366   :  { %7903 = vmatmul.msk.f32.gmra.mxu3 %vm149_vm0, %v10205_v42  ;;  %v13749_v42 = vld [vmem:[#allocation23_spill] sm:$0xff] }
 0x367   :  { %v3237_v7 = vpop.f32.mrf.mxu2  ;;  %v2368_v24 = vadd.f32 %v10108_v62, %v13749_v42  ;;  %v2445_v62 = vld [vmem:[%s13511_s0 + $0x172] sm:$0xff] }
 0x368   :  { %v3365_v37 = vadd.f32 %v3237_v7, %v2866_v46  ;;  %v10579_v8 = vpop.f32.mrf.mxu0 }
 0x369   :  { %13747 = vst [vmem:[#allocation22_spill] sm:$0xff] %v10579_v8  ;;  %v2741_v17 = vpop.f32.mrf.mxu1 }
 0x36a   :  { %v10590_v59 = vadd.f32 %v3736_v10, %v3365_v37  ;;  %v2867_v39 = vadd.f32 %v2741_v17, %v2368_v24  ;;  %v3903_v10 = vld [vmem:[%s13511_s0 + $0x4a] sm:$0xff]  ;;  %v2944_v37 = vld [vmem:[%s13511_s0 + $0x180] sm:$0xff] }
 0x36b   :  { %7923 = vmatmul.msk.f32.gmra.mxu0 %vm149_vm0, %v3902_v30  ;;  %v13752_v17 = vld [vmem:[#allocation24_spill] sm:$0xff] }
 0x36c   :  { %13748 = vst [vmem:[#allocation55_spill] sm:$0xff] %v10590_v59  ;;  %7779 = vmatmul.msk.f32.gmra.mxu1 %vm149_vm0, %v2444_v52  ;;  %7840 = vmatmul.msk.f32.gmra.mxu2 %vm149_vm0, %v2943_v13  ;;  %v2369_v52 = vadd.f32 %v10131_v18, %v13752_v17  ;;  %v2446_v18 = vld [vmem:[%s13511_s0 + $0x17a] sm:$0xff] }
 0x36e   :  { %7904 = vmatmul.msk.f32.gmra.mxu3 %vm149_vm0, %v10228_v3  ;;  %v3745_v3 = vpop.f32.mrf.mxu3 }
 0x36f   :  { %v3240_v21 = vpop.f32.mrf.mxu2 }
 0x370   :  { %v3366_v14 = vadd.f32 %v3240_v21, %v2867_v39  ;;  %v10599_v46 = vpop.f32.mrf.mxu0 }
 0x371   :  { %13750 = vst [vmem:[#allocation23_spill] sm:$0xff] %v10599_v46  ;;  %v2744_v7 = vpop.f32.mrf.mxu1 }
 0x372   :  { %v10610_v30 = vadd.f32 %v3739_v1, %v3366_v14  ;;  %v2868_v13 = vadd.f32 %v2744_v7, %v2369_v52  ;;  %v3904_v1 = vld [vmem:[%s13511_s0 + $0x52] sm:$0xff]  ;;  %v2945_v14 = vld [vmem:[%s13511_s0 + $0x188] sm:$0xff] }
 0x373   :  { %7924 = vmatmul.msk.f32.gmra.mxu0 %vm149_vm0, %v3903_v10 }
 0x374   :  { %13751 = vst [vmem:[#allocation56_spill] sm:$0xff] %v10610_v30  ;;  %7780 = vmatmul.msk.f32.gmra.mxu1 %vm149_vm0, %v2445_v62  ;;  %7841 = vmatmul.msk.f32.gmra.mxu2 %vm149_vm0, %v2944_v37  ;;  %v3938_v30 = vld [vmem:[%s13511_s0 + $0x162] sm:$0xff] }
 0x376   :  { %7905 = vmatmul.msk.f32.gmra.mxu3 %vm149_vm0, %v10251_v43  ;;  %v13755_v43 = vld [vmem:[#allocation25_spill] sm:$0xff]  ;;  %v3748_v62 = vpop.f32.mrf.mxu3 }
 0x377   :  { %v3243_v42 = vpop.f32.mrf.mxu2  ;;  %v2370_v7 = vadd.f32 %v10154_v35, %v13755_v43  ;;  %v2447_v35 = vld [vmem:[%s13511_s0 + $0x182] sm:$0xff] }
 0x378   :  { %v3367_v24 = vadd.f32 %v3243_v42, %v2868_v13  ;;  %v10619_v39 = vpop.f32.mrf.mxu0 }
 0x379   :  { %13753 = vst [vmem:[#allocation24_spill] sm:$0xff] %v10619_v39  ;;  %v2747_v21 = vpop.f32.mrf.mxu1 }
 0x37a   :  { %v10630_v10 = vadd.f32 %v3742_v32, %v3367_v24  ;;  %v2869_v37 = vadd.f32 %v2747_v21, %v2370_v7  ;;  %v3905_v32 = vld [vmem:[%s13511_s0 + $0x5a] sm:$0xff]  ;;  %v2946_v24 = vld [vmem:[%s13511_s0 + $0x190] sm:$0xff] }
 0x37b   :  { %7925 = vmatmul.msk.f32.gmra.mxu0 %vm149_vm0, %v3904_v1 }
 0x37c   :  { %13754 = vst [vmem:[#allocation57_spill] sm:$0xff] %v10630_v10  ;;  %7781 = vmatmul.msk.f32.gmra.mxu1 %vm149_vm0, %v2446_v18  ;;  %7842 = vmatmul.msk.f32.gmra.mxu2 %vm149_vm0, %v2945_v14 }
 0x37e   :  { %7906 = vmatmul.msk.f32.gmra.mxu3 %vm149_vm0, %v10274_v4  ;;  %v13758_v4 = vld [vmem:[#allocation26_spill] sm:$0xff]  ;;  %v3751_v43 = vpop.f32.mrf.mxu3 }
 0x37f   :  { %v3246_v17 = vpop.f32.mrf.mxu2  ;;  %v2371_v21 = vadd.f32 %v10177_v48, %v13758_v4  ;;  %v2448_v48 = vld [vmem:[%s13511_s0 + $0x18a] sm:$0xff] }
 0x380   :  { %v3368_v52 = vadd.f32 %v3246_v17, %v2869_v37  ;;  %v10639_v13 = vpop.f32.mrf.mxu0 }
 0x381   :  { %13756 = vst [vmem:[#allocation25_spill] sm:$0xff] %v10639_v13  ;;  %v2750_v42 = vpop.f32.mrf.mxu1 }
 0x382   :  { %v10650_v1 = vadd.f32 %v3745_v3, %v3368_v52  ;;  %v2870_v18 = vadd.f32 %v2750_v42, %v2371_v21  ;;  %v3906_v3 = vld [vmem:[%s13511_s0 + $0x62] sm:$0xff]  ;;  %v2947_v52 = vld [vmem:[%s13511_s0 + $0x198] sm:$0xff] }
 0x383   :  { %7926 = vmatmul.msk.f32.gmra.mxu0 %vm149_vm0, %v3905_v32 }
 0x384   :  { %13757 = vst [vmem:[#allocation58_spill] sm:$0xff] %v10650_v1  ;;  %7782 = vmatmul.msk.f32.gmra.mxu1 %vm149_vm0, %v2447_v35  ;;  %7843 = vmatmul.msk.f32.gmra.mxu2 %vm149_vm0, %v2946_v24 }
 0x386   :  { %7907 = vmatmul.msk.f32.gmra.mxu3 %vm149_vm0, %v10297_v49  ;;  %v13761_v49 = vld [vmem:[#allocation27_spill] sm:$0xff] }
 0x387   :  { %v3249_v14 = vpop.f32.mrf.mxu2  ;;  %v2372_v42 = vadd.f32 %v10200_v60, %v13761_v49  ;;  %v2449_v60 = vld [vmem:[%s13511_s0 + $0x192] sm:$0xff] }
 0x388   :  { %v3369_v7 = vadd.f32 %v3249_v14, %v2870_v18  ;;  %v10659_v37 = vpop.f32.mrf.mxu0  ;;  %v2948_v14 = vld [vmem:[%s13511_s0 + $0x1a0] sm:$0xff] }
 0x389   :  { %13759 = vst [vmem:[#allocation26_spill] sm:$0xff] %v10659_v37  ;;  %v2753_v17 = vpop.f32.mrf.mxu1  ;;  %v3947_v37 = vld [vmem:[%s13511_s0 + $0x1aa] sm:$0xff] }
 0x38a   :  { %v10670_v32 = vadd.f32 %v3748_v62, %v3369_v7  ;;  %v2871_v35 = vadd.f32 %v2753_v17, %v2372_v42  ;;  %v3907_v62 = vld [vmem:[%s13511_s0 + $0x6a] sm:$0xff]  ;;  %v3754_v7 = vpop.f32.mrf.mxu3 }
 0x38b   :  { %7927 = vmatmul.msk.f32.gmra.mxu0 %vm149_vm0, %v3906_v3 }
 0x38c   :  { %13760 = vst [vmem:[#allocation59_spill] sm:$0xff] %v10670_v32  ;;  %7783 = vmatmul.msk.f32.gmra.mxu1 %vm149_vm0, %v2448_v48  ;;  %7844 = vmatmul.msk.f32.gmra.mxu2 %vm149_vm0, %v2947_v52 }
 0x38e   :  { %7908 = vmatmul.msk.f32.gmra.mxu3 %vm149_vm0, %v10320_v6  ;;  %v13764_v6 = vld [vmem:[#allocation28_spill] sm:$0xff] }
 0x38f   :  { %v3252_v24 = vpop.f32.mrf.mxu2  ;;  %v2373_v17 = vadd.f32 %v10223_v36, %v13764_v6  ;;  %v2450_v36 = vld [vmem:[%s13511_s0 + $0x19a] sm:$0xff] }
 0x390   :  { %v3370_v4 = vadd.f32 %v3252_v24, %v2871_v35  ;;  %v10679_v21 = vpop.f32.mrf.mxu0  ;;  %v2949_v24 = vld [vmem:[%s13511_s0 + $0x1a8] sm:$0xff] }
 0x391   :  { %13762 = vst [vmem:[#allocation27_spill] sm:$0xff] %v10679_v21  ;;  %v2756_v18 = vpop.f32.mrf.mxu1 }
 0x392   :  { %v10690_v3 = vadd.f32 %v3751_v43, %v3370_v4  ;;  %v2872_v48 = vadd.f32 %v2756_v18, %v2373_v17  ;;  %v3908_v43 = vld [vmem:[%s13511_s0 + $0x72] sm:$0xff] }
 0x393   :  { %7928 = vmatmul.msk.f32.gmra.mxu0 %vm149_vm0, %v3907_v62  ;;  %v13767_v62 = vld [vmem:[#allocation29_spill] sm:$0xff] }
 0x394   :  { %13763 = vst [vmem:[#allocation60_spill] sm:$0xff] %v10690_v3  ;;  %7784 = vmatmul.msk.f32.gmra.mxu1 %vm149_vm0, %v2449_v60  ;;  %7845 = vmatmul.msk.f32.gmra.mxu2 %vm149_vm0, %v2948_v14  ;;  %v2374_v18 = vadd.f32 %v10246_v0, %v13767_v62  ;;  %v2451_v0 = vld [vmem:[%s13511_s0 + $0x1a2] sm:$0xff] }
 0x396   :  { %7909 = vmatmul.msk.f32.gmra.mxu3 %vm149_vm0, %v10343_v38  ;;  %v3757_v38 = vpop.f32.mrf.mxu3 }
 0x397   :  { %v3255_v52 = vpop.f32.mrf.mxu2 }
 0x398   :  { %v3371_v49 = vadd.f32 %v3255_v52, %v2872_v48  ;;  %v10699_v42 = vpop.f32.mrf.mxu0  ;;  %v2950_v52 = vld [vmem:[%s13511_s0 + $0x1b0] sm:$0xff] }
 0x399   :  { %13765 = vst [vmem:[#allocation28_spill] sm:$0xff] %v10699_v42  ;;  %v2759_v35 = vpop.f32.mrf.mxu1 }
 0x39a   :  { %v10710_v4 = vadd.f32 %v3754_v7, %v3371_v49  ;;  %v2873_v60 = vadd.f32 %v2759_v35, %v2374_v18  ;;  %v3909_v7 = vld [vmem:[%s13511_s0 + $0x7a] sm:$0xff] }
 0x39b   :  { %7929 = vmatmul.msk.f32.gmra.mxu0 %vm149_vm0, %v3908_v43 }
 0x39c   :  { %13766 = vst [vmem:[#allocation61_spill] sm:$0xff] %v10710_v4  ;;  %7785 = vmatmul.msk.f32.gmra.mxu1 %vm149_vm0, %v2450_v36  ;;  %7846 = vmatmul.msk.f32.gmra.mxu2 %vm149_vm0, %v2949_v24 }
 0x39e   :  { %7910 = vmatmul.msk.f32.gmra.mxu3 %vm149_vm0, %v10366_v25  ;;  %v13770_v25 = vld [vmem:[#allocation30_spill] sm:$0xff]  ;;  %v3760_v35 = vpop.f32.mrf.mxu3 }
 0x39f   :  { %v3258_v14 = vpop.f32.mrf.mxu2  ;;  %v2375_v43 = vadd.f32 %v10269_v57, %v13770_v25  ;;  %v2452_v57 = vld [vmem:[%s13511_s0 + $0x1aa] sm:$0xff] }
 0x3a0   :  { %v3372_v6 = vadd.f32 %v3258_v14, %v2873_v60  ;;  %v10719_v17 = vpop.f32.mrf.mxu0  ;;  %v2951_v60 = vld [vmem:[%s13511_s0 + $0x1b8] sm:$0xff] }
 0x3a1   :  { %13768 = vst [vmem:[#allocation29_spill] sm:$0xff] %v10719_v17  ;;  %v2762_v48 = vpop.f32.mrf.mxu1 }
 0x3a2   :  { %v10730_v49 = vadd.f32 %v3757_v38, %v3372_v6  ;;  %v2874_v36 = vadd.f32 %v2762_v48, %v2375_v43  ;;  %v3910_v38 = vld [vmem:[%s13511_s0 + $0x82] sm:$0xff]  ;;  %v13518_v48 = vmov 0.0  }
 0x3a3   :  { %7930 = vmatmul.msk.f32.gmra.mxu0 %vm149_vm0, %v3909_v7  ;;  %5813 = vst.msk [vmem:[#allocation3] sm:$0xff] %vm5120_vm1, %v13518_v48 }
 0x3a4   :  { %13769 = vst [vmem:[#allocation62_spill] sm:$0xff] %v10730_v49  ;;  %7786 = vmatmul.msk.f32.gmra.mxu1 %vm149_vm0, %v2451_v0  ;;  %7847 = vmatmul.msk.f32.gmra.mxu2 %vm149_vm0, %v2950_v52 }
 0x3a5   :  { %5814 = vst.msk [vmem:[#allocation3 + $0x8] sm:$0xff] %vm5120_vm1, %v13518_v48 }
 0x3a6   :  { %7911 = vmatmul.msk.f32.gmra.mxu3 %vm149_vm0, %v10389_v41  ;;  %v13773_v41 = vld [vmem:[#allocation31_spill] sm:$0xff]  ;;  %5815 = vst.msk [vmem:[#allocation3 + $0x10] sm:$0xff] %vm5120_vm1, %v13518_v48 }
 0x3a7   :  { %v3261_v24 = vpop.f32.mrf.mxu2  ;;  %v2376_v7 = vadd.f32 %v10292_v54, %v13773_v41  ;;  %v3763_v54 = vpop.f32.mrf.mxu3  ;;  %5816 = vst.msk [vmem:[#allocation3 + $0x18] sm:$0xff] %vm5120_vm1, %v13518_v48  ;;  %v2455_v41 = vld [vmem:[%s13511_s0 + $0x1c2] sm:$0xff] }
 0x3a8   :  { %v3373_v62 = vadd.f32 %v3261_v24, %v2874_v36  ;;  %v10739_v18 = vpop.f32.mrf.mxu0  ;;  %5817 = vst.msk [vmem:[#allocation3 + $0x20] sm:$0xff] %vm5120_vm1, %v13518_v48  ;;  %v2952_v36 = vld [vmem:[%s13511_s0 + $0x1c0] sm:$0xff] }
 0x3a9   :  { %13771 = vst [vmem:[#allocation30_spill] sm:$0xff] %v10739_v18  ;;  %v2765_v6 = vpop.f32.mrf.mxu1 }
 0x3aa   :  { %v10750_v14 = vadd.f32 %v3760_v35, %v3373_v62  ;;  %v2875_v0 = vadd.f32 %v2765_v6, %v2376_v7  ;;  %v3911_v35 = vld [vmem:[%s13511_s0 + $0x8a] sm:$0xff]  ;;  %5818 = vst.msk [vmem:[#allocation3 + $0x28] sm:$0xff] %vm5120_vm1, %v13518_v48  ;;  %v3913_v6 = vld [vmem:[%s13511_s0 + $0x9a] sm:$0xff] }
 0x3ab   :  { %7931 = vmatmul.msk.f32.gmra.mxu0 %vm149_vm0, %v3910_v38  ;;  %5819 = vst.msk [vmem:[#allocation3 + $0x30] sm:$0xff] %vm5120_vm1, %v13518_v48  ;;  %v3912_v38 = vld [vmem:[%s13511_s0 + $0x92] sm:$0xff] }
 0x3ac   :  { %13772 = vst [vmem:[#allocation63_spill] sm:$0xff] %v10750_v14  ;;  %7787 = vmatmul.msk.f32.gmra.mxu1 %vm149_vm0, %v2452_v57  ;;  %7848 = vmatmul.msk.f32.gmra.mxu2 %vm149_vm0, %v2951_v60  ;;  %v2454_v57 = vld [vmem:[%s13511_s0 + $0x1ba] sm:$0xff]  ;;  %v2954_v7 = vld [vmem:[%s13511_s0 + $0x1d0] sm:$0xff] }
 0x3ad   :  { %5820 = vst.msk [vmem:[#allocation3 + $0x38] sm:$0xff] %vm5120_vm1, %v13518_v48 }
 0x3ae   :  { %7912 = vmatmul.msk.f32.gmra.mxu3 %vm149_vm0, %v10412_v27  ;;  %v2453_v27 = vld [vmem:[%s13511_s0 + $0x1b2] sm:$0xff]  ;;  %5821 = vst.msk [vmem:[#allocation3 + $0x40] sm:$0xff] %vm5120_vm1, %v13518_v48 }
 0x3af   :  { %v3264_v52 = vpop.f32.mrf.mxu2  ;;  %5822 = vst.msk [vmem:[#allocation3 + $0x48] sm:$0xff] %vm5120_vm1, %v13518_v48 }
 0x3b0   :  { %v3374_v25 = vadd.f32 %v3264_v52, %v2875_v0  ;;  %v10767_v43 = vpop.f32.mrf.mxu0  ;;  %5823 = vst.msk [vmem:[#allocation3 + $0x50] sm:$0xff] %vm5120_vm1, %v13518_v48  ;;  %v3914_v0 = vld [vmem:[%s13511_s0 + $0xa2] sm:$0xff]  ;;  %v2456_v52 = vld [vmem:[%s13511_s0 + $0x1ca] sm:$0xff] }
 0x3b1   :  { %13774 = vst [vmem:[#allocation31_spill] sm:$0xff] %v10767_v43  ;;  %v8068_v43 = vld [vmem:[%s13512_s4 + $0x28] sm:$0xff] }
 0x3b2   :  { %v10782_v24 = vadd.f32 %v3763_v54, %v3374_v25  ;;  %5824 = vst.msk [vmem:[#allocation3 + $0x58] sm:$0xff] %vm5120_vm1, %v13518_v48  ;;  %v2955_v54 = vld [vmem:[%s13511_s0 + $0x1d8] sm:$0xff]  ;;  %6287 = vmatpush.msrb.mxu3 %v8068_v43 }
 0x3b3   :  { %7932 = vmatmul.msk.f32.gmra.mxu0 %vm149_vm0, %v3911_v35  ;;  %5825 = vst.msk [vmem:[#allocation3 + $0x60] sm:$0xff] %vm5120_vm1, %v13518_v48  ;;  %v3915_v35 = vld [vmem:[%s13511_s0 + $0xaa] sm:$0xff] }
 0x3b4   :  { %13775 = vst [vmem:[#allocation64_spill] sm:$0xff] %v10782_v24  ;;  %7788 = vmatmul.msk.f32.gmra.mxu1 %vm149_vm0, %v2453_v27  ;;  %7849 = vmatmul.msk.f32.gmra.mxu2 %vm149_vm0, %v2952_v36  ;;  %v2457_v27 = vld [vmem:[%s13511_s0 + $0x1d2] sm:$0xff]  ;;  %v2956_v36 = vld [vmem:[%s13511_s0 + $0x1e0] sm:$0xff] }
 0x3b5   :  { %5826 = vst.msk [vmem:[#allocation3 + $0x68] sm:$0xff] %vm5120_vm1, %v13518_v48 }
 0x3b6   :  { %7913 = vmatmul.msk.f32.gmra.mxu3 %vm149_vm0, %v10435_v44  ;;  %v2953_v44 = vld [vmem:[%s13511_s0 + $0x1c8] sm:$0xff]  ;;  %5827 = vst.msk [vmem:[#allocation3 + $0x70] sm:$0xff] %vm5120_vm1, %v13518_v48 }
 0x3b7   :  { %5828 = vst.msk [vmem:[#allocation3 + $0x78] sm:$0xff] %vm5120_vm1, %v13518_v48 }
 0x3b8   :  { %v10801_v62 = vpop.f32.mrf.mxu0 }
 0x3b9   :  { %13776 = vst [vmem:[#allocation65_spill] sm:$0xff] %v10801_v62 }
 0x3bb   :  { %7933 = vmatmul.msk.f32.gmra.mxu0 %vm149_vm0, %v3912_v38  ;;  %v3458_v38 = vld [vmem:[%s13511_s0 + $0x1f9] sm:$0xff] }
 0x3bc   :  { %7789 = vmatmul.msk.f32.gmra.mxu1 %vm149_vm0, %v2454_v57  ;;  %7850 = vmatmul.msk.f32.gmra.mxu2 %vm149_vm0, %v2953_v44  ;;  %v3916_v44 = vld [vmem:[%s13511_s0 + $0xb2] sm:$0xff] }
 0x3be   :  { %7914 = vmatmul.msk.f32.gmra.mxu3 %vm149_vm0, %v10458_v53 }
 0x3c0   :  { %v10825_v60 = vpop.f32.mrf.mxu0 }
 0x3c1   :  { %13777 = vst [vmem:[#allocation66_spill] sm:$0xff] %v10825_v60 }
 0x3c3   :  { %7934 = vmatmul.msk.f32.gmra.mxu0 %vm149_vm0, %v3913_v6  ;;  %v2458_v6 = vld [vmem:[%s13511_s0 + $0x1da] sm:$0xff] }
 0x3c4   :  { %7790 = vmatmul.msk.f32.gmra.mxu1 %vm149_vm0, %v2455_v41  ;;  %7851 = vmatmul.msk.f32.gmra.mxu2 %vm149_vm0, %v2954_v7  ;;  %v2957_v41 = vld [vmem:[%s13511_s0 + $0x1e8] sm:$0xff] }
 0x3c6   :  { %7915 = vmatmul.msk.f32.gmra.mxu3 %vm149_vm0, %v10481_v56  ;;  %v3457_v56 = vld [vmem:[%s13511_s0 + $0x1f1] sm:$0xff] }
 0x3c8   :  { %v10841_v53 = vpop.f32.mrf.mxu0 }
 0x3cb   :  { %7935 = vmatmul.msk.f32.gmra.mxu0 %vm149_vm0, %v3914_v0  ;;  %v3917_v0 = vld [vmem:[%s13511_s0 + $0xba] sm:$0xff] }
 0x3cc   :  { %7791 = vmatmul.msk.f32.gmra.mxu1 %vm149_vm0, %v2456_v52  ;;  %7852 = vmatmul.msk.f32.gmra.mxu2 %vm149_vm0, %v2955_v54  ;;  %v2459_v52 = vld [vmem:[%s13511_s0 + $0x1e2] sm:$0xff]  ;;  %v2958_v54 = vld [vmem:[%s13511_s0 + $0x1f0] sm:$0xff] }
 0x3ce   :  { %7916 = vmatmul.msk.f32.gmra.mxu3 %vm149_vm0, %v3457_v56 }
 0x3d0   :  { %v10859_v25 = vpop.f32.mrf.mxu0 }
 0x3d3   :  { %7936 = vmatmul.msk.f32.gmra.mxu0 %vm149_vm0, %v3915_v35  ;;  %v3918_v35 = vld [vmem:[%s13511_s0 + $0xc2] sm:$0xff] }
 0x3d4   :  { %7792 = vmatmul.msk.f32.gmra.mxu1 %vm149_vm0, %v2457_v27  ;;  %7853 = vmatmul.msk.f32.gmra.mxu2 %vm149_vm0, %v2956_v36  ;;  %v2460_v27 = vld [vmem:[%s13511_s0 + $0x1ea] sm:$0xff]  ;;  %v2959_v36 = vld [vmem:[%s13511_s0 + $0x1f8] sm:$0xff] }
 0x3d6   :  { %7917 = vmatmul.msk.f32.gmra.mxu3 %vm149_vm0, %v3458_v38 }
 0x3d8   :  { %v10877_v57 = vpop.f32.mrf.mxu0 }
 0x3db   :  { %7937 = vmatmul.msk.f32.gmra.mxu0 %vm149_vm0, %v3916_v44  ;;  %v3919_v44 = vld [vmem:[%s13511_s0 + $0xca] sm:$0xff] }
 0x3dc   :  { %7793 = vmatmul.msk.f32.gmra.mxu1 %vm149_vm0, %v2458_v6  ;;  %7854 = vmatmul.msk.f32.gmra.mxu2 %vm149_vm0, %v2957_v41  ;;  %v3920_v41 = vld [vmem:[%s13511_s0 + $0xd2] sm:$0xff] }
 0x3e0   :  { %v10891_v7 = vpop.f32.mrf.mxu0 }
 0x3e3   :  { %7938 = vmatmul.msk.f32.gmra.mxu0 %vm149_vm0, %v3917_v0 }
 0x3e4   :  { %7794 = vmatmul.msk.f32.gmra.mxu1 %vm149_vm0, %v2459_v52  ;;  %7855 = vmatmul.msk.f32.gmra.mxu2 %vm149_vm0, %v2958_v54  ;;  %v3921_v52 = vld [vmem:[%s13511_s0 + $0xda] sm:$0xff] }
 0x3e8   :  { %v10905_v56 = vpop.f32.mrf.mxu0 }
 0x3eb   :  { %7939 = vmatmul.msk.f32.gmra.mxu0 %vm149_vm0, %v3918_v35  ;;  %v3922_v35 = vld [vmem:[%s13511_s0 + $0xe2] sm:$0xff] }
 0x3ec   :  { %7795 = vmatmul.msk.f32.gmra.mxu1 %vm149_vm0, %v2460_v27  ;;  %7856 = vmatmul.msk.f32.gmra.mxu2 %vm149_vm0, %v2959_v36  ;;  %v3923_v36 = vld [vmem:[%s13511_s0 + $0xea] sm:$0xff] }
 0x3f0   :  { %v10919_v38 = vpop.f32.mrf.mxu0 }
 0x3f3   :  { %7940 = vmatmul.msk.f32.gmra.mxu0 %vm149_vm0, %v3919_v44 }
 0x3f8   :  { %v10925_v6 = vpop.f32.mrf.mxu0 }
 0x3fb   :  { %7941 = vmatmul.msk.f32.gmra.mxu0 %vm149_vm0, %v3920_v41  ;;  %v3924_v41 = vld [vmem:[%s13511_s0 + $0xf2] sm:$0xff] }
 0x400   :  { %v10931_v0 = vpop.f32.mrf.mxu0 }
 0x403   :  { %7942 = vmatmul.msk.f32.gmra.mxu0 %vm149_vm0, %v3921_v52 }
 0x408   :  { %v10937_v54 = vpop.f32.mrf.mxu0 }
 0x40b   :  { %7943 = vmatmul.msk.f32.gmra.mxu0 %vm149_vm0, %v3922_v35  ;;  %v3925_v35 = vld [vmem:[%s13511_s0 + $0xfa] sm:$0xff] }
 0x410   :  { %v10943_v27 = vpop.f32.mrf.mxu0 }
 0x413   :  { %7944 = vmatmul.msk.f32.gmra.mxu0 %vm149_vm0, %v3923_v36  ;;  %v3926_v36 = vld [vmem:[%s13511_s0 + $0x102] sm:$0xff] }
 0x418   :  { %v10949_v44 = vpop.f32.mrf.mxu0 }
 0x41b   :  { %7945 = vmatmul.msk.f32.gmra.mxu0 %vm149_vm0, %v3924_v41  ;;  %v3927_v41 = vld [vmem:[%s13511_s0 + $0x10a] sm:$0xff] }
 0x420   :  { %v10955_v52 = vpop.f32.mrf.mxu0 }
 0x423   :  { %7946 = vmatmul.msk.f32.gmra.mxu0 %vm149_vm0, %v3925_v35  ;;  %v3928_v35 = vld [vmem:[%s13511_s0 + $0x112] sm:$0xff] }
 0x428   :  { %v10961_v48 = vpop.f32.mrf.mxu0 }
 0x42b   :  { %7947 = vmatmul.msk.f32.gmra.mxu0 %vm149_vm0, %v3926_v36  ;;  %v3929_v36 = vld [vmem:[%s13511_s0 + $0x11a] sm:$0xff] }
 0x430   :  { %v10967_v60 = vpop.f32.mrf.mxu0 }
 0x433   :  { %7948 = vmatmul.msk.f32.gmra.mxu0 %vm149_vm0, %v3927_v41  ;;  %v3930_v41 = vld [vmem:[%s13511_s0 + $0x122] sm:$0xff] }
 0x438   :  { %v10973_v24 = vpop.f32.mrf.mxu0 }
 0x43b   :  { %7949 = vmatmul.msk.f32.gmra.mxu0 %vm149_vm0, %v3928_v35  ;;  %v3931_v35 = vld [vmem:[%s13511_s0 + $0x12a] sm:$0xff] }
 0x440   :  { %v10979_v14 = vpop.f32.mrf.mxu0 }
 0x441   :  { %13778 = vst [vmem:[#allocation67_spill] sm:$0xff] %v10979_v14 }
 0x443   :  { %7950 = vmatmul.msk.f32.gmra.mxu0 %vm149_vm0, %v3929_v36  ;;  %v3932_v36 = vld [vmem:[%s13511_s0 + $0x132] sm:$0xff] }
 0x448   :  { %v10985_v49 = vpop.f32.mrf.mxu0 }
 0x449   :  { %13779 = vst [vmem:[#allocation68_spill] sm:$0xff] %v10985_v49 }
 0x44b   :  { %7951 = vmatmul.msk.f32.gmra.mxu0 %vm149_vm0, %v3930_v41  ;;  %v3933_v41 = vld [vmem:[%s13511_s0 + $0x13a] sm:$0xff] }
 0x450   :  { %v10991_v62 = vpop.f32.mrf.mxu0 }
 0x451   :  { %13780 = vst [vmem:[#allocation69_spill] sm:$0xff] %v10991_v62 }
 0x453   :  { %7952 = vmatmul.msk.f32.gmra.mxu0 %vm149_vm0, %v3931_v35  ;;  %v3934_v35 = vld [vmem:[%s13511_s0 + $0x142] sm:$0xff] }
 0x458   :  { %v10997_v4 = vpop.f32.mrf.mxu0 }
 0x459   :  { %13781 = vst [vmem:[#allocation70_spill] sm:$0xff] %v10997_v4 }
 0x45b   :  { %7953 = vmatmul.msk.f32.gmra.mxu0 %vm149_vm0, %v3932_v36  ;;  %v3935_v36 = vld [vmem:[%s13511_s0 + $0x14a] sm:$0xff] }
 0x460   :  { %v11003_v3 = vpop.f32.mrf.mxu0 }
 0x461   :  { %13782 = vst [vmem:[#allocation71_spill] sm:$0xff] %v11003_v3  ;;  %v13800_v3 = vld [vmem:[#allocation33_spill] sm:$0xff] }
 0x462   :  { %v2378_v4 = vadd.f32 %v10338_v5, %v13800_v3 }
 0x463   :  { %7954 = vmatmul.msk.f32.gmra.mxu0 %vm149_vm0, %v3933_v41  ;;  %v6011_v41 = vld [vmem:[%s13512_s4 + $0x8] sm:$0xff] }
 0x464   :  { %6176 = vmatpush.msrb.mxu2 %v6011_v41  ;;  %v3937_v41 = vld [vmem:[%s13511_s0 + $0x15a] sm:$0xff] }
 0x468   :  { %v11009_v32 = vpop.f32.mrf.mxu0 }
 0x469   :  { %13783 = vst [vmem:[#allocation72_spill] sm:$0xff] %v11009_v32 }
 0x46b   :  { %7955 = vmatmul.msk.f32.gmra.mxu0 %vm149_vm0, %v3934_v35  ;;  %v3936_v35 = vld [vmem:[%s13511_s0 + $0x152] sm:$0xff] }
 0x470   :  { %v11015_v1 = vpop.f32.mrf.mxu0 }
 0x471   :  { %13784 = vst [vmem:[#allocation73_spill] sm:$0xff] %v11015_v1 }
 0x473   :  { %7956 = vmatmul.msk.f32.gmra.mxu0 %vm149_vm0, %v3935_v36  ;;  %v8040_v36 = vld [vmem:[%s13512_s4 + $0x18] sm:$0xff] }
 0x474   :  { %6081 = vmatpush.msrb.mxu1 %v8040_v36  ;;  %v3939_v36 = vld [vmem:[%s13511_s0 + $0x16a] sm:$0xff] }
 0x478   :  { %v11027_v10 = vpop.f32.mrf.mxu0 }
 0x479   :  { %13785 = vst [vmem:[#allocation74_spill] sm:$0xff] %v11027_v10 }
 0x47b   :  { %7957 = vmatmul.msk.f32.gmra.mxu0 %vm149_vm0, %v3936_v35 }
 0x480   :  { %v11036_v18 = vpop.f32.mrf.mxu0 }
 0x481   :  { %13786 = vst [vmem:[#allocation75_spill] sm:$0xff] %v11036_v18 }
 0x483   :  { %7958 = vmatmul.msk.f32.gmra.mxu0 %vm149_vm0, %v3937_v41  ;;  %v3940_v41 = vld [vmem:[%s13511_s0 + $0x172] sm:$0xff] }
 0x488   :  { %v11042_v43 = vpop.f32.mrf.mxu0 }
 0x489   :  { %13787 = vst [vmem:[#allocation76_spill] sm:$0xff] %v11042_v43 }
 0x48b   :  { %7959 = vmatmul.msk.f32.gmra.mxu0 %vm149_vm0, %v3938_v30  ;;  %v3941_v30 = vld [vmem:[%s13511_s0 + $0x17a] sm:$0xff] }
 0x490   :  { %v11048_v35 = vpop.f32.mrf.mxu0 }
 0x491   :  { %13788 = vst [vmem:[#allocation77_spill] sm:$0xff] %v11048_v35 }
 0x493   :  { %7960 = vmatmul.msk.f32.gmra.mxu0 %vm149_vm0, %v3939_v36  ;;  %v3942_v36 = vld [vmem:[%s13511_s0 + $0x182] sm:$0xff] }
 0x498   :  { %v11054_v59 = vpop.f32.mrf.mxu0 }
 0x499   :  { %13789 = vst [vmem:[#allocation78_spill] sm:$0xff] %v11054_v59 }
 0x49b   :  { %7961 = vmatmul.msk.f32.gmra.mxu0 %vm149_vm0, %v3940_v41  ;;  %v3943_v41 = vld [vmem:[%s13511_s0 + $0x18a] sm:$0xff] }
 0x4a0   :  { %v11060_v17 = vpop.f32.mrf.mxu0 }
 0x4a1   :  { %13790 = vst [vmem:[#allocation79_spill] sm:$0xff] %v11060_v17  ;;  %v2768_v17 = vpop.f32.mrf.mxu1 }
 0x4a3   :  { %7962 = vmatmul.msk.f32.gmra.mxu0 %vm149_vm0, %v3941_v30  ;;  %v3944_v30 = vld [vmem:[%s13511_s0 + $0x192] sm:$0xff] }
 0x4a8   :  { %v11066_v35 = vpop.f32.mrf.mxu0 }
 0x4a9   :  { %13791 = vst [vmem:[#allocation80_spill] sm:$0xff] %v11066_v35  ;;  %v3267_v35 = vpop.f32.mrf.mxu2  ;;  %v2771_v43 = vpop.f32.mrf.mxu1 }
 0x4ab   :  { %7963 = vmatmul.msk.f32.gmra.mxu0 %vm149_vm0, %v3942_v36  ;;  %v3945_v36 = vld [vmem:[%s13511_s0 + $0x19a] sm:$0xff] }
 0x4b0   :  { %v11072_v59 = vpop.f32.mrf.mxu0 }
 0x4b1   :  { %13792 = vst [vmem:[#allocation81_spill] sm:$0xff] %v11072_v59  ;;  %v3766_v59 = vpop.f32.mrf.mxu3 }
 0x4b3   :  { %7964 = vmatmul.msk.f32.gmra.mxu0 %vm149_vm0, %v3943_v41  ;;  %v3270_v41 = vpop.f32.mrf.mxu2 }
 0x4b8   :  { %v11078_v22 = vpop.f32.mrf.mxu0 }
 0x4b9   :  { %13793 = vst [vmem:[#allocation82_spill] sm:$0xff] %v11078_v22  ;;  %v3946_v22 = vld [vmem:[%s13511_s0 + $0x1a2] sm:$0xff]  ;;  %v3769_v21 = vpop.f32.mrf.mxu3 }
 0x4bb   :  { %7965 = vmatmul.msk.f32.gmra.mxu0 %vm149_vm0, %v3944_v30  ;;  %v2774_v30 = vpop.f32.mrf.mxu1  ;;  %v3273_v13 = vpop.f32.mrf.mxu2 }
 0x4c0   :  { %v11084_v42 = vpop.f32.mrf.mxu0 }
 0x4c1   :  { %13794 = vst [vmem:[#allocation83_spill] sm:$0xff] %v11084_v42 }
 0x4c3   :  { %7966 = vmatmul.msk.f32.gmra.mxu0 %vm149_vm0, %v3945_v36  ;;  %v3772_v36 = vpop.f32.mrf.mxu3  ;;  %v2777_v18 = vpop.f32.mrf.mxu1 }
 0x4c4   :  { %v3276_v10 = vpop.f32.mrf.mxu2 }
 0x4c8   :  { %v11090_v28 = vpop.f32.mrf.mxu0 }
 0x4c9   :  { %13795 = vst [vmem:[#allocation84_spill] sm:$0xff] %v11090_v28 }
 0x4cb   :  { %7967 = vmatmul.msk.f32.gmra.mxu0 %vm149_vm0, %v3946_v22  ;;  %v13798_v22 = vld [vmem:[#allocation32_spill] sm:$0xff]  ;;  %v3775_v29 = vpop.f32.mrf.mxu3  ;;  %v2780_v39 = vpop.f32.mrf.mxu1 }
 0x4cc   :  { %v3279_v32 = vpop.f32.mrf.mxu2 }
 0x4d0   :  { %v11096_v42 = vpop.f32.mrf.mxu0 }
 0x4d1   :  { %13796 = vst [vmem:[#allocation85_spill] sm:$0xff] %v11096_v42  ;;  %v2377_v42 = vadd.f32 %v10315_v63, %v13798_v22  ;;  %v3950_v63 = vld [vmem:[%s13511_s0 + $0x1c2] sm:$0xff]  ;;  %v2877_v22 = vadd.f32 %v2771_v43, %v2378_v4 }
 0x4d3   :  { %7968 = vmatmul.msk.f32.gmra.mxu0 %vm149_vm0, %v3947_v37  ;;  %v3949_v37 = vld [vmem:[%s13511_s0 + $0x1ba] sm:$0xff]  ;;  %v2876_v1 = vadd.f32 %v2768_v17, %v2377_v42  ;;  %v2783_v8 = vpop.f32.mrf.mxu1  ;;  %v3376_v14 = vadd.f32 %v3270_v41, %v2877_v22  ;;  %v4397_v41 = vlaneseq }
 0x4d5   :  { %v3875_v17 = vadd.f32 %v3769_v21, %v3376_v14 }
 0x4d8   :  { %v11102_v28 = vpop.f32.mrf.mxu0 }
 0x4d9   :  { %13797 = vst [vmem:[#allocation86_spill] sm:$0xff] %v11102_v28  ;;  %v3375_v28 = vadd.f32 %v3267_v35, %v2876_v1  ;;  %v13801_v1 = vld [vmem:[#allocation34_spill] sm:$0xff]  ;;  %v3282_v35 = vpop.f32.mrf.mxu2 }
 0x4da   :  { %v2379_v42 = vadd.f32 %v10361_v12, %v13801_v1 }
 0x4db   :  { %7969 = vmatmul.msk.f32.gmra.mxu0 %vm149_vm0, %v3948_v34  ;;  %v3874_v34 = vadd.f32 %v3766_v59, %v3375_v28  ;;  %v3951_v28 = vld [vmem:[%s13511_s0 + $0x1ca] sm:$0xff]  ;;  %v11134_v43 = vpop.f32.mrf.mxu1 }
 0x4dc   :  { %v2878_v59 = vadd.f32 %v2774_v30, %v2379_v42 }
 0x4de   :  { %v3377_v4 = vadd.f32 %v3273_v13, %v2878_v59 }
 0x4e0   :  { %v11110_v46 = vpop.f32.mrf.mxu0  ;;  %v3876_v21 = vadd.f32 %v3772_v36, %v3377_v4 }
 0x4e1   :  { %13799 = vst [vmem:[#allocation32_spill] sm:$0xff] %v11110_v46  ;;  %v3778_v46 = vpop.f32.mrf.mxu3  ;;  %v11143_v13 = vpop.f32.mrf.mxu2 }
 0x4e3   :  { %7970 = vmatmul.msk.f32.gmra.mxu0 %vm149_vm0, %v3949_v37  ;;  %v13802_v37 = vld [vmem:[#allocation35_spill] sm:$0xff]  ;;  %v11153_v36 = vpop.f32.mrf.mxu1 }
 0x4e4   :  { %v2380_v12 = vadd.f32 %v10384_v19, %v13802_v37 }
 0x4e6   :  { %v2879_v30 = vadd.f32 %v2777_v18, %v2380_v12 }
 0x4e8   :  { %v4265_v62 = vpop.f32.mrf.mxu0  ;;  %v3378_v1 = vadd.f32 %v3276_v10, %v2879_v30  ;;  %v3953_v10 = vld [vmem:[%s13511_s0 + $0x1da] sm:$0xff] }
 0x4e9   :  { %v11121_v49 = vadd.f32 %v4265_v62, %v3874_v34  ;;  %v11131_v62 = vpop.f32.mrf.mxu3  ;;  %v3952_v34 = vld [vmem:[%s13511_s0 + $0x1d2] sm:$0xff] }
 0x4ea   :  { %v3877_v18 = vadd.f32 %v3775_v29, %v3378_v1  ;;  %v11170_v29 = vpop.f32.mrf.mxu2  ;;  %v2382_v1 = vadd.f32 %v10430_v33, %v9588_v20 }
 0x4eb   :  { %7971 = vmatmul.msk.f32.gmra.mxu0 %vm149_vm0, %v3950_v63  ;;  %v11141_v63 = vshrl.u32 %v4397_v41, 7 }
 0x4ed   :  { %13803 = vst [vmem:[#allocation33_spill] sm:$0xff] %v11141_v63  ;;  %v11148_v42 = vadd.s32 8, %v11141_v63  ;;  %v11167_v37 = vadd.s32 24, %v11141_v63  ;;  %v11180_v30 = vadd.s32 40, %v11141_v63 }
 0x4ef   :  { %13804 = vst [vmem:[#allocation34_spill] sm:$0xff] %v11148_v42  ;;  %v4459_v12 = vand.u32 15, %v11148_v42 }
 0x4f0   :  { %v4268_v5 = vpop.f32.mrf.mxu0  ;;  %13807 = vst [vmem:[#allocation88_spill] sm:$0xff] %v11167_v37 }
 0x4f1   :  { %v11129_v3 = vadd.f32 %v4268_v5, %v3875_v17  ;;  %v11151_v19 = vpop.f32.mrf.mxu3  ;;  %v2381_v17 = vadd.f32 %v10407_v26, %v9568_v55  ;;  %v4519_v5 = vshra.s32 %v11148_v42, 4  ;;  %13809 = vst [vmem:[#allocation90_spill] sm:$0xff] %v11180_v30  ;;  %vm4699_vm2 = vcmp.lt.s32.totalorder %v4459_v12, 14 }
 0x4f2   :  { %v2881_v42 = vadd.f32 %v2783_v8, %v2382_v1  ;;  %v11197_v12 = vadd.s32 56, %v11141_v63  ;;  %v13812_v1 = vld [vmem:[#allocation37_spill] sm:$0xff] }
 0x4f3   :  { %7972 = vmatmul.msk.f32.gmra.mxu0 %vm149_vm0, %v3951_v28  ;;  %v11159_v28 = vadd.s32 16, %v11141_v63  ;;  %v2880_v4 = vadd.f32 %v2780_v39, %v2381_v17  ;;  %v4579_v55 = vand.u32 15, %v4519_v5  ;;  %v4521_v39 = vshra.s32 %v11167_v37, 4 }
 0x4f4   :  { %13810 = vst [vmem:[#allocation91_spill] sm:$0xff] %v11197_v12 }
 0x4f5   :  { %13805 = vst [vmem:[#allocation35_spill] sm:$0xff] %v11159_v28  ;;  %v3379_v26 = vadd.f32 %v3279_v32, %v2880_v4  ;;  %vm4819_vm3 = vcmp.lt.s32.totalorder %v4579_v55, 14  ;;  %v4581_v33 = vand.u32 15, %v4521_v39  ;;  %v13811_v55 = vld [vmem:[#allocation36_spill] sm:$0xff]  ;;  %v11207_v39 = vadd.f32 %v10859_v25, %v10029_v40 }
 0x4f6   :  { %vm4879_vm4 = vmand %vm4699_vm2, %vm4819_vm3 }
 0x4f7   :  { %v3878_v32 = vadd.f32 %v3778_v46, %v3379_v26  ;;  %v4523_v46 = vshra.s32 %v11180_v30, 4  ;;  %v2383_v26 = vadd.f32 %v10453_v2, %v13811_v55  ;;  %13813 = vst [vmem:[#allocation36_spill] sm:$0xff] %v11207_v39  ;;  %vm4821_vm8 = vcmp.lt.s32.totalorder %v4581_v33, 14 }
 0x4f8   :  { %v4271_v14 = vpop.f32.mrf.mxu0 }
 0x4f9   :  { %v11145_v22 = vadd.f32 %v4271_v14, %v3876_v21  ;;  %v4518_v21 = vshra.s32 %v11141_v63, 4  ;;  %v4520_v14 = vshra.s32 %v11159_v28, 4  ;;  %v11184_v17 = vpop.f32.mrf.mxu3  ;;  %v3954_v28 = vld [vmem:[%s13511_s0 + $0x1e2] sm:$0xff] }
 0x4fb   :  { %7973 = vmatmul.msk.f32.gmra.mxu0 %vm149_vm0, %v3952_v34  ;;  %v11176_v34 = vadd.s32 32, %v11141_v63  ;;  %v4580_v5 = vand.u32 15, %v4520_v14  ;;  %v4463_v14 = vand.u32 15, %v11180_v30  ;;  %v11275_v30 = vadd.f32 %v10891_v7, %v10075_v45  ;;  %v13834_v7 = vld [vmem:[#allocation41_spill] sm:$0xff] }
 0x4fd   :  { %13808 = vst [vmem:[#allocation89_spill] sm:$0xff] %v11176_v34  ;;  %vm4820_vm6 = vcmp.lt.s32.totalorder %v4580_v5, 14  ;;  %vm11241_vm10 = vcmp.lt.s32.totalorder %v4463_v14, 14 }
 0x500   :  { %v4274_v59 = vpop.f32.mrf.mxu0 }
 0x501   :  { %v11164_v41 = vadd.f32 %v4274_v59, %v3877_v18  ;;  %v4578_v18 = vand.u32 15, %v4518_v21  ;;  %v4522_v59 = vshra.s32 %v11176_v34, 4  ;;  %v3380_v21 = vadd.f32 %v3282_v35, %v2881_v42  ;;  %v11216_v35 = vpop.f32.mrf.mxu2 }
 0x502   :  { %v4583_v42 = vand.u32 15, %v4523_v46  ;;  %v11239_v46 = vadd.f32 %v10877_v57, %v10052_v50  ;;  %v11261_v57 = vadd.s32 72, %v11141_v63  ;;  %v11310_v50 = vadd.f32 %v10905_v56, %v10098_v47 }
 0x503   :  { %13806 = vst [vmem:[#allocation87_spill] sm:$0xff] %v11164_v41  ;;  %7974 = vmatmul.msk.f32.gmra.mxu0 %vm149_vm0, %v3953_v10  ;;  %v11187_v10 = vpop.f32.mrf.mxu1  ;;  %v4461_v41 = vand.u32 15, %v11167_v37  ;;  %vm4818_vm5 = vcmp.lt.s32.totalorder %v4578_v18, 14  ;;  %v4582_v8 = vand.u32 15, %v4522_v59  ;;  %v13819_v18 = vld [vmem:[#allocation38_spill] sm:$0xff]  ;;  %v3879_v5 = vadd.f32 %v11131_v62, %v3380_v21 }
 0x504   :  { %v11224_v40 = vadd.f32 %v10499_v16, %v13819_v18  ;;  %v11235_v59 = vadd.f32 %v10841_v53, %v10006_v61  ;;  %13823 = vst [vmem:[#allocation95_spill] sm:$0xff] %v11239_v46  ;;  %v2882_v61 = vadd.f32 %v11134_v43, %v2383_v26  ;;  %v11258_v53 = vpop.f32.mrf.mxu3  ;;  %vm4823_vm12 = vcmp.lt.s32.totalorder %v4583_v42, 14  ;;  %v13829_v26 = vld [vmem:[#allocation39_spill] sm:$0xff] }
 0x505   :  { %vm11212_vm7 = vcmp.lt.s32.totalorder %v4461_v41, 14  ;;  %vm4822_vm9 = vcmp.lt.s32.totalorder %v4582_v8, 14  ;;  %13828 = vst [vmem:[#allocation96_spill] sm:$0xff] %v11261_v57  ;;  %v4465_v43 = vand.u32 15, %v11197_v12  ;;  %v11271_v2 = vadd.f32 %v10519_v23, %v13829_v26  ;;  %vm4883_vm13 = vmand %vm11241_vm10, %vm4823_vm12 }
 0x506   :  { %13822 = vst [vmem:[#allocation94_spill] sm:$0xff] %v11235_v59  ;;  %vm11254_vm11 = vmand %vm11212_vm7, %vm4821_vm8  ;;  %v3381_v37 = vadd.f32 %v11143_v13, %v2882_v61  ;;  %v11297_v13 = vadd.f32 %v10559_v11, %v13834_v7  ;;  %v4527_v61 = vshra.s32 %v11261_v57, 4 }
 0x507   :  { %13830 = vst [vmem:[#allocation39_spill] sm:$0xff] %v11275_v30  ;;  %vm11312_vm14 = vcmp.lt.s32.totalorder %v4465_v43, 14 }
 0x508   :  { %v4277_v4 = vpop.f32.mrf.mxu0  ;;  %13836 = vst [vmem:[#allocation98_spill] sm:$0xff] %v11310_v50  ;;  %v3880_v42 = vadd.f32 %v11151_v19, %v3381_v37  ;;  %v3956_v19 = vld [vmem:[%s13511_s0 + $0x1f2] sm:$0xff] }
 0x509   :  { %v11193_v20 = vadd.f32 %v4277_v4, %v3878_v32  ;;  %v2384_v32 = vadd.f32 %v10476_v9, %v13812_v1  ;;  %v13814_v4 = vmov 0.0   ;;  %v4525_v9 = vshra.s32 %v11197_v12, 4  ;;  %v3955_v1 = vld [vmem:[%s13511_s0 + $0x1ea] sm:$0xff] }
 0x50a   :  { %v11210_v34 = vsel %vm4879_vm4, 1.0, %v13814_v4  ;;  %v11227_v25 = vsel %vm4818_vm5, 1.0, %v13814_v4  ;;  %v11230_v41 = vsel %vm4820_vm6, 1.0, %v13814_v4  ;;  %v11293_v45 = vsel %vm11254_vm11, 1.0, %v13814_v4 }
 0x50b   :  { %7975 = vmatmul.msk.f32.gmra.mxu0 %vm149_vm0, %v3954_v28  ;;  %13815 = vst [vmem:[#allocation37_spill] sm:$0xff] %v11210_v34  ;;  %v11219_v28 = vadd.s32 48, %v11141_v63  ;;  %v5061_v62 = vmul.f32 %v11210_v34, %v11207_v39  ;;  %v11265_v14 = vpop.f32.mrf.mxu1  ;;  %v4585_v33 = vand.u32 15, %v4525_v9  ;;  %v5060_v9 = vmul.f32 %v11227_v25, %v11235_v59 }
 0x50c   :  { %13820 = vst [vmem:[#allocation38_spill] sm:$0xff] %v11227_v25  ;;  %v5062_v23 = vmul.f32 %v11230_v41, %v11239_v46  ;;  %v5063_v8 = vmul.f32 %v11293_v45, %v11275_v30  ;;  %v11332_v43 = vsel %vm4883_vm13, 1.0, %v13814_v4  ;;  %v2883_v37 = vadd.f32 %v11153_v36, %v2384_v32  ;;  %v11351_v32 = vpop.f32.mrf.mxu3 }
 0x50d   :  { %13818 = vst [vmem:[#allocation92_spill] sm:$0xff] %v11219_v28  ;;  %v4524_v18 = vshra.s32 %v11219_v28, 4  ;;  %vm4825_vm15 = vcmp.lt.s32.totalorder %v4585_v33, 14  ;;  %v5121_v47 = vsel %vm5120_vm1, %v5060_v9, 0.0  ;;  %v4587_v12 = vand.u32 15, %v4527_v61 }
 0x50e   :  { %13821 = vst [vmem:[#allocation93_spill] sm:$0xff] %v11230_v41  ;;  %v5124_v56 = vsel %vm5120_vm1, %v5062_v23, 0.0  ;;  %vm4885_vm3 = vmand %vm11312_vm14, %vm4825_vm15  ;;  %v3382_v36 = vadd.f32 %v11170_v29, %v2883_v37  ;;  %v4430_v41 = vadd.s32 256, %v11141_v63  ;;  %v4434_v46 = vadd.s32 288, %v11141_v63 }
 0x50f   :  { %v4584_v26 = vand.u32 15, %v4524_v18  ;;  %v11329_v18 = vadd.f32 %v10919_v38, %v10121_v51  ;;  %13841 = vst [vmem:[#allocation101_spill] sm:$0xff] %v11332_v43  ;;  %v11347_v38 = vadd.s32 88, %v11141_v63  ;;  %vm4827_vm5 = vcmp.lt.s32.totalorder %v4587_v12, 14 }
 0x510   :  { %v4280_v55 = vpop.f32.mrf.mxu0  ;;  %v11383_v12 = vadd.f32 %v10931_v0, %v10167_v15  ;;  %v4437_v59 = vadd.s32 312, %v11141_v63 }
 0x511   :  { %v11263_v21 = vadd.f32 %v4280_v55, %v3879_v5  ;;  %v11279_v5 = vadd.s32 64, %v11141_v63  ;;  %v13832_v55 = vld [vmem:[#allocation40_spill] sm:$0xff]  ;;  %13840 = vst [vmem:[#allocation100_spill] sm:$0xff] %v11329_v18  ;;  %vm4824_vm2 = vcmp.lt.s32.totalorder %v4584_v26, 14  ;;  %v5065_v33 = vmul.f32 %v11332_v43, %v11329_v18 }
 0x512   :  { %v11284_v28 = vadd.f32 %v10539_v31, %v13832_v55  ;;  %13833 = vst [vmem:[#allocation40_spill] sm:$0xff] %v11293_v45  ;;  %v11302_v31 = vsel %vm4822_vm9, 1.0, %v13814_v4  ;;  %v11323_v55 = vadd.s32 80, %v11141_v63  ;;  %v5126_v45 = vsel %vm5120_vm1, %v5063_v8, 0.0 }
 0x513   :  { %13831 = vst [vmem:[#allocation97_spill] sm:$0xff] %v11279_v5  ;;  %7976 = vmatmul.msk.f32.gmra.mxu0 %vm149_vm0, %v3955_v1  ;;  %v5122_v1 = vsel %vm5120_vm1, %v5061_v62, 0.0  ;;  %v11319_v62 = vpop.f32.mrf.mxu2  ;;  %v4526_v16 = vshra.s32 %v11279_v5, 4  ;;  %v4467_v5 = vand.u32 15, %v11261_v57  ;;  %v5064_v51 = vmul.f32 %v11302_v31, %v11310_v50  ;;  %v11361_v11 = vpop.f32.mrf.mxu1 }
 0x514   :  { %13835 = vst [vmem:[#allocation41_spill] sm:$0xff] %v11302_v31  ;;  %v5123_v23 = vadd.f32 %v5122_v1, %v5121_v47  ;;  %v4528_v1 = vshra.s32 %v11323_v55, 4  ;;  %v11359_v26 = vadd.f32 %v10925_v6, %v10144_v58  ;;  %v11364_v8 = vadd.s32 96, %v11141_v63 }
 0x515   :  { %13839 = vst [vmem:[#allocation99_spill] sm:$0xff] %v11323_v55  ;;  %v4586_v61 = vand.u32 15, %v4526_v16  ;;  %v11367_v29 = vsel %vm4824_vm2, 1.0, %v13814_v4  ;;  %v11370_v16 = vsel %vm4885_vm3, 1.0, %v13814_v4  ;;  %vm4707_vm4 = vcmp.lt.s32.totalorder %v4467_v5, 14 }
 0x516   :  { %13842 = vst [vmem:[#allocation102_spill] sm:$0xff] %v11347_v38  ;;  %v4411_v58 = vadd.s32 104, %v11141_v63  ;;  %v2884_v6 = vadd.f32 %v11187_v10, %v11224_v40  ;;  %v4588_v37 = vand.u32 15, %v4528_v1  ;;  %v5066_v5 = vmul.f32 %v11367_v29, %v11359_v26  ;;  %vm4887_vm7 = vmand %vm4707_vm4, %vm4827_vm5  ;;  %v3957_v10 = vld [vmem:[%s13511_s0 + $0x1fa] sm:$0xff] }
 0x517   :  { %13843 = vst [vmem:[#allocation103_spill] sm:$0xff] %v11359_v26  ;;  %vm4826_vm6 = vcmp.lt.s32.totalorder %v4586_v61, 14  ;;  %v13848_v61 = vld [vmem:[#allocation54_spill] sm:$0xff]  ;;  %v4469_v0 = vand.u32 15, %v11347_v38  ;;  %v4428_v43 = vadd.s32 240, %v11141_v63  ;;  %v4433_v50 = vadd.s32 280, %v11141_v63 }
 0x518   :  { %v4283_v7 = vpop.f32.mrf.mxu0  ;;  %13844 = vst [vmem:[#allocation104_spill] sm:$0xff] %v11364_v8  ;;  %v3383_v40 = vadd.f32 %v11216_v35, %v2884_v6  ;;  %v11394_v1 = vadd.f32 %v10937_v54, %v13848_v61  ;;  %v11399_v15 = vsel %vm4826_vm6, 1.0, %v13814_v4  ;;  %vm4828_vm8 = vcmp.lt.s32.totalorder %v4588_v37, 14 }
 0x519   :  { %v11339_v9 = vadd.f32 %v4283_v7, %v3880_v42  ;;  %v5125_v42 = vadd.f32 %v5124_v56, %v5123_v23  ;;  %13845 = vst [vmem:[#allocation105_spill] sm:$0xff] %v11367_v29  ;;  %v5128_v56 = vsel %vm5120_vm1, %v5064_v51, 0.0  ;;  %v4529_v7 = vshra.s32 %v11347_v38, 4 }
 0x51a   :  { %13846 = vst [vmem:[#allocation106_spill] sm:$0xff] %v11370_v16  ;;  %v5130_v23 = vsel %vm5120_vm1, %v5065_v33, 0.0  ;;  %v4413_v35 = vadd.s32 120, %v11141_v63  ;;  %v5132_v54 = vsel %vm5120_vm1, %v5066_v5, 0.0  ;;  %v4471_v61 = vand.u32 15, %v4411_v58  ;;  %v13852_v5 = vld [vmem:[#allocation5_spill] sm:$0xff] }
 0x51b   :  { %7977 = vmatmul.msk.f32.gmra.mxu0 %vm149_vm0, %v3956_v19  ;;  %v5127_v47 = vadd.f32 %v5126_v45, %v5125_v42  ;;  %v3881_v19 = vadd.f32 %v11184_v17, %v3382_v36  ;;  %13847 = vst [vmem:[#allocation107_spill] sm:$0xff] %v11383_v12  ;;  %v4530_v45 = vshra.s32 %v11364_v8, 4  ;;  %v11390_v36 = vpop.f32.mrf.mxu2  ;;  %v4589_v33 = vand.u32 15, %v4529_v7 }
 0x51c   :  { %13849 = vst [vmem:[#allocation54_spill] sm:$0xff] %v11394_v1  ;;  %v4531_v8 = vshra.s32 %v4411_v58, 4  ;;  %v2885_v7 = vadd.f32 %v11265_v14, %v11271_v2  ;;  %v11422_v38 = vadd.f32 %v10943_v27, %v13852_v5  ;;  %v4533_v2 = vshra.s32 %v4413_v35, 4 }
 0x51d   :  { %v5129_v17 = vadd.f32 %v5128_v56, %v5127_v47  ;;  %13850 = vst [vmem:[#allocation108_spill] sm:$0xff] %v11399_v15  ;;  %v11403_v47 = vsel %vm4887_vm7, 1.0, %v13814_v4  ;;  %v5067_v56 = vmul.f32 %v11370_v16, %v11383_v12  ;;  %v4590_v6 = vand.u32 15, %v4530_v45 }
 0x51e   :  { %13851 = vst [vmem:[#allocation109_spill] sm:$0xff] %v11403_v47  ;;  %vm4829_vm9 = vcmp.lt.s32.totalorder %v4589_v33, 14  ;;  %v4591_v45 = vand.u32 15, %v4531_v8  ;;  %v3384_v14 = vadd.f32 %v11319_v62, %v2885_v7  ;;  %vm11436_vm12 = vcmp.lt.s32.totalorder %v4471_v61, 14  ;;  %v13859_v7 = vld [vmem:[#allocation7_spill] sm:$0xff] }
 0x51f   :  { %v5131_v55 = vadd.f32 %v5130_v23, %v5129_v17  ;;  %v3882_v23 = vadd.f32 %v11258_v53, %v3383_v40  ;;  %v5068_v17 = vmul.f32 %v11399_v15, %v11394_v1  ;;  %13853 = vst [vmem:[#allocation5_spill] sm:$0xff] %v11422_v38  ;;  %v11427_v53 = vsel %vm4828_vm8, 1.0, %v13814_v4  ;;  %v13936_v1 = vld [vmem:[#allocation76_spill] sm:$0xff] }
 0x520   :  { %v4286_v51 = vpop.f32.mrf.mxu0  ;;  %13854 = vst [vmem:[#allocation110_spill] sm:$0xff] %v11427_v53  ;;  %v5134_v40 = vsel %vm5120_vm1, %v5067_v56, 0.0  ;;  %vm4830_vm10 = vcmp.lt.s32.totalorder %v4590_v6, 14  ;;  %v4415_v15 = vadd.s32 136, %v11141_v63  ;;  %v5069_v37 = vmul.f32 %v11403_v47, %v11422_v38  ;;  %v13867_v6 = vld [vmem:[#allocation9_spill] sm:$0xff]  ;;  %v13928_v38 = vld [vmem:[#allocation46_spill] sm:$0xff] }
 0x521   :  { %v11396_v42 = vadd.f32 %v4286_v51, %v3881_v19  ;;  %v4412_v19 = vadd.s32 112, %v11141_v63  ;;  %v11414_v51 = vpop.f32.mrf.mxu3  ;;  %v5133_v57 = vadd.f32 %v5132_v54, %v5131_v55  ;;  %v5136_v27 = vsel %vm5120_vm1, %v5068_v17, 0.0 }
 0x522   :  { %vm4831_vm13 = vcmp.lt.s32.totalorder %v4591_v45, 14  ;;  %v4473_v33 = vand.u32 15, %v4413_v35  ;;  %v4414_v54 = vadd.s32 128, %v11141_v63  ;;  %v2886_v56 = vadd.f32 %v11361_v11, %v11284_v28  ;;  %v13862_v28 = vld [vmem:[#allocation8_spill] sm:$0xff] }
 0x523   :  { %7978 = vmatmul.msk.f32.gmra.mxu0 %vm149_vm0, %v3957_v10  ;;  %v11418_v10 = vpop.f32.mrf.mxu1  ;;  %vm4709_vm0 = vcmp.lt.s32.totalorder %v4469_v0, 14  ;;  %v4532_v58 = vshra.s32 %v4412_v19, 4  ;;  %v13855_v0 = vld [vmem:[#allocation6_spill] sm:$0xff]  ;;  %v5135_v19 = vadd.f32 %v5134_v40, %v5133_v57  ;;  %v11451_v17 = vadd.f32 %v10955_v52, %v13859_v7  ;;  %vm4891_vm14 = vmand %vm11436_vm12, %vm4831_vm13 }
 0x524   :  { %v11434_v8 = vadd.f32 %v10949_v44, %v13855_v0  ;;  %vm4889_vm11 = vmand %vm4709_vm0, %vm4829_vm9  ;;  %v11447_v44 = vpop.f32.mrf.mxu2  ;;  %v4593_v61 = vand.u32 15, %v4533_v2  ;;  %v4535_v35 = vshra.s32 %v4415_v15, 4  ;;  %v11461_v57 = vadd.f32 %v10961_v48, %v13862_v28 }
 0x525   :  { %13860 = vst [vmem:[#allocation7_spill] sm:$0xff] %v11451_v17  ;;  %v4592_v5 = vand.u32 15, %v4532_v58  ;;  %v5137_v0 = vadd.f32 %v5136_v27, %v5135_v19  ;;  %v11465_v52 = vsel %vm4830_vm10, 1.0, %v13814_v4  ;;  %vm11471_vm15 = vcmp.lt.s32.totalorder %v4473_v33, 14 }
 0x526   :  { %13856 = vst [vmem:[#allocation6_spill] sm:$0xff] %v11434_v8  ;;  %v5070_v47 = vmul.f32 %v11427_v53, %v11434_v8  ;;  %v4416_v2 = vadd.s32 144, %v11141_v63  ;;  %v11482_v45 = vadd.f32 %v10967_v60, %v13867_v6  ;;  %vm4833_vm2 = vcmp.lt.s32.totalorder %v4593_v61, 14  ;;  %v13870_v6 = vld [vmem:[#allocation10_spill] sm:$0xff] }
 0x527   :  { %13863 = vst [vmem:[#allocation8_spill] sm:$0xff] %v11461_v57  ;;  %v4417_v58 = vadd.s32 152, %v11141_v63  ;;  %v11486_v62 = vsel %vm4891_vm14, 1.0, %v13814_v4  ;;  %vm4832_vm3 = vcmp.lt.s32.totalorder %v4592_v5, 14  ;;  %v4595_v33 = vand.u32 15, %v4535_v35  ;;  %vm4893_vm4 = vmand %vm11471_vm15, %vm4833_vm2 }
 0x528   :  { %v4289_v16 = vpop.f32.mrf.mxu0  ;;  %13864 = vst [vmem:[#allocation112_spill] sm:$0xff] %v11465_v52  ;;  %v3385_v19 = vadd.f32 %v11390_v36, %v2886_v56  ;;  %v5140_v7 = vsel %vm5120_vm1, %v5070_v47, 0.0  ;;  %v5072_v28 = vmul.f32 %v11465_v52, %v11461_v57  ;;  %v4536_v5 = vshra.s32 %v4416_v2, 4 }
 0x529   :  { %v11440_v55 = vadd.f32 %v4289_v16, %v3882_v23  ;;  %v3883_v16 = vadd.f32 %v11351_v32, %v3384_v14  ;;  %v11455_v23 = vsel %vm4889_vm11, 1.0, %v13814_v4  ;;  %v5138_v32 = vsel %vm5120_vm1, %v5069_v37, 0.0  ;;  %v11476_v40 = vpop.f32.mrf.mxu3  ;;  %13868 = vst [vmem:[#allocation9_spill] sm:$0xff] %v11482_v45 }
 0x52a   :  { %13861 = vst [vmem:[#allocation111_spill] sm:$0xff] %v11455_v23  ;;  %v4534_v14 = vshra.s32 %v4414_v54, 4  ;;  %v5071_v48 = vmul.f32 %v11455_v23, %v11451_v17  ;;  %v4475_v37 = vand.u32 15, %v4415_v15  ;;  %v5139_v61 = vadd.f32 %v5138_v32, %v5137_v0  ;;  %v13873_v0 = vld [vmem:[#allocation11_spill] sm:$0xff] }
 0x52b   :  { %v2804_v27 = vpop.f32.mrf.mxu1  ;;  %13869 = vst [vmem:[#allocation113_spill] sm:$0xff] %v11486_v62  ;;  %v11496_v23 = vadd.f32 %v10973_v24, %v13870_v6  ;;  %v5073_v36 = vmul.f32 %v11486_v62, %v11482_v45  ;;  %v11504_v47 = vsel %vm4832_vm3, 1.0, %v13814_v4  ;;  %v4537_v56 = vshra.s32 %v4417_v58, 4  ;;  %v13874_v32 = vld [vmem:[#allocation67_spill] sm:$0xff] }
 0x52c   :  { %v4594_v15 = vand.u32 15, %v4534_v14  ;;  %v5142_v35 = vsel %vm5120_vm1, %v5071_v48, 0.0  ;;  %13872 = vst [vmem:[#allocation114_spill] sm:$0xff] %v11504_v47  ;;  %vm4715_vm5 = vcmp.lt.s32.totalorder %v4475_v37, 14  ;;  %vm4835_vm6 = vcmp.lt.s32.totalorder %v4595_v33, 14  ;;  %v3303_v14 = vpop.f32.mrf.mxu2  ;;  %v13913_v17 = vld [vmem:[#allocation43_spill] sm:$0xff] }
 0x52d   :  { %13871 = vst [vmem:[#allocation10_spill] sm:$0xff] %v11496_v23  ;;  %v2887_v24 = vadd.f32 %v11418_v10, %v11297_v13  ;;  %v3884_v11 = vadd.f32 %v11414_v51, %v3385_v19  ;;  %v5144_v2 = vsel %vm5120_vm1, %v5072_v28, 0.0  ;;  %v11515_v48 = vsel %vm4893_vm4, 1.0, %v13814_v4  ;;  %vm11520_vm8 = vmand %vm4715_vm5, %vm4835_vm6  ;;  %v13879_v19 = vld [vmem:[#allocation42_spill] sm:$0xff] }
 0x52e   :  { %13876 = vst [vmem:[#allocation67_spill] sm:$0xff] %v11515_v48  ;;  %vm4834_vm7 = vcmp.lt.s32.totalorder %v4594_v15, 14  ;;  %v5146_v37 = vsel %vm5120_vm1, %v5073_v36, 0.0  ;;  %v4477_v13 = vand.u32 15, %v4417_v58  ;;  %v4597_v51 = vand.u32 15, %v4537_v56  ;;  %v13880_v28 = vld [vmem:[#allocation22_spill] sm:$0xff] }
 0x52f   :  { %v4418_v10 = vadd.s32 160, %v11141_v63  ;;  %v13882_v15 = vld [vmem:[#allocation68_spill] sm:$0xff]  ;;  %v11535_v58 = vsel %vm4834_vm7, 1.0, %v13814_v4  ;;  %v4419_v56 = vadd.s32 168, %v11141_v63  ;;  %v4420_v33 = vadd.s32 176, %v11141_v63 }
 0x530   :  { %v4292_v54 = vpop.f32.mrf.mxu0  ;;  %13884 = vst [vmem:[#allocation22_spill] sm:$0xff] %v11535_v58  ;;  %vm11552_vm9 = vcmp.lt.s32.totalorder %v4477_v13, 14  ;;  %vm4837_vm10 = vcmp.lt.s32.totalorder %v4597_v51, 14  ;;  %v4424_v45 = vadd.s32 208, %v11141_v63  ;;  %v4548_v18 = vshra.s32 %v4428_v43, 4 }
 0x531   :  { %v11492_v60 = vadd.f32 %v4292_v54, %v3883_v16  ;;  %v5141_v16 = vadd.f32 %v5140_v7, %v5139_v61  ;;  %v11508_v54 = vadd.f32 %v13874_v32, %v13873_v0  ;;  %v5074_v7 = vmul.f32 %v11504_v47, %v11496_v23  ;;  %v3802_v62 = vpop.f32.mrf.mxu3  ;;  %vm4897_vm11 = vmand %vm11552_vm9, %vm4837_vm10  ;;  %v13896_v23 = vld [vmem:[#allocation71_spill] sm:$0xff] }
 0x532   :  { %v4596_v61 = vand.u32 15, %v4536_v5  ;;  %v2389_v0 = vadd.f32 %v13880_v28, %v13879_v19  ;;  %v3386_v47 = vadd.f32 %v11447_v44, %v2887_v24  ;;  %v11546_v28 = vsel %vm11520_vm8, 1.0, %v13814_v4  ;;  %v13886_v44 = vld [vmem:[#allocation13_spill] sm:$0xff] }
 0x533   :  { %13875 = vst [vmem:[#allocation11_spill] sm:$0xff] %v11508_v54  ;;  %v5143_v6 = vadd.f32 %v5142_v35, %v5141_v16  ;;  %v5075_v35 = vmul.f32 %v11515_v48, %v11508_v54  ;;  %v13881_v16 = vld [vmem:[#allocation12_spill] sm:$0xff]  ;;  %v11540_v19 = vpop.f32.mrf.mxu1  ;;  %v13887_v24 = vld [vmem:[#allocation69_spill] sm:$0xff]  ;;  %v13895_v54 = vld [vmem:[#allocation15_spill] sm:$0xff]  ;;  %v4608_v34 = vand.u32 15, %v4548_v18 }
 0x534   :  { %v11531_v5 = vadd.f32 %v13882_v15, %v13881_v16  ;;  %13885 = vst [vmem:[#allocation12_spill] sm:$0xff] %v11546_v28  ;;  %vm4836_vm0 = vcmp.lt.s32.totalorder %v4596_v61, 14  ;;  %v11550_v16 = vadd.f32 %v13887_v24, %v13886_v44  ;;  %v2888_v48 = vadd.f32 %v2804_v27, %v2389_v0  ;;  %v11565_v24 = vpop.f32.mrf.mxu2  ;;  %v13893_v27 = vld [vmem:[#allocation70_spill] sm:$0xff] }
 0x535   :  { %v5145_v32 = vadd.f32 %v5144_v2, %v5143_v6  ;;  %v5148_v6 = vsel %vm5120_vm1, %v5074_v7, 0.0  ;;  %v3885_v44 = vadd.f32 %v11476_v40, %v3386_v47  ;;  %v11563_v13 = vsel %vm4836_vm0, 1.0, %v13814_v4 }
 0x536   :  { %13883 = vst [vmem:[#allocation42_spill] sm:$0xff] %v11531_v5  ;;  %v5076_v7 = vmul.f32 %v11535_v58, %v11531_v5  ;;  %v4479_v58 = vand.u32 15, %v4419_v56  ;;  %v4540_v40 = vshra.s32 %v4420_v33, 4 }
 0x537   :  { %v5147_v2 = vadd.f32 %v5146_v37, %v5145_v32  ;;  %13888 = vst [vmem:[#allocation68_spill] sm:$0xff] %v11550_v16  ;;  %v5150_v37 = vsel %vm5120_vm1, %v5075_v35, 0.0  ;;  %v4421_v32 = vadd.s32 184, %v11141_v63 }
 0x538   :  { %v4295_v36 = vpop.f32.mrf.mxu0  ;;  %13891 = vst [vmem:[#allocation13_spill] sm:$0xff] %v11563_v13  ;;  %vm11590_vm13 = vcmp.lt.s32.totalorder %v4479_v58, 14 }
 0x539   :  { %v11538_v52 = vadd.f32 %v4295_v36, %v3884_v11  ;;  %v4538_v11 = vshra.s32 %v4418_v10, 4  ;;  %v5149_v61 = vadd.f32 %v5148_v6, %v5147_v2  ;;  %v4539_v36 = vshra.s32 %v4419_v56, 4  ;;  %v13892_v6 = vld [vmem:[#allocation14_spill] sm:$0xff] }
 0x53a   :  { %v5077_v10 = vmul.f32 %v11546_v28, %v11550_v16  ;;  %v5152_v2 = vsel %vm5120_vm1, %v5076_v7, 0.0  ;;  %v11574_v0 = vadd.f32 %v13893_v27, %v13892_v6  ;;  %v4541_v47 = vshra.s32 %v4421_v32, 4  ;;  %v11587_v6 = vpop.f32.mrf.mxu3  ;;  %v13902_v16 = vld [vmem:[#allocation16_spill] sm:$0xff] }
 0x53b   :  { %v5151_v51 = vadd.f32 %v5150_v37, %v5149_v61  ;;  %v4598_v35 = vand.u32 15, %v4538_v11  ;;  %v11578_v37 = vadd.f32 %v13896_v23, %v13895_v54  ;;  %v4599_v61 = vand.u32 15, %v4539_v36  ;;  %v11594_v54 = vpop.f32.mrf.mxu1  ;;  %v13910_v23 = vld [vmem:[#allocation73_spill] sm:$0xff] }
 0x53c   :  { %13894 = vst [vmem:[#allocation69_spill] sm:$0xff] %v11574_v0  ;;  %v4422_v28 = vadd.s32 192, %v11141_v63  ;;  %v3387_v11 = vadd.f32 %v3303_v14, %v2888_v48  ;;  %v11584_v56 = vsel %vm4897_vm11, 1.0, %v13814_v4  ;;  %v4423_v7 = vadd.s32 200, %v11141_v63 }
 0x53d   :  { %13897 = vst [vmem:[#allocation14_spill] sm:$0xff] %v11578_v37  ;;  %v5153_v33 = vadd.f32 %v5152_v2, %v5151_v51  ;;  %v5154_v27 = vsel %vm5120_vm1, %v5077_v10, 0.0  ;;  %vm4838_vm12 = vcmp.lt.s32.totalorder %v4598_v35, 14  ;;  %v5078_v14 = vmul.f32 %v11563_v13, %v11574_v0  ;;  %v13903_v51 = vld [vmem:[#allocation72_spill] sm:$0xff] }
 0x53e   :  { %13899 = vst [vmem:[#allocation15_spill] sm:$0xff] %v11584_v56  ;;  %v4600_v48 = vand.u32 15, %v4540_v40  ;;  %v4601_v36 = vand.u32 15, %v4541_v47  ;;  %v11602_v2 = vadd.f32 %v13903_v51, %v13902_v16  ;;  %vm4839_vm14 = vcmp.lt.s32.totalorder %v4599_v61, 14  ;;  %v11616_v47 = vpop.f32.mrf.mxu2 }
 0x53f   :  { %v4542_v58 = vshra.s32 %v4422_v28, 4  ;;  %v11605_v10 = vsel %vm4838_vm12, 1.0, %v13814_v4  ;;  %v4543_v35 = vshra.s32 %v4423_v7, 4  ;;  %v3886_v53 = vadd.f32 %v3802_v62, %v3387_v11  ;;  %vm4899_vm15 = vmand %vm11590_vm13, %vm4839_vm14 }
 0x540   :  { %v4298_v5 = vpop.f32.mrf.mxu0  ;;  %13904 = vst [vmem:[#allocation71_spill] sm:$0xff] %v11602_v2  ;;  %v5155_v13 = vadd.f32 %v5154_v27, %v5153_v33  ;;  %v5156_v40 = vsel %vm5120_vm1, %v5078_v14, 0.0  ;;  %vm4840_vm2 = vcmp.lt.s32.totalorder %v4600_v48, 14  ;;  %vm4841_vm4 = vcmp.lt.s32.totalorder %v4601_v36, 14  ;;  %v13909_v27 = vld [vmem:[#allocation17_spill] sm:$0xff] }
 0x541   :  { %v11581_v15 = vadd.f32 %v4298_v5, %v3885_v44  ;;  %v4481_v5 = vand.u32 15, %v4421_v32  ;;  %v5079_v44 = vmul.f32 %v11584_v56, %v11578_v37  ;;  %13905 = vst [vmem:[#allocation16_spill] sm:$0xff] %v11605_v10  ;;  %v4425_v32 = vadd.s32 216, %v11141_v63  ;;  %v13941_v48 = vld [vmem:[#allocation77_spill] sm:$0xff] }
 0x542   :  { %v5080_v62 = vmul.f32 %v11605_v10, %v11602_v2  ;;  %v4602_v11 = vand.u32 15, %v4542_v58  ;;  %v11625_v14 = vadd.f32 %v13910_v23, %v13909_v27  ;;  %v4603_v51 = vand.u32 15, %v4543_v35  ;;  %v13915_v10 = vld [vmem:[#allocation44_spill] sm:$0xff]  ;;  %v13918_v2 = vld [vmem:[#allocation74_spill] sm:$0xff] }
 0x543   :  { %13898 = vst [vmem:[#allocation70_spill] sm:$0xff] %v11581_v15  ;;  %vm11612_vm3 = vcmp.lt.s32.totalorder %v4481_v5, 14  ;;  %v5158_v61 = vsel %vm5120_vm1, %v5079_v44, 0.0  ;;  %v4483_v5 = vand.u32 15, %v4423_v7  ;;  %v4544_v56 = vshra.s32 %v4424_v45, 4  ;;  %v13914_v44 = vld [vmem:[#allocation23_spill] sm:$0xff] }
 0x544   :  { %13911 = vst [vmem:[#allocation17_spill] sm:$0xff] %v11625_v14  ;;  %v5157_v37 = vadd.f32 %v5156_v40, %v5155_v13  ;;  %v11628_v0 = vsel %vm4899_vm15, 1.0, %v13814_v4  ;;  %v4545_v57 = vshra.s32 %v4425_v32, 4  ;;  %v11632_v8 = vadd.f32 %v13914_v44, %v13913_v17  ;;  %v13916_v58 = vld [vmem:[#allocation24_spill] sm:$0xff]  ;;  %v11646_v13 = vpop.f32.mrf.mxu3  ;;  %vm4901_vm5 = vmand %vm11612_vm3, %vm4841_vm4  ;;  %v13923_v40 = vld [vmem:[#allocation19_spill] sm:$0xff] }
 0x545   :  { %13912 = vst [vmem:[#allocation73_spill] sm:$0xff] %v11628_v0  ;;  %v11644_v45 = vsel %vm4840_vm2, 1.0, %v13814_v4  ;;  %v5160_v35 = vsel %vm5120_vm1, %v5080_v62, 0.0  ;;  %vm4842_vm6 = vcmp.lt.s32.totalorder %v4602_v11, 14  ;;  %v4427_v17 = vadd.s32 232, %v11141_v63  ;;  %v13926_v44 = vld [vmem:[#allocation45_spill] sm:$0xff] }
 0x546   :  { %13920 = vst [vmem:[#allocation23_spill] sm:$0xff] %v11644_v45  ;;  %v5159_v7 = vadd.f32 %v5158_v61, %v5157_v37  ;;  %vm11657_vm7 = vcmp.lt.s32.totalorder %v4483_v5, 14  ;;  %vm4843_vm8 = vcmp.lt.s32.totalorder %v4603_v51, 14  ;;  %v4604_v37 = vand.u32 15, %v4544_v56  ;;  %v13924_v61 = vld [vmem:[#allocation75_spill] sm:$0xff]  ;;  %v13940_v51 = vld [vmem:[#allocation21_spill] sm:$0xff] }
 0x547   :  { %v11663_v36 = vadd.f32 %v13924_v61, %v13923_v40  ;;  %v4485_v16 = vand.u32 15, %v4425_v32  ;;  %v4605_v62 = vand.u32 15, %v4545_v57  ;;  %v4426_v23 = vadd.s32 224, %v11141_v63  ;;  %v13932_v32 = vld [vmem:[#allocation47_spill] sm:$0xff]  ;;  %vm4903_vm0 = vmand %vm11657_vm7, %vm4843_vm8 }
 0x548   :  { %v4301_v28 = vpop.f32.mrf.mxu0  ;;  %v11677_v56 = vsel %vm4901_vm5, 1.0, %v13814_v4  ;;  %v13933_v57 = vld [vmem:[#allocation27_spill] sm:$0xff]  ;;  %v5161_v29 = vadd.f32 %v5160_v35, %v5159_v7  ;;  %vm4844_vm9 = vcmp.lt.s32.totalorder %v4604_v37, 14  ;;  %v13938_v35 = vld [vmem:[#allocation48_spill] sm:$0xff]  ;;  %v11713_v31 = vsel %vm4903_vm0, 1.0, %v13814_v4 }
 0x549   :  { %v11621_v33 = vadd.f32 %v4301_v28, %v3886_v53  ;;  %v11636_v53 = vadd.f32 %v13916_v58, %v13915_v10  ;;  %v13917_v28 = vld [vmem:[#allocation18_spill] sm:$0xff]  ;;  %v11653_v10 = vpop.f32.mrf.mxu1  ;;  %13925 = vst [vmem:[#allocation44_spill] sm:$0xff] %v11663_v36  ;;  %v13927_v58 = vld [vmem:[#allocation25_spill] sm:$0xff]  ;;  %v11683_v61 = vadd.f32 %v13933_v57, %v13932_v32  ;;  %v4429_v32 = vadd.s32 248, %v11141_v63  ;;  %v11698_v57 = vpop.f32.mrf.mxu2  ;;  %v13950_v37 = vld [vmem:[#allocation56_spill] sm:$0xff] }
 0x54a   :  { %v11640_v27 = vadd.f32 %v13918_v2, %v13917_v28  ;;  %v5081_v2 = vmul.f32 %v11628_v0, %v11625_v14  ;;  %v11668_v28 = vadd.f32 %v13927_v58, %v13926_v44  ;;  %v13929_v0 = vld [vmem:[#allocation26_spill] sm:$0xff]  ;;  %13930 = vst [vmem:[#allocation24_spill] sm:$0xff] %v11677_v56  ;;  %v11687_v44 = vsel %vm4842_vm6, 1.0, %v13814_v4 }
 0x54b   :  { %13908 = vst [vmem:[#allocation72_spill] sm:$0xff] %v11621_v33  ;;  %v11672_v5 = vadd.f32 %v13929_v0, %v13928_v38  ;;  %v4547_v58 = vshra.s32 %v4427_v17, 4  ;;  %v13935_v0 = vld [vmem:[#allocation20_spill] sm:$0xff]  ;;  %v5083_v11 = vmul.f32 %v11677_v56, %v11663_v36  ;;  %vm4725_vm10 = vcmp.lt.s32.totalorder %v4485_v16, 14 }
 0x54c   :  { %13919 = vst [vmem:[#allocation43_spill] sm:$0xff] %v11640_v27  ;;  %v5082_v14 = vmul.f32 %v11644_v45, %v11640_v27  ;;  %v5162_v38 = vsel %vm5120_vm1, %v5081_v2, 0.0  ;;  %v11692_v45 = vadd.f32 %v13936_v1, %v13935_v0  ;;  %vm4845_vm11 = vcmp.lt.s32.totalorder %v4605_v62, 14  ;;  %v13939_v2 = vld [vmem:[#allocation28_spill] sm:$0xff]  ;;  %v13944_v62 = vld [vmem:[#allocation49_spill] sm:$0xff] }
 0x54d   :  { %13934 = vst [vmem:[#allocation74_spill] sm:$0xff] %v11687_v44  ;;  %v4546_v7 = vshra.s32 %v4426_v23, 4  ;;  %v11704_v27 = vadd.f32 %v13939_v2, %v13938_v35  ;;  %v11709_v0 = vadd.f32 %v13941_v48, %v13940_v51  ;;  %v5163_v12 = vadd.f32 %v5162_v38, %v5161_v29  ;;  %v13945_v23 = vld [vmem:[#allocation29_spill] sm:$0xff]  ;;  %vm4905_vm12 = vmand %vm4725_vm10, %vm4845_vm11  ;;  %v11725_v51 = vpop.f32.mrf.mxu3 }
 0x54e   :  { %13937 = vst [vmem:[#allocation19_spill] sm:$0xff] %v11692_v45  ;;  %v5164_v1 = vsel %vm5120_vm1, %v5082_v14, 0.0  ;;  %v4487_v56 = vand.u32 15, %v4427_v17  ;;  %v4607_v16 = vand.u32 15, %v4547_v58  ;;  %v11717_v36 = vadd.f32 %v13945_v23, %v13944_v62  ;;  %v13947_v17 = vld [vmem:[#allocation55_spill] sm:$0xff]  ;;  %v13948_v58 = vld [vmem:[#allocation78_spill] sm:$0xff] }
 0x54f   :  { %13942 = vst [vmem:[#allocation75_spill] sm:$0xff] %v11709_v0  ;;  %v5084_v35 = vmul.f32 %v11687_v44, %v11692_v45  ;;  %v11723_v14 = vsel %vm4844_vm9, 1.0, %v13814_v4  ;;  %v4549_v2 = vshra.s32 %v4429_v32, 4  ;;  %v5165_v29 = vadd.f32 %v5164_v1, %v5163_v12  ;;  %v13951_v45 = vld [vmem:[#allocation79_spill] sm:$0xff]  ;;  %v13955_v1 = vld [vmem:[#allocation50_spill] sm:$0xff] }
 0x550   :  { %v11679_v40 = vpop.f32.mrf.mxu0  ;;  %13943 = vst [vmem:[#allocation45_spill] sm:$0xff] %v11713_v31  ;;  %v5166_v38 = vsel %vm5120_vm1, %v5083_v11, 0.0  ;;  %v11730_v48 = vadd.f32 %v13948_v58, %v13947_v17  ;;  %v4606_v62 = vand.u32 15, %v4546_v7  ;;  %v5085_v44 = vmul.f32 %v11713_v31, %v11709_v0  ;;  %v13956_v17 = vld [vmem:[#allocation30_spill] sm:$0xff] }
 0x551   :  { %13931 = vst [vmem:[#allocation18_spill] sm:$0xff] %v11679_v40  ;;  %v11732_v23 = vpop.f32.mrf.mxu1  ;;  %v11738_v26 = vadd.f32 %v13951_v45, %v13950_v37  ;;  %v11744_v11 = vsel %vm4905_vm12, 1.0, %v13814_v4  ;;  %vm4727_vm13 = vcmp.lt.s32.totalorder %v4487_v56, 14  ;;  %vm4847_vm14 = vcmp.lt.s32.totalorder %v4607_v16, 14  ;;  %v14001_v40 = vld [vmem:[#allocation66_spill] sm:$0xff] }
 0x552   :  { %13946 = vst [vmem:[#allocation25_spill] sm:$0xff] %v11723_v14  ;;  %v4431_v7 = vadd.s32 264, %v11141_v63  ;;  %v11749_v58 = vadd.f32 %v13956_v17, %v13955_v1  ;;  %v5168_v31 = vsel %vm5120_vm1, %v5084_v35, 0.0  ;;  %v4489_v45 = vand.u32 15, %v4429_v32  ;;  %vm4907_vm2 = vmand %vm4727_vm13, %vm4847_vm14  ;;  %v11758_v17 = vpop.f32.mrf.mxu2  ;;  %v13957_v32 = vld [vmem:[#allocation57_spill] sm:$0xff] }
 0x553   :  { %13949 = vst [vmem:[#allocation46_spill] sm:$0xff] %v11730_v48  ;;  %v4609_v37 = vand.u32 15, %v4549_v2  ;;  %v5167_v43 = vadd.f32 %v5166_v38, %v5165_v29  ;;  %v5086_v0 = vmul.f32 %v11723_v14, %v11730_v48  ;;  %vm4846_vm15 = vcmp.lt.s32.totalorder %v4606_v62, 14  ;;  %v13958_v2 = vld [vmem:[#allocation80_spill] sm:$0xff]  ;;  %v13960_v14 = vld [vmem:[#allocation51_spill] sm:$0xff] }
 0x554   :  { %13952 = vst [vmem:[#allocation26_spill] sm:$0xff] %v11738_v26  ;;  %v5170_v56 = vsel %vm5120_vm1, %v5085_v44, 0.0  ;;  %v5087_v16 = vmul.f32 %v11744_v11, %v11738_v26  ;;  %v4550_v1 = vshra.s32 %v4430_v41, 4  ;;  %v11762_v29 = vadd.f32 %v13958_v2, %v13957_v32  ;;  %v13961_v48 = vld [vmem:[#allocation31_spill] sm:$0xff]  ;;  %v13965_v2 = vld [vmem:[#allocation58_spill] sm:$0xff] }
 0x555   :  { %13954 = vst [vmem:[#allocation27_spill] sm:$0xff] %v11744_v11  ;;  %v5169_v35 = vadd.f32 %v5168_v31, %v5167_v43  ;;  %v4551_v38 = vshra.s32 %v4431_v7, 4  ;;  %v4432_v62 = vadd.s32 272, %v11141_v63  ;;  %v11767_v25 = vadd.f32 %v13961_v48, %v13960_v14  ;;  %v13966_v11 = vld [vmem:[#allocation81_spill] sm:$0xff]  ;;  %v11783_v30 = vpop.f32.mrf.mxu3 }
 0x556   :  { %13959 = vst [vmem:[#allocation20_spill] sm:$0xff] %v11762_v29  ;;  %v11770_v44 = vsel %vm4846_vm15, 1.0, %v13814_v4  ;;  %vm4729_vm3 = vcmp.lt.s32.totalorder %v4489_v45, 14  ;;  %vm4849_vm4 = vcmp.lt.s32.totalorder %v4609_v37, 14  ;;  %v5172_v18 = vsel %vm5120_vm1, %v5086_v0, 0.0 }
 0x557   :  { %13962 = vst [vmem:[#allocation76_spill] sm:$0xff] %v11767_v25  ;;  %v5171_v41 = vadd.f32 %v5170_v56, %v5169_v35  ;;  %v11774_v31 = vsel %vm4907_vm2, 1.0, %v13814_v4  ;;  %v4553_v43 = vshra.s32 %v4433_v50, 4  ;;  %v5174_v32 = vsel %vm5120_vm1, %v5087_v16, 0.0  ;;  %vm4909_vm6 = vmand %vm4729_vm3, %vm4849_vm4 }
 0x558   :  { %v11741_v12 = vpop.f32.mrf.mxu0  ;;  %13963 = vst [vmem:[#allocation48_spill] sm:$0xff] %v11770_v44  ;;  %v11779_v26 = vadd.f32 %v13966_v11, %v13965_v2  ;;  %vm4848_vm5 = vcmp.lt.s32.totalorder %v4608_v34, 14  ;;  %v4610_v14 = vand.u32 15, %v4550_v1  ;;  %v5088_v45 = vmul.f32 %v11770_v44, %v11762_v29  ;;  %v13969_v2 = vld [vmem:[#allocation59_spill] sm:$0xff]  ;;  %v13970_v34 = vld [vmem:[#allocation82_spill] sm:$0xff] }
 0x559   :  { %13953 = vst [vmem:[#allocation47_spill] sm:$0xff] %v11741_v12  ;;  %v4491_v0 = vand.u32 15, %v4431_v7  ;;  %v4611_v37 = vand.u32 15, %v4551_v38  ;;  %v4552_v56 = vshra.s32 %v4432_v62, 4  ;;  %v2889_v16 = vadd.f32 %v11540_v19, %v11632_v8  ;;  %v11789_v35 = vpop.f32.mrf.mxu1 }
 0x55a   :  { %13964 = vst [vmem:[#allocation28_spill] sm:$0xff] %v11774_v31  ;;  %v5173_v11 = vadd.f32 %v5172_v18, %v5171_v41  ;;  %v11793_v1 = vadd.f32 %v13970_v34, %v13969_v2  ;;  %v11797_v39 = vsel %vm4848_vm5, 1.0, %v13814_v4  ;;  %v4493_v44 = vand.u32 15, %v4433_v50  ;;  %v13979_v2 = vld [vmem:[#allocation61_spill] sm:$0xff]  ;;  %v13980_v34 = vld [vmem:[#allocation84_spill] sm:$0xff] }
 0x55b   :  { %13967 = vst [vmem:[#allocation21_spill] sm:$0xff] %v11779_v26  ;;  %v4613_v29 = vand.u32 15, %v4553_v43  ;;  %v4435_v7 = vadd.s32 296, %v11141_v63  ;;  %v5089_v8 = vmul.f32 %v11774_v31, %v11779_v26  ;;  %v11803_v19 = vsel %vm4909_vm6, 1.0, %v13814_v4  ;;  %v13976_v43 = vld [vmem:[#allocation60_spill] sm:$0xff] }
 0x55c   :  { %13971 = vst [vmem:[#allocation49_spill] sm:$0xff] %v11793_v1  ;;  %v5175_v38 = vadd.f32 %v5174_v32, %v5173_v11  ;;  %vm4850_vm7 = vcmp.lt.s32.totalorder %v4610_v14, 14  ;;  %v5176_v62 = vsel %vm5120_vm1, %v5088_v45, 0.0  ;;  %vm11806_vm8 = vcmp.lt.s32.totalorder %v4491_v0, 14  ;;  %v13977_v32 = vld [vmem:[#allocation83_spill] sm:$0xff]  ;;  %v6010_v45 = vld [vmem:[%s13512_s4] sm:$0xff] }
 0x55d   :  { %13972 = vst [vmem:[#allocation29_spill] sm:$0xff] %v11797_v39  ;;  %vm4851_vm0 = vcmp.lt.s32.totalorder %v4611_v37, 14  ;;  %v4612_v18 = vand.u32 15, %v4552_v56  ;;  %v5090_v50 = vmul.f32 %v11797_v39, %v11793_v1  ;;  %v11814_v11 = vadd.f32 %v13977_v32, %v13976_v43  ;;  %v8067_v0 = vld [vmem:[%s13512_s4 + $0x20] sm:$0xff]  ;;  %v11826_v56 = vpop.f32.mrf.mxu2  ;;  %6177 = vmatpush.msrb.mxu2 %v6010_v45  ;;  %v13989_v37 = vld [vmem:[#allocation62_spill] sm:$0xff] }
 0x55e   :  { %13973 = vst [vmem:[#allocation55_spill] sm:$0xff] %v11803_v19  ;;  %v11818_v31 = vadd.f32 %v13980_v34, %v13979_v2  ;;  %v4554_v14 = vshra.s32 %v4434_v46, 4  ;;  %v11829_v39 = vsel %vm4850_vm7, 1.0, %v13814_v4  ;;  %vm11831_vm9 = vcmp.lt.s32.totalorder %v4493_v44, 14  ;;  %6288 = vmatpush.msrb.mxu3 %v8067_v0  ;;  %v13985_v46 = vld [vmem:[#allocation52_spill] sm:$0xff]  ;;  %v13986_v2 = vld [vmem:[#allocation65_spill] sm:$0xff]  ;;  %vm4911_vm11 = vmand %vm11806_vm8, %vm4851_vm0 }
 0x55f   :  { %13978 = vst [vmem:[#allocation78_spill] sm:$0xff] %v11814_v11  ;;  %vm4853_vm10 = vcmp.lt.s32.totalorder %v4613_v29, 14  ;;  %v4555_v32 = vshra.s32 %v4435_v7, 4  ;;  %v11837_v34 = vadd.f32 %v13986_v2, %v13985_v46  ;;  %v5178_v1 = vsel %vm5120_vm1, %v5089_v8, 0.0  ;;  %v13993_v2 = vld [vmem:[#allocation63_spill] sm:$0xff] }
 0x560   :  { %v11781_v48 = vpop.f32.mrf.mxu0  ;;  %13981 = vst [vmem:[#allocation56_spill] sm:$0xff] %v11818_v31  ;;  %v4436_v26 = vadd.s32 304, %v11141_v63  ;;  %v3388_v44 = vadd.f32 %v11565_v24, %v2889_v16  ;;  %v2890_v12 = vadd.f32 %v11594_v54, %v11636_v53  ;;  %v5177_v25 = vadd.f32 %v5176_v62, %v5175_v38  ;;  %vm4913_vm13 = vmand %vm11831_vm9, %vm4853_vm10  ;;  %v11858_v54 = vpop.f32.mrf.mxu3  ;;  %v13990_v16 = vld [vmem:[#allocation85_spill] sm:$0xff] }
 0x561   :  { %13968 = vst [vmem:[#allocation77_spill] sm:$0xff] %v11781_v48  ;;  %vm4852_vm12 = vcmp.lt.s32.totalorder %v4612_v18, 14  ;;  %v5180_v45 = vsel %vm5120_vm1, %v5090_v50, 0.0  ;;  %v5091_v8 = vmul.f32 %v11803_v19, %v11814_v11  ;;  %v5092_v0 = vmul.f32 %v11829_v39, %v11818_v31  ;;  %v11864_v18 = vpop.f32.mrf.mxu1 }
 0x562   :  { %13982 = vst [vmem:[#allocation79_spill] sm:$0xff] %v11829_v39  ;;  %v4614_v24 = vand.u32 15, %v4554_v14  ;;  %v5179_v53 = vadd.f32 %v5178_v1, %v5177_v25  ;;  %v11862_v38 = vadd.f32 %v13990_v16, %v13989_v37  ;;  %v4495_v62 = vand.u32 15, %v4435_v7  ;;  %v13994_v39 = vld [vmem:[#allocation86_spill] sm:$0xff] }
 0x563   :  { %13987 = vst [vmem:[#allocation50_spill] sm:$0xff] %v11837_v34  ;;  %v4615_v41 = vand.u32 15, %v4555_v32  ;;  %v11867_v50 = vsel %vm4911_vm11, 1.0, %v13814_v4  ;;  %v11870_v29 = vsel %vm4852_vm12, 1.0, %v13814_v4  ;;  %v4556_v43 = vshra.s32 %v4436_v26, 4  ;;  %v8039_v26 = vld [vmem:[%s13512_s4 + $0x10] sm:$0xff] }
 0x564   :  { %13991 = vst [vmem:[#allocation57_spill] sm:$0xff] %v11862_v38  ;;  %v4557_v46 = vshra.s32 %v4437_v59, 4  ;;  %v5181_v14 = vadd.f32 %v5180_v45, %v5179_v53  ;;  %v11874_v25 = vadd.f32 %v13994_v39, %v13993_v2  ;;  %v11877_v1 = vsel %vm4913_vm13, 1.0, %v13814_v4  ;;  %v13995_v45 = vld [vmem:[#allocation64_spill] sm:$0xff]  ;;  %6082 = vmatpush.msrb.mxu1 %v8039_v26  ;;  %v14000_v34 = vld [vmem:[#allocation53_spill] sm:$0xff] }
 0x565   :  { %13992 = vst [vmem:[#allocation80_spill] sm:$0xff] %v11867_v50  ;;  %v4439_v7 = vadd.s32 328, %v11141_v63  ;;  %v5182_v32 = vsel %vm5120_vm1, %v5091_v8, 0.0  ;;  %v5184_v37 = vsel %vm5120_vm1, %v5092_v0, 0.0  ;;  %vm4854_vm14 = vcmp.lt.s32.totalorder %v4614_v24, 14  ;;  %v13996_v53 = vld [vmem:[#allocation32_spill] sm:$0xff] }
 0x566   :  { %v4438_v16 = vadd.s32 320, %v11141_v63  ;;  %v5093_v39 = vmul.f32 %v11867_v50, %v11862_v38  ;;  %v11890_v2 = vadd.f32 %v13996_v53, %v13995_v45  ;;  %vm11892_vm15 = vcmp.lt.s32.totalorder %v4495_v62, 14  ;;  %v11903_v38 = vpop.f32.mrf.mxu2 }
 0x567   :  { %vm4855_vm2 = vcmp.lt.s32.totalorder %v4615_v41, 14  ;;  %v4616_v8 = vand.u32 15, %v4556_v43  ;;  %v4497_v0 = vand.u32 15, %v4437_v59  ;;  %v4617_v31 = vand.u32 15, %v4557_v46 }
 0x568   :  { %v11842_v48 = vpop.f32.mrf.mxu0  ;;  %v4441_v11 = vadd.s32 344, %v11141_v63  ;;  %v11901_v50 = vadd.f32 %v14001_v40, %v14000_v34  ;;  %v5183_v45 = vadd.f32 %v5182_v32, %v5181_v14  ;;  %v5094_v62 = vmul.f32 %v11870_v29, %v11874_v25  ;;  %vm4915_vm3 = vmand %vm11892_vm15, %vm4855_vm2 }
 0x569   :  { %13988 = vst [vmem:[#allocation30_spill] sm:$0xff] %v11842_v48  ;;  %v4559_v53 = vshra.s32 %v4439_v7, 4  ;;  %v11908_v26 = vadd.f32 %v11587_v6, %v3388_v44  ;;  %v3389_v59 = vadd.f32 %v11616_v47, %v2890_v12  ;;  %v4558_v43 = vshra.s32 %v4438_v16, 4  ;;  %v11928_v44 = vpop.f32.mrf.mxu3  ;;  %v11931_v41 = vpop.f32.mrf.mxu1 }
 0x56a   :  { %v4440_v46 = vadd.s32 336, %v11141_v63  ;;  %v5186_v33 = vsel %vm5120_vm1, %v5093_v39, 0.0  ;;  %v5095_v40 = vmul.f32 %v11877_v1, %v11890_v2  ;;  %v11917_v34 = vsel %vm4854_vm14, 1.0, %v13814_v4 }
 0x56b   :  { %vm4856_vm4 = vcmp.lt.s32.totalorder %v4616_v8, 14  ;;  %vm11922_vm5 = vcmp.lt.s32.totalorder %v4497_v0, 14  ;;  %vm4857_vm6 = vcmp.lt.s32.totalorder %v4617_v31, 14  ;;  %v4561_v47 = vshra.s32 %v4441_v11, 4 }
 0x56c   :  { %v2891_v12 = vadd.f32 %v11653_v10, %v11668_v28  ;;  %v5188_v24 = vsel %vm5120_vm1, %v5094_v62, 0.0  ;;  %v4499_v14 = vand.u32 15, %v4439_v7  ;;  %v4619_v32 = vand.u32 15, %v4559_v53  ;;  %vm4917_vm7 = vmand %vm11922_vm5, %vm4857_vm6 }
 0x56d   :  { %v4618_v16 = vand.u32 15, %v4558_v43  ;;  %v4560_v39 = vshra.s32 %v4440_v46, 4  ;;  %v5190_v0 = vsel %vm5120_vm1, %v5095_v40, 0.0  ;;  %v11941_v10 = vsel %vm4856_vm4, 1.0, %v13814_v4 }
 0x56e   :  { %14005 = vst [vmem:[#allocation58_spill] sm:$0xff] %v11941_v10  ;;  %v4621_v7 = vand.u32 15, %v4561_v47  ;;  %v4443_v62 = vadd.s32 360, %v11141_v63  ;;  %v3390_v43 = vadd.f32 %v11698_v57, %v2891_v12  ;;  %vm4739_vm8 = vcmp.lt.s32.totalorder %v4499_v14, 14  ;;  %v11956_v6 = vpop.f32.mrf.mxu2 }
 0x56f   :  { %vm4859_vm0 = vcmp.lt.s32.totalorder %v4619_v32, 14  ;;  %v11954_v46 = vsel %vm4917_vm7, 1.0, %v13814_v4  ;;  %vm4858_vm9 = vcmp.lt.s32.totalorder %v4618_v16, 14  ;;  %v4620_v40 = vand.u32 15, %v4560_v39 }
 0x570   :  { %v11897_v48 = vpop.f32.mrf.mxu0  ;;  %14006 = vst [vmem:[#allocation81_spill] sm:$0xff] %v11954_v46  ;;  %v5098_v47 = vmul.f32 %v11941_v10, %v11145_v22  ;;  %v4445_v57 = vadd.s32 376, %v11141_v63  ;;  %vm4919_vm10 = vmand %vm4739_vm8, %vm4859_vm0  ;;  %vm4861_vm12 = vcmp.lt.s32.totalorder %v4621_v7, 14  ;;  %v4563_v14 = vshra.s32 %v4443_v62, 4 }
 0x571   :  { %13999 = vst [vmem:[#allocation51_spill] sm:$0xff] %v11897_v48  ;;  %v5185_v48 = vadd.f32 %v5184_v37, %v5183_v45  ;;  %v11934_v37 = vsel %vm4915_vm3, 1.0, %v13814_v4  ;;  %v5096_v45 = vmul.f32 %v11917_v34, %v11121_v49  ;;  %v4444_v32 = vadd.s32 368, %v11141_v63  ;;  %v11982_v10 = vpop.f32.mrf.mxu3 }
 0x572   :  { %14004 = vst [vmem:[#allocation31_spill] sm:$0xff] %v11934_v37  ;;  %v5097_v8 = vmul.f32 %v11934_v37, %v11129_v3  ;;  %v2892_v39 = vadd.f32 %v11732_v23, %v11672_v5  ;;  %v11980_v7 = vsel %vm4858_vm9, 1.0, %v13814_v4  ;;  %vm4860_vm13 = vcmp.lt.s32.totalorder %v4620_v40, 14 }
 0x573   :  { %v5187_v19 = vadd.f32 %v5186_v33, %v5185_v48  ;;  %v4442_v33 = vadd.s32 352, %v11141_v63  ;;  %v4501_v48 = vand.u32 15, %v4441_v11  ;;  %v5192_v11 = vsel %vm5120_vm1, %v5096_v45, 0.0 }
 0x574   :  { %v5194_v45 = vsel %vm5120_vm1, %v5097_v8, 0.0  ;;  %v11986_v5 = vsel %vm4919_vm10, 1.0, %v13814_v4  ;;  %v4503_v8 = vand.u32 15, %v4443_v62  ;;  %v4564_v40 = vshra.s32 %v4444_v32, 4 }
 0x575   :  { %v5189_v28 = vadd.f32 %v5188_v24, %v5187_v19  ;;  %v4562_v24 = vshra.s32 %v4442_v33, 4  ;;  %vm11962_vm11 = vcmp.lt.s32.totalorder %v4501_v48, 14  ;;  %v11968_v19 = vadd.f32 %v11646_v13, %v3389_v59 }
 0x576   :  { %v5196_v13 = vsel %vm5120_vm1, %v5098_v47, 0.0  ;;  %vm11990_vm14 = vmand %vm11962_vm11, %vm4861_vm12  ;;  %v4565_v59 = vshra.s32 %v4445_v57, 4  ;;  %v2893_v47 = vadd.f32 %v11789_v35, %v11683_v61  ;;  %v5100_v12 = vmul.f32 %v11980_v7, %v11193_v20 }
 0x577   :  { %v5191_v31 = vadd.f32 %v5190_v0, %v5189_v28  ;;  %v11973_v0 = vadd.f32 %v11725_v51, %v3390_v43  ;;  %v14009_v28 = vld [vmem:[#allocation87_spill] sm:$0xff]  ;;  %v4622_v23 = vand.u32 15, %v4562_v24  ;;  %v11994_v43 = vpop.f32.mrf.mxu1  ;;  %v5101_v62 = vmul.f32 %v11986_v5, %v11263_v21 }
 0x578   :  { %v11948_v53 = vpop.f32.mrf.mxu0  ;;  %v5099_v48 = vmul.f32 %v11954_v46, %v14009_v28  ;;  %v12002_v46 = vsel %vm4860_vm13, 1.0, %v13814_v4  ;;  %v4505_v61 = vand.u32 15, %v4445_v57  ;;  %v4625_v35 = vand.u32 15, %v4565_v59 }
 0x579   :  { %v5193_v33 = vadd.f32 %v5192_v11, %v5191_v31  ;;  %v4623_v31 = vand.u32 15, %v4563_v14  ;;  %v3391_v11 = vadd.f32 %v11758_v17, %v2892_v39  ;;  %v12012_v17 = vsel %vm11990_vm14, 1.0, %v13814_v4 }
 0x57a   :  { %v5198_v28 = vsel %vm5120_vm1, %v5099_v48, 0.0  ;;  %14012 = vst [vmem:[#allocation59_spill] sm:$0xff] %v12012_v17  ;;  %vm4862_vm15 = vcmp.lt.s32.totalorder %v4622_v23, 14  ;;  %v4446_v14 = vadd.s32 384, %v11141_v63  ;;  %vm4743_vm2 = vcmp.lt.s32.totalorder %v4503_v8, 14  ;;  %v3327_v48 = vpop.f32.mrf.mxu2 }
 0x57b   :  { %v5195_v16 = vadd.f32 %v5194_v45, %v5193_v33  ;;  %vm4863_vm3 = vcmp.lt.s32.totalorder %v4623_v31, 14  ;;  %v4624_v32 = vand.u32 15, %v4564_v40  ;;  %v4447_v39 = vadd.s32 392, %v11141_v63 }
 0x57c   :  { %v3392_v45 = vadd.f32 %v11826_v56, %v2893_v47  ;;  %v2894_v33 = vadd.f32 %v11864_v18, %v11704_v27  ;;  %v5102_v51 = vmul.f32 %v12002_v46, %v11339_v9  ;;  %v5202_v23 = vsel %vm5120_vm1, %v5101_v62, 0.0  ;;  %vm12029_vm4 = vmand %vm4743_vm2, %vm4863_vm3  ;;  %v12045_v62 = vpop.f32.mrf.mxu3 }
 0x57d   :  { %v5197_v24 = vadd.f32 %v5196_v13, %v5195_v16  ;;  %v5200_v13 = vsel %vm5120_vm1, %v5100_v12, 0.0  ;;  %v12024_v59 = vsel %vm4862_vm15, 1.0, %v13814_v4  ;;  %v4449_v16 = vadd.s32 408, %v11141_v63 }
 0x57e   :  { %14013 = vst [vmem:[#allocation82_spill] sm:$0xff] %v12024_v59  ;;  %v5103_v56 = vmul.f32 %v12012_v17, %v11396_v42  ;;  %vm12033_vm5 = vcmp.lt.s32.totalorder %v4505_v61, 14  ;;  %vm4865_vm6 = vcmp.lt.s32.totalorder %v4625_v35, 14  ;;  %v4566_v18 = vshra.s32 %v4446_v14, 4 }
 0x57f   :  { %v5199_v57 = vadd.f32 %v5198_v28, %v5197_v24  ;;  %vm4864_vm7 = vcmp.lt.s32.totalorder %v4624_v32, 14  ;;  %v4567_v31 = vshra.s32 %v4447_v39, 4  ;;  %v4448_v40 = vadd.s32 400, %v11141_v63  ;;  %vm4925_vm8 = vmand %vm12033_vm5, %vm4865_vm6 }
 0x580   :  { %v12004_v37 = vpop.f32.mrf.mxu0  ;;  %v12039_v47 = vadd.f32 %v11783_v30, %v3391_v11  ;;  %v12042_v12 = vadd.f32 %v11858_v54, %v3392_v45  ;;  %v3393_v24 = vadd.f32 %v11903_v38, %v2894_v33  ;;  %v5204_v61 = vsel %vm5120_vm1, %v5102_v51, 0.0 }
 0x581   :  { %v5201_v28 = vadd.f32 %v5200_v13, %v5199_v57  ;;  %v2895_v14 = vadd.f32 %v11931_v41, %v11717_v36  ;;  %v2831_v13 = vpop.f32.mrf.mxu1  ;;  %v12053_v17 = vsel %vm12029_vm4, 1.0, %v13814_v4  ;;  %v4569_v30 = vshra.s32 %v4449_v16, 4 }
 0x582   :  { %14018 = vst [vmem:[#allocation60_spill] sm:$0xff] %v12053_v17  ;;  %v5206_v54 = vsel %vm5120_vm1, %v5103_v56, 0.0  ;;  %v5104_v38 = vmul.f32 %v12024_v59, %v11440_v55  ;;  %v12063_v36 = vsel %vm4864_vm7, 1.0, %v13814_v4  ;;  %v4626_v41 = vand.u32 15, %v4566_v18 }
 0x583   :  { %v5203_v57 = vadd.f32 %v5202_v23, %v5201_v28  ;;  %14019 = vst [vmem:[#allocation83_spill] sm:$0xff] %v12063_v36  ;;  %v4507_v33 = vand.u32 15, %v4447_v39  ;;  %v4627_v51 = vand.u32 15, %v4567_v31  ;;  %v4568_v35 = vshra.s32 %v4448_v40, 4 }
 0x584   :  { %v12068_v23 = vadd.f32 %v11928_v44, %v3393_v24  ;;  %v5105_v56 = vmul.f32 %v12053_v17, %v11492_v60  ;;  %v12073_v8 = vsel %vm4925_vm8, 1.0, %v13814_v4  ;;  %v4450_v32 = vadd.s32 416, %v11141_v63 }
 0x585   :  { %v5205_v45 = vadd.f32 %v5204_v61, %v5203_v57  ;;  %14020 = vst [vmem:[#allocation61_spill] sm:$0xff] %v12073_v8  ;;  %v3394_v27 = vadd.f32 %v11956_v6, %v2895_v14  ;;  %v4509_v28 = vand.u32 15, %v4449_v16  ;;  %v4629_v59 = vand.u32 15, %v4569_v30  ;;  %v3330_v61 = vpop.f32.mrf.mxu2 }
 0x586   :  { %v5208_v39 = vsel %vm5120_vm1, %v5104_v38, 0.0  ;;  %v5106_v44 = vmul.f32 %v12063_v36, %v11538_v52  ;;  %vm4866_vm0 = vcmp.lt.s32.totalorder %v4626_v41, 14  ;;  %v4451_v31 = vadd.s32 424, %v11141_v63 }
 0x587   :  { %v5207_v18 = vadd.f32 %v5206_v54, %v5205_v45  ;;  %v5107_v40 = vmul.f32 %v12073_v8, %v11581_v15  ;;  %vm4747_vm9 = vcmp.lt.s32.totalorder %v4507_v33, 14  ;;  %vm4867_vm10 = vcmp.lt.s32.totalorder %v4627_v51, 14  ;;  %v12094_v45 = vpop.f32.mrf.mxu3 }
 0x588   :  { %v12065_v11 = vpop.f32.mrf.mxu0  ;;  %v4628_v24 = vand.u32 15, %v4568_v35  ;;  %v2896_v6 = vadd.f32 %v11994_v43, %v11749_v58  ;;  %v5210_v16 = vsel %vm5120_vm1, %v5105_v56, 0.0  ;;  %v4570_v14 = vshra.s32 %v4450_v32, 4  ;;  %vm12097_vm13 = vmand %vm4747_vm9, %vm4867_vm10 }
 0x589   :  { %v4452_v57 = vadd.s32 432, %v11141_v63  ;;  %v5209_v30 = vadd.f32 %v5208_v39, %v5207_v18  ;;  %v12088_v54 = vsel %vm4866_vm0, 1.0, %v13814_v4  ;;  %vm12090_vm11 = vcmp.lt.s32.totalorder %v4509_v28, 14  ;;  %v2834_v56 = vpop.f32.mrf.mxu1  ;;  %v14027_v28 = vld [vmem:[#allocation18_spill] sm:$0xff] }
 0x58a   :  { %14021 = vst [vmem:[#allocation84_spill] sm:$0xff] %v12088_v54  ;;  %vm4869_vm12 = vcmp.lt.s32.totalorder %v4629_v59, 14  ;;  %v3395_v41 = vadd.f32 %v3327_v48, %v2896_v6  ;;  %v5212_v33 = vsel %vm5120_vm1, %v5106_v44, 0.0  ;;  %v4571_v43 = vshra.s32 %v4451_v31, 4  ;;  %v14026_v48 = vld [vmem:[#allocation72_spill] sm:$0xff] }
 0x58b   :  { %v4453_v51 = vadd.s32 440, %v11141_v63  ;;  %v12103_v35 = vadd.f32 %v11982_v10, %v3394_v27  ;;  %v5211_v32 = vadd.f32 %v5210_v16, %v5209_v30  ;;  %v5214_v18 = vsel %vm5120_vm1, %v5107_v40, 0.0  ;;  %vm4929_vm15 = vmand %vm12090_vm11, %vm4869_vm12  ;;  %v14029_v10 = vld [vmem:[#allocation76_spill] sm:$0xff] }
 0x58c   :  { %vm4868_vm14 = vcmp.lt.s32.totalorder %v4628_v24, 14  ;;  %v5108_v59 = vmul.f32 %v12088_v54, %v14026_v48  ;;  %v12110_v39 = vadd.f32 %v14027_v28, %v11908_v26  ;;  %v4630_v44 = vand.u32 15, %v4570_v14  ;;  %v14033_v24 = vld [vmem:[#allocation77_spill] sm:$0xff] }
 0x58d   :  { %v4572_v6 = vshra.s32 %v4452_v57, 4  ;;  %v2897_v27 = vadd.f32 %v2831_v13, %v14029_v10  ;;  %v5213_v16 = vadd.f32 %v5212_v33, %v5211_v32  ;;  %v12120_v40 = vsel %vm12097_vm13, 1.0, %v13814_v4  ;;  %v3333_v58 = vpop.f32.mrf.mxu2 }
 0x58e   :  { %14028 = vst [vmem:[#allocation52_spill] sm:$0xff] %v12110_v39  ;;  %v4511_v30 = vand.u32 15, %v4451_v31  ;;  %v12123_v54 = vadd.f32 %v12045_v62, %v3395_v41  ;;  %v4631_v26 = vand.u32 15, %v4571_v43  ;;  %v4573_v28 = vshra.s32 %v4453_v51, 4  ;;  %v14032_v43 = vld [vmem:[#allocation47_spill] sm:$0xff] }
 0x58f   :  { %14030 = vst [vmem:[#allocation65_spill] sm:$0xff] %v12120_v40  ;;  %v4455_v38 = vadd.s32 456, %v11141_v63  ;;  %v5215_v14 = vadd.f32 %v5214_v18, %v5213_v16  ;;  %v12128_v57 = vsel %vm4868_vm14, 1.0, %v13814_v4  ;;  %v12131_v13 = vsel %vm4929_vm15, 1.0, %v13814_v4 }
 0x590   :  { %v12114_v8 = vpop.f32.mrf.mxu0  ;;  %14031 = vst [vmem:[#allocation62_spill] sm:$0xff] %v12131_v13  ;;  %v4454_v33 = vadd.s32 448, %v11141_v63  ;;  %v5216_v31 = vsel %vm5120_vm1, %v5108_v59, 0.0  ;;  %v5109_v62 = vmul.f32 %v12120_v40, %v12110_v39  ;;  %vm4870_vm2 = vcmp.lt.s32.totalorder %v4630_v44, 14 }
 0x591   :  { %v4632_v41 = vand.u32 15, %v4572_v6  ;;  %v12139_v32 = vadd.f32 %v14032_v43, %v11968_v19  ;;  %v12143_v18 = vadd.f32 %v14033_v24, %v11973_v0  ;;  %vm12145_vm3 = vcmp.lt.s32.totalorder %v4511_v30, 14  ;;  %v14036_v6 = vld [vmem:[#allocation50_spill] sm:$0xff]  ;;  %v3832_v43 = vpop.f32.mrf.mxu3 }
 0x592   :  { %v4513_v16 = vand.u32 15, %v4453_v51  ;;  %vm4871_vm4 = vcmp.lt.s32.totalorder %v4631_v26, 14  ;;  %v4633_v59 = vand.u32 15, %v4573_v28  ;;  %v4575_v36 = vshra.s32 %v4455_v38, 4  ;;  %v2837_v51 = vpop.f32.mrf.mxu1 }
 0x593   :  { %v4457_v40 = vadd.s32 472, %v11141_v63  ;;  %v3396_v39 = vadd.f32 %v3330_v61, %v2897_v27  ;;  %v2898_v48 = vadd.f32 %v2834_v56, %v14036_v6  ;;  %v4574_v17 = vshra.s32 %v4454_v33, 4  ;;  %v14037_v56 = vld [vmem:[#allocation30_spill] sm:$0xff]  ;;  %vm4931_vm6 = vmand %vm12145_vm3, %vm4871_vm4  ;;  %v14040_v6 = vld [vmem:[#allocation51_spill] sm:$0xff] }
 0x594   :  { %v4456_v19 = vadd.s32 464, %v11141_v63  ;;  %v5217_v15 = vadd.f32 %v5216_v31, %v5215_v14  ;;  %v5218_v0 = vsel %vm5120_vm1, %v5109_v62, 0.0  ;;  %v12155_v30 = vsel %vm4870_vm2, 1.0, %v13814_v4 }
 0x595   :  { %vm4872_vm5 = vcmp.lt.s32.totalorder %v4632_v41, 14  ;;  %v5110_v28 = vmul.f32 %v12128_v57, %v12139_v32  ;;  %v5111_v61 = vmul.f32 %v12131_v13, %v12143_v18  ;;  %v12163_v27 = vadd.f32 %v14037_v56, %v12039_v47 }
 0x596   :  { %vm12168_vm7 = vcmp.lt.s32.totalorder %v4513_v16, 14  ;;  %vm4873_vm8 = vcmp.lt.s32.totalorder %v4633_v59, 14  ;;  %v4515_v14 = vand.u32 15, %v4455_v38  ;;  %v4635_v33 = vand.u32 15, %v4575_v36 }
 0x597   :  { %v4577_v62 = vshra.s32 %v4457_v40, 4  ;;  %v3397_v24 = vadd.f32 %v3333_v58, %v2898_v48  ;;  %v12174_v63 = vadd.f32 %v14040_v6, %v12042_v12  ;;  %v4634_v47 = vand.u32 15, %v4574_v17  ;;  %vm4933_vm0 = vmand %vm12168_vm7, %vm4873_vm8 }
 0x598   :  { %v4331_v31 = vpop.f32.mrf.mxu0  ;;  %v4576_v56 = vshra.s32 %v4456_v19, 4  ;;  %v2899_v26 = vadd.f32 %v2837_v51, %v11901_v50  ;;  %v5219_v10 = vadd.f32 %v5218_v0, %v5217_v15  ;;  %v12178_v16 = vsel %vm4931_vm6, 1.0, %v13814_v4  ;;  %v3336_v15 = vpop.f32.mrf.mxu2 }
 0x599   :  { %v12182_v13 = vsel %vm4872_vm5, 1.0, %v13814_v4  ;;  %v5220_v36 = vsel %vm5120_vm1, %v5110_v28, 0.0  ;;  %v5222_v48 = vsel %vm5120_vm1, %v5111_v61, 0.0  ;;  %v5112_v12 = vmul.f32 %v12155_v30, %v12163_v27 }
 0x59a   :  { %v12190_v17 = vadd.f32 %v11948_v53, %v12068_v23  ;;  %vm12195_vm9 = vcmp.lt.s32.totalorder %v4515_v14, 14  ;;  %vm4875_vm10 = vcmp.lt.s32.totalorder %v4635_v33, 14  ;;  %v4517_v38 = vand.u32 15, %v4457_v40 }
 0x59b   :  { %v4637_v58 = vand.u32 15, %v4577_v62  ;;  %v5113_v41 = vmul.f32 %v12178_v16, %v12174_v63  ;;  %v12203_v19 = vadd.f32 %v12004_v37, %v12103_v35  ;;  %vm4874_vm11 = vcmp.lt.s32.totalorder %v4634_v47, 14  ;;  %vm4935_vm12 = vmand %vm12195_vm9, %vm4875_vm10  ;;  %v3835_v37 = vpop.f32.mrf.mxu3 }
 0x59c   :  { %v4636_v53 = vand.u32 15, %v4576_v56  ;;  %v3895_v23 = vadd.f32 %v12094_v45, %v3396_v39  ;;  %v3896_v59 = vadd.f32 %v3832_v43, %v3397_v24  ;;  %v5221_v0 = vadd.f32 %v5220_v36, %v5219_v10 }
 0x59d   :  { %v12207_v51 = vsel %vm4933_vm0, 1.0, %v13814_v4  ;;  %v3398_v28 = vadd.f32 %v3336_v15, %v2899_v26  ;;  %v5224_v40 = vsel %vm5120_vm1, %v5112_v12, 0.0  ;;  %v5114_v61 = vmul.f32 %v12182_v13, %v12190_v17 }
 0x59e   :  { %v12214_v44 = vadd.f32 %v12065_v11, %v12123_v54  ;;  %v5223_v45 = vadd.f32 %v5222_v48, %v5221_v0  ;;  %v12220_v35 = vsel %vm4874_vm11, 1.0, %v13814_v4  ;;  %vm4757_vm13 = vcmp.lt.s32.totalorder %v4517_v38, 14 }
 0x59f   :  { %vm4877_vm14 = vcmp.lt.s32.totalorder %v4637_v58, 14  ;;  %v5226_v39 = vsel %vm5120_vm1, %v5113_v41, 0.0  ;;  %v5115_v43 = vmul.f32 %v12207_v51, %v12203_v19  ;;  %v12226_v14 = vadd.f32 %v12114_v8, %v3895_v23 }
 0x5a0   :  { %vm4876_vm15 = vcmp.lt.s32.totalorder %v4636_v53, 14  ;;  %v5225_v11 = vadd.f32 %v5224_v40, %v5223_v45  ;;  %v12229_v54 = vsel %vm4935_vm12, 1.0, %v13814_v4  ;;  %v4334_v33 = vpop.f32.mrf.mxu0  ;;  %v3897_v62 = vadd.f32 %v3835_v37, %v3398_v28  ;;  %vm4937_vm2 = vmand %vm4757_vm13, %vm4877_vm14 }
 0x5a1   :  { %v5228_v24 = vsel %vm5120_vm1, %v5114_v61, 0.0  ;;  %v5116_v6 = vmul.f32 %v12220_v35, %v12214_v44  ;;  %v12234_v47 = vadd.f32 %v4331_v31, %v3896_v59  ;;  %v12237_v26 = vsel %vm4876_vm15, 1.0, %v13814_v4 }
 0x5a2   :  { %v5227_v56 = vadd.f32 %v5226_v39, %v5225_v11  ;;  %v5230_v8 = vsel %vm5120_vm1, %v5115_v43, 0.0  ;;  %v5117_v10 = vmul.f32 %v12229_v54, %v12226_v14  ;;  %v12242_v36 = vadd.f32 %v4334_v33, %v3897_v62  ;;  %v14043_v33 = vld [vmem:[#allocation94_spill] sm:$0xff] }
 0x5a3   :  { %v12245_v12 = vsel %vm4937_vm2, 1.0, %v13814_v4  ;;  %v5232_v15 = vsel %vm5120_vm1, %v5116_v6, 0.0  ;;  %v5118_v31 = vmul.f32 %v12237_v26, %v12234_v47  ;;  %vm5839_vm6 = vcmask 129024  }
 0x5a4   :  { %v5229_v48 = vadd.f32 %v5228_v24, %v5227_v56  ;;  %v5234_v38 = vsel %vm5120_vm1, %v5117_v10, 0.0  ;;  %v5119_v58 = vmul.f32 %v12245_v12, %v12242_v36  ;;  %v14044_v24 = vld [vmem:[#allocation36_spill] sm:$0xff]  ;;  %v14045_v56 = vld [vmem:[#allocation95_spill] sm:$0xff] }
 0x5a5   :  { %v5236_v53 = vsel %vm5120_vm1, %v5118_v31, 0.0  ;;  %v14046_v10 = vld [vmem:[#allocation39_spill] sm:$0xff] }
 0x5a6   :  { %v5231_v50 = vadd.f32 %v5230_v8, %v5229_v48  ;;  %v5238_v59 = vsel %vm5120_vm1, %v5119_v58, 0.0  ;;  %v14049_v58 = vld [vmem:[#allocation98_spill] sm:$0xff] }
 0x5a8   :  { %v5233_v41 = vadd.f32 %v5232_v15, %v5231_v50  ;;  %v14047_v15 = vld [vmem:[#allocation38_spill] sm:$0xff]  ;;  %v14048_v50 = vld [vmem:[#allocation37_spill] sm:$0xff] }
 0x5aa   :  { %v5235_v23 = vadd.f32 %v5234_v38, %v5233_v41 }
 0x5ac   :  { %v5237_v0 = vadd.f32 %v5236_v53, %v5235_v23  ;;  %v14050_v53 = vld [vmem:[#allocation93_spill] sm:$0xff] }
 0x5ae   :  { %v5239_v28 = vadd.f32 %v5238_v59, %v5237_v0  ;;  %v14051_v59 = vld [vmem:[#allocation100_spill] sm:$0xff] }
 0x5b0   :  { %v5240_v40 = vrot.slane %v5239_v28, 4 }
 0x5b2   :  { %v5241_v61 = vadd.f32 %v5240_v40, %v5239_v28  ;;  %v14052_v28 = vld [vmem:[#allocation40_spill] sm:$0xff] }
 0x5b4   :  { %v5242_v37 = vrot.slane %v5241_v61, 2 }
 0x5b6   :  { %v5243_v45 = vadd.f32 %v5242_v37, %v5241_v61 }
 0x5b8   :  { %v5244_v39 = vrot.slane %v5243_v45, 1 }
 0x5ba   :  { %v5245_v43 = vadd.f32 %v5244_v39, %v5243_v45  ;;  %v14053_v45 = vld [vmem:[#allocation103_spill] sm:$0xff] }
 0x5bc   :  { %v12255_v11 = vmul.f32 0.0025510204, %v5245_v43  ;;  %v14054_v43 = vld [vmem:[#allocation41_spill] sm:$0xff] }
 0x5be   :  { %v5247_v62 = vsub.f32 %v14043_v33, %v12255_v11  ;;  %v5248_v6 = vsub.f32 %v14044_v24, %v12255_v11  ;;  %v5249_v8 = vsub.f32 %v14045_v56, %v12255_v11  ;;  %v5250_v48 = vsub.f32 %v14046_v10, %v12255_v11  ;;  %v14060_v56 = vld [vmem:[#allocation106_spill] sm:$0xff] }
 0x5bf   :  { %v5251_v41 = vsub.f32 %v14049_v58, %v12255_v11  ;;  %v5252_v0 = vsub.f32 %v14051_v59, %v12255_v11  ;;  %v5253_v39 = vsub.f32 %v14053_v45, %v12255_v11 }
 0x5c0   :  { %v5307_v31 = vmul.f32 %v14047_v15, %v5247_v62  ;;  %v5308_v38 = vmul.f32 %v14048_v50, %v5248_v6  ;;  %v5309_v23 = vmul.f32 %v14050_v53, %v5249_v8  ;;  %v5310_v40 = vmul.f32 %v14052_v28, %v5250_v48  ;;  %v14055_v6 = vld [vmem:[#allocation107_spill] sm:$0xff]  ;;  %v14056_v50 = vld [vmem:[#allocation101_spill] sm:$0xff]  ;;  %v14057_v48 = vld [vmem:[#allocation54_spill] sm:$0xff] }
 0x5c1   :  { %v5311_v4 = vmul.f32 %v14054_v43, %v5251_v41  ;;  %v5254_v15 = vsub.f32 %v14055_v6, %v12255_v11  ;;  %v5312_v58 = vmul.f32 %v14056_v50, %v5252_v0  ;;  %v14059_v43 = vld [vmem:[#allocation5_spill] sm:$0xff] }
 0x5c2   :  { %v5367_v61 = vmul.f32 %v5307_v31, %v5307_v31  ;;  %v5368_v37 = vmul.f32 %v5308_v38, %v5308_v38  ;;  %v5369_v62 = vmul.f32 %v5309_v23, %v5309_v23  ;;  %v5370_v10 = vmul.f32 %v5310_v40, %v5310_v40  ;;  %v14058_v38 = vld [vmem:[#allocation105_spill] sm:$0xff] }
 0x5c3   :  { %v5255_v31 = vsub.f32 %v14057_v48, %v12255_v11  ;;  %v5313_v28 = vmul.f32 %v14058_v38, %v5253_v39  ;;  %v5371_v45 = vmul.f32 %v5311_v4, %v5311_v4  ;;  %v5256_v6 = vsub.f32 %v14059_v43, %v12255_v11  ;;  %v14064_v38 = vld [vmem:[#allocation109_spill] sm:$0xff] }
 0x5c4   :  { %v5427_v8 = vsel %vm5120_vm1, %v5367_v61, 0.0  ;;  %v5428_v53 = vsel %vm5120_vm1, %v5368_v37, 0.0  ;;  %v5430_v41 = vsel %vm5120_vm1, %v5369_v62, 0.0  ;;  %v5314_v0 = vmul.f32 %v14060_v56, %v5254_v15  ;;  %v14061_v37 = vld [vmem:[#allocation6_spill] sm:$0xff] }
 0x5c5   :  { %v5429_v59 = vadd.f32 %v5428_v53, %v5427_v8  ;;  %v5372_v40 = vmul.f32 %v5312_v58, %v5312_v58  ;;  %v5432_v61 = vsel %vm5120_vm1, %v5370_v10, 0.0  ;;  %v5257_v8 = vsub.f32 %v14061_v37, %v12255_v11  ;;  %v14062_v53 = vld [vmem:[#allocation108_spill] sm:$0xff] }
 0x5c6   :  { %v5315_v48 = vmul.f32 %v14062_v53, %v5255_v31  ;;  %v5373_v24 = vmul.f32 %v5313_v28, %v5313_v28  ;;  %v5434_v4 = vsel %vm5120_vm1, %v5371_v45, 0.0  ;;  %v5374_v43 = vmul.f32 %v5314_v0, %v5314_v0  ;;  %v14065_v10 = vld [vmem:[#allocation8_spill] sm:$0xff]  ;;  %v14067_v45 = vld [vmem:[#allocation9_spill] sm:$0xff]  ;;  %v14068_v53 = vld [vmem:[#allocation111_spill] sm:$0xff] }
 0x5c7   :  { %v5431_v23 = vadd.f32 %v5430_v41, %v5429_v59  ;;  %v14063_v59 = vld [vmem:[#allocation7_spill] sm:$0xff]  ;;  %v5316_v41 = vmul.f32 %v14064_v38, %v5256_v6  ;;  %v5436_v56 = vsel %vm5120_vm1, %v5372_v40, 0.0  ;;  %v5259_v15 = vsub.f32 %v14065_v10, %v12255_v11  ;;  %v14069_v40 = vld [vmem:[#allocation10_spill] sm:$0xff]  ;;  %v14070_v38 = vld [vmem:[#allocation112_spill] sm:$0xff] }
 0x5c8   :  { %v5258_v62 = vsub.f32 %v14063_v59, %v12255_v11  ;;  %v5375_v37 = vmul.f32 %v5315_v48, %v5315_v48  ;;  %v5438_v31 = vsel %vm5120_vm1, %v5373_v24, 0.0  ;;  %v5440_v6 = vsel %vm5120_vm1, %v5374_v43, 0.0  ;;  %v14071_v24 = vld [vmem:[#allocation11_spill] sm:$0xff]  ;;  %v14073_v43 = vld [vmem:[#allocation42_spill] sm:$0xff] }
 0x5c9   :  { %v5433_v50 = vadd.f32 %v5432_v61, %v5431_v23  ;;  %v14066_v23 = vld [vmem:[#allocation110_spill] sm:$0xff]  ;;  %v5376_v59 = vmul.f32 %v5316_v41, %v5316_v41 }
 0x5ca   :  { %v5317_v61 = vmul.f32 %v14066_v23, %v5257_v8  ;;  %v5442_v48 = vsel %vm5120_vm1, %v5375_v37, 0.0  ;;  %v14072_v23 = vld [vmem:[#allocation113_spill] sm:$0xff]  ;;  %v14075_v37 = vld [vmem:[#allocation68_spill] sm:$0xff] }
 0x5cb   :  { %v5435_v39 = vadd.f32 %v5434_v4, %v5433_v50  ;;  %v5260_v50 = vsub.f32 %v14067_v45, %v12255_v11  ;;  %v5318_v4 = vmul.f32 %v14068_v53, %v5258_v62  ;;  %v5444_v62 = vsel %vm5120_vm1, %v5376_v59, 0.0  ;;  %v14074_v53 = vld [vmem:[#allocation114_spill] sm:$0xff]  ;;  %v14077_v59 = vld [vmem:[#allocation69_spill] sm:$0xff] }
 0x5cc   :  { %v5377_v10 = vmul.f32 %v5317_v61, %v5317_v61 }
 0x5cd   :  { %v5437_v58 = vadd.f32 %v5436_v56, %v5435_v39  ;;  %v5261_v39 = vsub.f32 %v14069_v40, %v12255_v11  ;;  %v5319_v56 = vmul.f32 %v14070_v38, %v5259_v15  ;;  %v5378_v45 = vmul.f32 %v5318_v4, %v5318_v4  ;;  %v14076_v38 = vld [vmem:[#allocation67_spill] sm:$0xff] }
 0x5ce   :  { %v5446_v15 = vsel %vm5120_vm1, %v5377_v10, 0.0  ;;  %v14079_v10 = vld [vmem:[#allocation14_spill] sm:$0xff] }
 0x5cf   :  { %v5439_v28 = vadd.f32 %v5438_v31, %v5437_v58  ;;  %v5262_v58 = vsub.f32 %v14071_v24, %v12255_v11  ;;  %v5320_v31 = vmul.f32 %v14072_v23, %v5260_v50  ;;  %v5379_v40 = vmul.f32 %v5319_v56, %v5319_v56  ;;  %v14078_v23 = vld [vmem:[#allocation22_spill] sm:$0xff] }
 0x5d0   :  { %v5448_v50 = vsel %vm5120_vm1, %v5378_v45, 0.0  ;;  %v14081_v45 = vld [vmem:[#allocation71_spill] sm:$0xff] }
 0x5d1   :  { %v5441_v0 = vadd.f32 %v5440_v6, %v5439_v28  ;;  %v5263_v28 = vsub.f32 %v14073_v43, %v12255_v11  ;;  %v5321_v6 = vmul.f32 %v14074_v53, %v5261_v39  ;;  %v5380_v24 = vmul.f32 %v5320_v31, %v5320_v31  ;;  %v14080_v53 = vld [vmem:[#allocation12_spill] sm:$0xff] }
 0x5d2   :  { %v5450_v39 = vsel %vm5120_vm1, %v5379_v40, 0.0  ;;  %v14083_v40 = vld [vmem:[#allocation17_spill] sm:$0xff] }
 0x5d3   :  { %v5443_v8 = vadd.f32 %v5442_v48, %v5441_v0  ;;  %v5264_v0 = vsub.f32 %v14075_v37, %v12255_v11  ;;  %v5322_v48 = vmul.f32 %v14076_v38, %v5262_v58  ;;  %v5381_v43 = vmul.f32 %v5321_v6, %v5321_v6  ;;  %v14082_v38 = vld [vmem:[#allocation13_spill] sm:$0xff] }
 0x5d4   :  { %v5452_v58 = vsel %vm5120_vm1, %v5380_v24, 0.0  ;;  %v14085_v24 = vld [vmem:[#allocation43_spill] sm:$0xff] }
 0x5d5   :  { %v5445_v41 = vadd.f32 %v5444_v62, %v5443_v8  ;;  %v5265_v8 = vsub.f32 %v14077_v59, %v12255_v11  ;;  %v5323_v62 = vmul.f32 %v14078_v23, %v5263_v28  ;;  %v5382_v37 = vmul.f32 %v5322_v48, %v5322_v48  ;;  %v14084_v23 = vld [vmem:[#allocation15_spill] sm:$0xff] }
 0x5d6   :  { %v5454_v28 = vsel %vm5120_vm1, %v5381_v43, 0.0  ;;  %v14087_v43 = vld [vmem:[#allocation44_spill] sm:$0xff] }
 0x5d7   :  { %v5447_v61 = vadd.f32 %v5446_v15, %v5445_v41  ;;  %v5266_v41 = vsub.f32 %v14079_v10, %v12255_v11  ;;  %v5324_v15 = vmul.f32 %v14080_v53, %v5264_v0  ;;  %v5383_v59 = vmul.f32 %v5323_v62, %v5323_v62  ;;  %v14086_v53 = vld [vmem:[#allocation16_spill] sm:$0xff] }
 0x5d8   :  { %v5456_v0 = vsel %vm5120_vm1, %v5382_v37, 0.0  ;;  %v14089_v37 = vld [vmem:[#allocation19_spill] sm:$0xff] }
 0x5d9   :  { %v5449_v4 = vadd.f32 %v5448_v50, %v5447_v61  ;;  %v5267_v61 = vsub.f32 %v14081_v45, %v12255_v11  ;;  %v5325_v50 = vmul.f32 %v14082_v38, %v5265_v8  ;;  %v5384_v10 = vmul.f32 %v5324_v15, %v5324_v15  ;;  %v14088_v38 = vld [vmem:[#allocation73_spill] sm:$0xff] }
 0x5da   :  { %v5458_v8 = vsel %vm5120_vm1, %v5383_v59, 0.0  ;;  %v14091_v59 = vld [vmem:[#allocation75_spill] sm:$0xff] }
 0x5db   :  { %v5451_v56 = vadd.f32 %v5450_v39, %v5449_v4  ;;  %v5268_v4 = vsub.f32 %v14083_v40, %v12255_v11  ;;  %v5326_v39 = vmul.f32 %v14084_v23, %v5266_v41  ;;  %v5385_v45 = vmul.f32 %v5325_v50, %v5325_v50  ;;  %v14090_v23 = vld [vmem:[#allocation23_spill] sm:$0xff] }
 0x5dc   :  { %v5460_v41 = vsel %vm5120_vm1, %v5384_v10, 0.0  ;;  %v14093_v10 = vld [vmem:[#allocation46_spill] sm:$0xff] }
 0x5dd   :  { %v5453_v31 = vadd.f32 %v5452_v58, %v5451_v56  ;;  %v5269_v56 = vsub.f32 %v14085_v24, %v12255_v11  ;;  %v5327_v58 = vmul.f32 %v14086_v53, %v5267_v61  ;;  %v5386_v40 = vmul.f32 %v5326_v39, %v5326_v39  ;;  %v14092_v53 = vld [vmem:[#allocation24_spill] sm:$0xff] }
 0x5de   :  { %v5462_v61 = vsel %vm5120_vm1, %v5385_v45, 0.0  ;;  %v14095_v45 = vld [vmem:[#allocation26_spill] sm:$0xff] }
 0x5df   :  { %v5455_v6 = vadd.f32 %v5454_v28, %v5453_v31  ;;  %v5270_v31 = vsub.f32 %v14087_v43, %v12255_v11  ;;  %v5328_v28 = vmul.f32 %v14088_v38, %v5268_v4  ;;  %v5387_v24 = vmul.f32 %v5327_v58, %v5327_v58  ;;  %v14094_v38 = vld [vmem:[#allocation74_spill] sm:$0xff] }
 0x5e0   :  { %v5464_v4 = vsel %vm5120_vm1, %v5386_v40, 0.0  ;;  %v14097_v40 = vld [vmem:[#allocation20_spill] sm:$0xff] }
 0x5e1   :  { %v5457_v48 = vadd.f32 %v5456_v0, %v5455_v6  ;;  %v5271_v6 = vsub.f32 %v14089_v37, %v12255_v11  ;;  %v5329_v0 = vmul.f32 %v14090_v23, %v5269_v56  ;;  %v5388_v43 = vmul.f32 %v5328_v28, %v5328_v28  ;;  %v14096_v23 = vld [vmem:[#allocation45_spill] sm:$0xff] }
 0x5e2   :  { %v5466_v56 = vsel %vm5120_vm1, %v5387_v24, 0.0  ;;  %v14099_v24 = vld [vmem:[#allocation21_spill] sm:$0xff] }
 0x5e3   :  { %v5459_v62 = vadd.f32 %v5458_v8, %v5457_v48  ;;  %v5272_v48 = vsub.f32 %v14091_v59, %v12255_v11  ;;  %v5330_v8 = vmul.f32 %v14092_v53, %v5270_v31  ;;  %v5389_v37 = vmul.f32 %v5329_v0, %v5329_v0  ;;  %v14098_v53 = vld [vmem:[#allocation25_spill] sm:$0xff] }
 0x5e4   :  { %v5468_v31 = vsel %vm5120_vm1, %v5388_v43, 0.0  ;;  %v14101_v43 = vld [vmem:[#allocation49_spill] sm:$0xff] }
 0x5e5   :  { %v5461_v15 = vadd.f32 %v5460_v41, %v5459_v62  ;;  %v5273_v62 = vsub.f32 %v14093_v10, %v12255_v11  ;;  %v5331_v41 = vmul.f32 %v14094_v38, %v5271_v6  ;;  %v5390_v59 = vmul.f32 %v5330_v8, %v5330_v8  ;;  %v14100_v38 = vld [vmem:[#allocation27_spill] sm:$0xff] }
 0x5e6   :  { %v5470_v6 = vsel %vm5120_vm1, %v5389_v37, 0.0  ;;  %v14103_v37 = vld [vmem:[#allocation78_spill] sm:$0xff] }
 0x5e7   :  { %v5463_v50 = vadd.f32 %v5462_v61, %v5461_v15  ;;  %v5274_v15 = vsub.f32 %v14095_v45, %v12255_v11  ;;  %v5332_v61 = vmul.f32 %v14096_v23, %v5272_v48  ;;  %v5391_v10 = vmul.f32 %v5331_v41, %v5331_v41  ;;  %v14102_v23 = vld [vmem:[#allocation48_spill] sm:$0xff] }
 0x5e8   :  { %v5472_v48 = vsel %vm5120_vm1, %v5390_v59, 0.0  ;;  %v14105_v59 = vld [vmem:[#allocation56_spill] sm:$0xff] }
 0x5e9   :  { %v5465_v39 = vadd.f32 %v5464_v4, %v5463_v50  ;;  %v5275_v50 = vsub.f32 %v14097_v40, %v12255_v11  ;;  %v5333_v4 = vmul.f32 %v14098_v53, %v5273_v62  ;;  %v5392_v45 = vmul.f32 %v5332_v61, %v5332_v61  ;;  %v14104_v53 = vld [vmem:[#allocation28_spill] sm:$0xff] }
 0x5ea   :  { %v5474_v62 = vsel %vm5120_vm1, %v5391_v10, 0.0  ;;  %v14107_v10 = vld [vmem:[#allocation57_spill] sm:$0xff] }
 0x5eb   :  { %v5467_v58 = vadd.f32 %v5466_v56, %v5465_v39  ;;  %v5276_v39 = vsub.f32 %v14099_v24, %v12255_v11  ;;  %v5334_v56 = vmul.f32 %v14100_v38, %v5274_v15  ;;  %v5393_v40 = vmul.f32 %v5333_v4, %v5333_v4  ;;  %v14106_v38 = vld [vmem:[#allocation29_spill] sm:$0xff] }
 0x5ec   :  { %v5476_v15 = vsel %vm5120_vm1, %v5392_v45, 0.0  ;;  %v5281_v45 = vsub.f32 %v11874_v25, %v12255_v11 }
 0x5ed   :  { %v5469_v28 = vadd.f32 %v5468_v31, %v5467_v58  ;;  %v5277_v58 = vsub.f32 %v14101_v43, %v12255_v11  ;;  %v5335_v31 = vmul.f32 %v14102_v23, %v5275_v50  ;;  %v5394_v24 = vmul.f32 %v5334_v56, %v5334_v56  ;;  %v14108_v23 = vld [vmem:[#allocation55_spill] sm:$0xff] }
 0x5ee   :  { %v5478_v50 = vsel %vm5120_vm1, %v5393_v40, 0.0  ;;  %v5282_v40 = vsub.f32 %v11890_v2, %v12255_v11 }
 0x5ef   :  { %v5471_v0 = vadd.f32 %v5470_v6, %v5469_v28  ;;  %v5278_v28 = vsub.f32 %v14103_v37, %v12255_v11  ;;  %v5336_v6 = vmul.f32 %v14104_v53, %v5276_v39  ;;  %v5395_v43 = vmul.f32 %v5335_v31, %v5335_v31 }
 0x5f0   :  { %v5480_v39 = vsel %vm5120_vm1, %v5394_v24, 0.0  ;;  %v5283_v24 = vsub.f32 %v11121_v49, %v12255_v11 }
 0x5f1   :  { %v5473_v8 = vadd.f32 %v5472_v48, %v5471_v0  ;;  %v5279_v0 = vsub.f32 %v14105_v59, %v12255_v11  ;;  %v5337_v48 = vmul.f32 %v14106_v38, %v5277_v58  ;;  %v5396_v37 = vmul.f32 %v5336_v6, %v5336_v6 }
 0x5f2   :  { %v5482_v58 = vsel %vm5120_vm1, %v5395_v43, 0.0  ;;  %v5284_v43 = vsub.f32 %v11129_v3, %v12255_v11 }
 0x5f3   :  { %v5475_v41 = vadd.f32 %v5474_v62, %v5473_v8  ;;  %v5280_v8 = vsub.f32 %v14107_v10, %v12255_v11  ;;  %v5338_v62 = vmul.f32 %v14108_v23, %v5278_v28  ;;  %v5484_v28 = vsel %vm5120_vm1, %v5396_v37, 0.0 }
 0x5f4   :  { %v5285_v37 = vsub.f32 %v11145_v22, %v12255_v11 }
 0x5f5   :  { %v5477_v61 = vadd.f32 %v5476_v15, %v5475_v41  ;;  %v14109_v41 = vld [vmem:[#allocation79_spill] sm:$0xff]  ;;  %v5397_v15 = vmul.f32 %v5337_v48, %v5337_v48 }
 0x5f6   :  { %v5339_v53 = vmul.f32 %v14109_v41, %v5279_v0  ;;  %v5343_v41 = vmul.f32 %v11917_v34, %v5283_v24 }
 0x5f7   :  { %v5479_v4 = vadd.f32 %v5478_v50, %v5477_v61  ;;  %v14110_v61 = vld [vmem:[#allocation80_spill] sm:$0xff]  ;;  %v5398_v50 = vmul.f32 %v5338_v62, %v5338_v62  ;;  %v5486_v0 = vsel %vm5120_vm1, %v5397_v15, 0.0 }
 0x5f8   :  { %v5340_v38 = vmul.f32 %v14110_v61, %v5280_v8  ;;  %v5399_v23 = vmul.f32 %v5339_v53, %v5339_v53  ;;  %v14111_v53 = vld [vmem:[#allocation87_spill] sm:$0xff] }
 0x5f9   :  { %v5481_v56 = vadd.f32 %v5480_v39, %v5479_v4  ;;  %v5341_v4 = vmul.f32 %v11870_v29, %v5281_v45  ;;  %v5342_v39 = vmul.f32 %v11877_v1, %v5282_v40  ;;  %v5488_v8 = vsel %vm5120_vm1, %v5398_v50, 0.0  ;;  %v14113_v50 = vld [vmem:[#allocation58_spill] sm:$0xff] }
 0x5fa   :  { %v5490_v29 = vsel %vm5120_vm1, %v5399_v23, 0.0  ;;  %v5286_v15 = vsub.f32 %v14111_v53, %v12255_v11  ;;  %v14114_v23 = vld [vmem:[#allocation81_spill] sm:$0xff] }
 0x5fb   :  { %v5483_v31 = vadd.f32 %v5482_v58, %v5481_v56  ;;  %v5400_v56 = vmul.f32 %v5340_v38, %v5340_v38  ;;  %v5401_v58 = vmul.f32 %v5341_v4, %v5341_v4  ;;  %v5287_v38 = vsub.f32 %v11193_v20, %v12255_v11 }
 0x5fc   :  { %v5288_v4 = vsub.f32 %v11263_v21, %v12255_v11 }
 0x5fd   :  { %v5485_v6 = vadd.f32 %v5484_v28, %v5483_v31  ;;  %v14112_v31 = vld [vmem:[#allocation31_spill] sm:$0xff]  ;;  %v5402_v28 = vmul.f32 %v5342_v39, %v5342_v39  ;;  %v5492_v1 = vsel %vm5120_vm1, %v5400_v56, 0.0  ;;  %v5494_v34 = vsel %vm5120_vm1, %v5401_v58, 0.0 }
 0x5fe   :  { %v5344_v61 = vmul.f32 %v14112_v31, %v5284_v43  ;;  %v5289_v56 = vsub.f32 %v11339_v9, %v12255_v11  ;;  %v5290_v58 = vsub.f32 %v11396_v42, %v12255_v11 }
 0x5ff   :  { %v5487_v48 = vadd.f32 %v5486_v0, %v5485_v6  ;;  %v5345_v6 = vmul.f32 %v14113_v50, %v5285_v37  ;;  %v5403_v0 = vmul.f32 %v5343_v41, %v5343_v41  ;;  %v5496_v43 = vsel %vm5120_vm1, %v5402_v28, 0.0 }
 0x600   :  { %v5291_v28 = vsub.f32 %v11440_v55, %v12255_v11  ;;  %v5292_v50 = vsub.f32 %v11492_v60, %v12255_v11 }
 0x601   :  { %v5489_v62 = vadd.f32 %v5488_v8, %v5487_v48  ;;  %v5346_v48 = vmul.f32 %v14114_v23, %v5286_v15  ;;  %v5404_v8 = vmul.f32 %v5344_v61, %v5344_v61  ;;  %v5498_v37 = vsel %vm5120_vm1, %v5403_v0, 0.0  ;;  %v14116_v23 = vld [vmem:[#allocation82_spill] sm:$0xff] }
 0x603   :  { %v5491_v45 = vadd.f32 %v5490_v29, %v5489_v62  ;;  %v5347_v62 = vmul.f32 %v11980_v7, %v5287_v38  ;;  %v5405_v29 = vmul.f32 %v5345_v6, %v5345_v6  ;;  %v5406_v31 = vmul.f32 %v5346_v48, %v5346_v48  ;;  %v14115_v6 = vld [vmem:[#allocation59_spill] sm:$0xff] }
 0x604   :  { %v5500_v15 = vsel %vm5120_vm1, %v5404_v8, 0.0  ;;  %v5350_v0 = vmul.f32 %v14115_v6, %v5290_v58  ;;  %v5351_v48 = vmul.f32 %v14116_v23, %v5291_v28  ;;  %v14122_v6 = vld [vmem:[#allocation61_spill] sm:$0xff]  ;;  %v14123_v23 = vld [vmem:[#allocation84_spill] sm:$0xff] }
 0x605   :  { %v5493_v40 = vadd.f32 %v5492_v1, %v5491_v45  ;;  %v5348_v45 = vmul.f32 %v11986_v5, %v5288_v4  ;;  %v5349_v1 = vmul.f32 %v12002_v46, %v5289_v56  ;;  %v5502_v7 = vsel %vm5120_vm1, %v5405_v29, 0.0 }
 0x606   :  { %v5504_v5 = vsel %vm5120_vm1, %v5406_v31, 0.0  ;;  %v5293_v4 = vsub.f32 %v11538_v52, %v12255_v11 }
 0x607   :  { %v5495_v24 = vadd.f32 %v5494_v34, %v5493_v40  ;;  %v5407_v40 = vmul.f32 %v5347_v62, %v5347_v62  ;;  %v5408_v34 = vmul.f32 %v5348_v45, %v5348_v45  ;;  %v5409_v8 = vmul.f32 %v5349_v1, %v5349_v1  ;;  %v14118_v62 = vld [vmem:[#allocation60_spill] sm:$0xff] }
 0x608   :  { %v5352_v29 = vmul.f32 %v14118_v62, %v5292_v50  ;;  %v14119_v45 = vld [vmem:[#allocation72_spill] sm:$0xff]  ;;  %v14124_v62 = vld [vmem:[#allocation65_spill] sm:$0xff] }
 0x609   :  { %v5497_v39 = vadd.f32 %v5496_v43, %v5495_v24  ;;  %v5506_v46 = vsel %vm5120_vm1, %v5407_v40, 0.0  ;;  %v5295_v31 = vsub.f32 %v14119_v45, %v12255_v11  ;;  %v5510_v28 = vsel %vm5120_vm1, %v5409_v8, 0.0  ;;  %v14121_v40 = vld [vmem:[#allocation52_spill] sm:$0xff] }
 0x60a   :  { %v5298_v8 = vsub.f32 %v12143_v18, %v12255_v11 }
 0x60b   :  { %v5499_v41 = vadd.f32 %v5498_v37, %v5497_v39  ;;  %v14117_v39 = vld [vmem:[#allocation70_spill] sm:$0xff]  ;;  %v5410_v37 = vmul.f32 %v5350_v0, %v5350_v0 }
 0x60c   :  { %v5294_v56 = vsub.f32 %v14117_v39, %v12255_v11 }
 0x60d   :  { %v5501_v61 = vadd.f32 %v5500_v15, %v5499_v41  ;;  %v5508_v41 = vsel %vm5120_vm1, %v5408_v34, 0.0  ;;  %v14120_v15 = vld [vmem:[#allocation83_spill] sm:$0xff]  ;;  %v5512_v50 = vsel %vm5120_vm1, %v5410_v37, 0.0  ;;  %v5297_v34 = vsub.f32 %v12139_v32, %v12255_v11 }
 0x60e   :  { %v5299_v37 = vsub.f32 %v12163_v27, %v12255_v11 }
 0x60f   :  { %v5503_v38 = vadd.f32 %v5502_v7, %v5501_v61  ;;  %v5353_v61 = vmul.f32 %v14120_v15, %v5293_v4  ;;  %v5411_v7 = vmul.f32 %v5351_v48, %v5351_v48  ;;  %v5357_v15 = vmul.f32 %v12128_v57, %v5297_v34 }
 0x611   :  { %v5505_v24 = vadd.f32 %v5504_v5, %v5503_v38  ;;  %v5296_v38 = vsub.f32 %v14121_v40, %v12255_v11  ;;  %v5354_v5 = vmul.f32 %v14122_v6, %v5294_v56  ;;  %v5514_v4 = vsel %vm5120_vm1, %v5411_v7, 0.0 }
 0x612   :  { %v5300_v7 = vsub.f32 %v12174_v63, %v12255_v11 }
 0x613   :  { %v5507_v43 = vadd.f32 %v5506_v46, %v5505_v24  ;;  %v5412_v24 = vmul.f32 %v5352_v29, %v5352_v29  ;;  %v5355_v46 = vmul.f32 %v14123_v23, %v5295_v31  ;;  %v5417_v23 = vmul.f32 %v5357_v15, %v5357_v15 }
 0x615   :  { %v5509_v58 = vadd.f32 %v5508_v41, %v5507_v43  ;;  %v5413_v43 = vmul.f32 %v5353_v61, %v5353_v61  ;;  %v5356_v41 = vmul.f32 %v14124_v62, %v5296_v38  ;;  %v5516_v56 = vsel %vm5120_vm1, %v5412_v24, 0.0 }
 0x616   :  { %v5301_v24 = vsub.f32 %v12190_v17, %v12255_v11  ;;  %v5303_v62 = vsub.f32 %v12214_v44, %v12255_v11 }
 0x617   :  { %v5511_v1 = vadd.f32 %v5510_v28, %v5509_v58  ;;  %v5414_v58 = vmul.f32 %v5354_v5, %v5354_v5  ;;  %v5415_v28 = vmul.f32 %v5355_v46, %v5355_v46  ;;  %v5518_v31 = vsel %vm5120_vm1, %v5413_v43, 0.0 }
 0x618   :  { %v5302_v46 = vsub.f32 %v12203_v19, %v12255_v11  ;;  %v5360_v43 = vmul.f32 %v12178_v16, %v5300_v7 }
 0x619   :  { %v5513_v0 = vadd.f32 %v5512_v50, %v5511_v1  ;;  %v14125_v1 = vld [vmem:[#allocation62_spill] sm:$0xff]  ;;  %v5416_v50 = vmul.f32 %v5356_v41, %v5356_v41  ;;  %v5520_v38 = vsel %vm5120_vm1, %v5414_v58, 0.0  ;;  %v5522_v57 = vsel %vm5120_vm1, %v5415_v28, 0.0 }
 0x61a   :  { %v5358_v6 = vmul.f32 %v14125_v1, %v5298_v8  ;;  %v5361_v41 = vmul.f32 %v12182_v13, %v5301_v24  ;;  %v5420_v15 = vmul.f32 %v5360_v43, %v5360_v43 }
 0x61b   :  { %v5515_v48 = vadd.f32 %v5514_v4, %v5513_v0  ;;  %v5359_v0 = vmul.f32 %v12155_v30, %v5299_v37  ;;  %v5526_v30 = vsel %vm5120_vm1, %v5417_v23, 0.0  ;;  %v5362_v37 = vmul.f32 %v12207_v51, %v5302_v46 }
 0x61c   :  { %v5418_v4 = vmul.f32 %v5358_v6, %v5358_v6  ;;  %v5421_v7 = vmul.f32 %v5361_v41, %v5361_v41  ;;  %v5306_v6 = vsub.f32 %v12242_v36, %v12255_v11  ;;  %v5532_v51 = vsel %vm5120_vm1, %v5420_v15, 0.0 }
 0x61d   :  { %v5517_v29 = vadd.f32 %v5516_v56, %v5515_v48  ;;  %v5524_v48 = vsel %vm5120_vm1, %v5416_v50, 0.0  ;;  %v5419_v58 = vmul.f32 %v5359_v0, %v5359_v0 }
 0x61e   :  { %v5528_v16 = vsel %vm5120_vm1, %v5418_v4, 0.0  ;;  %v5534_v23 = vsel %vm5120_vm1, %v5421_v7, 0.0 }
 0x61f   :  { %v5519_v61 = vadd.f32 %v5518_v31, %v5517_v29  ;;  %v5304_v29 = vsub.f32 %v12226_v14, %v12255_v11  ;;  %v5305_v31 = vsub.f32 %v12234_v47, %v12255_v11  ;;  %v5530_v13 = vsel %vm5120_vm1, %v5419_v58, 0.0 }
 0x621   :  { %v5521_v5 = vadd.f32 %v5520_v38, %v5519_v61  ;;  %v5363_v61 = vmul.f32 %v12220_v35, %v5303_v62  ;;  %v5364_v50 = vmul.f32 %v12229_v54, %v5304_v29  ;;  %v5422_v38 = vmul.f32 %v5362_v37, %v5362_v37 }
 0x622   :  { %v5365_v24 = vmul.f32 %v12237_v26, %v5305_v31  ;;  %v5366_v35 = vmul.f32 %v12245_v12, %v5306_v6 }
 0x623   :  { %v5523_v34 = vadd.f32 %v5522_v57, %v5521_v5  ;;  %v5423_v0 = vmul.f32 %v5363_v61, %v5363_v61  ;;  %v5536_v46 = vsel %vm5120_vm1, %v5422_v38, 0.0  ;;  %v5058_v38 = vld [vmem:[%s13513_s2] sm:$0x1] }
 0x624   :  { %v5425_v4 = vmul.f32 %v5365_v24, %v5365_v24 }
 0x625   :  { %v5525_v8 = vadd.f32 %v5524_v48, %v5523_v34  ;;  %v5424_v34 = vmul.f32 %v5364_v50, %v5364_v50  ;;  %v5538_v48 = vsel %vm5120_vm1, %v5423_v0, 0.0  ;;  %v5059_v0 = vld [vmem:[%s13514_s3] sm:$0x1] }
 0x626   :  { %v5542_v26 = vsel %vm5120_vm1, %v5425_v4, 0.0 }
 0x627   :  { %v5527_v56 = vadd.f32 %v5526_v30, %v5525_v8  ;;  %v5426_v8 = vmul.f32 %v5366_v35, %v5366_v35  ;;  %v5540_v62 = vsel %vm5120_vm1, %v5424_v34, 0.0 }
 0x629   :  { %v5529_v28 = vadd.f32 %v5528_v16, %v5527_v56  ;;  %v5544_v30 = vsel %vm5120_vm1, %v5426_v8, 0.0 }
 0x62b   :  { %v5531_v1 = vadd.f32 %v5530_v13, %v5529_v28 }
 0x62d   :  { %v5533_v5 = vadd.f32 %v5532_v51, %v5531_v1 }
 0x62f   :  { %v5535_v57 = vadd.f32 %v5534_v23, %v5533_v5 }
 0x631   :  { %v5537_v43 = vadd.f32 %v5536_v46, %v5535_v57 }
 0x633   :  { %v5539_v54 = vadd.f32 %v5538_v48, %v5537_v43 }
 0x635   :  { %v5541_v41 = vadd.f32 %v5540_v62, %v5539_v54  ;;  %v14126_v62 = vld [vmem:[#allocation36_spill] sm:$0xff] }
 0x637   :  { %v5543_v58 = vadd.f32 %v5542_v26, %v5541_v41  ;;  %v14127_v41 = vld [vmem:[#allocation95_spill] sm:$0xff] }
 0x638   :  { %v14128_v26 = vld [vmem:[#allocation39_spill] sm:$0xff] }
 0x639   :  { %v5545_v56 = vadd.f32 %v5544_v30, %v5543_v58  ;;  %v14129_v30 = vld [vmem:[#allocation98_spill] sm:$0xff] }
 0x63b   :  { %v5546_v29 = vrot.slane %v5545_v56, 4 }
 0x63d   :  { %v5547_v12 = vadd.f32 %v5546_v29, %v5545_v56  ;;  %v14130_v29 = vld [vmem:[#allocation100_spill] sm:$0xff] }
 0x63f   :  { %v5548_v37 = vrot.slane %v5547_v12, 2 }
 0x641   :  { %v5549_v15 = vadd.f32 %v5548_v37, %v5547_v12  ;;  %v14131_v37 = vld [vmem:[#allocation103_spill] sm:$0xff] }
 0x643   :  { %v5550_v16 = vrot.slane %v5549_v15, 1 }
 0x645   :  { %v5551_v28 = vadd.f32 %v5550_v16, %v5549_v15  ;;  %v14132_v16 = vld [vmem:[#allocation107_spill] sm:$0xff] }
 0x647   :  { %v5552_v31 = vmul.f32 0.0025510204, %v5551_v28  ;;  %v14133_v28 = vld [vmem:[#allocation54_spill] sm:$0xff] }
 0x649   :  { %v5553_v61 = vadd.f32 1e-05, %v5552_v31 }
 0x64b   :  { %8189 = vrsqrt.f32 %v5553_v61  ;;  %vm5560_vm4 = vweird.f32 %v5553_v61 }
 0x651   :  { %v8190_v7 = vpop.eup %8189 }
 0x652   :  { %v5555_v13 = vmul.f32 %v8190_v7, %v5553_v61  ;;  %vm5561_vm3 = vweird.f32 %v8190_v7 }
 0x653   :  { %vm5562_vm5 = vmor %vm5560_vm4, %vm5561_vm3 }
 0x654   :  { %v5556_v1 = vmul.f32 %v8190_v7, %v5555_v13 }
 0x656   :  { %v5557_v6 = vmul.f32 0.5, %v5556_v1 }
 0x658   :  { %v5558_v50 = vsub.f32 1.5, %v5557_v6 }
 0x65a   :  { %v5559_v51 = vmul.f32 %v8190_v7, %v5558_v50 }
 0x65c   :  { %v5563_v5 = vsel %vm5562_vm5, %v8190_v7, %v5559_v51 }
 0x65d   :  { %v5564_v24 = vmul.f32 %v5563_v5, %v5058_v38 }
 0x65f   :  { %v5565_v23 = vmul.f32 %v5564_v24, %v12255_v11  ;;  %v12504_v57 = vperm.slane %v5564_v24, 0 }
 0x661   :  { %v5566_v35 = vsub.f32 %v5059_v0, %v5565_v23  ;;  %v5628_v34 = vmul.f32 %v12504_v57, %v12234_v47  ;;  %v5629_v46 = vmul.f32 %v12504_v57, %v12242_v36  ;;  %v5570_v11 = vmul.f32 %v12504_v57, %v14043_v33 }
 0x662   :  { %v5571_v47 = vmul.f32 %v12504_v57, %v14126_v62  ;;  %v5572_v36 = vmul.f32 %v12504_v57, %v14127_v41  ;;  %v5573_v58 = vmul.f32 %v12504_v57, %v14128_v26  ;;  %v5574_v56 = vmul.f32 %v12504_v57, %v14129_v30 }
 0x663   :  { %v12510_v43 = vperm.slane %v5566_v35, 0  ;;  %v5575_v12 = vmul.f32 %v12504_v57, %v14130_v29  ;;  %v5576_v15 = vmul.f32 %v12504_v57, %v14131_v37  ;;  %v5577_v33 = vmul.f32 %v12504_v57, %v14132_v16  ;;  %v14134_v37 = vld [vmem:[#allocation5_spill] sm:$0xff] }
 0x664   :  { %v5578_v31 = vmul.f32 %v12504_v57, %v14133_v28  ;;  %v5608_v61 = vmul.f32 %v12504_v57, %v11145_v22  ;;  %v5609_v7 = vmul.f32 %v12504_v57, %v14111_v53  ;;  %v5610_v13 = vmul.f32 %v12504_v57, %v11193_v20 }
 0x665   :  { %v5691_v4 = vadd.f32 %v12510_v43, %v5628_v34  ;;  %v5692_v48 = vadd.f32 %v12510_v43, %v5629_v46  ;;  %v5611_v1 = vmul.f32 %v12504_v57, %v11263_v21  ;;  %v5612_v6 = vmul.f32 %v12504_v57, %v11339_v9 }
 0x666   :  { %v5613_v50 = vmul.f32 %v12504_v57, %v11396_v42  ;;  %v5614_v38 = vmul.f32 %v12504_v57, %v11440_v55  ;;  %v5615_v22 = vmul.f32 %v12504_v57, %v11492_v60  ;;  %v5616_v53 = vmul.f32 %v12504_v57, %v11538_v52 }
 0x667   :  { %v5751_v54 = vmax.f32 %v5691_v4, 0.0  ;;  %v5752_v8 = vmax.f32 %v5692_v48, 0.0  ;;  %v5617_v20 = vmul.f32 %v12504_v57, %v14117_v39  ;;  %v5618_v21 = vmul.f32 %v12504_v57, %v14119_v45 }
 0x668   :  { %v5619_v9 = vmul.f32 %v12504_v57, %v14121_v40  ;;  %v5620_v42 = vmul.f32 %v12504_v57, %v12139_v32  ;;  %v5621_v55 = vmul.f32 %v12504_v57, %v12143_v18  ;;  %v5622_v60 = vmul.f32 %v12504_v57, %v12163_v27 }
 0x669   :  { %5811 = vst.msk [vmem:[#allocation2 + $0x1d0] sm:$0xff] %vm5120_vm1, %v5751_v54  ;;  %v5623_v52 = vmul.f32 %v12504_v57, %v12174_v63  ;;  %v5624_v39 = vmul.f32 %v12504_v57, %v12190_v17  ;;  %v5625_v45 = vmul.f32 %v12504_v57, %v12203_v19  ;;  %v5626_v40 = vmul.f32 %v12504_v57, %v12214_v44 }
 0x66a   :  { %5812 = vst.msk [vmem:[#allocation2 + $0x1d8] sm:$0xff] %vm5120_vm1, %v5752_v8  ;;  %v5627_v32 = vmul.f32 %v12504_v57, %v12226_v14  ;;  %v5633_v18 = vadd.f32 %v12510_v43, %v5570_v11  ;;  %v5634_v51 = vadd.f32 %v12510_v43, %v5571_v47  ;;  %v5635_v27 = vadd.f32 %v12510_v43, %v5572_v36 }
 0x66b   :  { %v5636_v63 = vadd.f32 %v12510_v43, %v5573_v58  ;;  %v5637_v5 = vadd.f32 %v12510_v43, %v5574_v56  ;;  %v5638_v17 = vadd.f32 %v12510_v43, %v5575_v12  ;;  %v12581_v19 = vadd.f32 %v12510_v43, %v5608_v61 }
 0x66c   :  { %v12584_v44 = vadd.f32 %v12510_v43, %v5609_v7  ;;  %v12587_v14 = vadd.f32 %v12510_v43, %v5610_v13  ;;  %v12590_v24 = vadd.f32 %v12510_v43, %v5611_v1  ;;  %v12593_v0 = vadd.f32 %v12510_v43, %v5612_v6  ;;  %v14135_v7 = vld [vmem:[#allocation6_spill] sm:$0xff] }
 0x66d   :  { %v12596_v23 = vadd.f32 %v12510_v43, %v5613_v50  ;;  %v12599_v35 = vadd.f32 %v12510_v43, %v5614_v38  ;;  %v12602_v34 = vadd.f32 %v12510_v43, %v5615_v22  ;;  %v12605_v46 = vadd.f32 %v12510_v43, %v5616_v53  ;;  %v14136_v50 = vld [vmem:[#allocation7_spill] sm:$0xff]  ;;  %v14137_v53 = vld [vmem:[#allocation8_spill] sm:$0xff] }
 0x66e   :  { %v12608_v4 = vadd.f32 %v12510_v43, %v5617_v20  ;;  %v12611_v48 = vadd.f32 %v12510_v43, %v5618_v21  ;;  %v12614_v54 = vadd.f32 %v12510_v43, %v5619_v9  ;;  %v12617_v8 = vadd.f32 %v12510_v43, %v5620_v42 }
 0x66f   :  { %v12620_v11 = vadd.f32 %v12510_v43, %v5621_v55  ;;  %v12623_v62 = vadd.f32 %v12510_v43, %v5622_v60  ;;  %v12626_v47 = vadd.f32 %v12510_v43, %v5623_v52  ;;  %v12629_v41 = vadd.f32 %v12510_v43, %v5624_v39  ;;  %v14139_v60 = vld [vmem:[#allocation10_spill] sm:$0xff] }
 0x670   :  { %v12632_v36 = vadd.f32 %v12510_v43, %v5625_v45  ;;  %v12635_v26 = vadd.f32 %v12510_v43, %v5626_v40  ;;  %v12638_v58 = vadd.f32 %v12510_v43, %v5627_v32  ;;  %v5639_v30 = vadd.f32 %v12510_v43, %v5576_v15  ;;  %v14140_v40 = vld [vmem:[#allocation11_spill] sm:$0xff] }
 0x671   :  { %v5693_v56 = vmax.f32 %v5633_v18, 0.0  ;;  %v5694_v29 = vmax.f32 %v5634_v51, 0.0  ;;  %v5695_v12 = vmax.f32 %v5635_v27, 0.0  ;;  %v5579_v16 = vmul.f32 %v12504_v57, %v14134_v37  ;;  %v14141_v27 = vld [vmem:[#allocation42_spill] sm:$0xff]  ;;  %v14143_v37 = vld [vmem:[#allocation69_spill] sm:$0xff] }
 0x672   :  { %v5640_v28 = vadd.f32 %v12510_v43, %v5577_v33  ;;  %v5696_v61 = vmax.f32 %v5636_v63, 0.0  ;;  %v5580_v13 = vmul.f32 %v12504_v57, %v14135_v7  ;;  %v5641_v1 = vadd.f32 %v12510_v43, %v5578_v31  ;;  %v14138_v31 = vld [vmem:[#allocation9_spill] sm:$0xff]  ;;  %v14144_v7 = vld [vmem:[#allocation14_spill] sm:$0xff] }
 0x673   :  { %v5697_v6 = vmax.f32 %v5637_v5, 0.0  ;;  %5753 = vst.msk [vmem:[#allocation2] sm:$0xff] %vm5120_vm1, %v5693_v56  ;;  %v5581_v15 = vmul.f32 %v12504_v57, %v14136_v50  ;;  %v5642_v38 = vadd.f32 %v12510_v43, %v5579_v16  ;;  %v5698_v22 = vmax.f32 %v5638_v17, 0.0  ;;  %v14145_v50 = vld [vmem:[#allocation71_spill] sm:$0xff] }
 0x674   :  { %5754 = vst.msk [vmem:[#allocation2 + $0x8] sm:$0xff] %vm5120_vm1, %v5694_v29  ;;  %v5582_v33 = vmul.f32 %v12504_v57, %v14137_v53  ;;  %v5643_v20 = vadd.f32 %v12510_v43, %v5580_v13  ;;  %v5699_v21 = vmax.f32 %v5639_v30, 0.0  ;;  %v5583_v9 = vmul.f32 %v12504_v57, %v14138_v31  ;;  %v14142_v30 = vld [vmem:[#allocation68_spill] sm:$0xff]  ;;  %v14146_v53 = vld [vmem:[#allocation17_spill] sm:$0xff]  ;;  %v14147_v31 = vld [vmem:[#allocation43_spill] sm:$0xff] }
 0x675   :  { %5755 = vst.msk [vmem:[#allocation2 + $0x10] sm:$0xff] %vm5120_vm1, %v5695_v12  ;;  %v5644_v42 = vadd.f32 %v12510_v43, %v5581_v15  ;;  %v5700_v55 = vmax.f32 %v5640_v28, 0.0  ;;  %v5584_v52 = vmul.f32 %v12504_v57, %v14139_v60  ;;  %v5701_v45 = vmax.f32 %v5641_v1, 0.0  ;;  %v14148_v60 = vld [vmem:[#allocation44_spill] sm:$0xff] }
 0x676   :  { %5756 = vst.msk [vmem:[#allocation2 + $0x18] sm:$0xff] %vm5120_vm1, %v5696_v61  ;;  %v5645_v39 = vadd.f32 %v12510_v43, %v5582_v33  ;;  %v5585_v32 = vmul.f32 %v12504_v57, %v14140_v40  ;;  %v5646_v18 = vadd.f32 %v12510_v43, %v5583_v9  ;;  %v5702_v51 = vmax.f32 %v5642_v38, 0.0  ;;  %v14149_v40 = vld [vmem:[#allocation19_spill] sm:$0xff] }
 0x677   :  { %5757 = vst.msk [vmem:[#allocation2 + $0x20] sm:$0xff] %vm5120_vm1, %v5697_v6  ;;  %v5586_v63 = vmul.f32 %v12504_v57, %v14141_v27  ;;  %v5647_v5 = vadd.f32 %v12510_v43, %v5584_v52  ;;  %v5703_v17 = vmax.f32 %v5643_v20, 0.0  ;;  %v5587_v56 = vmul.f32 %v12504_v57, %v14142_v30  ;;  %v14150_v27 = vld [vmem:[#allocation75_spill] sm:$0xff]  ;;  %v14151_v30 = vld [vmem:[#allocation46_spill] sm:$0xff] }
 0x678   :  { %5758 = vst.msk [vmem:[#allocation2 + $0x28] sm:$0xff] %vm5120_vm1, %v5698_v22  ;;  %v5648_v29 = vadd.f32 %v12510_v43, %v5585_v32  ;;  %v5704_v12 = vmax.f32 %v5644_v42, 0.0  ;;  %v5588_v16 = vmul.f32 %v12504_v57, %v14143_v37  ;;  %v5705_v61 = vmax.f32 %v5645_v39, 0.0  ;;  %v14152_v37 = vld [vmem:[#allocation26_spill] sm:$0xff] }
 0x679   :  { %5759 = vst.msk [vmem:[#allocation2 + $0x30] sm:$0xff] %vm5120_vm1, %v5699_v21  ;;  %v5649_v28 = vadd.f32 %v12510_v43, %v5586_v63  ;;  %v5589_v13 = vmul.f32 %v12504_v57, %v14144_v7  ;;  %v5650_v1 = vadd.f32 %v12510_v43, %v5587_v56  ;;  %v5706_v6 = vmax.f32 %v5646_v18, 0.0 }
 0x67a   :  { %5760 = vst.msk [vmem:[#allocation2 + $0x38] sm:$0xff] %vm5120_vm1, %v5700_v55  ;;  %v5590_v15 = vmul.f32 %v12504_v57, %v14145_v50  ;;  %v5651_v38 = vadd.f32 %v12510_v43, %v5588_v16  ;;  %v5707_v22 = vmax.f32 %v5647_v5, 0.0  ;;  %v5591_v33 = vmul.f32 %v12504_v57, %v14146_v53 }
 0x67b   :  { %5761 = vst.msk [vmem:[#allocation2 + $0x40] sm:$0xff] %vm5120_vm1, %v5701_v45  ;;  %v5652_v20 = vadd.f32 %v12510_v43, %v5589_v13  ;;  %v5708_v21 = vmax.f32 %v5648_v29, 0.0  ;;  %v5592_v9 = vmul.f32 %v12504_v57, %v14147_v31  ;;  %v5709_v55 = vmax.f32 %v5649_v28, 0.0 }
 0x67c   :  { %5762 = vst.msk [vmem:[#allocation2 + $0x48] sm:$0xff] %vm5120_vm1, %v5702_v51  ;;  %v5653_v42 = vadd.f32 %v12510_v43, %v5590_v15  ;;  %v5593_v52 = vmul.f32 %v12504_v57, %v14148_v60  ;;  %v5654_v39 = vadd.f32 %v12510_v43, %v5591_v33  ;;  %v5710_v45 = vmax.f32 %v5650_v1, 0.0 }
 0x67d   :  { %5763 = vst.msk [vmem:[#allocation2 + $0x50] sm:$0xff] %vm5120_vm1, %v5703_v17  ;;  %v5594_v32 = vmul.f32 %v12504_v57, %v14149_v40  ;;  %v5655_v18 = vadd.f32 %v12510_v43, %v5592_v9  ;;  %v5711_v51 = vmax.f32 %v5651_v38, 0.0  ;;  %v5595_v63 = vmul.f32 %v12504_v57, %v14150_v27 }
 0x67e   :  { %5764 = vst.msk [vmem:[#allocation2 + $0x58] sm:$0xff] %vm5120_vm1, %v5704_v12  ;;  %v5656_v5 = vadd.f32 %v12510_v43, %v5593_v52  ;;  %v5712_v17 = vmax.f32 %v5652_v20, 0.0  ;;  %v5596_v56 = vmul.f32 %v12504_v57, %v14151_v30  ;;  %v5713_v12 = vmax.f32 %v5653_v42, 0.0  ;;  %v5835_v30 = vld [vmem:[#allocation2 + $0x11] ss:$2 sm:$0x7f] }
 0x67f   :  { %5765 = vst.msk [vmem:[#allocation2 + $0x60] sm:$0xff] %vm5120_vm1, %v5705_v61  ;;  %v5657_v29 = vadd.f32 %v12510_v43, %v5594_v32  ;;  %v5597_v16 = vmul.f32 %v12504_v57, %v14152_v37  ;;  %v5658_v28 = vadd.f32 %v12510_v43, %v5595_v63  ;;  %v5714_v61 = vmax.f32 %v5654_v39, 0.0 }
 0x680   :  { %5766 = vst.msk [vmem:[#allocation2 + $0x68] sm:$0xff] %vm5120_vm1, %v5706_v6  ;;  %v5659_v7 = vadd.f32 %v12510_v43, %v5596_v56  ;;  %v5715_v13 = vmax.f32 %v5655_v18, 0.0  ;;  %v5716_v6 = vmax.f32 %v5656_v5, 0.0  ;;  %v5602_v38 = vmul.f32 %v12504_v57, %v14105_v59  ;;  %v5831_v5 = vld [vmem:[#allocation2 + $0x1] ss:$2 sm:$0x7f] }
 0x681   :  { %5767 = vst.msk [vmem:[#allocation2 + $0x70] sm:$0xff] %vm5120_vm1, %v5707_v22  ;;  %v5660_v1 = vadd.f32 %v12510_v43, %v5597_v16  ;;  %v5717_v50 = vmax.f32 %v5657_v29, 0.0  ;;  %v5718_v15 = vmax.f32 %v5658_v28, 0.0  ;;  %v5603_v53 = vmul.f32 %v12504_v57, %v14107_v10  ;;  %v5842_v56 = vld [vmem:[#allocation2 + $0x20] ss:$2 sm:$0x7f] }
 0x682   :  { %5768 = vst.msk [vmem:[#allocation2 + $0x78] sm:$0xff] %vm5120_vm1, %v5708_v21  ;;  %v5719_v22 = vmax.f32 %v5659_v7, 0.0  ;;  %v5604_v20 = vmul.f32 %v12504_v57, %v11874_v25  ;;  %v5665_v21 = vadd.f32 %v12510_v43, %v5602_v38  ;;  %v5605_v31 = vmul.f32 %v12504_v57, %v11890_v2 }
 0x683   :  { %5769 = vst.msk [vmem:[#allocation2 + $0x80] sm:$0xff] %vm5120_vm1, %v5709_v55  ;;  %v5720_v33 = vmax.f32 %v5660_v1, 0.0  ;;  %v5666_v59 = vadd.f32 %v12510_v43, %v5603_v53  ;;  %v5606_v10 = vmul.f32 %v12504_v57, %v11121_v49  ;;  %v5607_v25 = vmul.f32 %v12504_v57, %v11129_v3  ;;  %v5856_v1 = vld [vmem:[#allocation2 + $0x41] ss:$2 sm:$0x7f] }
 0x684   :  { %5770 = vst.msk [vmem:[#allocation2 + $0x88] sm:$0xff] %vm5120_vm1, %v5710_v45  ;;  %v5667_v9 = vadd.f32 %v12510_v43, %v5604_v20  ;;  %v5668_v42 = vadd.f32 %v12510_v43, %v5605_v31  ;;  %v5725_v55 = vmax.f32 %v5665_v21, 0.0  ;;  %v5731_v3 = vmax.f32 %v12581_v19, 0.0 }
 0x685   :  { %5771 = vst.msk [vmem:[#allocation2 + $0x90] sm:$0xff] %vm5120_vm1, %v5711_v51  ;;  %v5669_v2 = vadd.f32 %v12510_v43, %v5606_v10  ;;  %v5670_v60 = vadd.f32 %v12510_v43, %v5607_v25  ;;  %v5726_v52 = vmax.f32 %v5666_v59, 0.0  ;;  %v5732_v57 = vmax.f32 %v12584_v44, 0.0  ;;  %v8098_v44 = vld [vmem:[%s13512_s4 + $0x48] sm:$0xff] }
 0x686   :  { %5772 = vst.msk [vmem:[#allocation2 + $0x98] sm:$0xff] %vm5120_vm1, %v5712_v17  ;;  %v5727_v39 = vmax.f32 %v5667_v9, 0.0  ;;  %v5728_v45 = vmax.f32 %v5668_v42, 0.0  ;;  %v5733_v32 = vmax.f32 %v12587_v14, 0.0  ;;  %v5734_v43 = vmax.f32 %v12590_v24, 0.0  ;;  %v8113_v14 = vld [vmem:[%s13512_s4 + $0x58] sm:$0xff]  ;;  %6535 = vmatpush.msra.mxu2 %v8098_v44 }
 0x687   :  { %5773 = vst.msk [vmem:[#allocation2 + $0xa0] sm:$0xff] %vm5120_vm1, %v5713_v12  ;;  %v5729_v49 = vmax.f32 %v5669_v2, 0.0  ;;  %v5730_v40 = vmax.f32 %v5670_v60, 0.0  ;;  %v5735_v18 = vmax.f32 %v12593_v0, 0.0  ;;  %v5736_v19 = vmax.f32 %v12596_v23, 0.0  ;;  %6659 = vmatpush.msra.mxu3 %v8113_v14  ;;  %v8083_v0 = vld [vmem:[%s13512_s4 + $0x38] sm:$0xff] }
 0x688   :  { %5774 = vst.msk [vmem:[#allocation2 + $0xa8] sm:$0xff] %vm5120_vm1, %v5714_v61  ;;  %v5737_v24 = vmax.f32 %v12599_v35, 0.0  ;;  %v5738_v23 = vmax.f32 %v12602_v34, 0.0  ;;  %6411 = vmatpush.msra.mxu1 %v8083_v0  ;;  %v5739_v51 = vmax.f32 %v12605_v46, 0.0  ;;  %v5740_v27 = vmax.f32 %v12608_v4, 0.0 }
 0x689   :  { %5775 = vst.msk [vmem:[#allocation2 + $0xb0] sm:$0xff] %vm5120_vm1, %v5715_v13  ;;  %v5741_v35 = vmax.f32 %v12611_v48, 0.0  ;;  %v5742_v63 = vmax.f32 %v12614_v54, 0.0  ;;  %v5829_v34 = vld [vmem:[#allocation2] ss:$2 sm:$0x7f] }
 0x68a   :  { %5776 = vst.msk [vmem:[#allocation2 + $0xb8] sm:$0xff] %vm5120_vm1, %v5716_v6  ;;  %v5833_v17 = vld [vmem:[#allocation2 + $0x10] ss:$2 sm:$0x7f]  ;;  %v5743_v46 = vmax.f32 %v12617_v8, 0.0  ;;  %v5744_v29 = vmax.f32 %v12620_v11, 0.0  ;;  %v5836_v16 = vmax.f32 %v5829_v34, %v5831_v5 }
 0x68b   :  { %5777 = vst.msk [vmem:[#allocation2 + $0xc0] sm:$0xff] %vm5120_vm1, %v5717_v50  ;;  %v5844_v4 = vld [vmem:[#allocation2 + $0x21] ss:$2 sm:$0x7f]  ;;  %v5745_v12 = vmax.f32 %v12623_v62, 0.0  ;;  %v5746_v37 = vmax.f32 %v12626_v47, 0.0  ;;  %v5837_v28 = vmax.f32 %v5833_v17, %v5835_v30 }
 0x68c   :  { %5778 = vst.msk [vmem:[#allocation2 + $0xc8] sm:$0xff] %vm5120_vm1, %v5718_v15  ;;  %v5846_v48 = vld [vmem:[#allocation2 + $0x30] ss:$2 sm:$0x7f]  ;;  %v5747_v8 = vmax.f32 %v12629_v41, 0.0  ;;  %v5748_v11 = vmax.f32 %v12632_v36, 0.0  ;;  %v5849_v61 = vmax.f32 %v5842_v56, %v5844_v4 }
 0x68d   :  { %5779 = vst.msk [vmem:[#allocation2 + $0xd0] sm:$0xff] %vm5120_vm1, %v5719_v22  ;;  %v5848_v54 = vld [vmem:[#allocation2 + $0x31] ss:$2 sm:$0x7f]  ;;  %v5749_v62 = vmax.f32 %v12635_v26, 0.0  ;;  %v5750_v47 = vmax.f32 %v12638_v58, 0.0  ;;  %v5838_v41 = vmax.f32 %v5836_v16, %v5837_v28 }
 0x68e   :  { %5780 = vst.msk [vmem:[#allocation2 + $0xd8] sm:$0xff] %vm5120_vm1, %v5720_v33  ;;  %v5850_v7 = vmax.f32 %v5846_v48, %v5848_v54  ;;  %v5854_v36 = vld [vmem:[#allocation2 + $0x40] ss:$2 sm:$0x7f] }
 0x68f   :  { %5785 = vst.msk [vmem:[#allocation2 + $0x100] sm:$0xff] %vm5120_vm1, %v5725_v55  ;;  %v5858_v26 = vld [vmem:[#allocation2 + $0x50] ss:$2 sm:$0x7f] }
 0x690   :  { %5786 = vst.msk [vmem:[#allocation2 + $0x108] sm:$0xff] %vm5120_vm1, %v5726_v52  ;;  %v5851_v13 = vmax.f32 %v5849_v61, %v5850_v7  ;;  %v5860_v6 = vld [vmem:[#allocation2 + $0x51] ss:$2 sm:$0x7f] }
 0x691   :  { %5787 = vst.msk [vmem:[#allocation2 + $0x110] sm:$0xff] %vm5120_vm1, %v5727_v39  ;;  %v5866_v58 = vld [vmem:[#allocation2 + $0x60] ss:$2 sm:$0x7f] }
 0x692   :  { %5788 = vst.msk [vmem:[#allocation2 + $0x118] sm:$0xff] %vm5120_vm1, %v5728_v45  ;;  %v5868_v50 = vld [vmem:[#allocation2 + $0x61] ss:$2 sm:$0x7f]  ;;  %v5861_v45 = vmax.f32 %v5854_v36, %v5856_v1 }
 0x693   :  { %5789 = vst.msk [vmem:[#allocation2 + $0x120] sm:$0xff] %vm5120_vm1, %v5729_v49  ;;  %v5870_v15 = vld [vmem:[#allocation2 + $0x70] ss:$2 sm:$0x7f]  ;;  %v5862_v49 = vmax.f32 %v5858_v26, %v5860_v6 }
 0x694   :  { %5790 = vst.msk [vmem:[#allocation2 + $0x128] sm:$0xff] %vm5120_vm1, %v5730_v40  ;;  %v5872_v38 = vld [vmem:[#allocation2 + $0x71] ss:$2 sm:$0x7f] }
 0x695   :  { %5791 = vst.msk [vmem:[#allocation2 + $0x130] sm:$0xff] %vm5120_vm1, %v5731_v3  ;;  %v5878_v22 = vld [vmem:[#allocation2 + $0x80] ss:$2 sm:$0x7f]  ;;  %v5863_v4 = vmax.f32 %v5861_v45, %v5862_v49 }
 0x696   :  { %5792 = vst.msk [vmem:[#allocation2 + $0x138] sm:$0xff] %vm5120_vm1, %v5732_v57  ;;  %v5880_v53 = vld [vmem:[#allocation2 + $0x81] ss:$2 sm:$0x7f] }
 0x697   :  { %5793 = vst.msk [vmem:[#allocation2 + $0x140] sm:$0xff] %vm5120_vm1, %v5733_v32  ;;  %v5882_v33 = vld [vmem:[#allocation2 + $0x90] ss:$2 sm:$0x7f]  ;;  %v5885_v0 = vmax.f32 %v5878_v22, %v5880_v53 }
 0x698   :  { %5794 = vst.msk [vmem:[#allocation2 + $0x148] sm:$0xff] %vm5120_vm1, %v5734_v43  ;;  %v5884_v20 = vld [vmem:[#allocation2 + $0x91] ss:$2 sm:$0x7f]  ;;  %v5873_v43 = vmax.f32 %v5866_v58, %v5868_v50 }
 0x699   :  { %5795 = vst.msk [vmem:[#allocation2 + $0x150] sm:$0xff] %vm5120_vm1, %v5735_v18  ;;  %v5890_v21 = vld [vmem:[#allocation2 + $0xa0] ss:$2 sm:$0x7f]  ;;  %v5874_v18 = vmax.f32 %v5870_v15, %v5872_v38 }
 0x69a   :  { %5796 = vst.msk [vmem:[#allocation2 + $0x158] sm:$0xff] %vm5120_vm1, %v5736_v19  ;;  %v5892_v31 = vld [vmem:[#allocation2 + $0xa1] ss:$2 sm:$0x7f] }
 0x69b   :  { %5797 = vst.msk [vmem:[#allocation2 + $0x160] sm:$0xff] %vm5120_vm1, %v5737_v24  ;;  %v5894_v59 = vld [vmem:[#allocation2 + $0xb0] ss:$2 sm:$0x7f]  ;;  %v5897_v34 = vmax.f32 %v5890_v21, %v5892_v31 }
 0x69c   :  { %5798 = vst.msk [vmem:[#allocation2 + $0x168] sm:$0xff] %vm5120_vm1, %v5738_v23  ;;  %v5896_v10 = vld [vmem:[#allocation2 + $0xb1] ss:$2 sm:$0x7f]  ;;  %v5886_v23 = vmax.f32 %v5882_v33, %v5884_v20 }
 0x69d   :  { %5799 = vst.msk [vmem:[#allocation2 + $0x170] sm:$0xff] %vm5120_vm1, %v5739_v51  ;;  %v5902_v9 = vld [vmem:[#allocation2 + $0xc0] ss:$2 sm:$0x7f]  ;;  %v5898_v5 = vmax.f32 %v5894_v59, %v5896_v10 }
 0x69e   :  { %5800 = vst.msk [vmem:[#allocation2 + $0x178] sm:$0xff] %vm5120_vm1, %v5740_v27  ;;  %v5904_v25 = vld [vmem:[#allocation2 + $0xc1] ss:$2 sm:$0x7f] }
 0x69f   :  { %5801 = vst.msk [vmem:[#allocation2 + $0x180] sm:$0xff] %vm5120_vm1, %v5741_v35  ;;  %v5906_v42 = vld [vmem:[#allocation2 + $0xd0] ss:$2 sm:$0x7f]  ;;  %v5899_v26 = vmax.f32 %v5897_v34, %v5898_v5 }
 0x6a0   :  { %5802 = vst.msk [vmem:[#allocation2 + $0x188] sm:$0xff] %vm5120_vm1, %v5742_v63  ;;  %v5908_v2 = vld [vmem:[#allocation2 + $0xd1] ss:$2 sm:$0x7f] }
 0x6a1   :  { %5803 = vst.msk [vmem:[#allocation2 + $0x190] sm:$0xff] %vm5120_vm1, %v5743_v46  ;;  %v5914_v55 = vld [vmem:[#allocation2 + $0x100] ss:$2 sm:$0x7f]  ;;  %v5910_v48 = vmax.f32 %v5906_v42, %v5908_v2 }
 0x6a2   :  { %5804 = vst.msk [vmem:[#allocation2 + $0x198] sm:$0xff] %vm5120_vm1, %v5744_v29  ;;  %v5916_v60 = vld [vmem:[#allocation2 + $0x101] ss:$2 sm:$0x7f]  ;;  %v5909_v29 = vmax.f32 %v5902_v9, %v5904_v25 }
 0x6a3   :  { %5805 = vst.msk [vmem:[#allocation2 + $0x1a0] sm:$0xff] %vm5120_vm1, %v5745_v12  ;;  %v5918_v52 = vld [vmem:[#allocation2 + $0x110] ss:$2 sm:$0x7f] }
 0x6a4   :  { %5806 = vst.msk [vmem:[#allocation2 + $0x1a8] sm:$0xff] %vm5120_vm1, %v5746_v37  ;;  %v5920_v39 = vld [vmem:[#allocation2 + $0x111] ss:$2 sm:$0x7f]  ;;  %v5875_v37 = vmax.f32 %v5873_v43, %v5874_v18  ;;  %v5911_v38 = vmax.f32 %v5909_v29, %v5910_v48 }
 0x6a5   :  { %5807 = vst.msk [vmem:[#allocation2 + $0x1b0] sm:$0xff] %vm5120_vm1, %v5747_v8  ;;  %v5926_v40 = vld [vmem:[#allocation2 + $0x120] ss:$2 sm:$0x7f]  ;;  %v5921_v8 = vmax.f32 %v5914_v55, %v5916_v60  ;;  %v5922_v16 = vmax.f32 %v5918_v52, %v5920_v39  ;;  %v8112_v43 = vld [vmem:[%s13512_s4 + $0x50] sm:$0xff] }
 0x6a6   :  { %5808 = vst.msk [vmem:[#allocation2 + $0x1b8] sm:$0xff] %vm5120_vm1, %v5748_v11  ;;  %v5928_v3 = vld [vmem:[#allocation2 + $0x121] ss:$2 sm:$0x7f]  ;;  %6660 = vmatpush.msra.mxu3 %v8112_v43 }
 0x6a7   :  { %5809 = vst.msk [vmem:[#allocation2 + $0x1c0] sm:$0xff] %vm5120_vm1, %v5749_v62  ;;  %v5930_v57 = vld [vmem:[#allocation2 + $0x130] ss:$2 sm:$0x7f]  ;;  %v5887_v62 = vmax.f32 %v5885_v0, %v5886_v23  ;;  %v5923_v33 = vmax.f32 %v5921_v8, %v5922_v16  ;;  %v8158_v8 = vld [vmem:[%s13512_s4 + $0x88] sm:$0xff] }
 0x6a8   :  { %5810 = vst.msk [vmem:[#allocation2 + $0x1c8] sm:$0xff] %vm5120_vm1, %v5750_v47  ;;  %v5932_v32 = vld [vmem:[#allocation2 + $0x131] ss:$2 sm:$0x7f]  ;;  %v5933_v47 = vmax.f32 %v5926_v40, %v5928_v3  ;;  %v8128_v16 = vld [vmem:[%s13512_s4 + $0x68] sm:$0xff] }
 0x6a9   :  { %5840 = vst.msk [vmem:[#allocation3] sm:$0x7f] %vm5839_vm6, %v5838_v41  ;;  %v5938_v19 = vld [vmem:[#allocation2 + $0x140] ss:$2 sm:$0x7f]  ;;  %v5934_v41 = vmax.f32 %v5930_v57, %v5932_v32 }
 0x6aa   :  { %5852 = vst.msk [vmem:[#allocation3 + $0x8] sm:$0x7f] %vm5839_vm6, %v5851_v13  ;;  %v5940_v44 = vld [vmem:[#allocation2 + $0x141] ss:$2 sm:$0x7f] }
 0x6ab   :  { %v5942_v14 = vld [vmem:[#allocation2 + $0x150] ss:$2 sm:$0x7f]  ;;  %v5944_v24 = vld [vmem:[#allocation2 + $0x151] ss:$2 sm:$0x7f]  ;;  %v5945_v6 = vmax.f32 %v5938_v19, %v5940_v44  ;;  %v5935_v31 = vmax.f32 %v5933_v47, %v5934_v41 }
 0x6ac   :  { %v5950_v51 = vld [vmem:[#allocation2 + $0x160] ss:$2 sm:$0x7f]  ;;  %v5952_v27 = vld [vmem:[#allocation2 + $0x161] ss:$2 sm:$0x7f]  ;;  %v5946_v58 = vmax.f32 %v5942_v14, %v5944_v24 }
 0x6ad   :  { %v5954_v35 = vld [vmem:[#allocation2 + $0x170] ss:$2 sm:$0x7f]  ;;  %v5956_v63 = vld [vmem:[#allocation2 + $0x171] ss:$2 sm:$0x7f]  ;;  %v5957_v22 = vmax.f32 %v5950_v51, %v5952_v27 }
 0x6ae   :  { %v5962_v17 = vld [vmem:[#allocation2 + $0x180] ss:$2 sm:$0x7f]  ;;  %v5964_v30 = vld [vmem:[#allocation2 + $0x181] ss:$2 sm:$0x7f]  ;;  %v5958_v53 = vmax.f32 %v5954_v35, %v5956_v63  ;;  %v5947_v9 = vmax.f32 %v5945_v6, %v5946_v58 }
 0x6af   :  { %v5966_v46 = vld [vmem:[#allocation2 + $0x190] ss:$2 sm:$0x7f]  ;;  %v5968_v56 = vld [vmem:[#allocation2 + $0x191] ss:$2 sm:$0x7f]  ;;  %v5969_v20 = vmax.f32 %v5962_v17, %v5964_v30 }
 0x6b0   :  { %v5974_v12 = vld [vmem:[#allocation2 + $0x1a0] ss:$2 sm:$0x7f]  ;;  %v5976_v54 = vld [vmem:[#allocation2 + $0x1a1] ss:$2 sm:$0x7f]  ;;  %v5970_v21 = vmax.f32 %v5966_v46, %v5968_v56  ;;  %v5959_v2 = vmax.f32 %v5957_v22, %v5958_v53 }
 0x6b1   :  { %v5990_v28 = vld [vmem:[#allocation2 + $0x1d0] ss:$2 sm:$0x7f]  ;;  %v5992_v11 = vld [vmem:[#allocation2 + $0x1d1] ss:$2 sm:$0x7f]  ;;  %v5981_v59 = vmax.f32 %v5974_v12, %v5976_v54 }
 0x6b2   :  { %v5978_v61 = vld [vmem:[#allocation2 + $0x1b0] ss:$2 sm:$0x7f]  ;;  %v5980_v7 = vld [vmem:[#allocation2 + $0x1b1] ss:$2 sm:$0x7f]  ;;  %v5994_v42 = vmax.f32 %v5990_v28, %v5992_v11  ;;  %v5971_v55 = vmax.f32 %v5969_v20, %v5970_v21 }
 0x6b3   :  { %v5986_v13 = vld [vmem:[#allocation2 + $0x1c0] ss:$2 sm:$0x7f]  ;;  %v5988_v50 = vld [vmem:[#allocation2 + $0x1c1] ss:$2 sm:$0x7f]  ;;  %v5982_v10 = vmax.f32 %v5978_v61, %v5980_v7 }
 0x6b4   :  { %v6012_v36 = vld [vmem:[#allocation3 + $0x1] sm:$0xff]  ;;  %5864 = vst.msk [vmem:[#allocation3 + $0x10] sm:$0x7f] %vm5839_vm6, %v5863_v4  ;;  %v5993_v25 = vmax.f32 %v5986_v13, %v5988_v50  ;;  %v8082_v14 = vld [vmem:[%s13512_s4 + $0x30] sm:$0xff]  ;;  %v12899_v17 = vld [vmem:[#allocation3 + $0x38] sm:$0xff] }
 0x6b5   :  { %v5997_v1 = vld [vmem:[#allocation3] sm:$0xff]  ;;  %8041 = vmatmul.msk.f32.vlgmr.msrb.gmra.mxu1 %vm5120_vm1, %v6012_v36  ;;  %5876 = vst.msk [vmem:[#allocation3 + $0x18] sm:$0x7f] %vm5839_vm6, %v5875_v37  ;;  %v5983_v60 = vmax.f32 %v5981_v59, %v5982_v10  ;;  %v12815_v39 = vld [vmem:[#allocation3 + $0x8] sm:$0xff]  ;;  %v8143_v37 = vld [vmem:[%s13512_s4 + $0x78] sm:$0xff] }
 0x6b6   :  { %8054 = vmatmul.msk.f32.vlgmr.msrb.gmra.mxu2 %vm5120_vm1, %v5997_v1  ;;  %v6218_v15 = vld [vmem:[#allocation3 + $0x2] sm:$0xff]  ;;  %5888 = vst.msk [vmem:[#allocation3 + $0x20] sm:$0x7f] %vm5839_vm6, %v5887_v62  ;;  %v5995_v45 = vmax.f32 %v5993_v25, %v5994_v42  ;;  %6412 = vmatpush.msra.mxu1 %v8082_v14 }
 0x6b7   :  { %8069 = vmatmul.msk.f32.vlgmr.msrb.gmra.mxu3 %vm5120_vm1, %v6218_v15  ;;  %5900 = vst.msk [vmem:[#allocation3 + $0x28] sm:$0x7f] %vm5839_vm6, %v5899_v26  ;;  %v8097_v32 = vld [vmem:[%s13512_s4 + $0x40] sm:$0xff]  ;;  %v8142_v26 = vld [vmem:[%s13512_s4 + $0x70] sm:$0xff] }
 0x6b8   :  { %5912 = vst.msk [vmem:[#allocation3 + $0x30] sm:$0x7f] %vm5839_vm6, %v5911_v38  ;;  %6536 = vmatpush.msra.mxu2 %v8097_v32  ;;  %7031 = vmatpush.msrb.mxu3 %v8158_v8  ;;  %v8157_v6 = vld [vmem:[%s13512_s4 + $0x80] sm:$0xff] }
 0x6b9   :  { %5924 = vst.msk [vmem:[#allocation3 + $0x40] sm:$0x7f] %vm5839_vm6, %v5923_v33  ;;  %6783 = vmatpush.msrb.mxu1 %v8128_v16  ;;  %v8127_v58 = vld [vmem:[%s13512_s4 + $0x60] sm:$0xff] }
 0x6ba   :  { %5936 = vst.msk [vmem:[#allocation3 + $0x48] sm:$0x7f] %vm5839_vm6, %v5935_v31  ;;  %6907 = vmatpush.msrb.mxu2 %v8143_v37  ;;  %7032 = vmatpush.msrb.mxu3 %v8157_v6 }
 0x6bb   :  { %v12813_v52 = vld [vmem:[#allocation3 + $0x9] sm:$0xff]  ;;  %5948 = vst.msk [vmem:[#allocation3 + $0x50] sm:$0x7f] %vm5839_vm6, %v5947_v9  ;;  %6784 = vmatpush.msrb.mxu1 %v8127_v58 }
 0x6bc   :  { %v12822_v49 = vld [vmem:[#allocation3 + $0xa] sm:$0xff]  ;;  %5960 = vst.msk [vmem:[#allocation3 + $0x58] sm:$0x7f] %vm5839_vm6, %v5959_v2  ;;  %v12838_v57 = vld [vmem:[#allocation3 + $0x12] sm:$0xff]  ;;  %6908 = vmatpush.msrb.mxu2 %v8142_v26 }
 0x6bd   :  { %8042 = vmatmul.msk.f32.gmra.mxu1 %vm5120_vm1, %v12813_v52  ;;  %5972 = vst.msk [vmem:[#allocation3 + $0x60] sm:$0x7f] %vm5839_vm6, %v5971_v55  ;;  %v12830_v40 = vld [vmem:[#allocation3 + $0x11] sm:$0xff]  ;;  %v12848_v18 = vld [vmem:[#allocation3 + $0x19] sm:$0xff] }
 0x6be   :  { %8055 = vmatmul.msk.f32.gmra.mxu2 %vm5120_vm1, %v12815_v39  ;;  %5984 = vst.msk [vmem:[#allocation3 + $0x68] sm:$0x7f] %vm5839_vm6, %v5983_v60  ;;  %v12832_v3 = vld [vmem:[#allocation3 + $0x10] sm:$0xff]  ;;  %v12850_v19 = vld [vmem:[#allocation3 + $0x18] sm:$0xff]  ;;  %v12863_v24 = vld [vmem:[#allocation3 + $0x21] sm:$0xff] }
 0x6bf   :  { %8070 = vmatmul.msk.f32.gmra.mxu3 %vm5120_vm1, %v12822_v49  ;;  %5996 = vst.msk [vmem:[#allocation3 + $0x70] sm:$0x7f] %vm5839_vm6, %v5995_v45  ;;  %v12856_v44 = vld [vmem:[#allocation3 + $0x1a] sm:$0xff]  ;;  %v12871_v23 = vld [vmem:[#allocation3 + $0x22] sm:$0xff]  ;;  %v12883_v35 = vld [vmem:[#allocation3 + $0x2a] sm:$0xff] }
 0x6c0   :  { %v12865_v0 = vld [vmem:[#allocation3 + $0x20] sm:$0xff]  ;;  %v12875_v51 = vld [vmem:[#allocation3 + $0x29] sm:$0xff]  ;;  %v12887_v63 = vld [vmem:[#allocation3 + $0x31] sm:$0xff] }
 0x6c1   :  { %v12877_v27 = vld [vmem:[#allocation3 + $0x28] sm:$0xff]  ;;  %v12889_v34 = vld [vmem:[#allocation3 + $0x30] sm:$0xff]  ;;  %v12901_v30 = vld [vmem:[#allocation3 + $0x39] sm:$0xff] }
 0x6c2   :  { %v12895_v5 = vld [vmem:[#allocation3 + $0x32] sm:$0xff]  ;;  %v12907_v46 = vld [vmem:[#allocation3 + $0x3a] sm:$0xff]  ;;  %v12919_v29 = vld [vmem:[#allocation3 + $0x42] sm:$0xff] }
 0x6c3   :  { %v12911_v56 = vld [vmem:[#allocation3 + $0x41] sm:$0xff]  ;;  %v12923_v48 = vld [vmem:[#allocation3 + $0x49] sm:$0xff]  ;;  %v12944_v28 = vld [vmem:[#allocation3 + $0x51] sm:$0xff] }
 0x6c4   :  { %v12913_v4 = vld [vmem:[#allocation3 + $0x40] sm:$0xff]  ;;  %v12925_v12 = vld [vmem:[#allocation3 + $0x48] sm:$0xff]  ;;  %v12946_v11 = vld [vmem:[#allocation3 + $0x50] sm:$0xff] }
 0x6c5   :  { %8043 = vmatmul.msk.f32.gmra.mxu1 %vm5120_vm1, %v12830_v40  ;;  %v12931_v54 = vld [vmem:[#allocation3 + $0x4a] sm:$0xff]  ;;  %v12952_v61 = vld [vmem:[#allocation3 + $0x52] sm:$0xff]  ;;  %v12964_v47 = vld [vmem:[#allocation3 + $0x5a] sm:$0xff] }
 0x6c6   :  { %8056 = vmatmul.msk.f32.gmra.mxu2 %vm5120_vm1, %v12832_v3  ;;  %v12956_v7 = vld [vmem:[#allocation3 + $0x59] sm:$0xff]  ;;  %v12968_v41 = vld [vmem:[#allocation3 + $0x61] sm:$0xff] }
 0x6c7   :  { %8071 = vmatmul.msk.f32.gmra.mxu3 %vm5120_vm1, %v12838_v57  ;;  %v12958_v62 = vld [vmem:[#allocation3 + $0x58] sm:$0xff]  ;;  %v12970_v13 = vld [vmem:[#allocation3 + $0x60] sm:$0xff] }
 0x6c8   :  { %v12976_v36 = vld [vmem:[#allocation3 + $0x62] sm:$0xff] }
 0x6cd   :  { %8044 = vmatmul.msk.f32.gmra.mxu1 %vm5120_vm1, %v12848_v18 }
 0x6ce   :  { %8057 = vmatmul.msk.f32.gmra.mxu2 %vm5120_vm1, %v12850_v19 }
 0x6cf   :  { %8072 = vmatmul.msk.f32.gmra.mxu3 %vm5120_vm1, %v12856_v44 }
 0x6d5   :  { %8045 = vmatmul.msk.f32.gmra.mxu1 %vm5120_vm1, %v12863_v24 }
 0x6d6   :  { %8058 = vmatmul.msk.f32.gmra.mxu2 %vm5120_vm1, %v12865_v0 }
 0x6d7   :  { %8073 = vmatmul.msk.f32.gmra.mxu3 %vm5120_vm1, %v12871_v23 }
 0x6dd   :  { %8046 = vmatmul.msk.f32.gmra.mxu1 %vm5120_vm1, %v12875_v51 }
 0x6de   :  { %8059 = vmatmul.msk.f32.gmra.mxu2 %vm5120_vm1, %v12877_v27 }
 0x6df   :  { %8074 = vmatmul.msk.f32.gmra.mxu3 %vm5120_vm1, %v12883_v35 }
 0x6e5   :  { %8047 = vmatmul.msk.f32.gmra.mxu1 %vm5120_vm1, %v12887_v63 }
 0x6e6   :  { %8060 = vmatmul.msk.f32.gmra.mxu2 %vm5120_vm1, %v12889_v34 }
 0x6e7   :  { %8075 = vmatmul.msk.f32.gmra.mxu3 %vm5120_vm1, %v12895_v5 }
 0x6ed   :  { %8048 = vmatmul.msk.f32.gmra.mxu1 %vm5120_vm1, %v12901_v30 }
 0x6ee   :  { %8061 = vmatmul.msk.f32.gmra.mxu2 %vm5120_vm1, %v12899_v17 }
 0x6ef   :  { %8076 = vmatmul.msk.f32.gmra.mxu3 %vm5120_vm1, %v12907_v46 }
 0x6f5   :  { %8049 = vmatmul.msk.f32.gmra.mxu1 %vm5120_vm1, %v12911_v56 }
 0x6f6   :  { %8062 = vmatmul.msk.f32.gmra.mxu2 %vm5120_vm1, %v12913_v4 }
 0x6f7   :  { %8077 = vmatmul.msk.f32.gmra.mxu3 %vm5120_vm1, %v12919_v29 }
 0x6fd   :  { %8050 = vmatmul.msk.f32.gmra.mxu1 %vm5120_vm1, %v12923_v48 }
 0x6fe   :  { %8063 = vmatmul.msk.f32.gmra.mxu2 %vm5120_vm1, %v12925_v12 }
 0x6ff   :  { %8078 = vmatmul.msk.f32.gmra.mxu3 %vm5120_vm1, %v12931_v54 }
 0x705   :  { %8051 = vmatmul.msk.f32.gmra.mxu1 %vm5120_vm1, %v12944_v28 }
 0x706   :  { %8064 = vmatmul.msk.f32.gmra.mxu2 %vm5120_vm1, %v12946_v11 }
 0x707   :  { %8079 = vmatmul.msk.f32.gmra.mxu3 %vm5120_vm1, %v12952_v61 }
 0x70d   :  { %8052 = vmatmul.msk.f32.gmra.mxu1 %vm5120_vm1, %v12956_v7 }
 0x70e   :  { %8065 = vmatmul.msk.f32.gmra.mxu2 %vm5120_vm1, %v12958_v62 }
 0x70f   :  { %8080 = vmatmul.msk.f32.gmra.mxu3 %vm5120_vm1, %v12964_v47 }
 0x715   :  { %8053 = vmatmul.msk.f32.gmra.mxu1 %vm5120_vm1, %v12968_v41 }
 0x716   :  { %8066 = vmatmul.msk.f32.gmra.mxu2 %vm5120_vm1, %v12970_v13 }
 0x717   :  { %8081 = vmatmul.msk.f32.gmra.mxu3 %vm5120_vm1, %v12976_v36 }
 0x71d   :  { %8084 = vmatmul.msk.f32.vlgmr.msra.gmra.mxu1 %vm5120_vm1, %v12815_v39 }
 0x71e   :  { %8099 = vmatmul.msk.f32.vlgmr.msra.gmra.mxu2 %vm5120_vm1, %v12813_v52 }
 0x71f   :  { %8114 = vmatmul.msk.f32.vlgmr.msra.gmra.mxu3 %vm5120_vm1, %v12822_v49 }
 0x725   :  { %8085 = vmatmul.msk.f32.gmra.mxu1 %vm5120_vm1, %v12832_v3 }
 0x726   :  { %8100 = vmatmul.msk.f32.gmra.mxu2 %vm5120_vm1, %v12830_v40 }
 0x727   :  { %8115 = vmatmul.msk.f32.gmra.mxu3 %vm5120_vm1, %v12838_v57 }
 0x72d   :  { %8086 = vmatmul.msk.f32.gmra.mxu1 %vm5120_vm1, %v12850_v19 }
 0x72e   :  { %8101 = vmatmul.msk.f32.gmra.mxu2 %vm5120_vm1, %v12848_v18 }
 0x72f   :  { %8116 = vmatmul.msk.f32.gmra.mxu3 %vm5120_vm1, %v12856_v44 }
 0x732   :  { %v6084_v1 = vpop.f32.mrf.mxu1 }
 0x735   :  { %8087 = vmatmul.msk.f32.gmra.mxu1 %vm5120_vm1, %v12865_v0 }
 0x736   :  { %8102 = vmatmul.msk.f32.gmra.mxu2 %vm5120_vm1, %v12863_v24 }
 0x737   :  { %8117 = vmatmul.msk.f32.gmra.mxu3 %vm5120_vm1, %v12871_v23 }
 0x739   :  { %v6179_v50 = vpop.f32.mrf.mxu2 }
 0x73a   :  { %v6180_v15 = vadd.f32 %v6179_v50, %v6084_v1  ;;  %v6290_v38 = vpop.f32.mrf.mxu3  ;;  %v6087_v22 = vpop.f32.mrf.mxu1 }
 0x73c   :  { %v13013_v53 = vadd.f32 %v6290_v38, %v6180_v15 }
 0x73d   :  { %8088 = vmatmul.msk.f32.gmra.mxu1 %vm5120_vm1, %v12877_v27 }
 0x73e   :  { %8103 = vmatmul.msk.f32.gmra.mxu2 %vm5120_vm1, %v12875_v51 }
 0x73f   :  { %8118 = vmatmul.msk.f32.gmra.mxu3 %vm5120_vm1, %v12883_v35 }
 0x741   :  { %v6182_v33 = vpop.f32.mrf.mxu2 }
 0x742   :  { %v6183_v20 = vadd.f32 %v6182_v33, %v6087_v22  ;;  %v6293_v21 = vpop.f32.mrf.mxu3  ;;  %v6090_v31 = vpop.f32.mrf.mxu1 }
 0x744   :  { %v13021_v59 = vadd.f32 %v6293_v21, %v6183_v20 }
 0x745   :  { %8089 = vmatmul.msk.f32.gmra.mxu1 %vm5120_vm1, %v12889_v34 }
 0x746   :  { %8104 = vmatmul.msk.f32.gmra.mxu2 %vm5120_vm1, %v12887_v63 }
 0x747   :  { %8119 = vmatmul.msk.f32.gmra.mxu3 %vm5120_vm1, %v12895_v5 }
 0x749   :  { %v6185_v10 = vpop.f32.mrf.mxu2 }
 0x74a   :  { %v6186_v9 = vadd.f32 %v6185_v10, %v6090_v31  ;;  %v6296_v25 = vpop.f32.mrf.mxu3  ;;  %v6093_v42 = vpop.f32.mrf.mxu1 }
 0x74c   :  { %v13029_v2 = vadd.f32 %v6296_v25, %v6186_v9 }
 0x74d   :  { %8090 = vmatmul.msk.f32.gmra.mxu1 %vm5120_vm1, %v12899_v17 }
 0x74e   :  { %8105 = vmatmul.msk.f32.gmra.mxu2 %vm5120_vm1, %v12901_v30 }
 0x74f   :  { %8120 = vmatmul.msk.f32.gmra.mxu3 %vm5120_vm1, %v12907_v46 }
 0x751   :  { %v6188_v55 = vpop.f32.mrf.mxu2 }
 0x752   :  { %v6189_v60 = vadd.f32 %v6188_v55, %v6093_v42  ;;  %v6299_v52 = vpop.f32.mrf.mxu3  ;;  %v6096_v39 = vpop.f32.mrf.mxu1 }
 0x754   :  { %v13037_v45 = vadd.f32 %v6299_v52, %v6189_v60  ;;  %v13079_v52 = vld [vmem:[#allocation3 + $0x68] sm:$0xff] }
 0x755   :  { %8091 = vmatmul.msk.f32.gmra.mxu1 %vm5120_vm1, %v12913_v4 }
 0x756   :  { %8106 = vmatmul.msk.f32.gmra.mxu2 %vm5120_vm1, %v12911_v56 }
 0x757   :  { %8121 = vmatmul.msk.f32.gmra.mxu3 %vm5120_vm1, %v12919_v29 }
 0x759   :  { %v6191_v49 = vpop.f32.mrf.mxu2 }
 0x75a   :  { %v6192_v32 = vadd.f32 %v6191_v49, %v6096_v39  ;;  %v6302_v43 = vpop.f32.mrf.mxu3  ;;  %v6099_v14 = vpop.f32.mrf.mxu1  ;;  %v13081_v39 = vld [vmem:[#allocation3 + $0x69] sm:$0xff] }
 0x75b   :  { %v13087_v49 = vld [vmem:[#allocation3 + $0x6a] sm:$0xff] }
 0x75c   :  { %v13045_v37 = vadd.f32 %v6302_v43, %v6192_v32 }
 0x75d   :  { %8092 = vmatmul.msk.f32.gmra.mxu1 %vm5120_vm1, %v12925_v12 }
 0x75e   :  { %8107 = vmatmul.msk.f32.gmra.mxu2 %vm5120_vm1, %v12923_v48 }
 0x75f   :  { %8122 = vmatmul.msk.f32.gmra.mxu3 %vm5120_vm1, %v12931_v54 }
 0x761   :  { %v6194_v8 = vpop.f32.mrf.mxu2 }
 0x762   :  { %v6195_v16 = vadd.f32 %v6194_v8, %v6099_v14  ;;  %v6305_v1 = vpop.f32.mrf.mxu3  ;;  %v6102_v26 = vpop.f32.mrf.mxu1 }
 0x764   :  { %v13053_v6 = vadd.f32 %v6305_v1, %v6195_v16 }
 0x765   :  { %8093 = vmatmul.msk.f32.gmra.mxu1 %vm5120_vm1, %v12946_v11 }
 0x766   :  { %8108 = vmatmul.msk.f32.gmra.mxu2 %vm5120_vm1, %v12944_v28 }
 0x767   :  { %8123 = vmatmul.msk.f32.gmra.mxu3 %vm5120_vm1, %v12952_v61 }
 0x769   :  { %v6197_v58 = vpop.f32.mrf.mxu2 }
 0x76a   :  { %v6198_v50 = vadd.f32 %v6197_v58, %v6102_v26  ;;  %v6308_v15 = vpop.f32.mrf.mxu3  ;;  %v6105_v38 = vpop.f32.mrf.mxu1 }
 0x76c   :  { %v13061_v22 = vadd.f32 %v6308_v15, %v6198_v50 }
 0x76d   :  { %8094 = vmatmul.msk.f32.gmra.mxu1 %vm5120_vm1, %v12958_v62 }
 0x76e   :  { %8109 = vmatmul.msk.f32.gmra.mxu2 %vm5120_vm1, %v12956_v7 }
 0x76f   :  { %8124 = vmatmul.msk.f32.gmra.mxu3 %vm5120_vm1, %v12964_v47 }
 0x771   :  { %v6200_v33 = vpop.f32.mrf.mxu2 }
 0x772   :  { %v6201_v20 = vadd.f32 %v6200_v33, %v6105_v38  ;;  %v6311_v21 = vpop.f32.mrf.mxu3  ;;  %v6108_v31 = vpop.f32.mrf.mxu1 }
 0x774   :  { %v13069_v10 = vadd.f32 %v6311_v21, %v6201_v20 }
 0x775   :  { %8095 = vmatmul.msk.f32.gmra.mxu1 %vm5120_vm1, %v12970_v13 }
 0x776   :  { %8110 = vmatmul.msk.f32.gmra.mxu2 %vm5120_vm1, %v12968_v41 }
 0x777   :  { %8125 = vmatmul.msk.f32.gmra.mxu3 %vm5120_vm1, %v12976_v36 }
 0x779   :  { %v6203_v9 = vpop.f32.mrf.mxu2 }
 0x77a   :  { %v6204_v25 = vadd.f32 %v6203_v9, %v6108_v31  ;;  %v6314_v42 = vpop.f32.mrf.mxu3  ;;  %v6111_v55 = vpop.f32.mrf.mxu1 }
 0x77c   :  { %v13077_v60 = vadd.f32 %v6314_v42, %v6204_v25 }
 0x77d   :  { %8096 = vmatmul.msk.f32.gmra.mxu1 %vm5120_vm1, %v13079_v52 }
 0x77e   :  { %8111 = vmatmul.msk.f32.gmra.mxu2 %vm5120_vm1, %v13081_v39 }
 0x77f   :  { %8126 = vmatmul.msk.f32.gmra.mxu3 %vm5120_vm1, %v13087_v49 }
 0x781   :  { %v6206_v32 = vpop.f32.mrf.mxu2 }
 0x782   :  { %v6207_v43 = vadd.f32 %v6206_v32, %v6111_v55  ;;  %v6317_v14 = vpop.f32.mrf.mxu3  ;;  %v6114_v8 = vpop.f32.mrf.mxu1 }
 0x784   :  { %v13091_v16 = vadd.f32 %v6317_v14, %v6207_v43 }
 0x785   :  { %8129 = vmatmul.msk.f32.vlgmr.msrb.gmra.mxu1 %vm5120_vm1, %v12832_v3 }
 0x786   :  { %8144 = vmatmul.msk.f32.vlgmr.msrb.gmra.mxu2 %vm5120_vm1, %v12830_v40 }
 0x787   :  { %8159 = vmatmul.msk.f32.vlgmr.msrb.gmra.mxu3 %vm5120_vm1, %v12838_v57 }
 0x789   :  { %v6209_v1 = vpop.f32.mrf.mxu2 }
 0x78a   :  { %v6210_v26 = vadd.f32 %v6209_v1, %v6114_v8  ;;  %v6320_v58 = vpop.f32.mrf.mxu3  ;;  %v6117_v50 = vpop.f32.mrf.mxu1 }
 0x78c   :  { %v13099_v15 = vadd.f32 %v6320_v58, %v6210_v26 }
 0x78d   :  { %8130 = vmatmul.msk.f32.gmra.mxu1 %vm5120_vm1, %v12850_v19 }
 0x78e   :  { %8145 = vmatmul.msk.f32.gmra.mxu2 %vm5120_vm1, %v12848_v18 }
 0x78f   :  { %8160 = vmatmul.msk.f32.gmra.mxu3 %vm5120_vm1, %v12856_v44 }
 0x791   :  { %v6212_v3 = vpop.f32.mrf.mxu2 }
 0x792   :  { %v6213_v40 = vadd.f32 %v6212_v3, %v6117_v50  ;;  %v6323_v38 = vpop.f32.mrf.mxu3  ;;  %v6120_v33 = vpop.f32.mrf.mxu1 }
 0x794   :  { %v13107_v57 = vadd.f32 %v6323_v38, %v6213_v40 }
 0x795   :  { %8131 = vmatmul.msk.f32.gmra.mxu1 %vm5120_vm1, %v12865_v0 }
 0x796   :  { %8146 = vmatmul.msk.f32.gmra.mxu2 %vm5120_vm1, %v12863_v24 }
 0x797   :  { %8161 = vmatmul.msk.f32.gmra.mxu3 %vm5120_vm1, %v12871_v23 }
 0x799   :  { %v6215_v19 = vpop.f32.mrf.mxu2 }
 0x79a   :  { %v6216_v18 = vadd.f32 %v6215_v19, %v6120_v33  ;;  %v6326_v20 = vpop.f32.mrf.mxu3  ;;  %v6414_v21 = vpop.f32.mrf.mxu1 }
 0x79b   :  { %v6453_v24 = vadd.f32 %v6414_v21, %v13013_v53  ;;  %v6726_v21 = vld [vmem:[#allocation3 + $0x70] sm:$0xff] }
 0x79c   :  { %v13115_v44 = vadd.f32 %v6326_v20, %v6216_v18 }
 0x79d   :  { %8132 = vmatmul.msk.f32.gmra.mxu1 %vm5120_vm1, %v12877_v27 }
 0x79e   :  { %8147 = vmatmul.msk.f32.gmra.mxu2 %vm5120_vm1, %v12875_v51 }
 0x79f   :  { %8162 = vmatmul.msk.f32.gmra.mxu3 %vm5120_vm1, %v12883_v35 }
 0x7a1   :  { %v6538_v0 = vpop.f32.mrf.mxu2 }
 0x7a2   :  { %v6577_v31 = vadd.f32 %v6538_v0, %v6453_v24  ;;  %v6662_v23 = vpop.f32.mrf.mxu3  ;;  %v6417_v9 = vpop.f32.mrf.mxu1  ;;  %v6850_v24 = vld [vmem:[#allocation3 + $0x71] sm:$0xff] }
 0x7a3   :  { %v6454_v51 = vadd.f32 %v6417_v9, %v13021_v59 }
 0x7a4   :  { %v13124_v25 = vadd.f32 %v6662_v23, %v6577_v31 }
 0x7a5   :  { %8133 = vmatmul.msk.f32.gmra.mxu1 %vm5120_vm1, %v12889_v34 }
 0x7a6   :  { %8148 = vmatmul.msk.f32.gmra.mxu2 %vm5120_vm1, %v12887_v63 }
 0x7a7   :  { %8163 = vmatmul.msk.f32.gmra.mxu3 %vm5120_vm1, %v12895_v5 }
 0x7a9   :  { %v6541_v27 = vpop.f32.mrf.mxu2 }
 0x7aa   :  { %v6578_v35 = vadd.f32 %v6541_v27, %v6454_v51  ;;  %v6665_v53 = vpop.f32.mrf.mxu3  ;;  %v6420_v42 = vpop.f32.mrf.mxu1 }
 0x7ab   :  { %v6455_v32 = vadd.f32 %v6420_v42, %v13029_v2 }
 0x7ac   :  { %v13133_v55 = vadd.f32 %v6665_v53, %v6578_v35 }
 0x7ad   :  { %8134 = vmatmul.msk.f32.gmra.mxu1 %vm5120_vm1, %v12899_v17 }
 0x7ae   :  { %8149 = vmatmul.msk.f32.gmra.mxu2 %vm5120_vm1, %v12901_v30 }
 0x7af   :  { %8164 = vmatmul.msk.f32.gmra.mxu3 %vm5120_vm1, %v12907_v46 }
 0x7b1   :  { %v6544_v63 = vpop.f32.mrf.mxu2 }
 0x7b2   :  { %v6579_v34 = vadd.f32 %v6544_v63, %v6455_v32  ;;  %v6668_v5 = vpop.f32.mrf.mxu3  ;;  %v6423_v59 = vpop.f32.mrf.mxu1 }
 0x7b3   :  { %v6456_v14 = vadd.f32 %v6423_v59, %v13037_v45 }
 0x7b4   :  { %v13142_v43 = vadd.f32 %v6668_v5, %v6579_v34 }
 0x7b5   :  { %8135 = vmatmul.msk.f32.gmra.mxu1 %vm5120_vm1, %v12913_v4 }
 0x7b6   :  { %8150 = vmatmul.msk.f32.gmra.mxu2 %vm5120_vm1, %v12911_v56 }
 0x7b7   :  { %8165 = vmatmul.msk.f32.gmra.mxu3 %vm5120_vm1, %v12919_v29 }
 0x7b9   :  { %v6547_v17 = vpop.f32.mrf.mxu2 }
 0x7ba   :  { %v6580_v30 = vadd.f32 %v6547_v17, %v6456_v14  ;;  %v6671_v46 = vpop.f32.mrf.mxu3  ;;  %v6426_v2 = vpop.f32.mrf.mxu1 }
 0x7bb   :  { %v6457_v1 = vadd.f32 %v6426_v2, %v13045_v37 }
 0x7bc   :  { %v13151_v8 = vadd.f32 %v6671_v46, %v6580_v30 }
 0x7bd   :  { %8136 = vmatmul.msk.f32.gmra.mxu1 %vm5120_vm1, %v12925_v12 }
 0x7be   :  { %8151 = vmatmul.msk.f32.gmra.mxu2 %vm5120_vm1, %v12923_v48 }
 0x7bf   :  { %8166 = vmatmul.msk.f32.gmra.mxu3 %vm5120_vm1, %v12931_v54 }
 0x7c1   :  { %v6550_v56 = vpop.f32.mrf.mxu2 }
 0x7c2   :  { %v6581_v4 = vadd.f32 %v6550_v56, %v6457_v1  ;;  %v6674_v29 = vpop.f32.mrf.mxu3  ;;  %v6429_v45 = vpop.f32.mrf.mxu1 }
 0x7c3   :  { %v6458_v58 = vadd.f32 %v6429_v45, %v13053_v6 }
 0x7c4   :  { %v13160_v26 = vadd.f32 %v6674_v29, %v6581_v4 }
 0x7c5   :  { %8137 = vmatmul.msk.f32.gmra.mxu1 %vm5120_vm1, %v12946_v11 }
 0x7c6   :  { %8152 = vmatmul.msk.f32.gmra.mxu2 %vm5120_vm1, %v12944_v28 }
 0x7c7   :  { %8167 = vmatmul.msk.f32.gmra.mxu3 %vm5120_vm1, %v12952_v61 }
 0x7c9   :  { %v6553_v48 = vpop.f32.mrf.mxu2 }
 0x7ca   :  { %v6582_v12 = vadd.f32 %v6553_v48, %v6458_v58  ;;  %v6677_v54 = vpop.f32.mrf.mxu3  ;;  %v6432_v37 = vpop.f32.mrf.mxu1 }
 0x7cb   :  { %v6459_v3 = vadd.f32 %v6432_v37, %v13061_v22 }
 0x7cc   :  { %v13169_v50 = vadd.f32 %v6677_v54, %v6582_v12 }
 0x7cd   :  { %8138 = vmatmul.msk.f32.gmra.mxu1 %vm5120_vm1, %v12958_v62 }
 0x7ce   :  { %8153 = vmatmul.msk.f32.gmra.mxu2 %vm5120_vm1, %v12956_v7 }
 0x7cf   :  { %8168 = vmatmul.msk.f32.gmra.mxu3 %vm5120_vm1, %v12964_v47 }
 0x7d1   :  { %v6556_v28 = vpop.f32.mrf.mxu2 }
 0x7d2   :  { %v6583_v11 = vadd.f32 %v6556_v28, %v6459_v3  ;;  %v6680_v61 = vpop.f32.mrf.mxu3  ;;  %v6435_v6 = vpop.f32.mrf.mxu1 }
 0x7d3   :  { %v6460_v38 = vadd.f32 %v6435_v6, %v13069_v10 }
 0x7d4   :  { %v13178_v40 = vadd.f32 %v6680_v61, %v6583_v11 }
 0x7d5   :  { %8139 = vmatmul.msk.f32.gmra.mxu1 %vm5120_vm1, %v12970_v13 }
 0x7d6   :  { %8154 = vmatmul.msk.f32.gmra.mxu2 %vm5120_vm1, %v12968_v41 }
 0x7d7   :  { %8169 = vmatmul.msk.f32.gmra.mxu3 %vm5120_vm1, %v12976_v36 }
 0x7d9   :  { %v6559_v7 = vpop.f32.mrf.mxu2 }
 0x7da   :  { %v6584_v62 = vadd.f32 %v6559_v7, %v6460_v38  ;;  %v6683_v47 = vpop.f32.mrf.mxu3  ;;  %v6438_v22 = vpop.f32.mrf.mxu1 }
 0x7db   :  { %v6461_v19 = vadd.f32 %v6438_v22, %v13077_v60  ;;  %v6974_v60 = vld [vmem:[#allocation3 + $0x72] sm:$0xff] }
 0x7dc   :  { %v13187_v33 = vadd.f32 %v6683_v47, %v6584_v62 }
 0x7dd   :  { %8140 = vmatmul.msk.f32.gmra.mxu1 %vm5120_vm1, %v13079_v52 }
 0x7de   :  { %8155 = vmatmul.msk.f32.gmra.mxu2 %vm5120_vm1, %v13081_v39 }
 0x7df   :  { %8170 = vmatmul.msk.f32.gmra.mxu3 %vm5120_vm1, %v13087_v49 }
 0x7e1   :  { %v6562_v41 = vpop.f32.mrf.mxu2 }
 0x7e2   :  { %v6585_v13 = vadd.f32 %v6562_v41, %v6461_v19  ;;  %v6686_v36 = vpop.f32.mrf.mxu3  ;;  %v6441_v10 = vpop.f32.mrf.mxu1 }
 0x7e3   :  { %v6462_v20 = vadd.f32 %v6441_v10, %v13091_v16  ;;  %v14154_v10 = vld [vmem:[#allocation33_spill] sm:$0xff] }
 0x7e4   :  { %v13196_v18 = vadd.f32 %v6686_v36, %v6585_v13  ;;  %v14153_v13 = vld [vmem:[#allocation34_spill] sm:$0xff] }
 0x7e5   :  { %8141 = vmatmul.msk.f32.gmra.mxu1 %vm5120_vm1, %v6726_v21  ;;  %v7100_v36 = vshra.s32 %v14153_v13, 3  ;;  %v14155_v21 = vld [vmem:[#allocation35_spill] sm:$0xff] }
 0x7e6   :  { %8156 = vmatmul.msk.f32.gmra.mxu2 %vm5120_vm1, %v6850_v24  ;;  %v7101_v24 = vshra.s32 %v14155_v21, 3 }
 0x7e7   :  { %8171 = vmatmul.msk.f32.gmra.mxu3 %vm5120_vm1, %v6974_v60 }
 0x7e9   :  { %v6565_v52 = vpop.f32.mrf.mxu2 }
 0x7ea   :  { %v6586_v39 = vadd.f32 %v6565_v52, %v6462_v20  ;;  %v6689_v49 = vpop.f32.mrf.mxu3  ;;  %v6444_v0 = vpop.f32.mrf.mxu1  ;;  %v7099_v20 = vshra.s32 %v14154_v10, 3  ;;  %v7087_v52 = vand.u32 7, %v14153_v13 }
 0x7eb   :  { %v6463_v23 = vadd.f32 %v6444_v0, %v13099_v15  ;;  %v7086_v0 = vand.u32 7, %v14154_v10 }
 0x7ec   :  { %v13202_v31 = vadd.f32 %v6689_v49, %v6586_v39  ;;  %v7113_v39 = vand.u32 7, %v7100_v36  ;;  %vm7139_vm1 = vcmp.lt.s32.totalorder %v7087_v52, 5 }
 0x7ed   :  { %vm7138_vm8 = vcmp.lt.s32.totalorder %v7086_v0, 5 }
 0x7ee   :  { %vm7165_vm7 = vcmp.lt.s32.totalorder %v7113_v39, 5 }
 0x7ef   :  { %vm7178_vm11 = vmand %vm7139_vm1, %vm7165_vm7 }
 0x7f1   :  { %v6568_v9 = vpop.f32.mrf.mxu2 }
 0x7f2   :  { %v6587_v51 = vadd.f32 %v6568_v9, %v6463_v23  ;;  %v6692_v16 = vpop.f32.mrf.mxu3  ;;  %v6447_v27 = vpop.f32.mrf.mxu1  ;;  %v7112_v9 = vand.u32 7, %v7099_v20 }
 0x7f3   :  { %v6464_v53 = vadd.f32 %v6447_v27, %v13107_v57  ;;  %v14156_v27 = vld [vmem:[#allocation88_spill] sm:$0xff] }
 0x7f4   :  { %v13205_v35 = vadd.f32 %v6692_v16, %v6587_v51  ;;  %v7088_v51 = vand.u32 7, %v14155_v21  ;;  %v7114_v16 = vand.u32 7, %v7101_v24  ;;  %vm7164_vm0 = vcmp.lt.s32.totalorder %v7112_v9, 5 }
 0x7f5   :  { %vm13267_vm12 = vmand %vm7138_vm8, %vm7164_vm0 }
 0x7f6   :  { %vm13254_vm9 = vcmp.lt.s32.totalorder %v7088_v51, 5  ;;  %vm7166_vm10 = vcmp.lt.s32.totalorder %v7114_v16, 5  ;;  %v14170_v16 = vld [vmem:[#allocation97_spill] sm:$0xff] }
 0x7f7   :  { %vm7179_vm13 = vmand %vm13254_vm9, %vm7166_vm10 }
 0x7f9   :  { %v6571_v42 = vpop.f32.mrf.mxu2 }
 0x7fa   :  { %v6588_v32 = vadd.f32 %v6571_v42, %v6464_v53  ;;  %v6695_v63 = vpop.f32.mrf.mxu3  ;;  %v6450_v34 = vpop.f32.mrf.mxu1  ;;  %v7102_v53 = vshra.s32 %v14156_v27, 3 }
 0x7fb   :  { %v6465_v59 = vadd.f32 %v6450_v34, %v13115_v44 }
 0x7fc   :  { %v13208_v5 = vadd.f32 %v6695_v63, %v6588_v32  ;;  %v14159_v32 = vld [vmem:[#allocation89_spill] sm:$0xff] }
 0x7fd   :  { %v7103_v63 = vshra.s32 %v14159_v32, 3 }
 0x801   :  { %v6574_v14 = vpop.f32.mrf.mxu2 }
 0x802   :  { %v6589_v17 = vadd.f32 %v6574_v14, %v6465_v59  ;;  %v6698_v30 = vpop.f32.mrf.mxu3  ;;  %v6786_v15 = vpop.f32.mrf.mxu1  ;;  %v7089_v59 = vand.u32 7, %v14156_v27  ;;  %v7115_v14 = vand.u32 7, %v7102_v53  ;;  %v7107_v27 = vshra.s32 %v14170_v16, 3 }
 0x803   :  { %v6825_v2 = vadd.f32 %v6786_v15, %v13124_v25 }
 0x804   :  { %v13211_v46 = vadd.f32 %v6698_v30, %v6589_v17  ;;  %v14160_v17 = vld [vmem:[#allocation90_spill] sm:$0xff]  ;;  %vm7141_vm14 = vcmp.lt.s32.totalorder %v7089_v59, 5  ;;  %vm7167_vm15 = vcmp.lt.s32.totalorder %v7115_v14, 5 }
 0x805   :  { %v7104_v30 = vshra.s32 %v14160_v17, 3  ;;  %v7091_v13 = vand.u32 7, %v14160_v17  ;;  %vm7180_vm3 = vmand %vm7141_vm14, %vm7167_vm15 }
 0x807   :  { %v7117_v36 = vand.u32 7, %v7104_v30  ;;  %vm13300_vm5 = vcmp.lt.s32.totalorder %v7091_v13, 5  ;;  %v7120_v30 = vand.u32 7, %v7107_v27  ;;  %v14174_v13 = vld [vmem:[#allocation99_spill] sm:$0xff] }
 0x809   :  { %v6910_v1 = vpop.f32.mrf.mxu2  ;;  %vm7169_vm6 = vcmp.lt.s32.totalorder %v7117_v36, 5  ;;  %v7109_v36 = vshra.s32 %v14174_v13, 3  ;;  %vm7172_vm14 = vcmp.lt.s32.totalorder %v7120_v30, 5 }
 0x80a   :  { %v6949_v56 = vadd.f32 %v6910_v1, %v6825_v2  ;;  %v7034_v4 = vpop.f32.mrf.mxu3  ;;  %v6789_v57 = vpop.f32.mrf.mxu1  ;;  %v14161_v2 = vld [vmem:[#allocation92_spill] sm:$0xff]  ;;  %vm7182_vm0 = vmand %vm13300_vm5, %vm7169_vm6 }
 0x80b   :  { %v6826_v45 = vadd.f32 %v6789_v57, %v13133_v55  ;;  %v7105_v1 = vshra.s32 %v14161_v2, 3  ;;  %v7092_v21 = vand.u32 7, %v14161_v2  ;;  %v14173_v2 = vld [vmem:[#allocation96_spill] sm:$0xff] }
 0x80c   :  { %v13214_v29 = vadd.f32 %v7034_v4, %v6949_v56 }
 0x80d   :  { %v7118_v24 = vand.u32 7, %v7105_v1  ;;  %vm7144_vm1 = vcmp.lt.s32.totalorder %v7092_v21, 5  ;;  %v7108_v1 = vshra.s32 %v14173_v2, 3 }
 0x80f   :  { %vm7170_vm7 = vcmp.lt.s32.totalorder %v7118_v24, 5 }
 0x810   :  { %vm7183_vm10 = vmand %vm7144_vm1, %vm7170_vm7 }
 0x811   :  { %v6913_v58 = vpop.f32.mrf.mxu2 }
 0x812   :  { %v6950_v48 = vadd.f32 %v6913_v58, %v6826_v45  ;;  %v7037_v12 = vpop.f32.mrf.mxu3  ;;  %v6792_v44 = vpop.f32.mrf.mxu1  ;;  %v7090_v45 = vand.u32 7, %v14159_v32 }
 0x813   :  { %v6827_v34 = vadd.f32 %v6792_v44, %v13142_v43  ;;  %v14164_v43 = vmov 0.0   ;;  %v7116_v44 = vand.u32 7, %v7103_v63 }
 0x814   :  { %v13217_v54 = vadd.f32 %v7037_v12, %v6950_v48  ;;  %v13275_v48 = vsel %vm7178_vm11, 1.0, %v14164_v43  ;;  %v13287_v52 = vsel %vm13267_vm12, 1.0, %v14164_v43  ;;  %vm13294_vm2 = vcmp.lt.s32.totalorder %v7090_v45, 5 }
 0x815   :  { %vm7168_vm4 = vcmp.lt.s32.totalorder %v7116_v44, 5  ;;  %v7218_v42 = vmul.f32 %v13287_v52, %v13214_v29  ;;  %v13347_v44 = vsel %vm7182_vm0, 1.0, %v14164_v43 }
 0x816   :  { %vm7181_vm8 = vmand %vm13294_vm2, %vm7168_vm4 }
 0x819   :  { %v6916_v37 = vpop.f32.mrf.mxu2 }
 0x81a   :  { %v7040_v3 = vpop.f32.mrf.mxu3  ;;  %v6795_v28 = vpop.f32.mrf.mxu1  ;;  %v6951_v57 = vadd.f32 %v6916_v37, %v6827_v34  ;;  %v14165_v37 = vld [vmem:[#allocation91_spill] sm:$0xff] }
 0x81b   :  { %v6828_v12 = vadd.f32 %v6795_v28, %v13151_v8  ;;  %v7106_v10 = vshra.s32 %v14165_v37, 3  ;;  %v13292_v8 = vsel %vm7179_vm13, 1.0, %v14164_v43  ;;  %v7093_v9 = vand.u32 7, %v14165_v37 }
 0x81c   :  { %v13289_v39 = vadd.f32 %v7040_v3, %v6951_v57 }
 0x81d   :  { %v7119_v51 = vand.u32 7, %v7106_v10  ;;  %vm13329_vm9 = vcmp.lt.s32.totalorder %v7093_v9, 5  ;;  %v13352_v10 = vsel %vm7183_vm10, 1.0, %v14164_v43 }
 0x81e   :  { %v7220_v34 = vmul.f32 %v13292_v8, %v13289_v39 }
 0x81f   :  { %vm7171_vm11 = vcmp.lt.s32.totalorder %v7119_v51, 5  ;;  %v7122_v51 = vand.u32 7, %v7109_v36 }
 0x820   :  { %vm7184_vm12 = vmand %vm13329_vm9, %vm7171_vm11 }
 0x821   :  { %v6919_v11 = vpop.f32.mrf.mxu2  ;;  %v13374_v9 = vsel %vm7184_vm12, 1.0, %v14164_v43  ;;  %vm7174_vm5 = vcmp.lt.s32.totalorder %v7122_v51, 5 }
 0x822   :  { %v13219_v61 = vpop.f32.mrf.mxu3  ;;  %v13221_v25 = vpop.f32.mrf.mxu1  ;;  %v6952_v20 = vadd.f32 %v6919_v11, %v6828_v12  ;;  %v7219_v11 = vmul.f32 %v13275_v48, %v13217_v54 }
 0x823   :  { %v6829_v3 = vadd.f32 %v13221_v25, %v13160_v26  ;;  %v13318_v26 = vsel %vm7180_vm3, 1.0, %v14164_v43 }
 0x824   :  { %v13311_v32 = vadd.f32 %v13219_v61, %v6952_v20  ;;  %v7231_v14 = vadd.f32 %v7219_v11, %v7218_v42 }
 0x826   :  { %v7221_v4 = vmul.f32 %v13318_v26, %v13311_v32  ;;  %v7232_v45 = vadd.f32 %v7231_v14, %v7220_v34  ;;  %v14180_v34 = vld [vmem:[#allocation104_spill] sm:$0xff] }
 0x828   :  { %v7233_v24 = vadd.f32 %v7232_v45, %v7221_v4 }
 0x829   :  { %v13223_v6 = vpop.f32.mrf.mxu2 }
 0x82a   :  { %v13225_v38 = vpop.f32.mrf.mxu3  ;;  %v13227_v7 = vpop.f32.mrf.mxu1  ;;  %v6953_v25 = vadd.f32 %v13223_v6, %v6829_v3  ;;  %v7094_v6 = vand.u32 7, %v14170_v16  ;;  %v7096_v3 = vand.u32 7, %v14174_v13 }
 0x82b   :  { %v6830_v61 = vadd.f32 %v13227_v7, %v13169_v50  ;;  %v13338_v50 = vsel %vm7181_vm8, 1.0, %v14164_v43 }
 0x82c   :  { %v13344_v12 = vadd.f32 %v13225_v38, %v6953_v25  ;;  %vm13360_vm13 = vcmp.lt.s32.totalorder %v7094_v6, 5  ;;  %vm13401_vm4 = vcmp.lt.s32.totalorder %v7096_v3, 5 }
 0x82d   :  { %vm7185_vm15 = vmand %vm13360_vm13, %vm7172_vm14 }
 0x82e   :  { %v7222_v0 = vmul.f32 %v13338_v50, %v13344_v12  ;;  %vm7187_vm8 = vmand %vm13401_vm4, %vm7174_vm5 }
 0x831   :  { %v13229_v55 = vpop.f32.mrf.mxu2 }
 0x832   :  { %v13231_v62 = vpop.f32.mrf.mxu3  ;;  %v13233_v47 = vpop.f32.mrf.mxu1  ;;  %v6954_v7 = vadd.f32 %v13229_v55, %v6830_v61 }
 0x833   :  { %v6831_v57 = vadd.f32 %v13233_v47, %v13178_v40  ;;  %v7095_v40 = vand.u32 7, %v14173_v2  ;;  %v7121_v47 = vand.u32 7, %v7108_v1 }
 0x834   :  { %v13366_v28 = vadd.f32 %v13231_v62, %v6954_v7 }
 0x835   :  { %vm13386_vm2 = vcmp.lt.s32.totalorder %v7095_v40, 5  ;;  %vm7173_vm3 = vcmp.lt.s32.totalorder %v7121_v47, 5 }
 0x836   :  { %vm7186_vm6 = vmand %vm13386_vm2, %vm7173_vm3 }
 0x839   :  { %v13235_v22 = vpop.f32.mrf.mxu2 }
 0x83a   :  { %v13237_v19 = vpop.f32.mrf.mxu3  ;;  %v13239_v41 = vpop.f32.mrf.mxu1  ;;  %v6955_v37 = vadd.f32 %v13235_v22, %v6831_v57  ;;  %v14177_v22 = vld [vmem:[#allocation102_spill] sm:$0xff] }
 0x83b   :  { %v6832_v55 = vadd.f32 %v13239_v41, %v13187_v33  ;;  %v7110_v21 = vshra.s32 %v14177_v22, 3 }
 0x83c   :  { %v13378_v27 = vadd.f32 %v13237_v19, %v6955_v37  ;;  %v7111_v19 = vshra.s32 %v14180_v34, 3  ;;  %v13429_v37 = vsel %vm7187_vm8, 1.0, %v14164_v43 }
 0x83d   :  { %v7123_v42 = vand.u32 7, %v7110_v21 }
 0x83e   :  { %v7224_v6 = vmul.f32 %v13352_v10, %v13378_v27  ;;  %v7124_v2 = vand.u32 7, %v7111_v19 }
 0x83f   :  { %vm7175_vm7 = vcmp.lt.s32.totalorder %v7123_v42, 5 }
 0x840   :  { %vm7176_vm10 = vcmp.lt.s32.totalorder %v7124_v2, 5 }
 0x841   :  { %v13244_v60 = vpop.f32.mrf.mxu2 }
 0x842   :  { %v13247_v49 = vpop.f32.mrf.mxu3  ;;  %v13250_v23 = vpop.f32.mrf.mxu1  ;;  %v6956_v33 = vadd.f32 %v13244_v60, %v6832_v55 }
 0x843   :  { %v6833_v41 = vadd.f32 %v13250_v23, %v13196_v18  ;;  %v7097_v23 = vand.u32 7, %v14177_v22 }
 0x844   :  { %v13395_v25 = vadd.f32 %v13247_v49, %v6956_v33 }
 0x845   :  { %vm7149_vm1 = vcmp.lt.s32.totalorder %v7097_v23, 5 }
 0x846   :  { %v7225_v4 = vmul.f32 %v13374_v9, %v13395_v25  ;;  %vm7188_vm0 = vmand %vm7149_vm1, %vm7175_vm7 }
 0x847   :  { %v13436_v47 = vsel %vm7188_vm0, 1.0, %v14164_v43 }
 0x849   :  { %v13262_v15 = vpop.f32.mrf.mxu2 }
 0x84a   :  { %v13265_v56 = vpop.f32.mrf.mxu3  ;;  %v13272_v58 = vpop.f32.mrf.mxu1  ;;  %v6957_v62 = vadd.f32 %v13262_v15, %v6833_v41  ;;  %v7223_v15 = vmul.f32 %v13347_v44, %v13366_v28 }
 0x84b   :  { %v6834_v18 = vadd.f32 %v13272_v58, %v13202_v31  ;;  %v7234_v31 = vadd.f32 %v7233_v24, %v7222_v0  ;;  %v13399_v58 = vsel %vm7185_vm15, 1.0, %v14164_v43 }
 0x84c   :  { %v13408_v30 = vadd.f32 %v13265_v56, %v6957_v62 }
 0x84d   :  { %v7235_v1 = vadd.f32 %v7234_v31, %v7223_v15 }
 0x84e   :  { %v7226_v13 = vmul.f32 %v13399_v58, %v13408_v30 }
 0x84f   :  { %v7236_v45 = vadd.f32 %v7235_v1, %v7224_v6 }
 0x851   :  { %v6937_v53 = vpop.f32.mrf.mxu2  ;;  %v7237_v55 = vadd.f32 %v7236_v45, %v7225_v4 }
 0x852   :  { %v13313_v63 = vpop.f32.mrf.mxu3  ;;  %v6816_v59 = vpop.f32.mrf.mxu1  ;;  %v6958_v14 = vadd.f32 %v6937_v53, %v6834_v18 }
 0x853   :  { %v6835_v61 = vadd.f32 %v6816_v59, %v13205_v35  ;;  %v7098_v59 = vand.u32 7, %v14180_v34 }
 0x854   :  { %v13417_v7 = vadd.f32 %v13313_v63, %v6958_v14 }
 0x855   :  { %vm7150_vm9 = vcmp.lt.s32.totalorder %v7098_v59, 5 }
 0x856   :  { %vm7189_vm11 = vmand %vm7150_vm9, %vm7176_vm10 }
 0x857   :  { %v8184_v3 = vsel %vm7189_vm11, 1.0, %v14164_v43 }
 0x859   :  { %v6940_v20 = vpop.f32.mrf.mxu2 }
 0x85a   :  { %v7064_v11 = vpop.f32.mrf.mxu3  ;;  %v6819_v16 = vpop.f32.mrf.mxu1  ;;  %v6959_v49 = vadd.f32 %v6940_v20, %v6835_v61  ;;  %v7238_v20 = vadd.f32 %v7237_v55, %v7226_v13 }
 0x85b   :  { %v6836_v35 = vadd.f32 %v6819_v16, %v13208_v5  ;;  %v13422_v5 = vsel %vm7186_vm6, 1.0, %v14164_v43 }
 0x85c   :  { %v13426_v36 = vadd.f32 %v7064_v11, %v6959_v49  ;;  %v7227_v40 = vmul.f32 %v13422_v5, %v13417_v7 }
 0x85e   :  { %v7228_v22 = vmul.f32 %v13429_v37, %v13426_v36  ;;  %v7239_v33 = vadd.f32 %v7238_v20, %v7227_v40 }
 0x860   :  { %v7240_v51 = vadd.f32 %v7239_v33, %v7228_v22 }
 0x861   :  { %v6943_v53 = vpop.f32.mrf.mxu2 }
 0x862   :  { %v6960_v56 = vadd.f32 %v6943_v53, %v6836_v35  ;;  %v7067_v57 = vpop.f32.mrf.mxu3  ;;  %v6822_v63 = vpop.f32.mrf.mxu1 }
 0x863   :  { %v6837_v21 = vadd.f32 %v6822_v63, %v13211_v46 }
 0x864   :  { %v13433_v38 = vadd.f32 %v7067_v57, %v6960_v56 }
 0x866   :  { %v7229_v41 = vmul.f32 %v13436_v47, %v13433_v38 }
 0x868   :  { %v7241_v62 = vadd.f32 %v7240_v51, %v7229_v41 }
 0x869   :  { %v6946_v24 = vpop.f32.mrf.mxu2 }
 0x86a   :  { %v6961_v11 = vadd.f32 %v6946_v24, %v6837_v21  ;;  %v7070_v0 = vpop.f32.mrf.mxu3 }
 0x86c   :  { %v7085_v16 = vadd.f32 %v7070_v0, %v6961_v11 }
 0x86e   :  { %v7230_v18 = vmul.f32 %v8184_v3, %v7085_v16 }
 0x870   :  { %v7242_v60 = vadd.f32 %v7241_v62, %v7230_v18 }
 0x872   :  { %v7243_v23 = vrot.slane %v7242_v60, 4 }
 0x874   :  { %v7244_v42 = vadd.f32 %v7243_v23, %v7242_v60 }
 0x876   :  { %v7245_v34 = vrot.slane %v7244_v42, 2 }
 0x878   :  { %v7246_v19 = vadd.f32 %v7245_v34, %v7244_v42 }
 0x87a   :  { %v7247_v46 = vrot.slane %v7246_v19, 1 }
 0x87c   :  { %v7248_v15 = vadd.f32 %v7247_v46, %v7246_v19 }
 0x87e   :  { %v13444_v14 = vmul.f32 0.02, %v7248_v15 }
 0x880   :  { %v7250_v61 = vsub.f32 %v13214_v29, %v13444_v14  ;;  %v7251_v31 = vsub.f32 %v13217_v54, %v13444_v14  ;;  %v7252_v43 = vsub.f32 %v13289_v39, %v13444_v14  ;;  %v7253_v17 = vsub.f32 %v13311_v32, %v13444_v14 }
 0x881   :  { %v7254_v35 = vsub.f32 %v13344_v12, %v13444_v14  ;;  %v7255_v1 = vsub.f32 %v13366_v28, %v13444_v14  ;;  %v7256_v56 = vsub.f32 %v13378_v27, %v13444_v14  ;;  %v7258_v63 = vsub.f32 %v13408_v30, %v13444_v14 }
 0x882   :  { %v7263_v6 = vmul.f32 %v13287_v52, %v7250_v61  ;;  %v7264_v49 = vmul.f32 %v13275_v48, %v7251_v31  ;;  %v7265_v53 = vmul.f32 %v13292_v8, %v7252_v43  ;;  %v7266_v4 = vmul.f32 %v13318_v26, %v7253_v17 }
 0x883   :  { %v7267_v57 = vmul.f32 %v13338_v50, %v7254_v35  ;;  %v7257_v48 = vsub.f32 %v13395_v25, %v13444_v14  ;;  %v7268_v12 = vmul.f32 %v13347_v44, %v7255_v1  ;;  %v7269_v28 = vmul.f32 %v13352_v10, %v7256_v56 }
 0x884   :  { %v7276_v59 = vmul.f32 %v7263_v6, %v7263_v6  ;;  %v7277_v2 = vmul.f32 %v7264_v49, %v7264_v49  ;;  %v7278_v52 = vmul.f32 %v7265_v53, %v7265_v53  ;;  %v7279_v8 = vmul.f32 %v7266_v4, %v7266_v4 }
 0x885   :  { %v7280_v26 = vmul.f32 %v7267_v57, %v7267_v57  ;;  %v7259_v27 = vsub.f32 %v13417_v7, %v13444_v14  ;;  %v7270_v50 = vmul.f32 %v13374_v9, %v7257_v48  ;;  %v7281_v40 = vmul.f32 %v7268_v12, %v7268_v12  ;;  %v7217_v57 = vld [vmem:[%s13516_s6] sm:$0x1] }
 0x886   :  { %v7289_v45 = vadd.f32 %v7277_v2, %v7276_v59  ;;  %v7260_v25 = vsub.f32 %v13426_v36, %v13444_v14  ;;  %v7271_v44 = vmul.f32 %v13399_v58, %v7258_v63  ;;  %v7282_v22 = vmul.f32 %v7269_v28, %v7269_v28  ;;  %v7216_v2 = vld [vmem:[%s13515_s5] sm:$0x1] }
 0x887   :  { %v7261_v24 = vsub.f32 %v13433_v38, %v13444_v14  ;;  %v7272_v10 = vmul.f32 %v13422_v5, %v7259_v27  ;;  %v7283_v33 = vmul.f32 %v7270_v50, %v7270_v50  ;;  %v7262_v11 = vsub.f32 %v7085_v16, %v13444_v14 }
 0x888   :  { %v7290_v13 = vadd.f32 %v7289_v45, %v7278_v52  ;;  %v7273_v9 = vmul.f32 %v13429_v37, %v7260_v25  ;;  %v7284_v0 = vmul.f32 %v7271_v44, %v7271_v44 }
 0x889   :  { %v7274_v62 = vmul.f32 %v13436_v47, %v7261_v24  ;;  %v7285_v18 = vmul.f32 %v7272_v10, %v7272_v10  ;;  %v7275_v58 = vmul.f32 %v8184_v3, %v7262_v11 }
 0x88a   :  { %v7291_v55 = vadd.f32 %v7290_v13, %v7279_v8  ;;  %v7286_v23 = vmul.f32 %v7273_v9, %v7273_v9 }
 0x88b   :  { %v7287_v34 = vmul.f32 %v7274_v62, %v7274_v62  ;;  %v7288_v46 = vmul.f32 %v7275_v58, %v7275_v58 }
 0x88c   :  { %v7292_v20 = vadd.f32 %v7291_v55, %v7280_v26 }
 0x88e   :  { %v7293_v21 = vadd.f32 %v7292_v20, %v7281_v40 }
 0x890   :  { %v7294_v41 = vadd.f32 %v7293_v21, %v7282_v22 }
 0x892   :  { %v7295_v51 = vadd.f32 %v7294_v41, %v7283_v33 }
 0x894   :  { %v7296_v60 = vadd.f32 %v7295_v51, %v7284_v0 }
 0x896   :  { %v7297_v42 = vadd.f32 %v7296_v60, %v7285_v18 }
 0x898   :  { %v7298_v19 = vadd.f32 %v7297_v42, %v7286_v23 }
 0x89a   :  { %v7299_v15 = vadd.f32 %v7298_v19, %v7287_v34 }
 0x89c   :  { %v7300_v5 = vadd.f32 %v7299_v15, %v7288_v46 }
 0x89e   :  { %v7301_v61 = vrot.slane %v7300_v5, 4 }
 0x8a0   :  { %v7302_v31 = vadd.f32 %v7301_v61, %v7300_v5 }
 0x8a2   :  { %v7303_v43 = vrot.slane %v7302_v31, 2 }
 0x8a4   :  { %v7304_v16 = vadd.f32 %v7303_v43, %v7302_v31 }
 0x8a6   :  { %v7305_v17 = vrot.slane %v7304_v16, 1 }
 0x8a8   :  { %v7306_v37 = vadd.f32 %v7305_v17, %v7304_v16 }
 0x8aa   :  { %v7307_v6 = vmul.f32 0.02, %v7306_v37 }
 0x8ac   :  { %v7308_v49 = vadd.f32 1e-05, %v7307_v6 }
 0x8ae   :  { %8191 = vrsqrt.f32 %v7308_v49  ;;  %vm7315_vm13 = vweird.f32 %v7308_v49 }
 0x8b4   :  { %v8192_v47 = vpop.eup %8191 }
 0x8b5   :  { %v7310_v35 = vmul.f32 %v8192_v47, %v7308_v49  ;;  %vm7316_vm12 = vweird.f32 %v8192_v47 }
 0x8b6   :  { %vm7317_vm14 = vmor %vm7315_vm13, %vm7316_vm12 }
 0x8b7   :  { %v7311_v53 = vmul.f32 %v8192_v47, %v7310_v35 }
 0x8b9   :  { %v7312_v3 = vmul.f32 0.5, %v7311_v53 }
 0x8bb   :  { %v7313_v59 = vsub.f32 1.5, %v7312_v3 }
 0x8bd   :  { %v7314_v1 = vmul.f32 %v8192_v47, %v7313_v59 }
 0x8bf   :  { %v7318_v4 = vsel %vm7317_vm14, %v8192_v47, %v7314_v1 }
 0x8c0   :  { %v7319_v56 = vmul.f32 %v7318_v4, %v7216_v2 }
 0x8c2   :  { %v7320_v52 = vmul.f32 %v7319_v56, %v13444_v14  ;;  %v7323_v45 = vperm.slane %v7319_v56, 0 }
 0x8c4   :  { %v7321_v48 = vsub.f32 %v7217_v57, %v7320_v52  ;;  %v7325_v12 = vmul.f32 %v7323_v45, %v13214_v29  ;;  %v7326_v8 = vmul.f32 %v7323_v45, %v13217_v54  ;;  %v7327_v13 = vmul.f32 %v7323_v45, %v13289_v39 }
 0x8c5   :  { %v7328_v63 = vmul.f32 %v7323_v45, %v13311_v32  ;;  %v7333_v40 = vmul.f32 %v7323_v45, %v13408_v30  ;;  %v7334_v44 = vmul.f32 %v7323_v45, %v13417_v7  ;;  %v7335_v29 = vmul.f32 %v7323_v45, %v13426_v36 }
 0x8c6   :  { %v7339_v28 = vperm.slane %v7321_v48, 0  ;;  %v7336_v39 = vmul.f32 %v7323_v45, %v13433_v38 }
 0x8c8   :  { %v7341_v26 = vadd.f32 %v7339_v28, %v7325_v12  ;;  %v7342_v55 = vadd.f32 %v7339_v28, %v7326_v8  ;;  %v7343_v27 = vadd.f32 %v7339_v28, %v7327_v13  ;;  %v7344_v50 = vadd.f32 %v7339_v28, %v7328_v63 }
 0x8c9   :  { %v7349_v54 = vadd.f32 %v7339_v28, %v7333_v40  ;;  %v7350_v32 = vadd.f32 %v7339_v28, %v7334_v44  ;;  %v7351_v21 = vadd.f32 %v7339_v28, %v7335_v29  ;;  %v7352_v24 = vadd.f32 %v7339_v28, %v7336_v39 }
 0x8ca   :  { %v7354_v20 = vmax.f32 %v7341_v26, 0.0  ;;  %v7355_v25 = vmax.f32 %v7342_v55, 0.0  ;;  %v7356_v14 = vmax.f32 %v7343_v27, 0.0  ;;  %v7357_v22 = vmax.f32 %v7344_v50, 0.0 }
 0x8cb   :  { %v7362_v10 = vmax.f32 %v7349_v54, 0.0  ;;  %v7363_v30 = vmax.f32 %v7350_v32, 0.0  ;;  %v7364_v33 = vmax.f32 %v7351_v21, 0.0  ;;  %v7365_v41 = vmax.f32 %v7352_v24, 0.0 }
 0x8cc   :  { %7367 = vst [vmem:[#allocation4] sm:$0xff] %v7354_v20 }
 0x8cd   :  { %7368 = vst [vmem:[#allocation4 + $0x8] sm:$0xff] %v7355_v25 }
 0x8ce   :  { %7369 = vst [vmem:[#allocation4 + $0x10] sm:$0xff] %v7356_v14 }
 0x8cf   :  { %7370 = vst [vmem:[#allocation4 + $0x18] sm:$0xff] %v7357_v22 }
 0x8d0   :  { %7375 = vst [vmem:[#allocation4 + $0x40] sm:$0xff] %v7362_v10 }
 0x8d1   :  { %7376 = vst [vmem:[#allocation4 + $0x48] sm:$0xff] %v7363_v30 }
 0x8d2   :  { %7377 = vst [vmem:[#allocation4 + $0x50] sm:$0xff] %v7364_v33 }
 0x8d3   :  { %v7380_v11 = vld [vmem:[#allocation4] ss:$2 sm:$0x3]  ;;  %v7382_v7 = vld [vmem:[#allocation4 + $0x1] ss:$2 sm:$0x3] }
 0x8d4   :  { %v7384_v9 = vld [vmem:[#allocation4 + $0x8] ss:$2 sm:$0x3]  ;;  %v7387_v36 = vmax.f32 %v7380_v11, %v7382_v7  ;;  %v7386_v0 = vld [vmem:[#allocation4 + $0x9] ss:$2 sm:$0x3] }
 0x8d5   :  { %7378 = vst [vmem:[#allocation4 + $0x58] sm:$0xff] %v7365_v41  ;;  %v7388_v38 = vmax.f32 %v7384_v9, %v7386_v0  ;;  %v7392_v51 = vld [vmem:[#allocation4 + $0x10] ss:$2 sm:$0x3] }
 0x8d6   :  { %v7394_v62 = vld [vmem:[#allocation4 + $0x11] ss:$2 sm:$0x3]  ;;  %v7396_v60 = vld [vmem:[#allocation4 + $0x18] ss:$2 sm:$0x3] }
 0x8d7   :  { %v7389_v18 = vmax.f32 %v7387_v36, %v7388_v38  ;;  %v7398_v58 = vld [vmem:[#allocation4 + $0x19] ss:$2 sm:$0x3]  ;;  %v7399_v23 = vmax.f32 %v7392_v51, %v7394_v62  ;;  %v7404_v34 = vld [vmem:[#allocation4 + $0x40] ss:$2 sm:$0x3] }
 0x8d8   :  { %v7400_v42 = vmax.f32 %v7396_v60, %v7398_v58  ;;  %v7406_v46 = vld [vmem:[#allocation4 + $0x41] ss:$2 sm:$0x3]  ;;  %v7408_v15 = vld [vmem:[#allocation4 + $0x48] ss:$2 sm:$0x3] }
 0x8d9   :  { %7390 = vst [vmem:[%s13517_s7] sm:$0x3] %v7389_v18  ;;  %v7410_v5 = vld [vmem:[#allocation4 + $0x49] ss:$2 sm:$0x3]  ;;  %v7411_v61 = vmax.f32 %v7404_v34, %v7406_v46 }
 0x8da   :  { %v7401_v19 = vmax.f32 %v7399_v23, %v7400_v42  ;;  %v7416_v31 = vld [vmem:[#allocation4 + $0x50] ss:$2 sm:$0x3]  ;;  %v7412_v43 = vmax.f32 %v7408_v15, %v7410_v5  ;;  %v7418_v16 = vld [vmem:[#allocation4 + $0x51] ss:$2 sm:$0x3] }
 0x8db   :  { %v7423_v6 = vmax.f32 %v7416_v31, %v7418_v16 }
 0x8dc   :  { %7402 = vst [vmem:[%s13517_s7 + $0x2] sm:$0x3] %v7401_v19  ;;  %v7420_v17 = vld [vmem:[#allocation4 + $0x58] ss:$2 sm:$0x3]  ;;  %v7413_v49 = vmax.f32 %v7411_v61, %v7412_v43 }
 0x8dd   :  { %v7422_v37 = vld [vmem:[#allocation4 + $0x59] ss:$2 sm:$0x3] }
 0x8de   :  { %v7424_v47 = vmax.f32 %v7420_v17, %v7422_v37  ;;  %7414 = vst [vmem:[%s13517_s7 + $0x4] sm:$0x3] %v7413_v49 }
 0x8e0   :  { %v7425_v35 = vmax.f32 %v7423_v6, %v7424_v47 }
 0x8e2   :  { %7426 = vst [vmem:[%s13517_s7 + $0x6] sm:$0x3] %v7425_v35 }

</bundles_post_ra>
